<compile_context>
chip_gen: v7x
topology: tpu7x:2x2x1
jax: 0.10.0
libtpu: 0.0.40
codegen_flags: <defaults>
</compile_context>

<pallas_src>
import jax
import jax.numpy as jnp
from jax import lax
from jax.experimental import pallas as pl
from jax.experimental.pallas import tpu as pltpu

NEG_SLOPE = 0.1    # nn.LeakyReLU(negative_slope=0.1)
BN_EPS = 1e-5      # nn.BatchNorm2d default eps


# ---------------------------------------------------------------------------
# VMEM budgeting helpers
# ---------------------------------------------------------------------------
def _vmem_budget_bytes():
    """~75% of physical VMEM (96 MiB on v5e/v6e, 48 MiB on v7x); safe fallback."""
    try:
        return int(pltpu.get_tpu_info().vmem_capacity_bytes) * 3 // 4
    except Exception:
        return 48 * 1024 * 1024


def _pick_row_tile(*, Ho, Wo, H, W, Hp, Wp, Cin, Cout, Cout_sc, K,
                   x_bytes, out_bytes, vmem_budget):
    """Largest divisor of Ho whose estimated VMEM working set fits the budget."""
    fixed = (Hp * Wp * Cin * 2                 # activated padded image scratch (bf16)
             + 2 * H * W * Cin * x_bytes       # input block (double-buffered)
             + 2 * K * K * Cin * Cout * 2      # conv weight (worst case 2 buffers)
             + 2 * Cin * Cout_sc * 2)          # shortcut weight
    for th in range(Ho, 0, -1):
        if Ho % th:
            continue
        m = th * Wo
        per = (m * K * K * Cin * 2                       # im2col lhs (bf16)
               + 2 * m * Cout * 4                        # f32 accumulator + slack
               + 2 * m * (Cout * out_bytes + Cout * 2 + Cout_sc * 2))
        if fixed + per <= int(vmem_budget * 0.8):
            return th
    return 1


# ---------------------------------------------------------------------------
# Fused conv kernel:
#   optional per-channel affine + LeakyReLU on the input (folded BatchNorm),
#   KxK conv (stride, zero padding handled in VMEM),
#   optional fused 1x1 shortcut conv, optional fused residual add,
#   optional per-tile sum / sum^2 side outputs for the next BatchNorm.
# ---------------------------------------------------------------------------
def _make_fused_conv_kernel(*, K, stride, pad, H, W, TH, Wo, Cin, Cout,
                            apply_act, has_shortcut, Cout_sc, has_residual,
                            emit_stats, concat_taps, deinterleave):
    WIN = (TH - 1) * stride + K          # padded input rows needed per row tile
    Hp, Wp = H + 2 * pad, W + 2 * pad
    n_even = (Wp + 1) // 2               # even padded-column count (de-interleave)

    def col_pos(c):
        # position of padded column c after even/odd de-interleave (static int)
        return c // 2 if c % 2 == 0 else n_even + c // 2

    def kernel(*refs):
        refs = list(refs)
        x_ref = refs.pop(0)                                   # (1, H, W, Cin)
        w_ref = refs.pop(0)                                   # conv weight (bf16)
        scale_ref = refs.pop(0) if apply_act else None        # (1, 1, Cin) f32
        bias_ref = refs.pop(0) if apply_act else None         # (1, 1, Cin) f32
        wsc_ref = refs.pop(0) if has_shortcut else None       # (Cin, Cout_sc) bf16
        res_ref = refs.pop(0) if has_residual else None       # (1, TH*Wo, Cout)
        o_ref = refs.pop(0)                                   # (1, TH*Wo, Cout)
        sc_ref = refs.pop(0) if has_shortcut else None        # (1, TH*Wo, Cout_sc)
        stat_ref = refs.pop(0) if emit_stats else None        # (1, 1, 2, Cout) f32
        pad_ref = refs.pop(0)                                 # (Hp, Wp, Cin) bf16

        r = pl.program_id(1)

        # Build the (optionally activated) zero-padded bf16 input image once per
        # batch element; it stays resident in VMEM across the row tiles.
        @pl.when(r == 0)
        def _():
            y = x_ref[0].astype(jnp.float32)          # BN / LeakyReLU math in f32
            if apply_act:
                y = y * scale_ref[...] + bias_ref[...]
                y = jnp.maximum(y, NEG_SLOPE * y)     # LeakyReLU(0.1)
            if not deinterleave:
                if pad > 0:   # zero only the pad border; interior overwritten below
                    zrow = jnp.zeros((pad, Wp, Cin), pad_ref.dtype)
                    zcol = jnp.zeros((Hp, pad, Cin), pad_ref.dtype)
                    pad_ref[0:pad, :, :] = zrow
                    pad_ref[pad + H:Hp, :, :] = zrow
                    pad_ref[:, 0:pad, :] = zcol
                    pad_ref[:, pad + W:Wp, :] = zcol
                pad_ref[pad:pad + H, pad:pad + W, :] = y.astype(pad_ref.dtype)
            else:
                # stride-2: de-interleave even/odd padded columns ONCE so every
                # im2col tap below becomes a contiguous (stride-1) column slice.
                pad_ref[...] = jnp.zeros_like(pad_ref)
                for w0 in (pad % 2, 1 - (pad % 2)):
                    cnt = len(range(w0, W, 2))
                    if cnt:
                        start = col_pos(w0 + pad)
                        pad_ref[pad:pad + H, start:start + cnt, :] = (
                            y[:, w0::2, :].astype(pad_ref.dtype))

        base = r * (TH * stride)
        if (TH * stride) % 8 == 0:
            base = pl.multiple_of(base, 8)
        ywin = pad_ref[pl.ds(base, WIN), :, :]                # (WIN, Wp, Cin) bf16

        def tap(dy, col, col_is_pos):
            if col_is_pos:        # de-interleaved: contiguous column slice
                p = lax.slice(ywin, (dy, col, 0),
                              (dy + (TH - 1) * stride + 1, col + Wo, Cin),
                              (stride, 1, 1))
            else:
                p = lax.slice(ywin, (dy, col, 0),
                              (dy + (TH - 1) * stride + 1,
                               col + (Wo - 1) * stride + 1, Cin),
                              (stride, stride, 1))
            return p.reshape(TH * Wo, Cin)                    # bf16

        def conv_tap(dy, dx):
            return tap(dy, col_pos(dx) if deinterleave else dx, deinterleave)

        # bf16 MXU operands, f32 accumulation.
        if concat_taps:
            # im2col: K*K taps concatenated along the (lane-aligned) contraction dim.
            cols = [conv_tap(dy, dx) for dy in range(K) for dx in range(K)]
            lhs = cols[0] if len(cols) == 1 else jnp.concatenate(cols, axis=1)
            acc = jnp.dot(lhs, w_ref[...], preferred_element_type=jnp.float32)
        else:
            # Lane-misaligned Cin: per-tap accumulated matmuls avoid the
            # minor-axis concat relayout.
            acc = jnp.zeros((TH * Wo, Cout), jnp.float32)
            for dy in range(K):
                for dx in range(K):
                    acc = acc + jnp.dot(conv_tap(dy, dx), w_ref[dy * K + dx],
                                        preferred_element_type=jnp.float32)

        out = acc
        if has_residual:
            out = out + res_ref[0].astype(jnp.float32)

        if emit_stats:    # partial sums for the following BatchNorm's batch stats
            stat_ref[0, 0, 0:1, :] = jnp.sum(out, axis=0, keepdims=True)
            stat_ref[0, 0, 1:2, :] = jnp.sum(out * out, axis=0, keepdims=True)

        o_ref[0] = out.astype(o_ref.dtype)

        if has_shortcut:  # fused 1x1/stride shortcut conv on the same input
            p = tap(pad, col_pos(pad) if deinterleave else pad, deinterleave)
            sc = jnp.dot(p, wsc_ref[...], preferred_element_type=jnp.float32)
            sc_ref[0] = sc.astype(sc_ref.dtype)

    return kernel


def fused_conv(x, w, *, stride, padding, in_scale=None, in_bias=None,
               shortcut_w=None, residual=None, emit_stats=False,
               out_dtype=jnp.float32, row_tile=None):
    """Conv2d (PyTorch OIHW weights, no bias) over an NHWC input with optional fused
    input affine+LeakyReLU (folded BatchNorm), fused 1x1 shortcut conv, fused
    residual add and sum/sum^2 side outputs.  Outputs are channels-minor
    (N, Ho*Wo, Cout).  MXU operands are bf16, accumulation f32."""
    N, H, W, Cin = x.shape
    Cout, _, K, _ = w.shape
    Ho = (H + 2 * padding - K) // stride + 1
    Wo = (W + 2 * padding - K) // stride + 1
    Hp, Wp = H + 2 * padding, W + 2 * padding

    apply_act = in_scale is not None
    has_sc = shortcut_w is not None
    has_res = residual is not None
    Cout_sc = shortcut_w.shape[0] if has_sc else 0

    concat_taps = (Cin % 128 == 0)       # lane-aligned concat vs per-tap matmuls
    deinterleave = (stride == 2)         # column de-interleave for stride-2 blocks

    vmem_budget = _vmem_budget_bytes()
    if row_tile is None:
        TH = _pick_row_tile(Ho=Ho, Wo=Wo, H=H, W=W, Hp=Hp, Wp=Wp, Cin=Cin,
                            Cout=Cout, Cout_sc=Cout_sc, K=K,
                            x_bytes=x.dtype.itemsize,
                            out_bytes=jnp.dtype(out_dtype).itemsize,
                            vmem_budget=vmem_budget)
    else:
        TH = row_tile if (Ho % row_tile == 0 and Ho >= row_tile) else Ho
    RT = Ho // TH

    # PyTorch OIHW -> (K, K, Cin, Cout), bf16 MXU operand.
    w_hwio = jnp.transpose(w, (2, 3, 1, 0)).astype(jnp.bfloat16)
    w_arg = (w_hwio.reshape(K * K * Cin, Cout) if concat_taps
             else w_hwio.reshape(K * K, Cin, Cout))

    args = [x, w_arg]
    if apply_act:
        args += [in_scale.reshape(1, 1, Cin).astype(jnp.float32),
                 in_bias.reshape(1, 1, Cin).astype(jnp.float32)]
    if has_sc:
        args.append(jnp.transpose(shortcut_w, (2, 3, 1, 0))
                    .reshape(Cin, Cout_sc).astype(jnp.bfloat16))
    if has_res:
        args.append(residual)

    out_shapes = [jax.ShapeDtypeStruct((N, Ho * Wo, Cout), out_dtype)]
    if has_sc:
        out_shapes.append(jax.ShapeDtypeStruct((N, Ho * Wo, Cout_sc), jnp.bfloat16))
    if emit_stats:
        out_shapes.append(jax.ShapeDtypeStruct((N, RT, 2, Cout), jnp.float32))

    kernel = _make_fused_conv_kernel(
        K=K, stride=stride, pad=padding, H=H, W=W, TH=TH, Wo=Wo, Cin=Cin,
        Cout=Cout, apply_act=apply_act, has_shortcut=has_sc, Cout_sc=Cout_sc,
        has_residual=has_res, emit_stats=emit_stats, concat_taps=concat_taps,
        deinterleave=deinterleave)

    def call(single_buffer_weights):
        # Constant-index weights need no double buffer (halves their VMEM).
        wmode = dict(pipeline_mode=pl.Buffered(1)) if single_buffer_weights else {}
        in_specs = [pl.BlockSpec((1, H, W, Cin), lambda n, r: (n, 0, 0, 0))]
        if concat_taps:
            in_specs.append(pl.BlockSpec((K * K * Cin, Cout),
                                         lambda n, r: (0, 0), **wmode))
        else:
            in_specs.append(pl.BlockSpec((K * K, Cin, Cout),
                                         lambda n, r: (0, 0, 0), **wmode))
        if apply_act:
            in_specs += [pl.BlockSpec((1, 1, Cin), lambda n, r: (0, 0, 0)),
                         pl.BlockSpec((1, 1, Cin), lambda n, r: (0, 0, 0))]
        if has_sc:
            in_specs.append(pl.BlockSpec((Cin, Cout_sc),
                                         lambda n, r: (0, 0), **wmode))
        if has_res:
            in_specs.append(pl.BlockSpec((1, TH * Wo, Cout), lambda n, r: (n, r, 0)))

        out_specs = [pl.BlockSpec((1, TH * Wo, Cout), lambda n, r: (n, r, 0))]
        if has_sc:
            out_specs.append(pl.BlockSpec((1, TH * Wo, Cout_sc),
                                          lambda n, r: (n, r, 0)))
        if emit_stats:
            out_specs.append(pl.BlockSpec((1, 1, 2, Cout),
                                          lambda n, r: (n, r, 0, 0)))

        return pl.pallas_call(
            kernel,
            out_shape=tuple(out_shapes),
            grid=(N, RT),
            in_specs=in_specs,
            out_specs=tuple(out_specs),
            scratch_shapes=[pltpu.VMEM((Hp, Wp, Cin), jnp.bfloat16)],
            compiler_params=pltpu.CompilerParams(
                dimension_semantics=("parallel", "arbitrary"),
                vmem_limit_bytes=int(vmem_budget)),
        )(*args)

    try:
        outs = call(True)
    except Exception:
        # pipeline_mode=pl.Buffered(1) unsupported on this jax version:
        # fall back to default double-buffered weights (correctness unaffected).
        outs = call(False)

    if not isinstance(outs, (tuple, list)):
        outs = (outs,)
    conv_out = outs[0]
    i = 1
    sc_out = stats = None
    if has_sc:
        sc_out = outs[i]; i += 1
    if emit_stats:
        stats = outs[i]; i += 1
    return conv_out, sc_out, stats, (Ho, Wo)


# ---------------------------------------------------------------------------
# BasicBlock forward (mirrors the PyTorch control flow exactly)
# ---------------------------------------------------------------------------
def basic_block_forward(x_nchw, params, *, stride, drop_rate=0.0,
                        activate_before_residual=False, bn1_stats=None,
                        return_stats=False):
    x = jnp.transpose(x_nchw, (0, 2, 3, 1)).astype(jnp.float32)   # NCHW -> NHWC
    N, H, W, Cin = x.shape
    Cout = params["conv1_w"].shape[0]
    equal_in_out = (Cin == Cout)

    # conv1 (and the 1x1 shortcut conv) consume the BN1+LeakyReLU-activated x,
    # except in the (not equalInOut, not activate_before_residual) branch where
    # the PyTorch module feeds the raw x to both (its activated `out` is unused).
    act_conv1_input = equal_in_out or activate_before_residual

    scale1 = bias1 = None
    if act_conv1_input:
        cnt1 = N * H * W
        if bn1_stats is not None:
            s1, s2, cnt1 = bn1_stats        # chained from the previous block
        else:
            # One fused XLA pass over x.  TODO(synk): chain from the previous
            # block's emitted stats (return_stats=True) to remove this pass.
            s1 = jnp.sum(x, axis=(0, 1, 2))
            s2 = jnp.sum(x * x, axis=(0, 1, 2))
        mean1 = s1 / cnt1
        var1 = s2 / cnt1 - mean1 * mean1
        scale1 = params["bn1_gamma"] * lax.rsqrt(var1 + BN_EPS)
        bias1 = params["bn1_beta"] - mean1 * scale1

    # Call 1: BN1+LeakyReLU prologue -> conv1 (+ fused shortcut conv, + BN2 sums).
    h, sc, stats, (Ho, Wo) = fused_conv(
        x, params["conv1_w"], stride=stride, padding=1,
        in_scale=scale1, in_bias=bias1,
        shortcut_w=None if equal_in_out else params["shortcut_w"],
        emit_stats=True, out_dtype=jnp.bfloat16)

    # BN2 batch statistics from conv1's in-kernel partial sums (no extra HBM pass).
    cnt2 = N * Ho * Wo
    st = jnp.sum(stats, axis=(0, 1))          # (2, Cout)
    mean2 = st[0] / cnt2
    var2 = st[1] / cnt2 - mean2 * mean2
    scale2 = params["bn2_gamma"] * lax.rsqrt(var2 + BN_EPS)
    bias2 = params["bn2_beta"] - mean2 * scale2

    if drop_rate > 0:
        # TODO(synk): F.dropout between relu2 and conv2 not implemented (module default dropRate=0.0 skips it).
        pass

    # Residual in the flattened (N, Ho*Wo, Cout) layout (free reshapes); the
    # shortcut-conv output is already bf16 from call 1.
    residual = x.reshape(N, H * W, Cin) if equal_in_out else sc

    # Call 2: BN2+LeakyReLU prologue -> conv2 -> + residual (+ optional stats
    # of the block output for the next block's BN1).
    y, _, stats2, _ = fused_conv(
        h.reshape(N, Ho, Wo, Cout),            # free: splits the fused spatial dim
        params["conv2_w"], stride=1, padding=1,
        in_scale=scale2, in_bias=bias2,
        residual=residual, emit_stats=return_stats, out_dtype=jnp.float32)

    y = jnp.transpose(y.reshape(N, Ho, Wo, Cout), (0, 3, 1, 2))   # back to NCHW
    if return_stats:
        st2 = jnp.sum(stats2, axis=(0, 1))
        return y, (st2[0], st2[1], N * Ho * Wo)
    return y


# ---------------------------------------------------------------------------
# Pure-JAX reference (correctness check only)
# ---------------------------------------------------------------------------
def _ref_conv(x, w, stride, padding):
    w_hwio = jnp.transpose(w, (2, 3, 1, 0))
    return lax.conv_general_dilated(
        x, w_hwio, (stride, stride), [(padding, padding), (padding, padding)],
        dimension_numbers=("NHWC", "HWIO", "NHWC"))


def _ref_bn_lrelu(x, gamma, beta):
    mean = jnp.mean(x, axis=(0, 1, 2))
    var = jnp.mean((x - mean) ** 2, axis=(0, 1, 2))
    y = (x - mean) * lax.rsqrt(var + BN_EPS) * gamma + beta
    return jnp.where(y >= 0, y, NEG_SLOPE * y)


def basic_block_reference(x_nchw, params, *, stride, activate_before_residual=False):
    x = jnp.transpose(x_nchw, (0, 2, 3, 1))
    in_planes = x.shape[-1]
    out_planes = params["conv1_w"].shape[0]
    equal_in_out = in_planes == out_planes
    if (not equal_in_out) and activate_before_residual:
        x = _ref_bn_lrelu(x, params["bn1_gamma"], params["bn1_beta"])
        out = x
    else:
        out = _ref_bn_lrelu(x, params["bn1_gamma"], params["bn1_beta"])
    out = _ref_conv(out if equal_in_out else x, params["conv1_w"], stride, 1)
    out = _ref_bn_lrelu(out, params["bn2_gamma"], params["bn2_beta"])
    out = _ref_conv(out, params["conv2_w"], 1, 1)
    shortcut = x if equal_in_out else _ref_conv(x, params["shortcut_w"], stride, 0)
    return jnp.transpose(shortcut + out, (0, 3, 1, 2))


# ---------------------------------------------------------------------------
# Deterministic parameter init + driver
# ---------------------------------------------------------------------------
def init_params(key, in_planes, out_planes):
    ks = jax.random.split(key, 6)

    def conv_init(k, cout, cin, ksz):
        fan = cin * ksz * ksz
        return (jax.random.normal(k, (cout, cin, ksz, ksz), jnp.float32)
                * jnp.sqrt(2.0 / fan))

    params = {
        "bn1_gamma": 1.0 + 0.1 * jax.random.normal(ks[0], (in_planes,), jnp.float32),
        "bn1_beta": 0.1 * jax.random.normal(ks[1], (in_planes,), jnp.float32),
        "conv1_w": conv_init(ks[2], out_planes, in_planes, 3),
        "bn2_gamma": 1.0 + 0.1 * jax.random.normal(ks[3], (out_planes,), jnp.float32),
        "bn2_beta": 0.1 * jax.random.normal(ks[4], (out_planes,), jnp.float32),
        "conv2_w": conv_init(ks[5], out_planes, out_planes, 3),
    }
    if in_planes != out_planes:
        params["shortcut_w"] = conv_init(
            jax.random.fold_in(key, 99), out_planes, in_planes, 1)
    return params


if __name__ == "__main__":
    key = jax.random.PRNGKey(0)

    # (in_planes, out_planes, stride, activate_before_residual)
    configs = [
        (4, 8, 1, True),       # first block of a group: pre-activated shortcut conv
        (8, 16, 2, False),     # downsampling block: stride-2 conv + stride-2 shortcut
        (128, 128, 1, False),  # equal in/out: identity residual, lane-aligned im2col
    ]
    for idx, (cin, cout, stride, abr) in enumerate(configs):
        k_x, k_p = jax.random.split(jax.random.fold_in(key, idx))
        x = jax.random.normal(k_x, (2, cin, 16, 16), jnp.float32)   # NCHW
        params = init_params(k_p, cin, cout)

        y = basic_block_forward(x, params, stride=stride, drop_rate=0.0,
                                activate_before_residual=abr)
        y = jax.block_until_ready(y)

        y_ref = jax.block_until_ready(
            basic_block_reference(x, params, stride=stride,
                                  activate_before_residual=abr))

        ho = 16 // stride
        assert y.shape == (2, cout, ho, ho), y.shape
        # bf16 MXU operands / bf16 inter-call activations: bf16-level tolerance.
        assert jnp.allclose(y, y_ref, atol=1e-1, rtol=1e-1), \
            (idx, float(jnp.max(jnp.abs(y - y_ref))))

    print("KERNEL_OK")
</pallas_src>

<mosaic_0001>
module attributes {stable_mosaic.version = 11 : i64} {
  func.func @kernel(%arg0: i32, %arg1: i32, %arg2: memref<1x16x16x4xf32, #tpu.memory_space<vmem>>, %arg3: memref<9x4x8xbf16, #tpu.memory_space<vmem>>, %arg4: memref<1x1x4xf32, #tpu.memory_space<vmem>>, %arg5: memref<1x1x4xf32, #tpu.memory_space<vmem>>, %arg6: memref<4x8xbf16, #tpu.memory_space<vmem>>, %arg7: memref<1x256x8xbf16, #tpu.memory_space<vmem>>, %arg8: memref<1x256x8xbf16, #tpu.memory_space<vmem>>, %arg9: memref<1x1x2x8xf32, #tpu.memory_space<vmem>>, %arg10: memref<18x18x4xbf16, #tpu.memory_space<vmem>>) attributes {dimension_semantics = [#tpu.dimension_semantics<parallel>, #tpu.dimension_semantics<arbitrary>], iteration_bounds = array<i64: 2, 1>, scalar_prefetch = 0 : i64, scratch_operands = 1 : i64, tpu.core_type = #tpu.core_type<tc>, window_params = [{transform_indices = @transform_0, window_bounds = array<i64: 1, 16, 16, 4>}, {pipeline_mode = #tpu.pipeline_mode<synchronous>, transform_indices = @transform_1, window_bounds = array<i64: 9, 4, 8>}, {pipeline_mode = #tpu.pipeline_mode<synchronous>, transform_indices = @transform_2, window_bounds = array<i64: 1, 1, 4>}, {pipeline_mode = #tpu.pipeline_mode<synchronous>, transform_indices = @transform_3, window_bounds = array<i64: 1, 1, 4>}, {pipeline_mode = #tpu.pipeline_mode<synchronous>, transform_indices = @transform_4, window_bounds = array<i64: 4, 8>}, {transform_indices = @transform_5, window_bounds = array<i64: 1, 256, 8>}, {transform_indices = @transform_6, window_bounds = array<i64: 1, 256, 8>}, {transform_indices = @transform_7, window_bounds = array<i64: 1, 1, 2, 8>}]} {
    %c0_i32 = arith.constant 0 : i32
    %0 = arith.cmpi eq, %arg1, %c0_i32 : i32
    %1 = arith.extui %0 : i1 to i32
    %c0_i32_0 = arith.constant 0 : i32
    %2 = arith.cmpi ne, %1, %c0_i32_0 : i32
    scf.if %2 {
      %c0_49 = arith.constant 0 : index
      %c0_50 = arith.constant 0 : index
      %c0_51 = arith.constant 0 : index
      %c0_52 = arith.constant 0 : index
      %85 = vector.load %arg2[%c0_49, %c0_50, %c0_51, %c0_52] : memref<1x16x16x4xf32, #tpu.memory_space<vmem>>, vector<1x16x16x4xf32>
      %86 = vector.shape_cast %85 : vector<1x16x16x4xf32> to vector<16x16x4xf32>
      %c0_53 = arith.constant 0 : index
      %c0_54 = arith.constant 0 : index
      %c0_55 = arith.constant 0 : index
      %87 = vector.load %arg4[%c0_53, %c0_54, %c0_55] : memref<1x1x4xf32, #tpu.memory_space<vmem>>, vector<1x1x4xf32>
      %88 = vector.broadcast %87 : vector<1x1x4xf32> to vector<16x16x4xf32>
      %89 = arith.mulf %86, %88 : vector<16x16x4xf32>
      %c0_56 = arith.constant 0 : index
      %c0_57 = arith.constant 0 : index
      %c0_58 = arith.constant 0 : index
      %90 = vector.load %arg5[%c0_56, %c0_57, %c0_58] : memref<1x1x4xf32, #tpu.memory_space<vmem>>, vector<1x1x4xf32>
      %91 = vector.broadcast %90 : vector<1x1x4xf32> to vector<16x16x4xf32>
      %92 = arith.addf %89, %91 : vector<16x16x4xf32>
      %cst_59 = arith.constant 1.000000e-01 : f32
      %93 = vector.broadcast %cst_59 : f32 to vector<16x16x4xf32>
      %94 = arith.mulf %93, %92 : vector<16x16x4xf32>
      %95 = arith.maximumf %92, %94 : vector<16x16x4xf32>
      %cst_60 = arith.constant 0.000000e+00 : bf16
      %96 = vector.broadcast %cst_60 : bf16 to vector<1x18x4xbf16>
      %cst_61 = arith.constant 0.000000e+00 : bf16
      %97 = vector.broadcast %cst_61 : bf16 to vector<18x1x4xbf16>
      %c0_62 = arith.constant 0 : index
      %c0_63 = arith.constant 0 : index
      %c0_64 = arith.constant 0 : index
      %98 = vector.load %arg10[%c0_62, %c0_63, %c0_64] : memref<18x18x4xbf16, #tpu.memory_space<vmem>>, vector<1x18x4xbf16>
      tpu.vector_store %arg10[%c0_62, %c0_63, %c0_64], %96 {strides = array<i32>} : memref<18x18x4xbf16, #tpu.memory_space<vmem>>, vector<1x18x4xbf16>,
      %c17 = arith.constant 17 : index
      %c0_65 = arith.constant 0 : index
      %c0_66 = arith.constant 0 : index
      %99 = vector.load %arg10[%c17, %c0_65, %c0_66] : memref<18x18x4xbf16, #tpu.memory_space<vmem>>, vector<1x18x4xbf16>
      tpu.vector_store %arg10[%c17, %c0_65, %c0_66], %96 {strides = array<i32>} : memref<18x18x4xbf16, #tpu.memory_space<vmem>>, vector<1x18x4xbf16>,
      %c0_67 = arith.constant 0 : index
      %c0_68 = arith.constant 0 : index
      %c0_69 = arith.constant 0 : index
      %100 = vector.load %arg10[%c0_67, %c0_68, %c0_69] : memref<18x18x4xbf16, #tpu.memory_space<vmem>>, vector<18x1x4xbf16>
      tpu.vector_store %arg10[%c0_67, %c0_68, %c0_69], %97 {strides = array<i32>} : memref<18x18x4xbf16, #tpu.memory_space<vmem>>, vector<18x1x4xbf16>,
      %c0_70 = arith.constant 0 : index
      %c17_71 = arith.constant 17 : index
      %c0_72 = arith.constant 0 : index
      %101 = vector.load %arg10[%c0_70, %c17_71, %c0_72] : memref<18x18x4xbf16, #tpu.memory_space<vmem>>, vector<18x1x4xbf16>
      tpu.vector_store %arg10[%c0_70, %c17_71, %c0_72], %97 {strides = array<i32>} : memref<18x18x4xbf16, #tpu.memory_space<vmem>>, vector<18x1x4xbf16>,
      %102 = arith.truncf %95 : vector<16x16x4xf32> to vector<16x16x4xbf16>
      %c1_73 = arith.constant 1 : index
      %c1_74 = arith.constant 1 : index
      %c0_75 = arith.constant 0 : index
      %103 = vector.load %arg10[%c1_73, %c1_74, %c0_75] : memref<18x18x4xbf16, #tpu.memory_space<vmem>>, vector<16x16x4xbf16>
      tpu.vector_store %arg10[%c1_73, %c1_74, %c0_75], %102 {strides = array<i32>} : memref<18x18x4xbf16, #tpu.memory_space<vmem>>, vector<16x16x4xbf16>,
    } else {
    }
    %c16_i32 = arith.constant 16 : i32
    %3 = arith.muli %arg1, %c16_i32 : i32
    %4 = tpu.assume_multiple %3, 8 : i32
    %5 = arith.index_cast %4 : i32 to index
    %c0 = arith.constant 0 : index
    %c0_1 = arith.constant 0 : index
    %6 = vector.load %arg10[%5, %c0, %c0_1] : memref<18x18x4xbf16, #tpu.memory_space<vmem>>, vector<18x18x4xbf16>
    %cst = arith.constant 0.000000e+00 : f32
    %7 = vector.broadcast %cst : f32 to vector<256x8xf32>
    %8 = vector.extract_strided_slice %6 {offsets = [0, 0, 0], sizes = [16, 16, 4], strides = [1, 1, 1]} : vector<18x18x4xbf16> to vector<16x16x4xbf16>
    %9 = vector.shape_cast %8 : vector<16x16x4xbf16> to vector<256x4xbf16>
    %c0_2 = arith.constant 0 : index
    %c0_3 = arith.constant 0 : index
    %c0_4 = arith.constant 0 : index
    %10 = vector.load %arg3[%c0_2, %c0_3, %c0_4] : memref<9x4x8xbf16, #tpu.memory_space<vmem>>, vector<1x4x8xbf16>
    %11 = vector.shape_cast %10 : vector<1x4x8xbf16> to vector<4x8xbf16>
    %cst_5 = arith.constant dense<0.000000e+00> : vector<256x8xf32>
    %12 = tpu.matmul %9, %11, %cst_5 {dimension_numbers = #tpu.dot_dimension_numbers<[1], [0], [0], [1], [0, 0, 1, 1], [], []>} : vector<256x4xbf16>, vector<4x8xbf16>, vector<256x8xf32> -> vector<256x8xf32>
    %13 = arith.addf %7, %12 : vector<256x8xf32>
    %14 = vector.extract_strided_slice %6 {offsets = [0, 1, 0], sizes = [16, 16, 4], strides = [1, 1, 1]} : vector<18x18x4xbf16> to vector<16x16x4xbf16>
    %15 = vector.shape_cast %14 : vector<16x16x4xbf16> to vector<256x4xbf16>
    %c1 = arith.constant 1 : index
    %c0_6 = arith.constant 0 : index
    %c0_7 = arith.constant 0 : index
    %16 = vector.load %arg3[%c1, %c0_6, %c0_7] : memref<9x4x8xbf16, #tpu.memory_space<vmem>>, vector<1x4x8xbf16>
    %17 = vector.shape_cast %16 : vector<1x4x8xbf16> to vector<4x8xbf16>
    %cst_8 = arith.constant dense<0.000000e+00> : vector<256x8xf32>
    %18 = tpu.matmul %15, %17, %cst_8 {dimension_numbers = #tpu.dot_dimension_numbers<[1], [0], [0], [1], [0, 0, 1, 1], [], []>} : vector<256x4xbf16>, vector<4x8xbf16>, vector<256x8xf32> -> vector<256x8xf32>
    %19 = arith.addf %13, %18 : vector<256x8xf32>
    %20 = vector.extract_strided_slice %6 {offsets = [0, 2, 0], sizes = [16, 16, 4], strides = [1, 1, 1]} : vector<18x18x4xbf16> to vector<16x16x4xbf16>
    %21 = vector.shape_cast %20 : vector<16x16x4xbf16> to vector<256x4xbf16>
    %c2 = arith.constant 2 : index
    %c0_9 = arith.constant 0 : index
    %c0_10 = arith.constant 0 : index
    %22 = vector.load %arg3[%c2, %c0_9, %c0_10] : memref<9x4x8xbf16, #tpu.memory_space<vmem>>, vector<1x4x8xbf16>
    %23 = vector.shape_cast %22 : vector<1x4x8xbf16> to vector<4x8xbf16>
    %cst_11 = arith.constant dense<0.000000e+00> : vector<256x8xf32>
    %24 = tpu.matmul %21, %23, %cst_11 {dimension_numbers = #tpu.dot_dimension_numbers<[1], [0], [0], [1], [0, 0, 1, 1], [], []>} : vector<256x4xbf16>, vector<4x8xbf16>, vector<256x8xf32> -> vector<256x8xf32>
    %25 = arith.addf %19, %24 : vector<256x8xf32>
    %26 = vector.extract_strided_slice %6 {offsets = [1, 0, 0], sizes = [16, 16, 4], strides = [1, 1, 1]} : vector<18x18x4xbf16> to vector<16x16x4xbf16>
    %27 = vector.shape_cast %26 : vector<16x16x4xbf16> to vector<256x4xbf16>
    %c3 = arith.constant 3 : index
    %c0_12 = arith.constant 0 : index
    %c0_13 = arith.constant 0 : index
    %28 = vector.load %arg3[%c3, %c0_12, %c0_13] : memref<9x4x8xbf16, #tpu.memory_space<vmem>>, vector<1x4x8xbf16>
    %29 = vector.shape_cast %28 : vector<1x4x8xbf16> to vector<4x8xbf16>
    %cst_14 = arith.constant dense<0.000000e+00> : vector<256x8xf32>
    %30 = tpu.matmul %27, %29, %cst_14 {dimension_numbers = #tpu.dot_dimension_numbers<[1], [0], [0], [1], [0, 0, 1, 1], [], []>} : vector<256x4xbf16>, vector<4x8xbf16>, vector<256x8xf32> -> vector<256x8xf32>
    %31 = arith.addf %25, %30 : vector<256x8xf32>
    %32 = vector.extract_strided_slice %6 {offsets = [1, 1, 0], sizes = [16, 16, 4], strides = [1, 1, 1]} : vector<18x18x4xbf16> to vector<16x16x4xbf16>
    %33 = vector.shape_cast %32 : vector<16x16x4xbf16> to vector<256x4xbf16>
    %c4 = arith.constant 4 : index
    %c0_15 = arith.constant 0 : index
    %c0_16 = arith.constant 0 : index
    %34 = vector.load %arg3[%c4, %c0_15, %c0_16] : memref<9x4x8xbf16, #tpu.memory_space<vmem>>, vector<1x4x8xbf16>
    %35 = vector.shape_cast %34 : vector<1x4x8xbf16> to vector<4x8xbf16>
    %cst_17 = arith.constant dense<0.000000e+00> : vector<256x8xf32>
    %36 = tpu.matmul %33, %35, %cst_17 {dimension_numbers = #tpu.dot_dimension_numbers<[1], [0], [0], [1], [0, 0, 1, 1], [], []>} : vector<256x4xbf16>, vector<4x8xbf16>, vector<256x8xf32> -> vector<256x8xf32>
    %37 = arith.addf %31, %36 : vector<256x8xf32>
    %38 = vector.extract_strided_slice %6 {offsets = [1, 2, 0], sizes = [16, 16, 4], strides = [1, 1, 1]} : vector<18x18x4xbf16> to vector<16x16x4xbf16>
    %39 = vector.shape_cast %38 : vector<16x16x4xbf16> to vector<256x4xbf16>
    %c5 = arith.constant 5 : index
    %c0_18 = arith.constant 0 : index
    %c0_19 = arith.constant 0 : index
    %40 = vector.load %arg3[%c5, %c0_18, %c0_19] : memref<9x4x8xbf16, #tpu.memory_space<vmem>>, vector<1x4x8xbf16>
    %41 = vector.shape_cast %40 : vector<1x4x8xbf16> to vector<4x8xbf16>
    %cst_20 = arith.constant dense<0.000000e+00> : vector<256x8xf32>
    %42 = tpu.matmul %39, %41, %cst_20 {dimension_numbers = #tpu.dot_dimension_numbers<[1], [0], [0], [1], [0, 0, 1, 1], [], []>} : vector<256x4xbf16>, vector<4x8xbf16>, vector<256x8xf32> -> vector<256x8xf32>
    %43 = arith.addf %37, %42 : vector<256x8xf32>
    %44 = vector.extract_strided_slice %6 {offsets = [2, 0, 0], sizes = [16, 16, 4], strides = [1, 1, 1]} : vector<18x18x4xbf16> to vector<16x16x4xbf16>
    %45 = vector.shape_cast %44 : vector<16x16x4xbf16> to vector<256x4xbf16>
    %c6 = arith.constant 6 : index
    %c0_21 = arith.constant 0 : index
    %c0_22 = arith.constant 0 : index
    %46 = vector.load %arg3[%c6, %c0_21, %c0_22] : memref<9x4x8xbf16, #tpu.memory_space<vmem>>, vector<1x4x8xbf16>
    %47 = vector.shape_cast %46 : vector<1x4x8xbf16> to vector<4x8xbf16>
    %cst_23 = arith.constant dense<0.000000e+00> : vector<256x8xf32>
    %48 = tpu.matmul %45, %47, %cst_23 {dimension_numbers = #tpu.dot_dimension_numbers<[1], [0], [0], [1], [0, 0, 1, 1], [], []>} : vector<256x4xbf16>, vector<4x8xbf16>, vector<256x8xf32> -> vector<256x8xf32>
    %49 = arith.addf %43, %48 : vector<256x8xf32>
    %50 = vector.extract_strided_slice %6 {offsets = [2, 1, 0], sizes = [16, 16, 4], strides = [1, 1, 1]} : vector<18x18x4xbf16> to vector<16x16x4xbf16>
    %51 = vector.shape_cast %50 : vector<16x16x4xbf16> to vector<256x4xbf16>
    %c7 = arith.constant 7 : index
    %c0_24 = arith.constant 0 : index
    %c0_25 = arith.constant 0 : index
    %52 = vector.load %arg3[%c7, %c0_24, %c0_25] : memref<9x4x8xbf16, #tpu.memory_space<vmem>>, vector<1x4x8xbf16>
    %53 = vector.shape_cast %52 : vector<1x4x8xbf16> to vector<4x8xbf16>
    %cst_26 = arith.constant dense<0.000000e+00> : vector<256x8xf32>
    %54 = tpu.matmul %51, %53, %cst_26 {dimension_numbers = #tpu.dot_dimension_numbers<[1], [0], [0], [1], [0, 0, 1, 1], [], []>} : vector<256x4xbf16>, vector<4x8xbf16>, vector<256x8xf32> -> vector<256x8xf32>
    %55 = arith.addf %49, %54 : vector<256x8xf32>
    %56 = vector.extract_strided_slice %6 {offsets = [2, 2, 0], sizes = [16, 16, 4], strides = [1, 1, 1]} : vector<18x18x4xbf16> to vector<16x16x4xbf16>
    %57 = vector.shape_cast %56 : vector<16x16x4xbf16> to vector<256x4xbf16>
    %c8 = arith.constant 8 : index
    %c0_27 = arith.constant 0 : index
    %c0_28 = arith.constant 0 : index
    %58 = vector.load %arg3[%c8, %c0_27, %c0_28] : memref<9x4x8xbf16, #tpu.memory_space<vmem>>, vector<1x4x8xbf16>
    %59 = vector.shape_cast %58 : vector<1x4x8xbf16> to vector<4x8xbf16>
    %cst_29 = arith.constant dense<0.000000e+00> : vector<256x8xf32>
    %60 = tpu.matmul %57, %59, %cst_29 {dimension_numbers = #tpu.dot_dimension_numbers<[1], [0], [0], [1], [0, 0, 1, 1], [], []>} : vector<256x4xbf16>, vector<4x8xbf16>, vector<256x8xf32> -> vector<256x8xf32>
    %61 = arith.addf %55, %60 : vector<256x8xf32>
    %cst_30 = arith.constant dense<0.000000e+00> : vector<8xf32>
    %62 = vector.multi_reduction <add>, %61, %cst_30 [0] : vector<256x8xf32> to vector<8xf32>
    %63 = vector.shape_cast %62 : vector<8xf32> to vector<1x8xf32>
    %c0_31 = arith.constant 0 : index
    %c0_32 = arith.constant 0 : index
    %c0_33 = arith.constant 0 : index
    %c0_34 = arith.constant 0 : index
    %64 = vector.load %arg9[%c0_31, %c0_32, %c0_33, %c0_34] : memref<1x1x2x8xf32, #tpu.memory_space<vmem>>, vector<1x1x1x8xf32>
    %65 = vector.shape_cast %64 : vector<1x1x1x8xf32> to vector<1x8xf32>
    %66 = vector.shape_cast %63 : vector<1x8xf32> to vector<1x1x1x8xf32>
    tpu.vector_store %arg9[%c0_31, %c0_32, %c0_33, %c0_34], %66 {strides = array<i32>} : memref<1x1x2x8xf32, #tpu.memory_space<vmem>>, vector<1x1x1x8xf32>,
    %67 = arith.mulf %61, %61 : vector<256x8xf32>
    %cst_35 = arith.constant dense<0.000000e+00> : vector<8xf32>
    %68 = vector.multi_reduction <add>, %67, %cst_35 [0] : vector<256x8xf32> to vector<8xf32>
    %69 = vector.shape_cast %68 : vector<8xf32> to vector<1x8xf32>
    %c0_36 = arith.constant 0 : index
    %c0_37 = arith.constant 0 : index
    %c1_38 = arith.constant 1 : index
    %c0_39 = arith.constant 0 : index
    %70 = vector.load %arg9[%c0_36, %c0_37, %c1_38, %c0_39] : memref<1x1x2x8xf32, #tpu.memory_space<vmem>>, vector<1x1x1x8xf32>
    %71 = vector.shape_cast %70 : vector<1x1x1x8xf32> to vector<1x8xf32>
    %72 = vector.shape_cast %69 : vector<1x8xf32> to vector<1x1x1x8xf32>
    tpu.vector_store %arg9[%c0_36, %c0_37, %c1_38, %c0_39], %72 {strides = array<i32>} : memref<1x1x2x8xf32, #tpu.memory_space<vmem>>, vector<1x1x1x8xf32>,
    %73 = arith.truncf %61 : vector<256x8xf32> to vector<256x8xbf16>
    %c0_40 = arith.constant 0 : index
    %c0_41 = arith.constant 0 : index
    %c0_42 = arith.constant 0 : index
    %74 = vector.load %arg7[%c0_40, %c0_41, %c0_42] : memref<1x256x8xbf16, #tpu.memory_space<vmem>>, vector<1x256x8xbf16>
    %75 = vector.shape_cast %74 : vector<1x256x8xbf16> to vector<256x8xbf16>
    %76 = vector.shape_cast %73 : vector<256x8xbf16> to vector<1x256x8xbf16>
    tpu.vector_store %arg7[%c0_40, %c0_41, %c0_42], %76 {strides = array<i32>} : memref<1x256x8xbf16, #tpu.memory_space<vmem>>, vector<1x256x8xbf16>,
    %77 = vector.extract_strided_slice %6 {offsets = [1, 1, 0], sizes = [16, 16, 4], strides = [1, 1, 1]} : vector<18x18x4xbf16> to vector<16x16x4xbf16>
    %78 = vector.shape_cast %77 : vector<16x16x4xbf16> to vector<256x4xbf16>
    %c0_43 = arith.constant 0 : index
    %c0_44 = arith.constant 0 : index
    %79 = vector.load %arg6[%c0_43, %c0_44] : memref<4x8xbf16, #tpu.memory_space<vmem>>, vector<4x8xbf16>
    %cst_45 = arith.constant dense<0.000000e+00> : vector<256x8xf32>
    %80 = tpu.matmul %78, %79, %cst_45 {dimension_numbers = #tpu.dot_dimension_numbers<[1], [0], [0], [1], [0, 0, 1, 1], [], []>} : vector<256x4xbf16>, vector<4x8xbf16>, vector<256x8xf32> -> vector<256x8xf32>
    %81 = arith.truncf %80 : vector<256x8xf32> to vector<256x8xbf16>
    %c0_46 = arith.constant 0 : index
    %c0_47 = arith.constant 0 : index
    %c0_48 = arith.constant 0 : index
    %82 = vector.load %arg8[%c0_46, %c0_47, %c0_48] : memref<1x256x8xbf16, #tpu.memory_space<vmem>>, vector<1x256x8xbf16>
    %83 = vector.shape_cast %82 : vector<1x256x8xbf16> to vector<256x8xbf16>
    %84 = vector.shape_cast %81 : vector<256x8xbf16> to vector<1x256x8xbf16>
    tpu.vector_store %arg8[%c0_46, %c0_47, %c0_48], %84 {strides = array<i32>} : memref<1x256x8xbf16, #tpu.memory_space<vmem>>, vector<1x256x8xbf16>,
    return
  }
  func.func @transform_0(%arg0: i32, %arg1: i32) -> (i32, i32, i32, i32) {
    %c0_i32 = arith.constant 0 : i32
    %c0_i32_0 = arith.constant 0 : i32
    %c0_i32_1 = arith.constant 0 : i32
    %c0_i32_2 = arith.constant 0 : i32
    return %arg0, %c0_i32, %c0_i32_0, %c0_i32_1 : i32, i32, i32, i32
  }
  func.func @transform_1(%arg0: i32, %arg1: i32) -> (i32, i32, i32) {
    %c0_i32 = arith.constant 0 : i32
    %c0_i32_0 = arith.constant 0 : i32
    %c0_i32_1 = arith.constant 0 : i32
    %c0_i32_2 = arith.constant 0 : i32
    return %c0_i32, %c0_i32_0, %c0_i32_1 : i32, i32, i32
  }
  func.func @transform_2(%arg0: i32, %arg1: i32) -> (i32, i32, i32) {
    %c0_i32 = arith.constant 0 : i32
    %c0_i32_0 = arith.constant 0 : i32
    %c0_i32_1 = arith.constant 0 : i32
    %c0_i32_2 = arith.constant 0 : i32
    return %c0_i32, %c0_i32_0, %c0_i32_1 : i32, i32, i32
  }
  func.func @transform_3(%arg0: i32, %arg1: i32) -> (i32, i32, i32) {
    %c0_i32 = arith.constant 0 : i32
    %c0_i32_0 = arith.constant 0 : i32
    %c0_i32_1 = arith.constant 0 : i32
    %c0_i32_2 = arith.constant 0 : i32
    return %c0_i32, %c0_i32_0, %c0_i32_1 : i32, i32, i32
  }
  func.func @transform_4(%arg0: i32, %arg1: i32) -> (i32, i32) {
    %c0_i32 = arith.constant 0 : i32
    %c0_i32_0 = arith.constant 0 : i32
    %c0_i32_1 = arith.constant 0 : i32
    return %c0_i32, %c0_i32_0 : i32, i32
  }
  func.func @transform_5(%arg0: i32, %arg1: i32) -> (i32, i32, i32) {
    %c0_i32 = arith.constant 0 : i32
    %c0_i32_0 = arith.constant 0 : i32
    return %arg0, %arg1, %c0_i32 : i32, i32, i32
  }
  func.func @transform_6(%arg0: i32, %arg1: i32) -> (i32, i32, i32) {
    %c0_i32 = arith.constant 0 : i32
    %c0_i32_0 = arith.constant 0 : i32
    return %arg0, %arg1, %c0_i32 : i32, i32, i32
  }
  func.func @transform_7(%arg0: i32, %arg1: i32) -> (i32, i32, i32, i32) {
    %c0_i32 = arith.constant 0 : i32
    %c0_i32_0 = arith.constant 0 : i32
    %c0_i32_1 = arith.constant 0 : i32
    return %arg0, %arg1, %c0_i32, %c0_i32_0 : i32, i32, i32, i32
  }
}

module attributes {stable_mosaic.version = 11 : i64} {
  func.func @kernel(%arg0: i32, %arg1: i32, %arg2: memref<1x16x16x4xf32, #tpu.memory_space<vmem>>, %arg3: memref<9x4x8xbf16, #tpu.memory_space<vmem>>, %arg4: memref<1x1x4xf32, #tpu.memory_space<vmem>>, %arg5: memref<1x1x4xf32, #tpu.memory_space<vmem>>, %arg6: memref<4x8xbf16, #tpu.memory_space<vmem>>, %arg7: memref<1x256x8xbf16, #tpu.memory_space<vmem>>, %arg8: memref<1x256x8xbf16, #tpu.memory_space<vmem>>, %arg9: memref<1x1x2x8xf32, #tpu.memory_space<vmem>>, %arg10: memref<18x18x4xbf16, #tpu.memory_space<vmem>>) attributes {dimension_semantics = [#tpu.dimension_semantics<parallel>, #tpu.dimension_semantics<arbitrary>], iteration_bounds = array<i64: 2, 1>, scalar_prefetch = 0 : i64, scratch_operands = 1 : i64, tpu.core_type = #tpu.core_type<tc>, window_params = [{transform_indices = @transform_0, window_bounds = array<i64: 1, 16, 16, 4>}, {pipeline_mode = #tpu.pipeline_mode<synchronous>, transform_indices = @transform_1, window_bounds = array<i64: 9, 4, 8>}, {pipeline_mode = #tpu.pipeline_mode<synchronous>, transform_indices = @transform_2, window_bounds = array<i64: 1, 1, 4>}, {pipeline_mode = #tpu.pipeline_mode<synchronous>, transform_indices = @transform_3, window_bounds = array<i64: 1, 1, 4>}, {pipeline_mode = #tpu.pipeline_mode<synchronous>, transform_indices = @transform_4, window_bounds = array<i64: 4, 8>}, {transform_indices = @transform_5, window_bounds = array<i64: 1, 256, 8>}, {transform_indices = @transform_6, window_bounds = array<i64: 1, 256, 8>}, {transform_indices = @transform_7, window_bounds = array<i64: 1, 1, 2, 8>}]} {
    %c0_i32 = arith.constant 0 : i32
    %0 = arith.cmpi eq, %arg1, %c0_i32 : i32
    %1 = arith.extui %0 : i1 to i32
    %c0_i32_0 = arith.constant 0 : i32
    %2 = arith.cmpi ne, %1, %c0_i32_0 : i32
    scf.if %2 {
      %c0_49 = arith.constant 0 : index
      %c0_50 = arith.constant 0 : index
      %c0_51 = arith.constant 0 : index
      %c0_52 = arith.constant 0 : index
      %85 = vector.load %arg2[%c0_49, %c0_50, %c0_51, %c0_52] : memref<1x16x16x4xf32, #tpu.memory_space<vmem>>, vector<1x16x16x4xf32>
      %86 = vector.shape_cast %85 : vector<1x16x16x4xf32> to vector<16x16x4xf32>
      %c0_53 = arith.constant 0 : index
      %c0_54 = arith.constant 0 : index
      %c0_55 = arith.constant 0 : index
      %87 = vector.load %arg4[%c0_53, %c0_54, %c0_55] : memref<1x1x4xf32, #tpu.memory_space<vmem>>, vector<1x1x4xf32>
      %88 = vector.broadcast %87 : vector<1x1x4xf32> to vector<16x16x4xf32>
      %89 = arith.mulf %86, %88 : vector<16x16x4xf32>
      %c0_56 = arith.constant 0 : index
      %c0_57 = arith.constant 0 : index
      %c0_58 = arith.constant 0 : index
      %90 = vector.load %arg5[%c0_56, %c0_57, %c0_58] : memref<1x1x4xf32, #tpu.memory_space<vmem>>, vector<1x1x4xf32>
      %91 = vector.broadcast %90 : vector<1x1x4xf32> to vector<16x16x4xf32>
      %92 = arith.addf %89, %91 : vector<16x16x4xf32>
      %cst_59 = arith.constant 1.000000e-01 : f32
      %93 = vector.broadcast %cst_59 : f32 to vector<16x16x4xf32>
      %94 = arith.mulf %93, %92 : vector<16x16x4xf32>
      %95 = arith.maximumf %92, %94 : vector<16x16x4xf32>
      %cst_60 = arith.constant 0.000000e+00 : bf16
      %96 = vector.broadcast %cst_60 : bf16 to vector<1x18x4xbf16>
      %cst_61 = arith.constant 0.000000e+00 : bf16
      %97 = vector.broadcast %cst_61 : bf16 to vector<18x1x4xbf16>
      %c0_62 = arith.constant 0 : index
      %c0_63 = arith.constant 0 : index
      %c0_64 = arith.constant 0 : index
      %98 = vector.load %arg10[%c0_62, %c0_63, %c0_64] : memref<18x18x4xbf16, #tpu.memory_space<vmem>>, vector<1x18x4xbf16>
      tpu.vector_store %arg10[%c0_62, %c0_63, %c0_64], %96 {strides = array<i32>} : memref<18x18x4xbf16, #tpu.memory_space<vmem>>, vector<1x18x4xbf16>,
      %c17 = arith.constant 17 : index
      %c0_65 = arith.constant 0 : index
      %c0_66 = arith.constant 0 : index
      %99 = vector.load %arg10[%c17, %c0_65, %c0_66] : memref<18x18x4xbf16, #tpu.memory_space<vmem>>, vector<1x18x4xbf16>
      tpu.vector_store %arg10[%c17, %c0_65, %c0_66], %96 {strides = array<i32>} : memref<18x18x4xbf16, #tpu.memory_space<vmem>>, vector<1x18x4xbf16>,
      %c0_67 = arith.constant 0 : index
      %c0_68 = arith.constant 0 : index
      %c0_69 = arith.constant 0 : index
      %100 = vector.load %arg10[%c0_67, %c0_68, %c0_69] : memref<18x18x4xbf16, #tpu.memory_space<vmem>>, vector<18x1x4xbf16>
      tpu.vector_store %arg10[%c0_67, %c0_68, %c0_69], %97 {strides = array<i32>} : memref<18x18x4xbf16, #tpu.memory_space<vmem>>, vector<18x1x4xbf16>,
      %c0_70 = arith.constant 0 : index
      %c17_71 = arith.constant 17 : index
      %c0_72 = arith.constant 0 : index
      %101 = vector.load %arg10[%c0_70, %c17_71, %c0_72] : memref<18x18x4xbf16, #tpu.memory_space<vmem>>, vector<18x1x4xbf16>
      tpu.vector_store %arg10[%c0_70, %c17_71, %c0_72], %97 {strides = array<i32>} : memref<18x18x4xbf16, #tpu.memory_space<vmem>>, vector<18x1x4xbf16>,
      %102 = arith.truncf %95 : vector<16x16x4xf32> to vector<16x16x4xbf16>
      %c1_73 = arith.constant 1 : index
      %c1_74 = arith.constant 1 : index
      %c0_75 = arith.constant 0 : index
      %103 = vector.load %arg10[%c1_73, %c1_74, %c0_75] : memref<18x18x4xbf16, #tpu.memory_space<vmem>>, vector<16x16x4xbf16>
      tpu.vector_store %arg10[%c1_73, %c1_74, %c0_75], %102 {strides = array<i32>} : memref<18x18x4xbf16, #tpu.memory_space<vmem>>, vector<16x16x4xbf16>,
    } else {
    }
    %c16_i32 = arith.constant 16 : i32
    %3 = arith.muli %arg1, %c16_i32 : i32
    %4 = tpu.assume_multiple %3, 8 : i32
    %5 = arith.index_cast %4 : i32 to index
    %c0 = arith.constant 0 : index
    %c0_1 = arith.constant 0 : index
    %6 = vector.load %arg10[%5, %c0, %c0_1] : memref<18x18x4xbf16, #tpu.memory_space<vmem>>, vector<18x18x4xbf16>
    %cst = arith.constant 0.000000e+00 : f32
    %7 = vector.broadcast %cst : f32 to vector<256x8xf32>
    %8 = vector.extract_strided_slice %6 {offsets = [0, 0, 0], sizes = [16, 16, 4], strides = [1, 1, 1]} : vector<18x18x4xbf16> to vector<16x16x4xbf16>
    %9 = vector.shape_cast %8 : vector<16x16x4xbf16> to vector<256x4xbf16>
    %c0_2 = arith.constant 0 : index
    %c0_3 = arith.constant 0 : index
    %c0_4 = arith.constant 0 : index
    %10 = vector.load %arg3[%c0_2, %c0_3, %c0_4] : memref<9x4x8xbf16, #tpu.memory_space<vmem>>, vector<1x4x8xbf16>
    %11 = vector.shape_cast %10 : vector<1x4x8xbf16> to vector<4x8xbf16>
    %cst_5 = arith.constant dense<0.000000e+00> : vector<256x8xf32>
    %12 = tpu.matmul %9, %11, %cst_5 {dimension_numbers = #tpu.dot_dimension_numbers<[1], [0], [0], [1], [0, 0, 1, 1], [], []>} : vector<256x4xbf16>, vector<4x8xbf16>, vector<256x8xf32> -> vector<256x8xf32>
    %13 = arith.addf %7, %12 : vector<256x8xf32>
    %14 = vector.extract_strided_slice %6 {offsets = [0, 1, 0], sizes = [16, 16, 4], strides = [1, 1, 1]} : vector<18x18x4xbf16> to vector<16x16x4xbf16>
    %15 = vector.shape_cast %14 : vector<16x16x4xbf16> to vector<256x4xbf16>
    %c1 = arith.constant 1 : index
    %c0_6 = arith.constant 0 : index
    %c0_7 = arith.constant 0 : index
    %16 = vector.load %arg3[%c1, %c0_6, %c0_7] : memref<9x4x8xbf16, #tpu.memory_space<vmem>>, vector<1x4x8xbf16>
    %17 = vector.shape_cast %16 : vector<1x4x8xbf16> to vector<4x8xbf16>
    %cst_8 = arith.constant dense<0.000000e+00> : vector<256x8xf32>
    %18 = tpu.matmul %15, %17, %cst_8 {dimension_numbers = #tpu.dot_dimension_numbers<[1], [0], [0], [1], [0, 0, 1, 1], [], []>} : vector<256x4xbf16>, vector<4x8xbf16>, vector<256x8xf32> -> vector<256x8xf32>
    %19 = arith.addf %13, %18 : vector<256x8xf32>
    %20 = vector.extract_strided_slice %6 {offsets = [0, 2, 0], sizes = [16, 16, 4], strides = [1, 1, 1]} : vector<18x18x4xbf16> to vector<16x16x4xbf16>
    %21 = vector.shape_cast %20 : vector<16x16x4xbf16> to vector<256x4xbf16>
    %c2 = arith.constant 2 : index
    %c0_9 = arith.constant 0 : index
    %c0_10 = arith.constant 0 : index
    %22 = vector.load %arg3[%c2, %c0_9, %c0_10] : memref<9x4x8xbf16, #tpu.memory_space<vmem>>, vector<1x4x8xbf16>
    %23 = vector.shape_cast %22 : vector<1x4x8xbf16> to vector<4x8xbf16>
    %cst_11 = arith.constant dense<0.000000e+00> : vector<256x8xf32>
    %24 = tpu.matmul %21, %23, %cst_11 {dimension_numbers = #tpu.dot_dimension_numbers<[1], [0], [0], [1], [0, 0, 1, 1], [], []>} : vector<256x4xbf16>, vector<4x8xbf16>, vector<256x8xf32> -> vector<256x8xf32>
    %25 = arith.addf %19, %24 : vector<256x8xf32>
    %26 = vector.extract_strided_slice %6 {offsets = [1, 0, 0], sizes = [16, 16, 4], strides = [1, 1, 1]} : vector<18x18x4xbf16> to vector<16x16x4xbf16>
    %27 = vector.shape_cast %26 : vector<16x16x4xbf16> to vector<256x4xbf16>
    %c3 = arith.constant 3 : index
    %c0_12 = arith.constant 0 : index
    %c0_13 = arith.constant 0 : index
    %28 = vector.load %arg3[%c3, %c0_12, %c0_13] : memref<9x4x8xbf16, #tpu.memory_space<vmem>>, vector<1x4x8xbf16>
    %29 = vector.shape_cast %28 : vector<1x4x8xbf16> to vector<4x8xbf16>
    %cst_14 = arith.constant dense<0.000000e+00> : vector<256x8xf32>
    %30 = tpu.matmul %27, %29, %cst_14 {dimension_numbers = #tpu.dot_dimension_numbers<[1], [0], [0], [1], [0, 0, 1, 1], [], []>} : vector<256x4xbf16>, vector<4x8xbf16>, vector<256x8xf32> -> vector<256x8xf32>
    %31 = arith.addf %25, %30 : vector<256x8xf32>
    %32 = vector.extract_strided_slice %6 {offsets = [1, 1, 0], sizes = [16, 16, 4], strides = [1, 1, 1]} : vector<18x18x4xbf16> to vector<16x16x4xbf16>
    %33 = vector.shape_cast %32 : vector<16x16x4xbf16> to vector<256x4xbf16>
    %c4 = arith.constant 4 : index
    %c0_15 = arith.constant 0 : index
    %c0_16 = arith.constant 0 : index
    %34 = vector.load %arg3[%c4, %c0_15, %c0_16] : memref<9x4x8xbf16, #tpu.memory_space<vmem>>, vector<1x4x8xbf16>
    %35 = vector.shape_cast %34 : vector<1x4x8xbf16> to vector<4x8xbf16>
    %cst_17 = arith.constant dense<0.000000e+00> : vector<256x8xf32>
    %36 = tpu.matmul %33, %35, %cst_17 {dimension_numbers = #tpu.dot_dimension_numbers<[1], [0], [0], [1], [0, 0, 1, 1], [], []>} : vector<256x4xbf16>, vector<4x8xbf16>, vector<256x8xf32> -> vector<256x8xf32>
    %37 = arith.addf %31, %36 : vector<256x8xf32>
    %38 = vector.extract_strided_slice %6 {offsets = [1, 2, 0], sizes = [16, 16, 4], strides = [1, 1, 1]} : vector<18x18x4xbf16> to vector<16x16x4xbf16>
    %39 = vector.shape_cast %38 : vector<16x16x4xbf16> to vector<256x4xbf16>
    %c5 = arith.constant 5 : index
    %c0_18 = arith.constant 0 : index
    %c0_19 = arith.constant 0 : index
    %40 = vector.load %arg3[%c5, %c0_18, %c0_19] : memref<9x4x8xbf16, #tpu.memory_space<vmem>>, vector<1x4x8xbf16>
    %41 = vector.shape_cast %40 : vector<1x4x8xbf16> to vector<4x8xbf16>
    %cst_20 = arith.constant dense<0.000000e+00> : vector<256x8xf32>
    %42 = tpu.matmul %39, %41, %cst_20 {dimension_numbers = #tpu.dot_dimension_numbers<[1], [0], [0], [1], [0, 0, 1, 1], [], []>} : vector<256x4xbf16>, vector<4x8xbf16>, vector<256x8xf32> -> vector<256x8xf32>
    %43 = arith.addf %37, %42 : vector<256x8xf32>
    %44 = vector.extract_strided_slice %6 {offsets = [2, 0, 0], sizes = [16, 16, 4], strides = [1, 1, 1]} : vector<18x18x4xbf16> to vector<16x16x4xbf16>
    %45 = vector.shape_cast %44 : vector<16x16x4xbf16> to vector<256x4xbf16>
    %c6 = arith.constant 6 : index
    %c0_21 = arith.constant 0 : index
    %c0_22 = arith.constant 0 : index
    %46 = vector.load %arg3[%c6, %c0_21, %c0_22] : memref<9x4x8xbf16, #tpu.memory_space<vmem>>, vector<1x4x8xbf16>
    %47 = vector.shape_cast %46 : vector<1x4x8xbf16> to vector<4x8xbf16>
    %cst_23 = arith.constant dense<0.000000e+00> : vector<256x8xf32>
    %48 = tpu.matmul %45, %47, %cst_23 {dimension_numbers = #tpu.dot_dimension_numbers<[1], [0], [0], [1], [0, 0, 1, 1], [], []>} : vector<256x4xbf16>, vector<4x8xbf16>, vector<256x8xf32> -> vector<256x8xf32>
    %49 = arith.addf %43, %48 : vector<256x8xf32>
    %50 = vector.extract_strided_slice %6 {offsets = [2, 1, 0], sizes = [16, 16, 4], strides = [1, 1, 1]} : vector<18x18x4xbf16> to vector<16x16x4xbf16>
    %51 = vector.shape_cast %50 : vector<16x16x4xbf16> to vector<256x4xbf16>
    %c7 = arith.constant 7 : index
    %c0_24 = arith.constant 0 : index
    %c0_25 = arith.constant 0 : index
    %52 = vector.load %arg3[%c7, %c0_24, %c0_25] : memref<9x4x8xbf16, #tpu.memory_space<vmem>>, vector<1x4x8xbf16>
    %53 = vector.shape_cast %52 : vector<1x4x8xbf16> to vector<4x8xbf16>
    %cst_26 = arith.constant dense<0.000000e+00> : vector<256x8xf32>
    %54 = tpu.matmul %51, %53, %cst_26 {dimension_numbers = #tpu.dot_dimension_numbers<[1], [0], [0], [1], [0, 0, 1, 1], [], []>} : vector<256x4xbf16>, vector<4x8xbf16>, vector<256x8xf32> -> vector<256x8xf32>
    %55 = arith.addf %49, %54 : vector<256x8xf32>
    %56 = vector.extract_strided_slice %6 {offsets = [2, 2, 0], sizes = [16, 16, 4], strides = [1, 1, 1]} : vector<18x18x4xbf16> to vector<16x16x4xbf16>
    %57 = vector.shape_cast %56 : vector<16x16x4xbf16> to vector<256x4xbf16>
    %c8 = arith.constant 8 : index
    %c0_27 = arith.constant 0 : index
    %c0_28 = arith.constant 0 : index
    %58 = vector.load %arg3[%c8, %c0_27, %c0_28] : memref<9x4x8xbf16, #tpu.memory_space<vmem>>, vector<1x4x8xbf16>
    %59 = vector.shape_cast %58 : vector<1x4x8xbf16> to vector<4x8xbf16>
    %cst_29 = arith.constant dense<0.000000e+00> : vector<256x8xf32>
    %60 = tpu.matmul %57, %59, %cst_29 {dimension_numbers = #tpu.dot_dimension_numbers<[1], [0], [0], [1], [0, 0, 1, 1], [], []>} : vector<256x4xbf16>, vector<4x8xbf16>, vector<256x8xf32> -> vector<256x8xf32>
    %61 = arith.addf %55, %60 : vector<256x8xf32>
    %cst_30 = arith.constant dense<0.000000e+00> : vector<8xf32>
    %62 = vector.multi_reduction <add>, %61, %cst_30 [0] : vector<256x8xf32> to vector<8xf32>
    %63 = vector.shape_cast %62 : vector<8xf32> to vector<1x8xf32>
    %c0_31 = arith.constant 0 : index
    %c0_32 = arith.constant 0 : index
    %c0_33 = arith.constant 0 : index
    %c0_34 = arith.constant 0 : index
    %64 = vector.load %arg9[%c0_31, %c0_32, %c0_33, %c0_34] : memref<1x1x2x8xf32, #tpu.memory_space<vmem>>, vector<1x1x1x8xf32>
    %65 = vector.shape_cast %64 : vector<1x1x1x8xf32> to vector<1x8xf32>
    %66 = vector.shape_cast %63 : vector<1x8xf32> to vector<1x1x1x8xf32>
    tpu.vector_store %arg9[%c0_31, %c0_32, %c0_33, %c0_34], %66 {strides = array<i32>} : memref<1x1x2x8xf32, #tpu.memory_space<vmem>>, vector<1x1x1x8xf32>,
    %67 = arith.mulf %61, %61 : vector<256x8xf32>
    %cst_35 = arith.constant dense<0.000000e+00> : vector<8xf32>
    %68 = vector.multi_reduction <add>, %67, %cst_35 [0] : vector<256x8xf32> to vector<8xf32>
    %69 = vector.shape_cast %68 : vector<8xf32> to vector<1x8xf32>
    %c0_36 = arith.constant 0 : index
    %c0_37 = arith.constant 0 : index
    %c1_38 = arith.constant 1 : index
    %c0_39 = arith.constant 0 : index
    %70 = vector.load %arg9[%c0_36, %c0_37, %c1_38, %c0_39] : memref<1x1x2x8xf32, #tpu.memory_space<vmem>>, vector<1x1x1x8xf32>
    %71 = vector.shape_cast %70 : vector<1x1x1x8xf32> to vector<1x8xf32>
    %72 = vector.shape_cast %69 : vector<1x8xf32> to vector<1x1x1x8xf32>
    tpu.vector_store %arg9[%c0_36, %c0_37, %c1_38, %c0_39], %72 {strides = array<i32>} : memref<1x1x2x8xf32, #tpu.memory_space<vmem>>, vector<1x1x1x8xf32>,
    %73 = arith.truncf %61 : vector<256x8xf32> to vector<256x8xbf16>
    %c0_40 = arith.constant 0 : index
    %c0_41 = arith.constant 0 : index
    %c0_42 = arith.constant 0 : index
    %74 = vector.load %arg7[%c0_40, %c0_41, %c0_42] : memref<1x256x8xbf16, #tpu.memory_space<vmem>>, vector<1x256x8xbf16>
    %75 = vector.shape_cast %74 : vector<1x256x8xbf16> to vector<256x8xbf16>
    %76 = vector.shape_cast %73 : vector<256x8xbf16> to vector<1x256x8xbf16>
    tpu.vector_store %arg7[%c0_40, %c0_41, %c0_42], %76 {strides = array<i32>} : memref<1x256x8xbf16, #tpu.memory_space<vmem>>, vector<1x256x8xbf16>,
    %77 = vector.extract_strided_slice %6 {offsets = [1, 1, 0], sizes = [16, 16, 4], strides = [1, 1, 1]} : vector<18x18x4xbf16> to vector<16x16x4xbf16>
    %78 = vector.shape_cast %77 : vector<16x16x4xbf16> to vector<256x4xbf16>
    %c0_43 = arith.constant 0 : index
    %c0_44 = arith.constant 0 : index
    %79 = vector.load %arg6[%c0_43, %c0_44] : memref<4x8xbf16, #tpu.memory_space<vmem>>, vector<4x8xbf16>
    %cst_45 = arith.constant dense<0.000000e+00> : vector<256x8xf32>
    %80 = tpu.matmul %78, %79, %cst_45 {dimension_numbers = #tpu.dot_dimension_numbers<[1], [0], [0], [1], [0, 0, 1, 1], [], []>} : vector<256x4xbf16>, vector<4x8xbf16>, vector<256x8xf32> -> vector<256x8xf32>
    %81 = arith.truncf %80 : vector<256x8xf32> to vector<256x8xbf16>
    %c0_46 = arith.constant 0 : index
    %c0_47 = arith.constant 0 : index
    %c0_48 = arith.constant 0 : index
    %82 = vector.load %arg8[%c0_46, %c0_47, %c0_48] : memref<1x256x8xbf16, #tpu.memory_space<vmem>>, vector<1x256x8xbf16>
    %83 = vector.shape_cast %82 : vector<1x256x8xbf16> to vector<256x8xbf16>
    %84 = vector.shape_cast %81 : vector<256x8xbf16> to vector<1x256x8xbf16>
    tpu.vector_store %arg8[%c0_46, %c0_47, %c0_48], %84 {strides = array<i32>} : memref<1x256x8xbf16, #tpu.memory_space<vmem>>, vector<1x256x8xbf16>,
    return
  }
  func.func @transform_0(%arg0: i32, %arg1: i32) -> (i32, i32, i32, i32) {
    %c0_i32 = arith.constant 0 : i32
    %c0_i32_0 = arith.constant 0 : i32
    %c0_i32_1 = arith.constant 0 : i32
    %c0_i32_2 = arith.constant 0 : i32
    return %arg0, %c0_i32, %c0_i32_0, %c0_i32_1 : i32, i32, i32, i32
  }
  func.func @transform_1(%arg0: i32, %arg1: i32) -> (i32, i32, i32) {
    %c0_i32 = arith.constant 0 : i32
    %c0_i32_0 = arith.constant 0 : i32
    %c0_i32_1 = arith.constant 0 : i32
    %c0_i32_2 = arith.constant 0 : i32
    return %c0_i32, %c0_i32_0, %c0_i32_1 : i32, i32, i32
  }
  func.func @transform_2(%arg0: i32, %arg1: i32) -> (i32, i32, i32) {
    %c0_i32 = arith.constant 0 : i32
    %c0_i32_0 = arith.constant 0 : i32
    %c0_i32_1 = arith.constant 0 : i32
    %c0_i32_2 = arith.constant 0 : i32
    return %c0_i32, %c0_i32_0, %c0_i32_1 : i32, i32, i32
  }
  func.func @transform_3(%arg0: i32, %arg1: i32) -> (i32, i32, i32) {
    %c0_i32 = arith.constant 0 : i32
    %c0_i32_0 = arith.constant 0 : i32
    %c0_i32_1 = arith.constant 0 : i32
    %c0_i32_2 = arith.constant 0 : i32
    return %c0_i32, %c0_i32_0, %c0_i32_1 : i32, i32, i32
  }
  func.func @transform_4(%arg0: i32, %arg1: i32) -> (i32, i32) {
    %c0_i32 = arith.constant 0 : i32
    %c0_i32_0 = arith.constant 0 : i32
    %c0_i32_1 = arith.constant 0 : i32
    return %c0_i32, %c0_i32_0 : i32, i32
  }
  func.func @transform_5(%arg0: i32, %arg1: i32) -> (i32, i32, i32) {
    %c0_i32 = arith.constant 0 : i32
    %c0_i32_0 = arith.constant 0 : i32
    return %arg0, %arg1, %c0_i32 : i32, i32, i32
  }
  func.func @transform_6(%arg0: i32, %arg1: i32) -> (i32, i32, i32) {
    %c0_i32 = arith.constant 0 : i32
    %c0_i32_0 = arith.constant 0 : i32
    return %arg0, %arg1, %c0_i32 : i32, i32, i32
  }
  func.func @transform_7(%arg0: i32, %arg1: i32) -> (i32, i32, i32, i32) {
    %c0_i32 = arith.constant 0 : i32
    %c0_i32_0 = arith.constant 0 : i32
    %c0_i32_1 = arith.constant 0 : i32
    return %arg0, %arg1, %c0_i32, %c0_i32_0 : i32, i32, i32, i32
  }
}

</mosaic_0001>

<bundles_post_ra>
// kernel: tpu_custom_call.1
= control target key start
LH: loop header
LB: loop body
LE: loop exit
PB: predicated region body
PF: predicated region fallthrough
CT: control target
= control target key end

     0   :  { %13 = vsyncpa [#allocation4], 0  ;;  %s7727_s0 = inlined_call_operand.vmem [shape: f32[2,16,16,4], index: 0, kind: input, shape index: {}]   ;;  %s7728_s1 = inlined_call_operand.vmem [shape: bf16[9,4,8], index: 1, kind: input, shape index: {}]   ;;  %s7729_s2 = inlined_call_operand.vmem [shape: f32[1,1,4], index: 2, kind: input, shape index: {}]   ;;  %s7730_s3 = inlined_call_operand.vmem [shape: f32[1,1,4], index: 3, kind: input, shape index: {}]   ;;  %s7731_s4 = inlined_call_operand.vmem [shape: bf16[4,8], index: 4, kind: input, shape index: {}]   ;;  %s7732_s5 = inlined_call_operand.vmem [shape: bf16[2,256,8], index: 5, kind: output, shape index: {0}]   ;;  %s7733_s6 = inlined_call_operand.vmem [shape: bf16[2,256,8], index: 6, kind: output, shape index: {1}]   ;;  %s7734_s7 = inlined_call_operand.hbm [shape: f32[2,1,2,8], index: 7, kind: output, shape index: {2}]  }
   0x1   :  { %15 = vsyncpa [#allocation4 + $0x1], 0  ;;  %s6178_s24 = smov 0   ;;  %s6180_s25 = smov 0  }
   0x2   :  { %s6182_s26 = smov 0   ;;  %s6184_s27 = smov 0  }
   0x3   :  { %s6186_s28 = smov 0   ;;  %s6188_s29 = smov 0  }
   0x4 LB: > { %s4736_s30 = sadd.s32 4294967295, %s6134_s29   ;;  %s4737_s8 = sadd.s32 4294967294, %s6134_s29   ;;  %s6134_s29 = sphi %s6188_s29, %s21_s29   ;;  %s6130_s28 = sphi %s6186_s28, %s7812_s28   ;;  %s6126_s27 = sphi %s6184_s27, %s7811_s27   ;;  %s6122_s26 = sphi %s6182_s26, %s7810_s26   ;;  %s6118_s25 = sphi %s6180_s25, %s7809_s25   ;;  %s6114_s24 = sphi %s6178_s24, %s7808_s24  }
   0x5   : > { %s33_s9 = sadd.s32 1, %s6130_s28  ;;  %s208_s10 = sadd.s32 1, %s6122_s26 }
   0x6   : > { %p35_p0 = scmp.ge.s32.totalorder %s33_s9, 2  ;;  %p218_p1 = scmp.ne.s32.totalorder %s6122_s26, %s6118_s25 }
   0x7   : > { %p219_p2 = scmp.eq.s32.totalorder %s4736_s30, 1  ;;  %p224_p3 = scmp.ne.s32.totalorder %s6118_s25, %s6114_s24 }
   0x8   : > { %s7814_s9 = smov (%p35_p0, %s33_s9), 0  ;;  %p225_p5 = scmp.eq.s32.totalorder %s4737_s8, 1 }
   0x9   : > { %p6218_p4 = por %p219_p2, %p218_p1  ;;  %s203_s12 = ssub.s32 %s6130_s28, %s7814_s9 }
   0xa   : > { %p4740_p6 = scmp.ge.s32.totalorder %s6134_s29, 1  ;;  %p206_p7 = scmp.eq.s32.totalorder %s203_s12, 0 }
   0xb   : > { %p6225_p8 = por %p225_p5, %p224_p3  ;;  %p263_p9 = scmp.lt.s32.totalorder %s6134_s29, 3 }
   0xc   : > { %s6231_s14 = scalar_select %p206_p7, %s6122_s26, %s208_s10  }
   0xd   : > { %p264_p10 = pnand %p4740_p6, %p263_p9 }
   0xf   : > { %267 = sbr.rel (%p264_p10) target bundleno = 735 (0x2df), region = 40 }
  0x16   : > { %v4782_v0 = vld [vmem:[%s7728_s1 + $0x2] sm:$0x3]  ;;  %vm1717_vm0 = vcmask 1041408   ;;  %v4914_v1 = vld [vmem:[%s7728_s1 + $0x8] sm:$0x3]  ;;  %vm517_vm1 = vcmask 27648  }
  0x17   : > { %5955 = vmatprep.subr.msk.bf16.mxu1 %vm1717_vm0, %v4782_v0  ;;  %5959 = vmatprep.subr.msk.bf16.mxu0 %vm1717_vm0, %v4914_v1  ;;  %v1719_v2 = vsel %vm1717_vm0, %v4782_v0, 0  ;;  %v2838_v3 = vsel %vm1717_vm0, %v4914_v1, 0  ;;  %vm520_vm2 = vcmask 24576   ;;  %p313_p11 = scmp.lt.s32.totalorder %s6126_s27, 1  ;;  %v6136_v4 = vmov 0   ;;  %s310_s20 = sand.u32 1, %s6118_s25  }
  0x18   : > { %5360 = vmatpush3.bf16.msra.mxu1 %v1719_v2  ;;  %5496 = vmatpush3.bf16.msra.mxu0 %v2838_v3  ;;  %518 = vst.msk [vmem:[#allocation2] sm:$0xf] %vm517_vm1, %v6136_v4  ;;  %519 = vst.msk [vmem:[#allocation2 + $0x4] sm:$0xf] %vm517_vm1, %v6136_v4  ;;  %vm527_vm3 = vsmask.f32 256 }
  0x19   : > { %521 = vst.msk [vmem:[#allocation2 + $0x8] sm:$0x1] %vm520_vm2, %v6136_v4  ;;  %vm583_vm4 = vsmask.f32 7938  ;;  %525 = vst.msk [vmem:[#allocation2 + $0xd4] sm:$0x1] %vm520_vm2, %v6136_v4 }
  0x1a   : > { %523 = vst.msk [vmem:[#allocation2 + $0xcc] sm:$0xf] %vm517_vm1, %v6136_v4  ;;  %524 = vst.msk [vmem:[#allocation2 + $0xd0] sm:$0xf] %vm517_vm1, %v6136_v4  ;;  %s6257_s19 = scalar_select %p313_p11, %s6126_s27, 1  ;;  %vm1668_vm10 = vcmask 31744  }
  0x1b   : > { %vm6252_vm5 = vmand %vm520_vm2, %vm527_vm3  ;;  %v6268_v7 = vld [vmem:[%s7729_s2] ss:$0 sm:$0xff]  ;;  %v532_v8 = vld [vmem:[#allocation2 + $0xc] sm:$0x1]  ;;  %vm1231_vm7 = vsmask.f32 3328 }
  0x1c   : > { %vm6261_vm6 = vmand %vm520_vm2, %vm583_vm4  ;;  %s5090_s22 = sshll.u32 %s6257_s19, 8  ;;  %v533_v9 = vsel %vm6252_vm5, 0, %v532_v8  ;;  %v588_v10 = vld [vmem:[#allocation2 + $0x14] sm:$0x1]  ;;  %v6276_v11 = vld [vmem:[%s7728_s1 + $0xa] sm:$0x3] }
  0x1d   : > { %s6281_s12 = scalar_lea.vmem %s7727_s0, %s5090_s22  ;;  %534 = vst [vmem:[#allocation2 + $0xc] sm:$0x1] %v533_v9  ;;  %v589_v12 = vsel %vm6261_vm6, 0, %v588_v10  ;;  %5960 = vmatprep.subr.msk.bf16.mxu0 %vm1717_vm0, %v6276_v11  ;;  %v535_v13 = vld [vmem:[#allocation2 + $0x18] sm:$0x1]  ;;  %vm6349_vm12 = vmand %vm517_vm1, %vm583_vm4  ;;  %vm2190_vm14 = vcmask 1042432  }
  0x1e   : > { %v591_v14 = vld [vmem:[#allocation2 + $0x20] sm:$0x1]  ;;  %v344_v16 = vld [vmem:[%s6281_s12 + $0x8] sm:$0xff]  ;;  %590 = vst [vmem:[#allocation2 + $0x14] sm:$0x1] %v589_v12  ;;  %v536_v18 = vsel %vm6252_vm5, 0, %v535_v13 }
  0x1f   : > { %v343_v15 = vld [vmem:[%s6281_s12] sm:$0xff]  ;;  %v592_v19 = vsel %vm6261_vm6, 0, %v591_v14  ;;  %v383_v21 = vmul.f32 %v6268_v7, %v344_v16  ;;  %v345_v22 = vld [vmem:[%s6281_s12 + $0x10] sm:$0xff]  ;;  %v346_v23 = vld [vmem:[%s6281_s12 + $0x18] sm:$0xff]  ;;  %537 = vst [vmem:[#allocation2 + $0x18] sm:$0x1] %v536_v18 }
  0x20   : > { %v6292_v17 = vld [vmem:[%s7730_s3] ss:$0 sm:$0xff]  ;;  %v382_v20 = vmul.f32 %v6268_v7, %v343_v15  ;;  %593 = vst [vmem:[#allocation2 + $0x20] sm:$0x1] %v592_v19  ;;  %v585_v26 = vld [vmem:[#allocation2 + $0x8] sm:$0x1]  ;;  %v384_v28 = vmul.f32 %v6268_v7, %v345_v22  ;;  %v385_v29 = vmul.f32 %v6268_v7, %v346_v23 }
  0x21   : > { %v347_v24 = vld [vmem:[%s6281_s12 + $0x20] sm:$0xff]  ;;  %vm1232_vm8 = vsmask.f32 7440  ;;  %v586_v32 = vsel %vm6261_vm6, 0, %v585_v26  ;;  %v348_v35 = vld [vmem:[%s6281_s12 + $0x28] sm:$0xff]  ;;  %v349_v36 = vld [vmem:[%s6281_s12 + $0x30] sm:$0xff]  ;;  %v422_v38 = vadd.f32 %v6292_v17, %v383_v21 }
  0x22   : > { %v529_v25 = vld [vmem:[#allocation2] sm:$0x1]  ;;  %v1177_v27 = vld [vmem:[#allocation2 + $0x4] sm:$0xf]  ;;  %v386_v30 = vmul.f32 %v6268_v7, %v347_v24  ;;  %587 = vst [vmem:[#allocation2 + $0x8] sm:$0x1] %v586_v32  ;;  %v421_v37 = vadd.f32 %v6292_v17, %v382_v20  ;;  %v423_v39 = vadd.f32 %v6292_v17, %v384_v28  ;;  %v424_v40 = vadd.f32 %v6292_v17, %v385_v29  ;;  %vm6338_vm11 = vmor %vm1231_vm7, %vm1232_vm8 }
  0x23   : > { %v530_v31 = vsel %vm6252_vm5, 0, %v529_v25  ;;  %v1244_v33 = vshll.u32 %v1177_v27, 16  ;;  %v1248_v34 = vshrl.u32 %v1177_v27, 16  ;;  %v387_v43 = vmul.f32 %v6268_v7, %v348_v35  ;;  %v350_v45 = vld [vmem:[%s6281_s12 + $0x38] sm:$0xff]  ;;  %v538_v53 = vld [vmem:[#allocation2 + $0x24] sm:$0x1] }
  0x24   : > { %531 = vst [vmem:[#allocation2] sm:$0x1] %v530_v31  ;;  %v425_v44 = vadd.f32 %v6292_v17, %v386_v30  ;;  %v453_v46 = vmul.f32 0.1, %v421_v37  ;;  %v454_v47 = vmul.f32 0.1, %v422_v38  ;;  %v388_v48 = vmul.f32 %v6268_v7, %v349_v36 }
  0x25   : > { %v6316_v41 = vrot.slane %v1244_v33, 5  ;;  %v1250_v42 = vrot.slane %v1248_v34, 4  ;;  %vm735_vm9 = vsmask.f32 4368  ;;  %v455_v50 = vmul.f32 0.1, %v423_v39 }
  0x26   : > { %v456_v51 = vmul.f32 0.1, %v424_v40  ;;  %v426_v52 = vadd.f32 %v6292_v17, %v387_v43  ;;  %v485_v54 = vmax.f32 %v421_v37, %v453_v46  ;;  %v486_v55 = vmax.f32 %v422_v38, %v454_v47  ;;  %v594_v57 = vld [vmem:[#allocation2 + $0x2c] sm:$0x1]  ;;  %v6345_v27 = vld [vmem:[%s7728_s1] sm:$0x3]  ;;  %vm6360_vm13 = vmor %vm527_vm3, %vm735_vm9 }
  0x27   : > { %v1251_v49 = vor.u32 %v1250_v42, %v6316_v41  ;;  %v457_v56 = vmul.f32 0.1, %v425_v44  ;;  %v6325_v58 = vmul.f32 %v6268_v7, %v350_v45  ;;  %v487_v59 = vmax.f32 %v423_v39, %v455_v50  ;;  %5956 = vmatprep.subr.msk.bf16.mxu1 %vm1717_vm0, %v6345_v27  ;;  %v1060_v36 = vld [vmem:[#allocation2 + $0xc] sm:$0xf]  ;;  %v1064_v37 = vld [vmem:[#allocation2 + $0x14] sm:$0x1] }
  0x28   : > { %v488_v60 = vmax.f32 %v424_v40, %v456_v51  ;;  %v458_v61 = vmul.f32 0.1, %v426_v52  ;;  %v6328_v62 = vadd.f32 %v6292_v17, %v388_v48  ;;  %v5093_v0 = vpack.c.bf16 %v485_v54, %v485_v54  ;;  %v1067_v45 = vld [vmem:[#allocation2 + $0x18] sm:$0xf]  ;;  %s5091_s10 = sshll.u32 %s6257_s19, 7  ;;  %s4741_s21 = sshll.u32 %s310_s20, 1 }
  0x29   : > { %v6330_v63 = vrot.slane %v1251_v49, 4  ;;  %v5094_v1 = vpack.c.bf16 %v486_v55, %v486_v55  ;;  %v539_v2 = vsel %vm6252_vm5, 0, %v538_v53  ;;  %v1178_v4 = vld [vmem:[#allocation2 + $0x8] sm:$0x1]  ;;  %v5095_v8 = vpack.c.bf16 %v487_v59, %v487_v59  ;;  %v1071_v53 = vld [vmem:[#allocation2 + $0x20] sm:$0x1]  ;;  %s7448_s16 = scalar_lea.vmem %s7733_s6, %s5091_s10  ;;  %s7461_s18 = scalar_lea.vmem %s7732_s5, %s5091_s10 }
  0x2a   : > { %v5096_v9 = vpack.c.bf16 %v488_v60, %v488_v60  ;;  %v489_v10 = vmax.f32 %v425_v44, %v457_v56  ;;  %540 = vst [vmem:[#allocation2 + $0x24] sm:$0x1] %v539_v2  ;;  %v595_v12 = vsel %vm6261_vm6, 0, %v594_v57  ;;  %v1254_v15 = vshll.u32 %v1178_v4, 16  ;;  %v541_v60 = vld [vmem:[#allocation2 + $0x30] sm:$0x1] }
  0x2b   : > { %v1176_v3 = vld [vmem:[#allocation2] sm:$0xf]  ;;  %v490_v16 = vmax.f32 %v426_v52, %v458_v61  ;;  %596 = vst [vmem:[#allocation2 + $0x2c] sm:$0x1] %v595_v12  ;;  %v7770_v18 = vmov 0  ;;  %v738_v19 = vshrl.u32 %v5093_v0, 16 }
  0x2c   : > { %v1235_v13 = vshrl.u32 %v1176_v3, 16  ;;  %v1238_v14 = vshll.u32 %v1176_v3, 16  ;;  %v7771_v18 = vsel %vm6338_vm11, 4294967295, %v7770_v18  ;;  %v741_v20 = vshll.u32 %v5093_v0, 16  ;;  %v597_v2 = vld [vmem:[#allocation2 + $0x38] sm:$0x1] }
  0x2d   : > { %7772 = vst [vmem:[#allocation6_spill] sm:$0xff] %v7771_v18  ;;  %v746_v21 = vshrl.u32 %v5094_v1, 16  ;;  %v749_v22 = vshll.u32 %v5094_v1, 16  ;;  %v1256_v25 = vrot.slane %v1254_v15, 5  ;;  %v755_v26 = vshrl.u32 %v5095_v8, 16  ;;  %v351_v3 = vld [vmem:[%s6281_s12 + $0x40] sm:$0xff] }
  0x2e   : > { %v1237_v23 = vrot.slane %v1235_v13, 4  ;;  %v1240_v24 = vrot.slane %v1238_v14, 5  ;;  %v740_v29 = vrot.slane %v738_v19, 7  ;;  %v758_v31 = vshll.u32 %v5095_v8, 16  ;;  %s5087_s22 = sshll.u32 %s6126_s27, 5  ;;  %s312_s23 = scalar_lea.vmem [#allocation3], %s4741_s21 }
  0x2f   : > { %v748_v30 = vrot.slane %v746_v21, 7  ;;  %v763_v32 = vshrl.u32 %v5096_v9, 16  ;;  %v1257_v34 = vsel %vm6338_vm11, %v6330_v63, %v1256_v25  ;;  %v757_v38 = vrot.slane %v755_v26, 7  ;;  %s4592_s30 = sshll.u32 %s312_s23, 4  ;;  %s7680_s15 = scalar_lea.hbm %s7734_s7, %s5087_s22  ;;  %s7682_s30 = int_to_ptr.vmem [resolvable:$true] %s4592_s30 }
  0x30   : > { %v1241_v33 = vor.u32 %v1240_v24, %v1237_v23  ;;  %v766_v39 = vshll.u32 %v5096_v9, 16  ;;  %v743_v40 = vor.u32 %v741_v20, %v740_v29  ;;  %v744_v42 = vrot.slane %v740_v29, 4  ;;  %s6137_s27 = smov [#allocation3]  }
  0x31   : > { %v751_v43 = vor.u32 %v749_v22, %v748_v30  ;;  %v753_v44 = vrot.slane %v748_v30, 4  ;;  %v760_v47 = vor.u32 %v758_v31, %v757_v38  ;;  %v761_v48 = vrot.slane %v757_v38, 4  ;;  %v1074_v19 = vld [vmem:[#allocation2 + $0x24] sm:$0xf]  ;;  %s6060_s19 = sshll.u32 %s6137_s27, 4  ;;  %s6061_s19 = int_to_ptr.vmem [resolvable:$false] %s6060_s19 }
  0x32   : > { %v1242_v46 = vrot.slane %v1241_v33, 4  ;;  %v765_v49 = vrot.slane %v763_v32, 7  ;;  %v1061_v51 = vsel %vm6349_vm12, %v743_v40, %v1060_v36  ;;  %v5097_v54 = vpack.c.bf16 %v489_v10, %v489_v10  ;;  %v352_v10 = vld [vmem:[%s6281_s12 + $0x48] sm:$0xff]  ;;  %s6062_s17 = scalar_lea.vmem %s6061_s19, 64  ;;  %p6063_p1 = scmp.lt.s32.totalorder %s7682_s30, %s6061_s19 }
  0x33   : > { %v752_v50 = vsel %vm6360_vm13, %v744_v42, %v751_v43  ;;  %v1065_v52 = vsel %vm6252_vm5, %v753_v44, %v1064_v37  ;;  %1062 = vst [vmem:[#allocation2 + $0xc] sm:$0xf] %v1061_v51  ;;  %v1068_v59 = vsel %vm6349_vm12, %v760_v47, %v1067_v45  ;;  %v5098_v63 = vpack.c.bf16 %v490_v16, %v490_v16  ;;  %v544_v16 = vld [vmem:[#allocation2 + $0x3c] sm:$0x1] }
  0x34   : > { %v1247_v55 = vsel %vm6338_vm11, %v1242_v46, %v6316_v41  ;;  %1063 = vst.msk [vmem:[#allocation2 + $0x10] sm:$0xf] %vm517_vm1, %v752_v50  ;;  %1066 = vst [vmem:[#allocation2 + $0x14] sm:$0x1] %v1065_v52  ;;  %v768_v56 = vor.u32 %v766_v39, %v765_v49  ;;  %v770_v57 = vrot.slane %v765_v49, 4  ;;  %v772_v0 = vshrl.u32 %v5097_v54, 16 }
  0x35   : > { %v4783_v61 = vcombine.low %v1247_v55, %v1257_v34  ;;  %1069 = vst [vmem:[#allocation2 + $0x18] sm:$0xf] %v1068_v59  ;;  %v775_v1 = vshll.u32 %v5097_v54, 16  ;;  %v428_v8 = vadd.f32 %v6292_v17, %v6325_v58  ;;  %v459_v9 = vmul.f32 0.1, %v6328_v62 }
  0x36   : > { %v769_v41 = vsel %vm6360_vm13, %v761_v48, %v768_v56  ;;  %v1072_v4 = vsel %vm6252_vm5, %v770_v57, %v1071_v53  ;;  %v774_v12 = vrot.slane %v772_v0, 7  ;;  %v780_v13 = vshrl.u32 %v5098_v63, 16  ;;  %v353_v48 = vld [vmem:[%s6281_s12 + $0x50] sm:$0xff] }
  0x37   : > { %5361 = vmatprep.mubr.msk.bf16.mxu1 %vm1668_vm10, %v4783_v61  ;;  %1070 = vst.msk [vmem:[#allocation2 + $0x1c] sm:$0xf] %vm517_vm1, %v769_v41  ;;  %1073 = vst [vmem:[#allocation2 + $0x20] sm:$0x1] %v1072_v4  ;;  %v783_v14 = vshll.u32 %v5098_v63, 16  ;;  %v542_v15 = vsel %vm6252_vm5, 0, %v541_v60  ;;  %v491_v21 = vmax.f32 %v6328_v62, %v459_v9  ;;  %v390_v22 = vmul.f32 %v6268_v7, %v351_v3 }
  0x38   : > { %v460_v20 = vmul.f32 0.1, %v428_v8  ;;  %543 = vst [vmem:[#allocation2 + $0x30] sm:$0x1] %v542_v15  ;;  %v598_v58 = vsel %vm6261_vm6, 0, %v597_v2  ;;  %v777_v23 = vor.u32 %v775_v1, %v774_v12  ;;  %v778_v24 = vrot.slane %v774_v12, 4 }
  0x39   : > { %v782_v25 = vrot.slane %v780_v13, 7  ;;  %599 = vst [vmem:[#allocation2 + $0x38] sm:$0x1] %v598_v58  ;;  %v6395_v26 = vsel %vm1717_vm0, %v6276_v11, 0  ;;  %v391_v30 = vmul.f32 %v6268_v7, %v352_v10  ;;  %v545_v62 = vsel %vm6252_vm5, 0, %v544_v16 }
  0x3a   : > { %v492_v29 = vmax.f32 %v428_v8, %v460_v20  ;;  %v1179_v31 = vld [vmem:[#allocation2 + $0xc] sm:$0xf]  ;;  %v1075_v36 = vsel %vm6349_vm12, %v777_v23, %v1074_v19  ;;  %v6402_v37 = vpack.c.bf16 %v491_v21, %v491_v21  ;;  %v6405_v38 = vadd.f32 %v6292_v17, %v390_v22  ;;  %546 = vst [vmem:[#allocation2 + $0x3c] sm:$0x1] %v545_v62 }
  0x3b   : > { %v1180_v32 = vld [vmem:[#allocation2 + $0x10] sm:$0xf]  ;;  %v1181_v33 = vld [vmem:[#allocation2 + $0x14] sm:$0x1]  ;;  %v785_v34 = vor.u32 %v783_v14, %v782_v25  ;;  %v1259_v11 = vshrl.u32 %v1179_v31, 16  ;;  %v1262_v39 = vshll.u32 %v1179_v31, 16  ;;  %v6412_v3 = vadd.f32 %v6292_v17, %v391_v30 }
  0x3c   : > { %v1268_v40 = vshll.u32 %v1180_v32, 16  ;;  %v1272_v42 = vshrl.u32 %v1180_v32, 16  ;;  %v1182_v43 = vld [vmem:[#allocation2 + $0x18] sm:$0xf]  ;;  %1076 = vst [vmem:[#allocation2 + $0x24] sm:$0xf] %v1075_v36  ;;  %v6415_v41 = vmul.f32 %v6268_v7, %v353_v48  ;;  %v5100_v16 = vpack.c.bf16 %v492_v29, %v492_v29 }
  0x3d   : > { %v1278_v44 = vshll.u32 %v1181_v33, 16  ;;  %v1283_v45 = vshrl.u32 %v1182_v43, 16  ;;  %v1286_v46 = vshll.u32 %v1182_v43, 16  ;;  %v786_v47 = vsel %vm6360_vm13, %v778_v24, %v785_v34  ;;  %v1078_v12 = vld [vmem:[#allocation2 + $0x2c] sm:$0x1] }
  0x3e   : > { %v1261_v49 = vrot.slane %v1259_v11, 4  ;;  %v1264_v50 = vrot.slane %v1262_v39, 5  ;;  %v1270_v51 = vrot.slane %v1268_v40, 5  ;;  %v1274_v52 = vrot.slane %v1272_v42, 4  ;;  %v1183_v53 = vld [vmem:[#allocation2 + $0x1c] sm:$0xf] }
  0x3f   : > { %1077 = vst.msk [vmem:[#allocation2 + $0x28] sm:$0xf] %vm517_vm1, %v786_v47  ;;  %v1280_v54 = vrot.slane %v1278_v44, 5  ;;  %v1184_v55 = vld [vmem:[#allocation2 + $0x20] sm:$0x1]  ;;  %v1285_v56 = vrot.slane %v1283_v45, 4 }
  0x40   : > { %v1288_v57 = vrot.slane %v1286_v46, 5  ;;  %v1292_v59 = vshll.u32 %v1183_v53, 16  ;;  %v1265_v60 = vor.u32 %v1264_v50, %v1261_v49  ;;  %v1275_v61 = vor.u32 %v1274_v52, %v1270_v51  ;;  %v600_v40 = vld [vmem:[#allocation2 + $0x44] sm:$0x1]  ;;  %v1081_v46 = vld [vmem:[#allocation2 + $0x30] sm:$0xf] }
  0x41   : > { %v1296_v63 = vshrl.u32 %v1183_v53, 16  ;;  %v1302_v0 = vshll.u32 %v1184_v55, 16  ;;  %v787_v14 = vrot.slane %v782_v25, 4  ;;  %v789_v19 = vshrl.u32 %v6402_v37, 16  ;;  %v354_v47 = vld [vmem:[%s6281_s12 + $0x58] sm:$0xff] }
  0x42   : > { %v1289_v1 = vor.u32 %v1288_v57, %v1285_v56  ;;  %v1294_v2 = vrot.slane %v1292_v59, 5  ;;  %v1266_v4 = vrot.slane %v1265_v60, 4  ;;  %v1276_v8 = vrot.slane %v1275_v61, 4  ;;  %v1085_v57 = vld [vmem:[#allocation2 + $0x38] sm:$0x1] }
  0x43   : > { %v1298_v9 = vrot.slane %v1296_v63, 4  ;;  %v1304_v10 = vrot.slane %v1302_v0, 5  ;;  %v1185_v15 = vld [vmem:[#allocation2 + $0x24] sm:$0xf]  ;;  %v1079_v25 = vsel %vm6252_vm5, %v787_v14, %v1078_v12  ;;  %v791_v36 = vrot.slane %v789_v19, 7 }
  0x44   : > { %v1290_v13 = vrot.slane %v1289_v1, 4  ;;  %v1271_v20 = vsel %vm6338_vm11, %v1266_v4, %v1270_v51  ;;  %v1281_v21 = vsel %vm6338_vm11, %v1276_v8, %v1280_v54  ;;  %v1307_v22 = vshrl.u32 %v1185_v15, 16  ;;  %1080 = vst [vmem:[#allocation2 + $0x2c] sm:$0x1] %v1079_v25  ;;  %v603_v12 = vld [vmem:[#allocation2 + $0x50] sm:$0x1] }
  0x45   : > { %v1299_v58 = vor.u32 %v1298_v9, %v1294_v2  ;;  %v6422_v23 = vcombine.low %v1271_v20, %v1281_v21  ;;  %v1310_v29 = vshll.u32 %v1185_v15, 16  ;;  %v792_v11 = vshll.u32 %v6402_v37, 16  ;;  %v355_v20 = vld [vmem:[%s6281_s12 + $0x60] sm:$0xff] }
  0x46   : > { %v1295_v24 = vsel %vm6338_vm11, %v1290_v13, %v1294_v2  ;;  %v1186_v30 = vld [vmem:[#allocation2 + $0x28] sm:$0xf]  ;;  %v1309_v31 = vrot.slane %v1307_v22, 4  ;;  %v797_v39 = vshrl.u32 %v5100_v16, 16  ;;  %v800_v45 = vshll.u32 %v5100_v16, 16 }
  0x47   : > { %7777 = vst [vmem:[#allocation7_spill] sm:$0xff] %v6422_v23  ;;  %v1300_v62 = vrot.slane %v1299_v58, 4  ;;  %v1316_v32 = vshll.u32 %v1186_v30, 16  ;;  %v1320_v33 = vshrl.u32 %v1186_v30, 16  ;;  %5362 = vmatmul.mubr.msk.bf16.vlgmr.msra.gmra.mrb[0].mxu1 %vm1668_vm10, %v6422_v23  ;;  %5497 = vmatprep.mubr.msk.bf16.mxu0 %vm1668_vm10, %v6422_v23  ;;  %v1312_v34 = vrot.slane %v1310_v29, 5 }
  0x48   : > { %v794_v50 = vor.u32 %v792_v11, %v791_v36  ;;  %v795_v51 = vrot.slane %v791_v36, 4  ;;  %v799_v53 = vrot.slane %v797_v39, 7  ;;  %v461_v54 = vmul.f32 0.1, %v6405_v38  ;;  %v547_v2 = vld [vmem:[#allocation2 + $0x48] sm:$0x1] }
  0x49   : > { %v1305_v42 = vsel %vm6338_vm11, %v1300_v62, %v1304_v10  ;;  %v1318_v43 = vrot.slane %v1316_v32, 5  ;;  %v1322_v44 = vrot.slane %v1320_v33, 4  ;;  %v1313_v49 = vor.u32 %v1312_v34, %v1309_v31 }
  0x4a   : > { %v6436_v48 = vcombine.low %v1295_v24, %v1305_v42  ;;  %v462_v37 = vmul.f32 0.1, %v6412_v3  ;;  %v1082_v56 = vsel %vm6349_vm12, %v794_v50, %v1081_v46  ;;  %v601_v59 = vsel %vm6261_vm6, 0, %v600_v40  ;;  %v1088_v40 = vld [vmem:[#allocation2 + $0x3c] sm:$0xf] }
  0x4b   : > { %v1323_v52 = vor.u32 %v1322_v44, %v1318_v43  ;;  %v1314_v55 = vrot.slane %v1313_v49, 4  ;;  %v393_v60 = vmul.f32 %v6268_v7, %v354_v47  ;;  %v802_v63 = vor.u32 %v800_v45, %v799_v53  ;;  %1083 = vst [vmem:[#allocation2 + $0x30] sm:$0xf] %v1082_v56  ;;  %602 = vst [vmem:[#allocation2 + $0x44] sm:$0x1] %v601_v59  ;;  %v356_v44 = vld [vmem:[%s6281_s12 + $0x68] sm:$0xff] }
  0x4c   : > { %5498 = vmatmul.mubr.msk.bf16.vlgmr.msra.gmra.mrb[0].mxu0 %vm1668_vm10, %v6436_v48  ;;  %5365 = vmatprep.mubr.msk.bf16.mxu1 %vm1668_vm10, %v6436_v48  ;;  %v804_v0 = vrot.slane %v799_v53, 4  ;;  %v493_v1 = vmax.f32 %v6405_v38, %v461_v54  ;;  %v1187_v4 = vld [vmem:[#allocation2 + $0x2c] sm:$0x1]  ;;  %v494_v9 = vmax.f32 %v6412_v3, %v462_v37  ;;  %v431_v10 = vadd.f32 %v6292_v17, %v6415_v41 }
  0x4d   : > { %5530 = vmatpush3.bf16.msra.mxu0 %v6395_v26  ;;  %v1324_v61 = vrot.slane %v1323_v52, 4  ;;  %v1319_v8 = vsel %vm6338_vm11, %v1314_v55, %v1318_v43  ;;  %v432_v26 = vadd.f32 %v6292_v17, %v393_v60  ;;  %v1326_v13 = vshll.u32 %v1187_v4, 16 }
  0x4e   : > { %v803_v14 = vsel %vm6360_vm13, %v795_v51, %v802_v63  ;;  %v1086_v38 = vsel %vm6252_vm5, %v804_v0, %v1085_v57  ;;  %v5101_v15 = vpack.c.bf16 %v493_v1, %v493_v1  ;;  %v5102_v16 = vpack.c.bf16 %v494_v9, %v494_v9  ;;  %v550_v9 = vld [vmem:[#allocation2 + $0x54] sm:$0x1] }
  0x4f   : > { %1084 = vst.msk [vmem:[#allocation2 + $0x34] sm:$0xf] %vm517_vm1, %v803_v14  ;;  %1087 = vst [vmem:[#allocation2 + $0x38] sm:$0x1] %v1086_v38  ;;  %v463_v19 = vmul.f32 0.1, %v431_v10  ;;  %v394_v34 = vmul.f32 %v6268_v7, %v355_v20  ;;  %v395_v59 = vmul.f32 %v6268_v7, %v356_v44 }
  0x50   : > { %v464_v3 = vmul.f32 0.1, %v432_v26  ;;  %v548_v41 = vsel %vm6252_vm5, 0, %v547_v2  ;;  %v1328_v21 = vrot.slane %v1326_v13, 5  ;;  %v806_v58 = vshrl.u32 %v5101_v15, 16 }
  0x51   : > { %v809_v22 = vshll.u32 %v5101_v15, 16  ;;  %549 = vst [vmem:[#allocation2 + $0x48] sm:$0x1] %v548_v41  ;;  %v604_v24 = vsel %vm6261_vm6, 0, %v603_v12  ;;  %v814_v25 = vshrl.u32 %v5102_v16, 16  ;;  %v817_v30 = vshll.u32 %v5102_v16, 16 }
  0x52   : > { %v495_v29 = vmax.f32 %v431_v10, %v463_v19  ;;  %v496_v62 = vmax.f32 %v432_v26, %v464_v3  ;;  %605 = vst [vmem:[#allocation2 + $0x50] sm:$0x1] %v604_v24  ;;  %v1329_v31 = vsel %vm6338_vm11, %v1324_v61, %v1328_v21  ;;  %v808_v32 = vrot.slane %v806_v58, 7  ;;  %v1188_v11 = vld [vmem:[#allocation2 + $0x30] sm:$0xf] }
  0x53   : > { %v2011_v33 = vsel %vm1717_vm0, %v6345_v27, 0  ;;  %v6472_v36 = vcombine.low %v1319_v8, %v1329_v31  ;;  %v816_v39 = vrot.slane %v814_v25, 7  ;;  %v1331_v45 = vshrl.u32 %v1188_v11, 16  ;;  %v1092_v51 = vld [vmem:[#allocation2 + $0x44] sm:$0x1]  ;;  %v357_v24 = vld [vmem:[%s6281_s12 + $0x70] sm:$0xff] }
  0x54   : > { %v5103_v42 = vpack.c.bf16 %v495_v29, %v495_v29  ;;  %v5104_v43 = vpack.c.bf16 %v496_v62, %v496_v62  ;;  %5394 = vmatpush3.bf16.msra.mxu1 %v2011_v33  ;;  %v1334_v46 = vshll.u32 %v1188_v11, 16  ;;  %v811_v47 = vor.u32 %v809_v22, %v808_v32  ;;  %v606_v3 = vld [vmem:[#allocation2 + $0x5c] sm:$0x1] }
  0x55   : > { %v812_v49 = vrot.slane %v808_v32, 4  ;;  %5366 = vmatmul.mubr.msk.bf16.gmra.mrb[4].mxu1 %vm1668_vm10, %v6472_v36  ;;  %5501 = vmatprep.mubr.msk.bf16.mxu0 %vm1668_vm10, %v6472_v36  ;;  %v819_v27 = vor.u32 %v817_v30, %v816_v39  ;;  %v821_v50 = vrot.slane %v816_v39, 4  ;;  %v1333_v55 = vrot.slane %v1331_v45, 4  ;;  %v358_v25 = vld [vmem:[%s6281_s12 + $0x78] sm:$0xff]  ;;  %v4951_v45 = vld [vmem:[%s7728_s1 + $0xc] sm:$0x3] }
  0x56   : > { %v823_v52 = vshrl.u32 %v5103_v42, 16  ;;  %v826_v53 = vshll.u32 %v5103_v42, 16  ;;  %v1189_v54 = vld [vmem:[#allocation2 + $0x34] sm:$0xf]  ;;  %v1190_v37 = vld [vmem:[#allocation2 + $0x38] sm:$0x1]  ;;  %v1089_v57 = vsel %vm6349_vm12, %v811_v47, %v1088_v40  ;;  %v433_v21 = vadd.f32 %v6292_v17, %v394_v34  ;;  %5961 = vmatprep.subr.msk.bf16.mxu0 %vm1717_vm0, %v4951_v45 }
  0x57   : > { %v1336_v56 = vrot.slane %v1334_v46, 5  ;;  %v1340_v60 = vshll.u32 %v1189_v54, 16  ;;  %v1344_v61 = vshrl.u32 %v1189_v54, 16  ;;  %v1350_v63 = vshll.u32 %v1190_v37, 16  ;;  %1090 = vst [vmem:[#allocation2 + $0x3c] sm:$0xf] %v1089_v57 }
  0x58   : > { %v820_v0 = vsel %vm6360_vm13, %v812_v49, %v819_v27  ;;  %v1093_v2 = vsel %vm6252_vm5, %v821_v50, %v1092_v51  ;;  %v825_v4 = vrot.slane %v823_v52, 7  ;;  %v831_v8 = vshrl.u32 %v5104_v43, 16  ;;  %v1095_v14 = vld [vmem:[#allocation2 + $0x48] sm:$0xf] }
  0x59   : > { %v1337_v1 = vor.u32 %v1336_v56, %v1333_v55  ;;  %1091 = vst.msk [vmem:[#allocation2 + $0x40] sm:$0xf] %vm517_vm1, %v820_v0  ;;  %v1342_v10 = vrot.slane %v1340_v60, 5  ;;  %v1346_v26 = vrot.slane %v1344_v61, 4  ;;  %v1352_v12 = vrot.slane %v1350_v63, 5 }
  0x5a   : > { %1094 = vst [vmem:[#allocation2 + $0x44] sm:$0x1] %v1093_v2  ;;  %v834_v13 = vshll.u32 %v5104_v43, 16  ;;  %v828_v15 = vor.u32 %v826_v53, %v825_v4  ;;  %v829_v16 = vrot.slane %v825_v4, 4  ;;  %v833_v19 = vrot.slane %v831_v8, 7 }
  0x5b   : > { %v1338_v38 = vrot.slane %v1337_v1, 4  ;;  %v1347_v41 = vor.u32 %v1346_v26, %v1342_v10  ;;  %v1099_v20 = vld [vmem:[#allocation2 + $0x50] sm:$0x1]  ;;  %v434_v58 = vadd.f32 %v6292_v17, %v395_v59  ;;  %v551_v22 = vsel %vm6252_vm5, 0, %v550_v9  ;;  %v359_v9 = vld [vmem:[%s6281_s12 + $0x80] sm:$0xff] }
  0x5c   : > { %v836_v29 = vor.u32 %v834_v13, %v833_v19  ;;  %v838_v62 = vrot.slane %v833_v19, 4  ;;  %v1096_v31 = vsel %vm6349_vm12, %v828_v15, %v1095_v14  ;;  %552 = vst [vmem:[#allocation2 + $0x54] sm:$0x1] %v551_v22  ;;  %v465_v33 = vmul.f32 0.1, %v433_v21 }
  0x5d   : > { %v1343_v30 = vsel %vm6338_vm11, %v1338_v38, %v1342_v10  ;;  %v1348_v32 = vrot.slane %v1347_v41, 4  ;;  %1097 = vst [vmem:[#allocation2 + $0x48] sm:$0xf] %v1096_v31  ;;  %v466_v34 = vmul.f32 0.1, %v434_v58  ;;  %v607_v11 = vsel %vm6261_vm6, 0, %v606_v3 }
  0x5e   : > { %v1191_v39 = vld [vmem:[#allocation2 + $0x3c] sm:$0xf]  ;;  %v837_v40 = vsel %vm6360_vm13, %v829_v16, %v836_v29  ;;  %v1100_v42 = vsel %vm6252_vm5, %v838_v62, %v1099_v20  ;;  %608 = vst [vmem:[#allocation2 + $0x5c] sm:$0x1] %v607_v11  ;;  %v396_v43 = vmul.f32 %v6268_v7, %v357_v24  ;;  %v397_v44 = vmul.f32 %v6268_v7, %v358_v25  ;;  %v360_v10 = vld [vmem:[%s6281_s12 + $0x88] sm:$0xff] }
  0x5f   : > { %v1353_v46 = vsel %vm6338_vm11, %v1348_v32, %v1352_v12  ;;  %v1355_v49 = vshrl.u32 %v1191_v39, 16  ;;  %v1358_v27 = vshll.u32 %v1191_v39, 16  ;;  %1098 = vst.msk [vmem:[#allocation2 + $0x4c] sm:$0xf] %vm517_vm1, %v837_v40  ;;  %1101 = vst [vmem:[#allocation2 + $0x50] sm:$0x1] %v1100_v42  ;;  %v497_v50 = vmax.f32 %v433_v21, %v465_v33 }
  0x60   : > { %v1192_v47 = vld [vmem:[#allocation2 + $0x40] sm:$0xf]  ;;  %v6512_v51 = vcombine.low %v1343_v30, %v1353_v46  ;;  %v498_v37 = vmax.f32 %v434_v58, %v466_v34  ;;  %v435_v0 = vadd.f32 %v6292_v17, %v396_v43  ;;  %v436_v38 = vadd.f32 %v6292_v17, %v397_v44  ;;  %v609_v46 = vld [vmem:[#allocation2 + $0x68] sm:$0x1] }
  0x61   : > { %v1193_v52 = vld [vmem:[#allocation2 + $0x44] sm:$0x1]  ;;  %v1364_v53 = vshll.u32 %v1192_v47, 16  ;;  %v1368_v54 = vshrl.u32 %v1192_v47, 16  ;;  %v1357_v55 = vrot.slane %v1355_v49, 4  ;;  %v1360_v56 = vrot.slane %v1358_v27, 5 }
  0x62   : > { %7778 = vst [vmem:[#allocation8_spill] sm:$0xff] %v6512_v51  ;;  %v1374_v57 = vshll.u32 %v1193_v52, 16  ;;  %v5105_v59 = vpack.c.bf16 %v497_v50, %v497_v50  ;;  %5502 = vmatmul.mubr.msk.bf16.gmra.mrb[4].mxu0 %vm1668_vm10, %v6512_v51  ;;  %5369 = vmatprep.mubr.msk.bf16.mxu1 %vm1668_vm10, %v6512_v51  ;;  %v5106_v63 = vpack.c.bf16 %v498_v37, %v498_v37  ;;  %v553_v39 = vld [vmem:[#allocation2 + $0x60] sm:$0x1]  ;;  %v556_v52 = vld [vmem:[#allocation2 + $0x6c] sm:$0x1] }
  0x63   : > { %v1366_v60 = vrot.slane %v1364_v53, 5  ;;  %v1370_v61 = vrot.slane %v1368_v54, 4  ;;  %v1361_v1 = vor.u32 %v1360_v56, %v1357_v55  ;;  %v398_v22 = vmul.f32 %v6268_v7, %v359_v9  ;;  %v1102_v11 = vld [vmem:[#allocation2 + $0x54] sm:$0xf]  ;;  %v362_v9 = vld [vmem:[%s6281_s12 + $0x98] sm:$0xff] }
  0x64   : > { %v1376_v2 = vrot.slane %v1374_v57, 5  ;;  %v840_v4 = vshrl.u32 %v5105_v59, 16  ;;  %v843_v8 = vshll.u32 %v5105_v59, 16  ;;  %v1194_v12 = vld [vmem:[#allocation2 + $0x48] sm:$0xf]  ;;  %v848_v13 = vshrl.u32 %v5106_v63, 16 }
  0x65   : > { %v1371_v26 = vor.u32 %v1370_v61, %v1366_v60  ;;  %v851_v14 = vshll.u32 %v5106_v63, 16  ;;  %v1362_v15 = vrot.slane %v1361_v1, 4  ;;  %v1379_v16 = vshrl.u32 %v1194_v12, 16  ;;  %v1106_v45 = vld [vmem:[#allocation2 + $0x5c] sm:$0x1]  ;;  %v361_v63 = vld [vmem:[%s6281_s12 + $0x90] sm:$0xff] }
  0x66   : > { %v1382_v19 = vshll.u32 %v1194_v12, 16  ;;  %v842_v3 = vrot.slane %v840_v4, 7  ;;  %v1195_v20 = vld [vmem:[#allocation2 + $0x4c] sm:$0xf]  ;;  %v1196_v21 = vld [vmem:[#allocation2 + $0x50] sm:$0x1]  ;;  %v399_v24 = vmul.f32 %v6268_v7, %v360_v10 }
  0x67   : > { %v1372_v41 = vrot.slane %v1371_v26, 4  ;;  %v850_v58 = vrot.slane %v848_v13, 7  ;;  %v1367_v25 = vsel %vm6338_vm11, %v1362_v15, %v1366_v60  ;;  %v1381_v30 = vrot.slane %v1379_v16, 4  ;;  %v612_v61 = vld [vmem:[#allocation2 + $0x74] sm:$0x1] }
  0x68   : > { %v1384_v29 = vrot.slane %v1382_v19, 5  ;;  %v1388_v62 = vshll.u32 %v1195_v20, 16  ;;  %v1392_v32 = vshrl.u32 %v1195_v20, 16  ;;  %v1398_v33 = vshll.u32 %v1196_v21, 16  ;;  %v559_v20 = vld [vmem:[#allocation2 + $0x78] sm:$0x1] }
  0x69   : > { %v1377_v31 = vsel %vm6338_vm11, %v1372_v41, %v1376_v2  ;;  %v845_v34 = vor.u32 %v843_v8, %v842_v3  ;;  %v846_v44 = vrot.slane %v842_v3, 4  ;;  %v853_v27 = vor.u32 %v851_v14, %v850_v58 }
  0x6a   : > { %v6528_v40 = vcombine.low %v1367_v25, %v1377_v31  ;;  %v1385_v42 = vor.u32 %v1384_v29, %v1381_v30  ;;  %v1390_v43 = vrot.slane %v1388_v62, 5  ;;  %v1394_v47 = vrot.slane %v1392_v32, 4 }
  0x6b   : > { %v1400_v49 = vrot.slane %v1398_v33, 5  ;;  %v855_v50 = vrot.slane %v850_v58, 4  ;;  %v1103_v54 = vsel %vm6349_vm12, %v845_v34, %v1102_v11  ;;  %v467_v37 = vmul.f32 0.1, %v435_v0 }
  0x6c   : > { %7779 = vst [vmem:[#allocation9_spill] sm:$0xff] %v6528_v40  ;;  %5370 = vmatmul.mubr.msk.bf16.gmra.mrb[8].mxu1 %vm1668_vm10, %v6528_v40  ;;  %5505 = vmatprep.mubr.msk.bf16.mxu0 %vm1668_vm10, %v6528_v40  ;;  %v1386_v53 = vrot.slane %v1385_v42, 4  ;;  %v468_v55 = vmul.f32 0.1, %v436_v38  ;;  %v1395_v56 = vor.u32 %v1394_v47, %v1390_v43  ;;  %v854_v57 = vsel %vm6360_vm13, %v846_v44, %v853_v27 }
  0x6d   : > { %1104 = vst [vmem:[#allocation2 + $0x54] sm:$0xf] %v1103_v54  ;;  %v1107_v59 = vsel %vm6252_vm5, %v855_v50, %v1106_v45  ;;  %v554_v60 = vsel %vm6252_vm5, 0, %v553_v39  ;;  %1105 = vst.msk [vmem:[#allocation2 + $0x58] sm:$0xf] %vm517_vm1, %v854_v57  ;;  %v499_v2 = vmax.f32 %v435_v0, %v467_v37  ;;  %v610_v8 = vsel %vm6261_vm6, 0, %v609_v46 }
  0x6e   : > { %v1391_v1 = vsel %vm6338_vm11, %v1386_v53, %v1390_v43  ;;  %1108 = vst [vmem:[#allocation2 + $0x5c] sm:$0x1] %v1107_v59  ;;  %v500_v4 = vmax.f32 %v436_v38, %v468_v55  ;;  %555 = vst [vmem:[#allocation2 + $0x60] sm:$0x1] %v554_v60  ;;  %v1396_v10 = vrot.slane %v1395_v56, 4  ;;  %v437_v26 = vadd.f32 %v6292_v17, %v398_v22 }
  0x6f   : > { %611 = vst [vmem:[#allocation2 + $0x68] sm:$0x1] %v610_v8  ;;  %v438_v12 = vadd.f32 %v6292_v17, %v399_v24  ;;  %v557_v13 = vsel %vm6252_vm5, 0, %v556_v52  ;;  %v5107_v14 = vpack.c.bf16 %v499_v2, %v499_v2  ;;  %v613_v0 = vsel %vm6261_vm6, 0, %v612_v61  ;;  %v615_v2 = vld [vmem:[#allocation2 + $0x80] sm:$0x1] }
  0x70   : > { %v5108_v15 = vpack.c.bf16 %v500_v4, %v500_v4  ;;  %558 = vst [vmem:[#allocation2 + $0x6c] sm:$0x1] %v557_v13  ;;  %v400_v38 = vmul.f32 %v6268_v7, %v361_v63  ;;  %v1401_v16 = vsel %vm6338_vm11, %v1396_v10, %v1400_v49  ;;  %v469_v19 = vmul.f32 0.1, %v437_v26  ;;  %614 = vst [vmem:[#allocation2 + $0x74] sm:$0x1] %v613_v0 }
  0x71   : > { %v470_v3 = vmul.f32 0.1, %v438_v12  ;;  %v401_v41 = vmul.f32 %v6268_v7, %v362_v9  ;;  %v6559_v21 = vcombine.low %v1391_v1, %v1401_v16  ;;  %v857_v58 = vshrl.u32 %v5107_v14, 16  ;;  %v6576_v4 = vld [vmem:[%s7728_s1 + $0x4] sm:$0x3] }
  0x72   : > { %v860_v22 = vshll.u32 %v5107_v14, 16  ;;  %v865_v24 = vshrl.u32 %v5108_v15, 16  ;;  %v868_v25 = vshll.u32 %v5108_v15, 16  ;;  %v501_v30 = vmax.f32 %v437_v26, %v469_v19  ;;  %5957 = vmatprep.subr.msk.bf16.mxu1 %vm1717_vm0, %v6576_v4 }
  0x73   : > { %7780 = vst [vmem:[#allocation10_spill] sm:$0xff] %v6559_v21  ;;  %v502_v29 = vmax.f32 %v438_v12, %v470_v3  ;;  %v439_v62 = vadd.f32 %v6292_v17, %v400_v38  ;;  %5506 = vmatmul.mubr.msk.bf16.gmra.mrb[8].mxu0 %vm1668_vm10, %v6559_v21  ;;  %5373 = vmatprep.mubr.msk.bf16.mxu1 %vm1668_vm10, %v6559_v21  ;;  %v859_v32 = vrot.slane %v857_v58, 7  ;;  %v560_v34 = vsel %vm6252_vm5, 0, %v559_v20 }
  0x74   : > { %v1197_v31 = vld [vmem:[#allocation2 + $0x54] sm:$0xf]  ;;  %v867_v7 = vrot.slane %v865_v24, 7  ;;  %v440_v33 = vadd.f32 %v6292_v17, %v401_v41  ;;  %v1198_v11 = vld [vmem:[#allocation2 + $0x58] sm:$0xf]  ;;  %v5109_v44 = vpack.c.bf16 %v501_v30, %v501_v30  ;;  %v616_v3 = vsel %vm6261_vm6, 0, %v615_v2 }
  0x75   : > { %v1199_v39 = vld [vmem:[#allocation2 + $0x5c] sm:$0x1]  ;;  %v1403_v42 = vshrl.u32 %v1197_v31, 16  ;;  %v1406_v43 = vshll.u32 %v1197_v31, 16  ;;  %v5110_v45 = vpack.c.bf16 %v502_v29, %v502_v29  ;;  %561 = vst [vmem:[#allocation2 + $0x78] sm:$0x1] %v560_v34  ;;  %v862_v27 = vor.u32 %v860_v22, %v859_v32 }
  0x76   : > { %v1412_v46 = vshll.u32 %v1198_v11, 16  ;;  %v1416_v47 = vshrl.u32 %v1198_v11, 16  ;;  %v1422_v49 = vshll.u32 %v1199_v39, 16  ;;  %v1109_v50 = vld [vmem:[#allocation2 + $0x60] sm:$0xf]  ;;  %v863_v54 = vrot.slane %v859_v32, 4 }
  0x77   : > { %v1405_v52 = vrot.slane %v1403_v42, 4  ;;  %v1408_v53 = vrot.slane %v1406_v43, 5  ;;  %v870_v37 = vor.u32 %v868_v25, %v867_v7  ;;  %v1113_v17 = vld [vmem:[#allocation2 + $0x68] sm:$0x1]  ;;  %v872_v59 = vrot.slane %v867_v7, 4  ;;  %v363_v41 = vld [vmem:[%s6281_s12 + $0xa0] sm:$0xff] }
  0x78   : > { %v1414_v55 = vrot.slane %v1412_v46, 5  ;;  %v1418_v56 = vrot.slane %v1416_v47, 4  ;;  %v1424_v57 = vrot.slane %v1422_v49, 5  ;;  %v1110_v63 = vsel %vm6349_vm12, %v862_v27, %v1109_v50  ;;  %v1116_v12 = vld [vmem:[#allocation2 + $0x6c] sm:$0xf]  ;;  %v365_v34 = vld [vmem:[%s6281_s12 + $0xb0] sm:$0xff] }
  0x79   : > { %v1409_v60 = vor.u32 %v1408_v53, %v1405_v52  ;;  %v871_v61 = vsel %vm6360_vm13, %v863_v54, %v870_v37  ;;  %v874_v1 = vshrl.u32 %v5109_v44, 16  ;;  %1111 = vst [vmem:[#allocation2 + $0x60] sm:$0xf] %v1110_v63  ;;  %v1114_v9 = vsel %vm6252_vm5, %v872_v59, %v1113_v17  ;;  %v1120_v24 = vld [vmem:[#allocation2 + $0x74] sm:$0x1]  ;;  %v364_v30 = vld [vmem:[%s6281_s12 + $0xa8] sm:$0xff] }
  0x7a   : > { %v1419_v8 = vor.u32 %v1418_v56, %v1414_v55  ;;  %1112 = vst.msk [vmem:[#allocation2 + $0x64] sm:$0xf] %vm517_vm1, %v871_v61  ;;  %v877_v10 = vshll.u32 %v5109_v44, 16  ;;  %v882_v26 = vshrl.u32 %v5110_v45, 16  ;;  %1115 = vst [vmem:[#allocation2 + $0x68] sm:$0x1] %v1114_v9 }
  0x7b   : > { %v1410_v13 = vrot.slane %v1409_v60, 4  ;;  %v876_v14 = vrot.slane %v874_v1, 7  ;;  %v885_v15 = vshll.u32 %v5110_v45, 16  ;;  %v471_v0 = vmul.f32 0.1, %v439_v62 }
  0x7c   : > { %v1420_v38 = vrot.slane %v1419_v8, 4  ;;  %v884_v16 = vrot.slane %v882_v26, 7  ;;  %v472_v19 = vmul.f32 0.1, %v440_v33  ;;  %617 = vst [vmem:[#allocation2 + $0x80] sm:$0x1] %v616_v3 }
  0x7d   : > { %v1415_v20 = vsel %vm6338_vm11, %v1410_v13, %v1414_v55  ;;  %v879_v58 = vor.u32 %v877_v10, %v876_v14  ;;  %v880_v22 = vrot.slane %v876_v14, 4  ;;  %v503_v25 = vmax.f32 %v439_v62, %v471_v0  ;;  %v6599_v43 = vld [vmem:[%s7729_s2] ss:$0 sm:$0xff]  ;;  %v562_v1 = vld [vmem:[#allocation2 + $0x84] sm:$0x1]  ;;  %v366_v0 = vld [vmem:[%s6281_s12 + $0xb8] sm:$0xff] }
  0x7e   : > { %v1425_v29 = vsel %vm6338_vm11, %v1420_v38, %v1424_v57  ;;  %v887_v31 = vor.u32 %v885_v15, %v884_v16  ;;  %v889_v32 = vrot.slane %v884_v16, 4  ;;  %v504_v7 = vmax.f32 %v440_v33, %v472_v19  ;;  %v6615_v52 = vld [vmem:[%s7730_s3] ss:$0 sm:$0xff]  ;;  %v1123_v26 = vld [vmem:[#allocation2 + $0x78] sm:$0xf] }
  0x7f   : > { %v6592_v11 = vcombine.low %v1415_v20, %v1425_v29  ;;  %v1117_v39 = vsel %vm6349_vm12, %v879_v58, %v1116_v12  ;;  %v5111_v42 = vpack.c.bf16 %v503_v25, %v503_v25  ;;  %v402_v62 = vmul.f32 %v6599_v43, %v363_v41 }
  0x80   : > { %v888_v44 = vsel %vm6360_vm13, %v880_v22, %v887_v31  ;;  %1118 = vst [vmem:[#allocation2 + $0x6c] sm:$0xf] %v1117_v39  ;;  %v1121_v33 = vsel %vm6252_vm5, %v889_v32, %v1120_v24  ;;  %v5112_v45 = vpack.c.bf16 %v504_v7, %v504_v7  ;;  %v403_v46 = vmul.f32 %v6599_v43, %v364_v30  ;;  %v1200_v47 = vld [vmem:[#allocation2 + $0x60] sm:$0xf] }
  0x81   : > { %7781 = vst [vmem:[#allocation11_spill] sm:$0xff] %v6592_v11  ;;  %5374 = vmatmul.mubr.msk.bf16.gmra.mrb[12].mxu1 %vm1668_vm10, %v6592_v11  ;;  %5509 = vmatprep.mubr.msk.bf16.mxu0 %vm1668_vm10, %v6592_v11  ;;  %v1201_v49 = vld [vmem:[#allocation2 + $0x64] sm:$0xf]  ;;  %1119 = vst.msk [vmem:[#allocation2 + $0x70] sm:$0xf] %vm517_vm1, %v888_v44  ;;  %v891_v27 = vshrl.u32 %v5111_v42, 16  ;;  %v441_v53 = vadd.f32 %v6615_v52, %v402_v62  ;;  %v6619_v54 = vmul.f32 %v6599_v43, %v365_v34 }
  0x82   : > { %1122 = vst [vmem:[#allocation2 + $0x74] sm:$0x1] %v1121_v33  ;;  %v894_v50 = vshll.u32 %v5111_v42, 16  ;;  %v1202_v37 = vld [vmem:[#allocation2 + $0x68] sm:$0x1]  ;;  %v1427_v17 = vshrl.u32 %v1200_v47, 16  ;;  %v442_v19 = vadd.f32 %v6615_v52, %v403_v46  ;;  %v405_v7 = vmul.f32 %v6599_v43, %v366_v0 }
  0x83   : > { %v1430_v55 = vshll.u32 %v1200_v47, 16  ;;  %v1436_v56 = vshll.u32 %v1201_v49, 16  ;;  %v1440_v57 = vshrl.u32 %v1201_v49, 16  ;;  %v1446_v59 = vshll.u32 %v1202_v37, 16  ;;  %v1127_v44 = vld [vmem:[#allocation2 + $0x80] sm:$0x1] }
  0x84   : > { %v893_v60 = vrot.slane %v891_v27, 7  ;;  %v899_v61 = vshrl.u32 %v5112_v45, 16  ;;  %v902_v63 = vshll.u32 %v5112_v45, 16  ;;  %v1429_v2 = vrot.slane %v1427_v17, 4  ;;  %v618_v49 = vld [vmem:[#allocation2 + $0x8c] sm:$0x1] }
  0x85   : > { %v1432_v8 = vrot.slane %v1430_v55, 5  ;;  %v1438_v9 = vrot.slane %v1436_v56, 5  ;;  %v1442_v10 = vrot.slane %v1440_v57, 4  ;;  %v1448_v12 = vrot.slane %v1446_v59, 5  ;;  %v565_v17 = vld [vmem:[#allocation2 + $0x90] sm:$0x1] }
  0x86   : > { %v896_v13 = vor.u32 %v894_v50, %v893_v60  ;;  %v897_v14 = vrot.slane %v893_v60, 4  ;;  %v901_v15 = vrot.slane %v899_v61, 7  ;;  %v473_v3 = vmul.f32 0.1, %v441_v53  ;;  %v621_v60 = vld [vmem:[#allocation2 + $0x98] sm:$0x1] }
  0x87   : > { %v1433_v38 = vor.u32 %v1432_v8, %v1429_v2  ;;  %v1443_v16 = vor.u32 %v1442_v10, %v1438_v9  ;;  %v1203_v41 = vld [vmem:[#allocation2 + $0x6c] sm:$0xf]  ;;  %v563_v24 = vsel %vm6252_vm5, 0, %v562_v1  ;;  %v474_v59 = vmul.f32 0.1, %v442_v19 }
  0x88   : > { %v904_v20 = vor.u32 %v902_v63, %v901_v15  ;;  %v906_v58 = vrot.slane %v901_v15, 4  ;;  %v1124_v22 = vsel %vm6349_vm12, %v896_v13, %v1123_v26  ;;  %v6627_v29 = vld [vmem:[#allocation2 + $0x70] sm:$0xf]  ;;  %v505_v32 = vmax.f32 %v441_v53, %v473_v3  ;;  %564 = vst [vmem:[#allocation2 + $0x84] sm:$0x1] %v563_v24 }
  0x89   : > { %v1434_v25 = vrot.slane %v1433_v38, 4  ;;  %v1444_v30 = vrot.slane %v1443_v16, 4  ;;  %v1205_v31 = vld [vmem:[#allocation2 + $0x74] sm:$0x1]  ;;  %1125 = vst [vmem:[#allocation2 + $0x78] sm:$0xf] %v1124_v22  ;;  %v443_v2 = vadd.f32 %v6615_v52, %v6619_v54  ;;  %v444_v10 = vadd.f32 %v6615_v52, %v405_v7 }
  0x8a   : > { %v1451_v34 = vshrl.u32 %v1203_v41, 16  ;;  %v1454_v39 = vshll.u32 %v1203_v41, 16  ;;  %v1460_v42 = vshll.u32 %v6627_v29, 16  ;;  %v1464_v62 = vshrl.u32 %v6627_v29, 16  ;;  %v6037_v11 = vld [vmem:[#allocation2 + $0x40] sm:$0xf] }
  0x8b   : > { %v1439_v33 = vsel %vm6338_vm11, %v1434_v25, %v1438_v9  ;;  %v1449_v45 = vsel %vm6338_vm11, %v1444_v30, %v1448_v12  ;;  %v1470_v46 = vshll.u32 %v1205_v31, 16  ;;  %v905_v47 = vsel %vm6360_vm13, %v897_v14, %v904_v20 }
  0x8c   : > { %v6638_v27 = vcombine.low %v1439_v33, %v1449_v45  ;;  %v1453_v50 = vrot.slane %v1451_v34, 4  ;;  %v1456_v53 = vrot.slane %v1454_v39, 5  ;;  %v1462_v37 = vrot.slane %v1460_v42, 5  ;;  %1126 = vst.msk [vmem:[#allocation2 + $0x7c] sm:$0xf] %vm517_vm1, %v905_v47  ;;  %v367_v47 = vld [vmem:[%s6281_s12 + $0xc0] sm:$0xff] }
  0x8d   : > { %v1466_v55 = vrot.slane %v1464_v62, 4  ;;  %v1472_v56 = vrot.slane %v1470_v46, 5  ;;  %v1128_v57 = vsel %vm6252_vm5, %v906_v58, %v1127_v44  ;;  %v619_v63 = vsel %vm6261_vm6, 0, %v618_v49 }
  0x8e   : > { %7782 = vst [vmem:[#allocation12_spill] sm:$0xff] %v6638_v27  ;;  %5510 = vmatmul.mubr.msk.bf16.gmra.mrb[12].mxu0 %vm1668_vm10, %v6638_v27  ;;  %5377 = vmatprep.mubr.msk.bf16.mxu1 %vm1668_vm10, %v6638_v27  ;;  %v1457_v61 = vor.u32 %v1456_v53, %v1453_v50  ;;  %1129 = vst [vmem:[#allocation2 + $0x80] sm:$0x1] %v1128_v57  ;;  %v5113_v1 = vpack.c.bf16 %v505_v32, %v505_v32  ;;  %v566_v26 = vsel %vm6252_vm5, 0, %v565_v17  ;;  %vm2191_vm15 = vcmask 1046532  }
  0x8f   : > { %v1467_v8 = vor.u32 %v1466_v55, %v1462_v37  ;;  %v506_v9 = vmax.f32 %v442_v19, %v474_v59  ;;  %620 = vst [vmem:[#allocation2 + $0x8c] sm:$0x1] %v619_v63  ;;  %567 = vst [vmem:[#allocation2 + $0x90] sm:$0x1] %v566_v26  ;;  %v622_v0 = vsel %vm6261_vm6, 0, %v621_v60  ;;  %v368_v60 = vld [vmem:[%s6281_s12 + $0xc8] sm:$0xff] }
  0x90   : > { %v1458_v12 = vrot.slane %v1457_v61, 4  ;;  %v6654_v13 = vld [vmem:[#allocation2 + $0x78] sm:$0xf]  ;;  %v908_v14 = vshrl.u32 %v5113_v1, 16  ;;  %v911_v15 = vshll.u32 %v5113_v1, 16  ;;  %vm3891_vm2 = vcmask 64512  }
  0x91   : > { %v1468_v38 = vrot.slane %v1467_v8, 4  ;;  %v1475_v54 = vshrl.u32 %v6654_v13, 16  ;;  %v1478_v16 = vshll.u32 %v6654_v13, 16  ;;  %v5114_v19 = vpack.c.bf16 %v506_v9, %v506_v9  ;;  %v1130_v3 = vld [vmem:[#allocation2 + $0x84] sm:$0xf] }
  0x92   : > { %623 = vst [vmem:[#allocation2 + $0x98] sm:$0x1] %v622_v0  ;;  %v1463_v41 = vsel %vm6338_vm11, %v1458_v12, %v1462_v37  ;;  %v910_v20 = vrot.slane %v908_v14, 7  ;;  %v475_v58 = vmul.f32 0.1, %v443_v2  ;;  %v406_v8 = vmul.f32 %v6599_v43, %v367_v47 }
  0x93   : > { %v476_v22 = vmul.f32 0.1, %v444_v10  ;;  %v1473_v24 = vsel %vm6338_vm11, %v1468_v38, %v1472_v56  ;;  %v6664_v25 = vld [vmem:[#allocation2 + $0x7c] sm:$0xf]  ;;  %v1477_v30 = vrot.slane %v1475_v54, 4  ;;  %v1480_v31 = vrot.slane %v1478_v16, 5 }
  0x94   : > { %v916_v32 = vshrl.u32 %v5114_v19, 16  ;;  %v6666_v7 = vcombine.low %v1463_v41, %v1473_v24  ;;  %v1484_v34 = vshll.u32 %v6664_v25, 16  ;;  %v1488_v39 = vshrl.u32 %v6664_v25, 16  ;;  %v568_v9 = vld [vmem:[#allocation2 + $0x9c] sm:$0x1]  ;;  %v369_v16 = vld [vmem:[%s6281_s12 + $0xd0] sm:$0xff] }
  0x95   : > { %v913_v42 = vor.u32 %v911_v15, %v910_v20  ;;  %v6670_v62 = vld [vmem:[#allocation2 + $0x80] sm:$0x1]  ;;  %v1481_v44 = vor.u32 %v1480_v31, %v1477_v30  ;;  %v914_v33 = vrot.slane %v910_v20, 4  ;;  %v919_v46 = vshll.u32 %v5114_v19, 16  ;;  %v624_v26 = vld [vmem:[#allocation2 + $0xa4] sm:$0x1] }
  0x96   : > { %7783 = vst [vmem:[#allocation13_spill] sm:$0xff] %v6666_v7  ;;  %v918_v45 = vrot.slane %v916_v32, 7  ;;  %5378 = vmatmul.mubr.msk.bf16.gmra.mrb[16].mxu1 %vm1668_vm10, %v6666_v7  ;;  %5513 = vmatprep.mubr.msk.bf16.mxu0 %vm1668_vm10, %v6666_v7  ;;  %v1486_v49 = vrot.slane %v1484_v34, 5  ;;  %v1490_v50 = vrot.slane %v1488_v39, 4  ;;  %v1494_v53 = vshll.u32 %v6670_v62, 16  ;;  %v370_v19 = vld [vmem:[%s6281_s12 + $0xd8] sm:$0xff] }
  0x97   : > { %v1131_v37 = vsel %vm6349_vm12, %v913_v42, %v1130_v3  ;;  %v1134_v17 = vld [vmem:[#allocation2 + $0x8c] sm:$0x1]  ;;  %v1482_v55 = vrot.slane %v1481_v44, 4  ;;  %v507_v59 = vmax.f32 %v443_v2, %v475_v58  ;;  %v508_v1 = vmax.f32 %v444_v10, %v476_v22  ;;  %v571_v22 = vld [vmem:[#allocation2 + $0xa8] sm:$0x1] }
  0x98   : > { %v921_v56 = vor.u32 %v919_v46, %v918_v45  ;;  %v923_v57 = vrot.slane %v918_v45, 4  ;;  %1132 = vst [vmem:[#allocation2 + $0x84] sm:$0xf] %v1131_v37  ;;  %v1491_v61 = vor.u32 %v1490_v50, %v1486_v49  ;;  %v1496_v63 = vrot.slane %v1494_v53, 5  ;;  %v1137_v42 = vld [vmem:[#allocation2 + $0x90] sm:$0xf] }
  0x99   : > { %v1487_v12 = vsel %vm6338_vm11, %v1482_v55, %v1486_v49  ;;  %v5115_v2 = vpack.c.bf16 %v507_v59, %v507_v59  ;;  %v5116_v38 = vpack.c.bf16 %v508_v1, %v508_v1  ;;  %v407_v10 = vmul.f32 %v6599_v43, %v368_v60  ;;  %v1141_v59 = vld [vmem:[#allocation2 + $0x98] sm:$0x1]  ;;  %v6036_v7 = vld [vmem:[#allocation2 + $0x2c] sm:$0x1] }
  0x9a   : > { %v922_v14 = vsel %vm6360_vm13, %v914_v33, %v921_v56  ;;  %v1135_v15 = vsel %vm6252_vm5, %v923_v57, %v1134_v17  ;;  %v1492_v0 = vrot.slane %v1491_v61, 4  ;;  %v445_v54 = vadd.f32 %v6615_v52, %v406_v8 }
  0x9b   : > { %1133 = vst.msk [vmem:[#allocation2 + $0x88] sm:$0xf] %vm517_vm1, %v922_v14  ;;  %1136 = vst [vmem:[#allocation2 + $0x8c] sm:$0x1] %v1135_v15  ;;  %v925_v3 = vshrl.u32 %v5115_v2, 16  ;;  %v928_v41 = vshll.u32 %v5115_v2, 16  ;;  %v446_v32 = vadd.f32 %v6615_v52, %v407_v10  ;;  %v408_v33 = vmul.f32 %v6599_v43, %v369_v16 }
  0x9c   : > { %v569_v20 = vsel %vm6252_vm5, 0, %v568_v9  ;;  %v625_v58 = vsel %vm6261_vm6, 0, %v624_v26  ;;  %v1497_v24 = vsel %vm6338_vm11, %v1492_v0, %v1496_v63  ;;  %v933_v30 = vshrl.u32 %v5116_v38, 16 }
  0x9d   : > { %v936_v31 = vshll.u32 %v5116_v38, 16  ;;  %570 = vst [vmem:[#allocation2 + $0x9c] sm:$0x1] %v569_v20  ;;  %626 = vst [vmem:[#allocation2 + $0xa4] sm:$0x1] %v625_v58  ;;  %v6700_v34 = vcombine.low %v1487_v12, %v1497_v24  ;;  %v927_v39 = vrot.slane %v925_v3, 7  ;;  %v409_v49 = vmul.f32 %v6599_v43, %v370_v19 }
  0x9e   : > { %v477_v44 = vmul.f32 0.1, %v445_v54  ;;  %v935_v46 = vrot.slane %v933_v30, 7  ;;  %v478_v47 = vmul.f32 0.1, %v446_v32  ;;  %v572_v50 = vsel %vm6252_vm5, 0, %v571_v22 }
  0x9f   : > { %7784 = vst [vmem:[#allocation14_spill] sm:$0xff] %v6700_v34  ;;  %v6703_v45 = vld [vmem:[#allocation2 + $0x84] sm:$0xf]  ;;  %5514 = vmatmul.mubr.msk.bf16.gmra.mrb[16].mxu0 %vm1668_vm10, %v6700_v34  ;;  %5381 = vmatprep.mubr.msk.bf16.mxu1 %vm1668_vm10, %v6700_v34  ;;  %v930_v17 = vor.u32 %v928_v41, %v927_v39  ;;  %v931_v55 = vrot.slane %v927_v39, 4  ;;  %573 = vst [vmem:[#allocation2 + $0xa8] sm:$0x1] %v572_v50  ;;  %v447_v12 = vadd.f32 %v6615_v52, %v408_v33 }
  0xa0   : > { %v1499_v53 = vshrl.u32 %v6703_v45, 16  ;;  %v1502_v37 = vshll.u32 %v6703_v45, 16  ;;  %v938_v56 = vor.u32 %v936_v31, %v935_v46  ;;  %v940_v57 = vrot.slane %v935_v46, 4  ;;  %v627_v58 = vld [vmem:[#allocation2 + $0xb0] sm:$0x1] }
  0xa1   : > { %v509_v60 = vmax.f32 %v445_v54, %v477_v44  ;;  %v510_v61 = vmax.f32 %v446_v32, %v478_v47  ;;  %v1138_v26 = vsel %vm6349_vm12, %v930_v17, %v1137_v42  ;;  %v448_v20 = vadd.f32 %v6615_v52, %v409_v49  ;;  %v371_v32 = vld [vmem:[%s6281_s12 + $0xe0] sm:$0xff] }
  0xa2   : > { %v6714_v63 = vld [vmem:[#allocation2 + $0x88] sm:$0xf]  ;;  %v6716_v1 = vld [vmem:[#allocation2 + $0x8c] sm:$0x1]  ;;  %v1501_v8 = vrot.slane %v1499_v53, 4  ;;  %v1504_v9 = vrot.slane %v1502_v37, 5  ;;  %v939_v0 = vsel %vm6360_vm13, %v931_v55, %v938_v56  ;;  %v1142_v10 = vsel %vm6252_vm5, %v940_v57, %v1141_v59 }
  0xa3   : > { %v1508_v14 = vshll.u32 %v6714_v63, 16  ;;  %v1512_v15 = vshrl.u32 %v6714_v63, 16  ;;  %v1518_v2 = vshll.u32 %v6716_v1, 16  ;;  %1139 = vst [vmem:[#allocation2 + $0x90] sm:$0xf] %v1138_v26  ;;  %v5117_v54 = vpack.c.bf16 %v509_v60, %v509_v60 }
  0xa4   : > { %v1505_v38 = vor.u32 %v1504_v9, %v1501_v8  ;;  %1140 = vst.msk [vmem:[#allocation2 + $0x94] sm:$0xf] %vm517_vm1, %v939_v0  ;;  %v5118_v16 = vpack.c.bf16 %v510_v61, %v510_v61  ;;  %1143 = vst [vmem:[#allocation2 + $0x98] sm:$0x1] %v1142_v10  ;;  %v479_v44 = vmul.f32 0.1, %v447_v12  ;;  %v410_v55 = vmul.f32 %v6599_v43, %v371_v32 }
  0xa5   : > { %v1510_v19 = vrot.slane %v1508_v14, 5  ;;  %v1514_v3 = vrot.slane %v1512_v15, 4  ;;  %v1520_v41 = vrot.slane %v1518_v2, 5  ;;  %v942_v24 = vshrl.u32 %v5117_v54, 16  ;;  %v1144_v8 = vld [vmem:[#allocation2 + $0x9c] sm:$0xf] }
  0xa6   : > { %v1506_v22 = vrot.slane %v1505_v38, 4  ;;  %v945_v30 = vshll.u32 %v5117_v54, 16  ;;  %v950_v31 = vshrl.u32 %v5118_v16, 16  ;;  %v953_v42 = vshll.u32 %v5118_v16, 16  ;;  %v1148_v15 = vld [vmem:[#allocation2 + $0xa4] sm:$0x1] }
  0xa7   : > { %v1515_v39 = vor.u32 %v1514_v3, %v1510_v19  ;;  %v480_v33 = vmul.f32 0.1, %v448_v20  ;;  %v944_v47 = vrot.slane %v942_v24, 7  ;;  %v628_v53 = vsel %vm6261_vm6, 0, %v627_v58  ;;  %v372_v58 = vld [vmem:[%s6281_s12 + $0xe8] sm:$0xff] }
  0xa8   : > { %v1511_v46 = vsel %vm6338_vm11, %v1506_v22, %v1510_v19  ;;  %v952_v50 = vrot.slane %v950_v31, 7  ;;  %v511_v49 = vmax.f32 %v447_v12, %v479_v44  ;;  %629 = vst [vmem:[#allocation2 + $0xb0] sm:$0x1] %v628_v53  ;;  %v574_v32 = vld [vmem:[#allocation2 + $0xb4] sm:$0x1]  ;;  %v2219_v27 = vrot.slane %v6036_v7, 5 }
  0xa9   : > { %v1516_v37 = vrot.slane %v1515_v39, 4  ;;  %v512_v17 = vmax.f32 %v448_v20, %v480_v33  ;;  %v947_v57 = vor.u32 %v945_v30, %v944_v47  ;;  %v948_v59 = vrot.slane %v944_v47, 4 }
  0xaa   : > { %v6736_v56 = vld [vmem:[#allocation2 + $0x90] sm:$0xf]  ;;  %v955_v60 = vor.u32 %v953_v42, %v952_v50  ;;  %v957_v61 = vrot.slane %v952_v50, 4  ;;  %v5119_v2 = vpack.c.bf16 %v511_v49, %v511_v49  ;;  %vm3961_vm3 = vcmask 57344  }
  0xab   : > { %v1521_v9 = vsel %vm6338_vm11, %v1516_v37, %v1520_v41  ;;  %v6740_v26 = vld [vmem:[#allocation2 + $0x94] sm:$0xf]  ;;  %v1523_v14 = vshrl.u32 %v6736_v56, 16  ;;  %v1526_v12 = vshll.u32 %v6736_v56, 16  ;;  %v6746_v38 = vld [vmem:[#allocation2 + $0x98] sm:$0x1]  ;;  %v1145_v20 = vsel %vm6349_vm12, %v947_v57, %v1144_v8 }
  0xac   : > { %v6744_v0 = vcombine.low %v1511_v46, %v1521_v9  ;;  %v1532_v10 = vshll.u32 %v6740_v26, 16  ;;  %v1536_v54 = vshrl.u32 %v6740_v26, 16  ;;  %v956_v16 = vsel %vm6360_vm13, %v948_v59, %v955_v60  ;;  %1146 = vst [vmem:[#allocation2 + $0x9c] sm:$0xf] %v1145_v20  ;;  %v630_v46 = vld [vmem:[#allocation2 + $0xbc] sm:$0x1] }
  0xad   : > { %v1525_v19 = vrot.slane %v1523_v14, 4  ;;  %v1528_v3 = vrot.slane %v1526_v12, 5  ;;  %v1542_v41 = vshll.u32 %v6746_v38, 16  ;;  %1147 = vst.msk [vmem:[#allocation2 + $0xa0] sm:$0xf] %vm517_vm1, %v956_v16  ;;  %v1149_v30 = vsel %vm6252_vm5, %v957_v61, %v1148_v15 }
  0xae   : > { %7785 = vst [vmem:[#allocation15_spill] sm:$0xff] %v6744_v0  ;;  %5382 = vmatmul.mubr.msk.bf16.gmra.mrb[20].mxu1 %vm1668_vm10, %v6744_v0  ;;  %5517 = vmatprep.mubr.msk.bf16.mxu0 %vm1668_vm10, %v6744_v0  ;;  %v1534_v22 = vrot.slane %v1532_v10, 5  ;;  %v1538_v24 = vrot.slane %v1536_v54, 4  ;;  %v5120_v31 = vpack.c.bf16 %v512_v17, %v512_v17  ;;  %1150 = vst [vmem:[#allocation2 + $0xa4] sm:$0x1] %v1149_v30  ;;  %v959_v44 = vshrl.u32 %v5119_v2, 16 }
  0xaf   : > { %v1529_v39 = vor.u32 %v1528_v3, %v1525_v19  ;;  %v1544_v42 = vrot.slane %v1542_v41, 5  ;;  %v962_v33 = vshll.u32 %v5119_v2, 16  ;;  %v411_v37 = vmul.f32 %v6599_v43, %v372_v58  ;;  %v1151_v8 = vld [vmem:[#allocation2 + $0xa8] sm:$0xf]  ;;  %v1155_v10 = vld [vmem:[#allocation2 + $0xb0] sm:$0x1] }
  0xb0   : > { %v1539_v47 = vor.u32 %v1538_v24, %v1534_v22  ;;  %v967_v50 = vshrl.u32 %v5120_v31, 16  ;;  %v970_v53 = vshll.u32 %v5120_v31, 16  ;;  %v961_v57 = vrot.slane %v959_v44, 7  ;;  %v373_v31 = vld [vmem:[%s6281_s12 + $0xf0] sm:$0xff] }
  0xb1   : > { %v1530_v49 = vrot.slane %v1529_v39, 4  ;;  %v449_v59 = vadd.f32 %v6615_v52, %v410_v55  ;;  %v575_v60 = vsel %vm6252_vm5, 0, %v574_v32  ;;  %v450_v9 = vadd.f32 %v6615_v52, %v411_v37 }
  0xb2   : > { %v1540_v17 = vrot.slane %v1539_v47, 4  ;;  %v969_v61 = vrot.slane %v967_v50, 7  ;;  %576 = vst [vmem:[#allocation2 + $0xb4] sm:$0x1] %v575_v60  ;;  %v631_v14 = vsel %vm6261_vm6, 0, %v630_v46  ;;  %v964_v15 = vor.u32 %v962_v33, %v961_v57  ;;  %v374_v46 = vld [vmem:[%s6281_s12 + $0xf8] sm:$0xff] }
  0xb3   : > { %v1535_v12 = vsel %vm6338_vm11, %v1530_v49, %v1534_v22  ;;  %v965_v2 = vrot.slane %v961_v57, 4  ;;  %v481_v55 = vmul.f32 0.1, %v449_v59  ;;  %632 = vst [vmem:[#allocation2 + $0xbc] sm:$0x1] %v631_v14  ;;  %s4570_s12 = scalar_lea.sflag [#allocation4], %s310_s20 }
  0xb4   : > { %v1545_v54 = vsel %vm6338_vm11, %v1540_v17, %v1544_v42  ;;  %v6774_v16 = vld [vmem:[#allocation2 + $0xa0] sm:$0xf]  ;;  %v972_v19 = vor.u32 %v970_v53, %v969_v61  ;;  %v974_v3 = vrot.slane %v969_v61, 4  ;;  %v482_v41 = vmul.f32 0.1, %v450_v9 }
  0xb5   : > { %v6776_v20 = vcombine.low %v1535_v12, %v1545_v54  ;;  %v6778_v58 = vld [vmem:[#allocation2 + $0x9c] sm:$0xf]  ;;  %v1556_v22 = vshll.u32 %v6774_v16, 16  ;;  %v1560_v24 = vshrl.u32 %v6774_v16, 16  ;;  %v1152_v30 = vsel %vm6349_vm12, %v964_v15, %v1151_v8  ;;  %v6785_v32 = vld [vmem:[#allocation2 + $0xa4] sm:$0x1] }
  0xb6   : > { %v1547_v39 = vshrl.u32 %v6778_v58, 16  ;;  %v1550_v42 = vshll.u32 %v6778_v58, 16  ;;  %v973_v44 = vsel %vm6360_vm13, %v965_v2, %v972_v19  ;;  %1153 = vst [vmem:[#allocation2 + $0xa8] sm:$0xf] %v1152_v30  ;;  %v1156_v33 = vsel %vm6252_vm5, %v974_v3, %v1155_v10  ;;  %v577_v49 = vld [vmem:[#allocation2 + $0xc0] sm:$0x1] }
  0xb7   : > { %7786 = vst [vmem:[#allocation16_spill] sm:$0xff] %v6776_v20  ;;  %5518 = vmatmul.mubr.msk.bf16.gmra.mrb[20].mxu0 %vm1668_vm10, %v6776_v20  ;;  %5385 = vmatprep.mubr.msk.bf16.mxu1 %vm1668_vm10, %v6776_v20  ;;  %v1558_v47 = vrot.slane %v1556_v22, 5  ;;  %v1562_v50 = vrot.slane %v1560_v24, 4  ;;  %v1566_v53 = vshll.u32 %v6785_v32, 16  ;;  %1154 = vst.msk [vmem:[#allocation2 + $0xac] sm:$0xf] %vm517_vm1, %v973_v44  ;;  %v513_v37 = vmax.f32 %v449_v59, %v481_v55 }
  0xb8   : > { %1157 = vst [vmem:[#allocation2 + $0xb0] sm:$0x1] %v1156_v33  ;;  %v1549_v57 = vrot.slane %v1547_v39, 4  ;;  %v1552_v60 = vrot.slane %v1550_v42, 5  ;;  %v514_v17 = vmax.f32 %v450_v9, %v482_v41  ;;  %v412_v61 = vmul.f32 %v6599_v43, %v373_v31  ;;  %v633_v3 = vld [vmem:[#allocation2 + $0xc8] sm:$0x1] }
  0xb9   : > { %v1563_v8 = vor.u32 %v1562_v50, %v1558_v47  ;;  %v1568_v14 = vrot.slane %v1566_v53, 5  ;;  %v5121_v12 = vpack.c.bf16 %v513_v37, %v513_v37  ;;  %v413_v15 = vmul.f32 %v6599_v43, %v374_v46  ;;  %v6034_v20 = vld [vmem:[#allocation2 + $0x18] sm:$0xf] }
  0xba   : > { %v1553_v2 = vor.u32 %v1552_v60, %v1549_v57  ;;  %v5122_v10 = vpack.c.bf16 %v514_v17, %v514_v17  ;;  %v451_v54 = vadd.f32 %v6615_v52, %v412_v61  ;;  %v578_v19 = vsel %vm6252_vm5, 0, %v577_v49 }
  0xbb   : > { %v1564_v59 = vrot.slane %v1563_v8, 4  ;;  %v976_v55 = vshrl.u32 %v5121_v12, 16  ;;  %v979_v22 = vshll.u32 %v5121_v12, 16  ;;  %v452_v9 = vadd.f32 %v6615_v52, %v413_v15  ;;  %579 = vst [vmem:[#allocation2 + $0xc0] sm:$0x1] %v578_v19 }
  0xbc   : > { %v1554_v41 = vrot.slane %v1553_v2, 4  ;;  %v984_v24 = vshrl.u32 %v5122_v10, 16  ;;  %v987_v30 = vshll.u32 %v5122_v10, 16  ;;  %v483_v31 = vmul.f32 0.1, %v451_v54 }
  0xbd   : > { %v1569_v43 = vsel %vm6338_vm11, %v1564_v59, %v1568_v14  ;;  %v6808_v39 = vld [vmem:[#allocation2 + $0xa8] sm:$0xf]  ;;  %v978_v42 = vrot.slane %v976_v55, 7  ;;  %v484_v44 = vmul.f32 0.1, %v452_v9  ;;  %v634_v33 = vsel %vm6261_vm6, 0, %v633_v3 }
  0xbe   : > { %v1559_v46 = vsel %vm6338_vm11, %v1554_v41, %v1558_v47  ;;  %v6814_v50 = vld [vmem:[#allocation2 + $0xac] sm:$0xf]  ;;  %v1571_v53 = vshrl.u32 %v6808_v39, 16  ;;  %v1574_v37 = vshll.u32 %v6808_v39, 16  ;;  %v515_v49 = vmax.f32 %v451_v54, %v483_v31  ;;  %635 = vst [vmem:[#allocation2 + $0xc8] sm:$0x1] %v634_v33 }
  0xbf   : > { %v6816_v52 = vld [vmem:[#allocation2 + $0xb0] sm:$0x1]  ;;  %v6820_v57 = vcombine.low %v1559_v46, %v1569_v43  ;;  %v1580_v60 = vshll.u32 %v6814_v50, 16  ;;  %v1584_v17 = vshrl.u32 %v6814_v50, 16  ;;  %v1158_v8 = vld [vmem:[#allocation2 + $0xb4] sm:$0xf]  ;;  %v981_v12 = vor.u32 %v979_v22, %v978_v42 }
  0xc0   : > { %v1590_v61 = vshll.u32 %v6816_v52, 16  ;;  %v1573_v47 = vrot.slane %v1571_v53, 4  ;;  %v1576_v14 = vrot.slane %v1574_v37, 5  ;;  %v982_v10 = vrot.slane %v978_v42, 4  ;;  %v1162_v59 = vld [vmem:[#allocation2 + $0xbc] sm:$0x1] }
  0xc1   : > { %7787 = vst [vmem:[#allocation17_spill] sm:$0xff] %v6820_v57  ;;  %5386 = vmatmul.mubr.msk.bf16.gmra.mrb[24].mxu1 %vm1668_vm10, %v6820_v57  ;;  %5521 = vmatprep.mubr.msk.bf16.mxu0 %vm1668_vm10, %v6820_v57  ;;  %v1582_v15 = vrot.slane %v1580_v60, 5  ;;  %v1586_v2 = vrot.slane %v1584_v17, 4  ;;  %v986_v54 = vrot.slane %v984_v24, 7  ;;  %v1159_v3 = vsel %vm6349_vm12, %v981_v12, %v1158_v8  ;;  %v6033_v57 = vld [vmem:[#allocation2 + $0x34] sm:$0xf] }
  0xc2   : > { %v1577_v19 = vor.u32 %v1576_v14, %v1573_v47  ;;  %v516_v55 = vmax.f32 %v452_v9, %v484_v44  ;;  %v5123_v41 = vpack.c.bf16 %v515_v49, %v515_v49  ;;  %v1592_v43 = vrot.slane %v1590_v61, 5  ;;  %1160 = vst [vmem:[#allocation2 + $0xb4] sm:$0xf] %v1159_v3  ;;  %v1165_v61 = vld [vmem:[#allocation2 + $0xc0] sm:$0xf] }
  0xc3   : > { %v1587_v31 = vor.u32 %v1586_v2, %v1582_v15  ;;  %v989_v22 = vor.u32 %v987_v30, %v986_v54  ;;  %v991_v33 = vrot.slane %v986_v54, 4  ;;  %v4849_v0 = vrot.slane %v6034_v20, 9 }
  0xc4   : > { %v1578_v46 = vrot.slane %v1577_v19, 4  ;;  %v5124_v53 = vpack.c.bf16 %v516_v55, %v516_v55  ;;  %v993_v37 = vshrl.u32 %v5123_v41, 16  ;;  %v996_v23 = vshll.u32 %v5123_v41, 16 }
  0xc5   : > { %v1588_v60 = vrot.slane %v1587_v31, 4  ;;  %v990_v24 = vsel %vm6360_vm13, %v982_v10, %v989_v22  ;;  %v1163_v42 = vsel %vm6252_vm5, %v991_v33, %v1162_v59  ;;  %v1169_v2 = vld [vmem:[#allocation2 + $0xc8] sm:$0x1]  ;;  %v2296_v40 = vrot.slane %v6816_v52, 5 }
  0xc6   : > { %v1583_v9 = vsel %vm6338_vm11, %v1578_v46, %v1582_v15  ;;  %1161 = vst.msk [vmem:[#allocation2 + $0xb8] sm:$0xf] %vm517_vm1, %v990_v24  ;;  %1164 = vst [vmem:[#allocation2 + $0xbc] sm:$0x1] %v1163_v42  ;;  %v995_v30 = vrot.slane %v993_v37, 7  ;;  %v1001_v44 = vshrl.u32 %v5124_v53, 16 }
  0xc7   : > { %v1004_v49 = vshll.u32 %v5124_v53, 16  ;;  %v1593_v17 = vsel %vm6338_vm11, %v1588_v60, %v1592_v43  ;;  %v6025_v60 = vld [vmem:[#allocation2 + $0x10] sm:$0xf] }
  0xc8   : > { %v6840_v8 = vcombine.low %v1583_v9, %v1593_v17  ;;  %v998_v47 = vor.u32 %v996_v23, %v995_v30  ;;  %v999_v14 = vrot.slane %v995_v30, 4  ;;  %v1003_v12 = vrot.slane %v1001_v44, 7 }
  0xc9   : > { %v6846_v15 = vld [vmem:[#allocation2 + $0xb4] sm:$0xf]  ;;  %v2202_v24 = vrot.slane %v6025_v60, 5 }
  0xca   : > { %7788 = vst [vmem:[#allocation18_spill] sm:$0xff] %v6840_v8  ;;  %5522 = vmatmul.mubr.msk.bf16.gmra.mrb[24].mxu0 %vm1668_vm10, %v6840_v8  ;;  %5389 = vmatprep.mubr.msk.bf16.mxu1 %vm1668_vm10, %v6840_v8  ;;  %v1006_v10 = vor.u32 %v1004_v49, %v1003_v12  ;;  %v1008_v54 = vrot.slane %v1003_v12, 4  ;;  %v1166_v19 = vsel %vm6349_vm12, %v998_v47, %v1165_v61  ;;  %v1595_v3 = vshrl.u32 %v6846_v15, 16  ;;  %v6026_v61 = vld [vmem:[#allocation2 + $0xc] sm:$0xf] }
  0xcb   : > { %v1598_v23 = vshll.u32 %v6846_v15, 16  ;;  %1167 = vst [vmem:[#allocation2 + $0xc0] sm:$0xf] %v1166_v19  ;;  %v4848_v47 = vrot.slane %v6026_v61, 9 }
  0xcc   : > { %v1007_v59 = vsel %vm6360_vm13, %v999_v14, %v1006_v10  ;;  %v1170_v55 = vsel %vm6252_vm5, %v1008_v54, %v1169_v2  ;;  %v1597_v43 = vrot.slane %v1595_v3, 4  ;;  %v6027_v14 = vld [vmem:[#allocation2 + $0x14] sm:$0x1]  ;;  %v2204_v3 = vrot.slane %v2202_v24, 4 }
  0xcd   : > { %v6856_v41 = vld [vmem:[#allocation2 + $0xb8] sm:$0xf]  ;;  %v6858_v31 = vld [vmem:[#allocation2 + $0xbc] sm:$0x1]  ;;  %v1600_v22 = vrot.slane %v1598_v23, 5  ;;  %v2205_v12 = vrot.slane %v6027_v14, 5 }
  0xce   : > { %1168 = vst.msk [vmem:[#allocation2 + $0xc4] sm:$0xf] %vm517_vm1, %v1007_v59  ;;  %1171 = vst [vmem:[#allocation2 + $0xc8] sm:$0x1] %v1170_v55  ;;  %v1604_v28 = vshll.u32 %v6856_v41, 16  ;;  %v1608_v33 = vshrl.u32 %v6856_v41, 16 }
  0xcf   : > { %v1614_v46 = vshll.u32 %v6858_v31, 16  ;;  %v1601_v35 = vor.u32 %v1600_v22, %v1597_v43  ;;  %vm6878_vm1 = vmor %vm2190_vm14, %vm2191_vm15  ;;  %v2300_v52 = vrot.slane %v6856_v41, 5 }
  0xd0   : > { %v1606_v53 = vrot.slane %v1604_v28, 5  ;;  %v1610_v37 = vrot.slane %v1608_v33, 4  ;;  %v2203_v8 = vsel %vm6878_vm1, %v4848_v47, %v2202_v24  ;;  %v2223_v24 = vrot.slane %v6033_v57, 5 }
  0xd1   : > { %v1602_v42 = vrot.slane %v1601_v35, 4  ;;  %v1616_v30 = vrot.slane %v1614_v46, 5  ;;  %v6885_v46 = vld [vmem:[#allocation2 + $0x4] sm:$0xf]  ;;  %v6887_v35 = vld [vmem:[#allocation2] sm:$0xf] }
  0xd2   : > { %v1611_v9 = vor.u32 %v1610_v37, %v1606_v53  ;;  %v6864_v44 = vld [vmem:[#allocation2 + $0xc0] sm:$0xf] }
  0xd3   : > { %v2806_v49 = vshrl.u32 %v6864_v44, 16  ;;  %v2809_v17 = vshll.u32 %v6864_v44, 16  ;;  %v1607_v2 = vsel %vm6338_vm11, %v1602_v42, %v1606_v53  ;;  %v4815_v53 = vcombine.low %v6887_v35, %v6885_v46 }
  0xd4   : > { %v1612_v10 = vrot.slane %v1611_v9, 4 }
  0xd5   : > { %v6870_v54 = vld [vmem:[#allocation2 + $0xc4] sm:$0xf]  ;;  %v6872_v19 = vld [vmem:[#allocation2 + $0xc8] sm:$0x1]  ;;  %v2808_v23 = vrot.slane %v2806_v49, 4  ;;  %v2811_v59 = vrot.slane %v2809_v17, 5 }
  0xd6   : > { %v2815_v55 = vshll.u32 %v6870_v54, 16  ;;  %v2819_v43 = vshrl.u32 %v6870_v54, 16  ;;  %v1617_v28 = vsel %vm6338_vm11, %v1612_v10, %v1616_v30  ;;  %v2825_v33 = vshll.u32 %v6872_v19, 16  ;;  %v6030_v17 = vld [vmem:[#allocation2 + $0x1c] sm:$0xf] }
  0xd7   : > { %v6891_v37 = vcombine.low %v1607_v2, %v1617_v28  ;;  %v2812_v42 = vor.u32 %v2811_v59, %v2808_v23  ;;  %v2209_v14 = vrot.slane %v6030_v17, 5  ;;  %v2206_v30 = vsel %vm6878_vm1, %v2204_v3, %v2205_v12  ;;  %v6031_v23 = vld [vmem:[#allocation2 + $0x28] sm:$0xf] }
  0xd8   : > { %v2817_v9 = vrot.slane %v2815_v55, 5  ;;  %v2821_v49 = vrot.slane %v2819_v43, 4  ;;  %v2827_v28 = vrot.slane %v2825_v33, 5  ;;  %v2216_v59 = vrot.slane %v6031_v23, 5  ;;  %v6032_v55 = vld [vmem:[#allocation2 + $0x20] sm:$0x1] }
  0xd9   : > { %7791 = vst [vmem:[#allocation19_spill] sm:$0xff] %v6891_v37  ;;  %5390 = vmatmul.mubr.msk.bf16.gmra.mrb[28].mxu1 %vm1668_vm10, %v6891_v37  ;;  %5525 = vmatprep.mubr.msk.bf16.mxu0 %vm1668_vm10, %v6891_v37  ;;  %v2813_v10 = vrot.slane %v2812_v42, 4  ;;  %v2212_v43 = vrot.slane %v6032_v55, 5  ;;  %v6904_v3 = vcombine.low %v6026_v61, %v6025_v60  ;;  %v6906_v37 = vcombine.low %v2203_v8, %v2206_v30  ;;  %v6038_v60 = vld [vmem:[#allocation2 + $0x30] sm:$0xf] }
  0xda   : > { %v2822_v2 = vor.u32 %v2821_v49, %v2817_v9  ;;  %5395 = vmatprep.mubr.msk.bf16.mxu1 %vm1668_vm10, %v4815_v53  ;;  %v2211_v42 = vrot.slane %v2209_v14, 4  ;;  %v6908_v33 = vcombine.low %v6034_v20, %v6030_v17  ;;  %v6035_v49 = vld [vmem:[#allocation2 + $0x24] sm:$0xf]  ;;  %v2218_v55 = vrot.slane %v2216_v59, 4  ;;  %v6039_v8 = vld [vmem:[#allocation2 + $0x38] sm:$0x1] }
  0xdb   : > { %v2818_v47 = vsel %vm6338_vm11, %v2813_v10, %v2817_v9  ;;  %v4850_v34 = vrot.slane %v6035_v49, 9  ;;  %v2230_v9 = vrot.slane %v6037_v11, 5  ;;  %v4851_v61 = vrot.slane %v6038_v60, 9 }
  0xdc   : > { %v2823_v12 = vrot.slane %v2822_v2, 4  ;;  %v2225_v2 = vrot.slane %v2223_v24, 4  ;;  %v2226_v30 = vrot.slane %v6039_v8, 5  ;;  %v2404_v20 = vsel %vm1717_vm0, %v6576_v4, 0 }
  0xdd   : > { %v2210_v17 = vsel %vm6878_vm1, %v4849_v0, %v2209_v14  ;;  %v2213_v7 = vsel %vm6878_vm1, %v2211_v42, %v2212_v43  ;;  %v2220_v4 = vsel %vm6878_vm1, %v2218_v55, %v2219_v27  ;;  %v6040_v0 = vld [vmem:[#allocation2 + $0x3c] sm:$0xf]  ;;  %v2232_v43 = vrot.slane %v2230_v9, 4  ;;  %v6042_v27 = vld [vmem:[%s7728_s1 + $0xc] sm:$0x3] }
  0xde   : > { %v2828_v53 = vsel %vm6338_vm11, %v2823_v12, %v2827_v28  ;;  %v2217_v28 = vsel %vm6878_vm1, %v4850_v34, %v2216_v59  ;;  %v4852_v14 = vrot.slane %v6040_v0, 9  ;;  %v6041_v12 = vld [vmem:[#allocation2 + $0x44] sm:$0x1]  ;;  %v2224_v34 = vsel %vm6878_vm1, %v4851_v61, %v2223_v24  ;;  %v6043_v61 = vld [vmem:[#allocation2 + $0x4c] sm:$0xf] }
  0xdf   : > { %v6912_v10 = vcombine.low %v2818_v47, %v2828_v53  ;;  %v6927_v47 = vld [vmem:[%s7728_s1 + $0x6] sm:$0x3]  ;;  %v2233_v42 = vrot.slane %v6041_v12, 5  ;;  %v2227_v59 = vsel %vm6878_vm1, %v2225_v2, %v2226_v30  ;;  %v6941_v53 = vcombine.low %v2210_v17, %v2213_v7 }
  0xe0   : > { %v3256_v55 = vsel %vm1717_vm0, %v6042_v27, 0  ;;  %v6949_v8 = vcombine.low %v6035_v49, %v6031_v23  ;;  %v6951_v12 = vcombine.low %v2217_v28, %v2220_v4  ;;  %v6953_v24 = vcombine.low %v6038_v60, %v6033_v57  ;;  %v6044_v27 = vld [vmem:[#allocation2 + $0x48] sm:$0xf]  ;;  %v6045_v23 = vld [vmem:[#allocation2 + $0x50] sm:$0x1] }
  0xe1   : > { %7792 = vst [vmem:[#allocation20_spill] sm:$0xff] %v6912_v10  ;;  %5526 = vmatmul.mubr.msk.bf16.gmra.mrb[28].mxu0 %vm1668_vm10, %v6912_v10  ;;  %5396 = vmatmul.mubr.msk.bf16.vlgmr.msra.gmra.mrb[0].mxu1 %vm1668_vm10, %v6904_v3  ;;  %v2237_v2 = vrot.slane %v6043_v61, 5  ;;  %v6955_v30 = vcombine.low %v2224_v34, %v2227_v59  ;;  %v2231_v17 = vsel %vm6878_vm1, %v4852_v14, %v2230_v9  ;;  %v4853_v18 = vrot.slane %v6044_v27, 9  ;;  %v6966_v60 = vld [vmem:[#allocation2 + $0x58] sm:$0xf] }
  0xe2   : > { %5531 = vmatprep.mubr.msk.bf16.mxu0 %vm1668_vm10, %v6906_v37  ;;  %5399 = vmatprep.mubr.msk.bf16.mxu1 %vm1668_vm10, %v6908_v33  ;;  %v2234_v7 = vsel %vm6878_vm1, %v2232_v43, %v2233_v42  ;;  %v2240_v49 = vrot.slane %v6045_v23, 5  ;;  %v6963_v28 = vcombine.low %v6044_v27, %v6043_v61  ;;  %v4859_v57 = vrot.slane %v6736_v56, 9  ;;  %v6047_v42 = vld [vmem:[#allocation2 + $0x54] sm:$0xf] }
  0xe3   : > { %5428 = vmatpush3.bf16.msra.mxu1 %v2404_v20  ;;  %v6957_v20 = vcombine.low %v6040_v0, %v6037_v11  ;;  %v2244_v4 = vrot.slane %v6966_v60, 5  ;;  %v2279_v11 = vrot.slane %v6740_v26, 5  ;;  %v2282_v0 = vrot.slane %v6746_v38, 5  ;;  %v6986_v38 = vld [vmem:[%s7728_s1 + $0xe] sm:$0x3] }
  0xe4   : > { %5958 = vmatprep.subr.msk.bf16.mxu1 %vm1717_vm0, %v6927_v47  ;;  %v6973_v9 = vcombine.low %v6736_v56, %v6740_v26  ;;  %v6977_v14 = vcombine.low %v2231_v17, %v2234_v7  ;;  %v2239_v43 = vrot.slane %v2237_v2, 4  ;;  %v4854_v34 = vrot.slane %v6047_v42, 9  ;;  %v6048_v7 = vld [vmem:[#allocation2 + $0x5c] sm:$0x1] }
  0xe5   : > { %v6981_v59 = vcombine.low %v6778_v58, %v6774_v16  ;;  %v2280_v56 = vsel %vm6878_vm1, %v4859_v57, %v2279_v11  ;;  %v2281_v26 = vrot.slane %v2279_v11, 4  ;;  %v4860_v61 = vrot.slane %v6778_v58, 9 }
  0xe6   : > { %v2286_v17 = vrot.slane %v6774_v16, 5  ;;  %v2247_v27 = vrot.slane %v6048_v7, 5  ;;  %v4861_v23 = vrot.slane %v6808_v39, 9  ;;  %v2293_v10 = vrot.slane %v6814_v50, 5 }
  0xe7   : > { %v2246_v57 = vrot.slane %v2244_v4, 4  ;;  %v2283_v58 = vsel %vm6878_vm1, %v2281_v26, %v2282_v0  ;;  %v7016_v0 = vcombine.low %v6808_v39, %v6814_v50  ;;  %v7020_v26 = vcombine.low %v6846_v15, %v6856_v41 }
  0xe8   : > { %v2287_v16 = vsel %vm6878_vm1, %v4860_v61, %v2286_v17  ;;  %v2288_v11 = vrot.slane %v2286_v17, 4  ;;  %v7007_v21 = vcombine.low %v2280_v56, %v2283_v58  ;;  %v2295_v7 = vrot.slane %v2293_v10, 4  ;;  %v6049_v58 = vld [vmem:[#allocation2 + $0x64] sm:$0xf] }
  0xe9   : > { %5532 = vmatmul.mubr.msk.bf16.vlgmr.msra.gmra.mrb[0].mxu0 %vm1668_vm10, %v6941_v53  ;;  %5400 = vmatmul.mubr.msk.bf16.gmra.mrb[4].mxu1 %vm1668_vm10, %v6949_v8  ;;  %v4862_v56 = vrot.slane %v6846_v15, 9  ;;  %v2303_v17 = vrot.slane %v6858_v31, 5  ;;  %v4932_v39 = vrot.slane %v6864_v44, 9  ;;  %v3036_v50 = vrot.slane %v6870_v54, 5  ;;  %v580_v31 = vld [vmem:[#allocation2 + $0xcc] sm:$0x1] }
  0xea   : > { %5564 = vmatpush3.bf16.msra.mxu0 %v3256_v55  ;;  %5535 = vmatprep.mubr.msk.bf16.mxu0 %vm1668_vm10, %v6951_v12  ;;  %v2289_v55 = vrot.slane %v6785_v32, 5  ;;  %v2294_v32 = vsel %vm6878_vm1, %v4861_v23, %v2293_v10  ;;  %v2297_v10 = vsel %vm6878_vm1, %v2295_v7, %v2296_v40  ;;  %v3039_v23 = vrot.slane %v6872_v19, 5 }
  0xeb   : > { %5403 = vmatprep.mubr.msk.bf16.mxu1 %vm1668_vm10, %v6953_v24  ;;  %5962 = vmatprep.subr.msk.bf16.mxu0 %vm1717_vm0, %v6986_v38  ;;  %v2241_v40 = vsel %vm6878_vm1, %v2239_v43, %v2240_v49  ;;  %v2301_v15 = vsel %vm6878_vm1, %v4862_v56, %v2300_v52  ;;  %v2302_v41 = vrot.slane %v2300_v52, 4  ;;  %v2245_v19 = vsel %vm6878_vm1, %v4854_v34, %v2244_v4  ;;  %v6051_v52 = vld [vmem:[#allocation2 + $0x68] sm:$0x1] }
  0xec   : > { %v2290_v51 = vsel %vm6878_vm1, %v2288_v11, %v2289_v55  ;;  %v7029_v55 = vcombine.low %v2294_v32, %v2297_v10  ;;  %v2248_v49 = vsel %vm6878_vm1, %v2246_v57, %v2247_v27  ;;  %v2258_v43 = vrot.slane %v6627_v29, 5 }
  0xed   : > { %v7023_v61 = vcombine.low %v2287_v16, %v2290_v51  ;;  %v2238_v51 = vsel %vm6878_vm1, %v4853_v18, %v2237_v2  ;;  %v2251_v16 = vrot.slane %v6049_v58, 5  ;;  %v3037_v18 = vsel %vm6878_vm1, %v4932_v39, %v3036_v50 }
  0xee   : > { %v3038_v2 = vrot.slane %v3036_v50, 4  ;;  %v2304_v11 = vsel %vm6878_vm1, %v2302_v41, %v2303_v17  ;;  %v7059_v4 = vcombine.low %v6864_v44, %v6870_v54  ;;  %v581_v7 = vsel %vm6252_vm5, 0, %v580_v31  ;;  %v6050_v44 = vld [vmem:[#allocation2 + $0x60] sm:$0xf]  ;;  %v6052_v50 = vld [vmem:[#allocation2 + $0x6c] sm:$0xf] }
  0xef   : > { %v7061_v34 = vcombine.low %v2301_v15, %v2304_v11  ;;  %v7067_v56 = vcombine.low %v2238_v51, %v2241_v40  ;;  %v7070_v27 = vcombine.low %v6047_v42, %v6966_v60  ;;  %582 = vst [vmem:[#allocation2 + $0xcc] sm:$0x1] %v581_v7  ;;  %v7074_v57 = vcombine.low %v2245_v19, %v2248_v49  ;;  %v6053_v51 = vld [vmem:[#allocation2 + $0x74] sm:$0x1] }
  0xf0   : > { %v3040_v32 = vsel %vm6878_vm1, %v3038_v2, %v3039_v23  ;;  %v4855_v54 = vrot.slane %v6050_v44, 9  ;;  %v2253_v10 = vrot.slane %v2251_v16, 4  ;;  %v2254_v17 = vrot.slane %v6051_v52, 5 }
  0xf1   : > { %5536 = vmatmul.mubr.msk.bf16.gmra.mrb[4].mxu0 %vm1668_vm10, %v6955_v30  ;;  %5404 = vmatmul.mubr.msk.bf16.gmra.mrb[8].mxu1 %vm1668_vm10, %v6957_v20  ;;  %v7072_v29 = vcombine.low %v3037_v18, %v3040_v32  ;;  %v7076_v39 = vcombine.low %v6050_v44, %v6049_v58  ;;  %v4856_v5 = vrot.slane %v6052_v50, 9  ;;  %v2260_v23 = vrot.slane %v2258_v43, 4  ;;  %v6054_v18 = vld [vmem:[#allocation2 + $0x70] sm:$0xf] }
  0xf2   : > { %5539 = vmatprep.mubr.msk.bf16.mxu0 %vm1668_vm10, %v6977_v14  ;;  %5407 = vmatprep.mubr.msk.bf16.mxu1 %vm1668_vm10, %v6963_v28  ;;  %v2261_v40 = vrot.slane %v6053_v51, 5  ;;  %v2252_v60 = vsel %vm6878_vm1, %v4855_v54, %v2251_v16  ;;  %v2255_v42 = vsel %vm6878_vm1, %v2253_v10, %v2254_v17  ;;  %v2265_v15 = vrot.slane %v6664_v25, 5  ;;  %v636_v51 = vld [vmem:[#allocation2 + $0xd4] sm:$0x1] }
  0xf3   : > { %v2259_v41 = vsel %vm6878_vm1, %v4856_v5, %v2258_v43  ;;  %v2272_v19 = vrot.slane %v6714_v63, 5  ;;  %v7096_v58 = vcombine.low %v2252_v60, %v2255_v42  ;;  %v7098_v16 = vcombine.low %v6052_v50, %v6054_v18  ;;  %v6055_v5 = vld [vmem:[#allocation2 + $0x8] sm:$0x1]  ;;  %v4226_v42 = vld [vmem:[%s7731_s4] sm:$0x3] }
  0xf4   : > { %v2262_v31 = vsel %vm6878_vm1, %v2260_v23, %v2261_v40  ;;  %v4857_v49 = vrot.slane %v6654_v13, 9  ;;  %v2267_v11 = vrot.slane %v2265_v15, 4  ;;  %v2268_v32 = vrot.slane %v6670_v62, 5  ;;  %v7796_v18 = vld [vmem:[#allocation11_spill] sm:$0xff] }
  0xf5   : > { %v7100_v2 = vcombine.low %v2259_v41, %v2262_v31  ;;  %v7106_v43 = vcombine.low %v6654_v13, %v6664_v25  ;;  %v4858_v7 = vrot.slane %v6703_v45, 9  ;;  %v2274_v44 = vrot.slane %v2272_v19, 4 }
  0xf6   : > { %v2275_v54 = vrot.slane %v6716_v1, 5  ;;  %v2266_v62 = vsel %vm6878_vm1, %v4857_v49, %v2265_v15  ;;  %v2269_v13 = vsel %vm6878_vm1, %v2267_v11, %v2268_v32  ;;  %v7130_v52 = vcombine.low %v6703_v45, %v6714_v63  ;;  %v4988_v15 = vld [vmem:[%s7728_s1 + $0x10] sm:$0x3] }
  0xf7   : > { %v2273_v25 = vsel %vm6878_vm1, %v4858_v7, %v2272_v19  ;;  %v7126_v10 = vcombine.low %v2266_v62, %v2269_v13  ;;  %v2195_v50 = vrot.slane %v6885_v46, 5  ;;  %v2198_v23 = vrot.slane %v6055_v5, 5  ;;  %v7801_v11 = vld [vmem:[#allocation16_spill] sm:$0xff]  ;;  %v7802_v13 = vld [vmem:[#allocation17_spill] sm:$0xff] }
  0xf8   : > { %v2276_v1 = vsel %vm6878_vm1, %v2274_v44, %v2275_v54  ;;  %v4847_v45 = vrot.slane %v6887_v35, 9  ;;  %v637_v40 = vsel %vm6261_vm6, 0, %v636_v51  ;;  %v2610_v6 = vsel %vm1717_vm0, %v6927_v47, 0 }
  0xf9   : > { %5540 = vmatmul.mubr.msk.bf16.gmra.mrb[8].mxu0 %vm1668_vm10, %v7067_v56  ;;  %5408 = vmatmul.mubr.msk.bf16.gmra.mrb[12].mxu1 %vm1668_vm10, %v7070_v27  ;;  %v7132_v17 = vcombine.low %v2273_v25, %v2276_v1  ;;  %v2197_v63 = vrot.slane %v2195_v50, 4  ;;  %638 = vst [vmem:[#allocation2 + $0xd4] sm:$0x1] %v637_v40  ;;  %v3484_v47 = vsel %vm1717_vm0, %v6986_v38, 0  ;;  %v7241_v38 = vld [vmem:[#allocation2 + $0xd0] sm:$0xf] }
  0xfa   : > { %5543 = vmatprep.mubr.msk.bf16.mxu0 %vm1668_vm10, %v7074_v57  ;;  %5411 = vmatprep.mubr.msk.bf16.mxu1 %vm1668_vm10, %v7076_v39  ;;  %v2196_v46 = vsel %vm6878_vm1, %v4847_v45, %v2195_v50  ;;  %v4228_v31 = vsel %vm1717_vm0, %v4226_v42, 0  ;;  %v3696_v19 = vsel %vm1717_vm0, %v4988_v15, 0  ;;  %v3461_v32 = vshll.u32 %v7241_v38, 16  ;;  %v7805_v45 = vld [vmem:[#allocation20_spill] sm:$0xff]  ;;  %v7807_v40 = vld [vmem:[#allocation7_spill] sm:$0xff] }
  0xfb   : > { %v2199_v35 = vsel %vm6878_vm1, %v2197_v63, %v2198_v23  ;;  %v7804_v23 = vld [vmem:[#allocation19_spill] sm:$0xff] }
  0xfc   : > { %v4864_v60 = vcombine.low %v2196_v46, %v2199_v35  ;;  %v3463_v44 = vrot.slane %v3461_v32, 5 }
 0x100   : > { %v1229_v62 = vld [vmem:[#allocation2 + $0xd4] sm:$0x1] }
 0x101   : > { %5544 = vmatmul.mubr.msk.bf16.gmra.mrb[12].mxu0 %vm1668_vm10, %v7096_v58  ;;  %5412 = vmatmul.mubr.msk.bf16.gmra.mrb[16].mxu1 %vm1668_vm10, %v7098_v16 }
 0x102   : > { %5547 = vmatprep.mubr.msk.bf16.mxu0 %vm1668_vm10, %v7100_v2  ;;  %5415 = vmatprep.mubr.msk.bf16.mxu1 %vm1668_vm10, %v7106_v43 }
 0x109   : > { %5548 = vmatmul.mubr.msk.bf16.gmra.mrb[16].mxu0 %vm1668_vm10, %v7126_v10  ;;  %5416 = vmatmul.mubr.msk.bf16.gmra.mrb[20].mxu1 %vm1668_vm10, %v7130_v52 }
 0x10a   : > { %5551 = vmatprep.mubr.msk.bf16.mxu0 %vm1668_vm10, %v7132_v17  ;;  %5419 = vmatprep.mubr.msk.bf16.mxu1 %vm1668_vm10, %v6973_v9 }
 0x111   : > { %5552 = vmatmul.mubr.msk.bf16.gmra.mrb[20].mxu0 %vm1668_vm10, %v7007_v21  ;;  %5420 = vmatmul.mubr.msk.bf16.gmra.mrb[24].mxu1 %vm1668_vm10, %v6981_v59 }
 0x112   : > { %5555 = vmatprep.mubr.msk.bf16.mxu0 %vm1668_vm10, %v7023_v61  ;;  %5423 = vmatprep.mubr.msk.bf16.mxu1 %vm1668_vm10, %v7016_v0 }
 0x119   : > { %5556 = vmatmul.mubr.msk.bf16.gmra.mrb[24].mxu0 %vm1668_vm10, %v7029_v55  ;;  %5424 = vmatmul.mubr.msk.bf16.gmra.mrb[28].mxu1 %vm1668_vm10, %v7020_v26 }
 0x11a   : > { %5559 = vmatprep.mubr.msk.bf16.mxu0 %vm1668_vm10, %v7061_v34  ;;  %5429 = vmatprep.mubr.msk.bf16.mxu1 %vm1668_vm10, %v4864_v60 }
 0x121   : > { %5560 = vmatmul.mubr.msk.bf16.gmra.mrb[28].mxu0 %vm1668_vm10, %v7072_v29  ;;  %5430 = vmatmul.mubr.msk.bf16.vlgmr.msra.gmra.mrb[0].mxu1 %vm1668_vm10, %v6906_v37  ;;  %v7239_v37 = vld [vmem:[#allocation2 + $0xcc] sm:$0xf] }
 0x122   : > { %5565 = vmatprep.mubr.msk.bf16.mxu0 %vm1668_vm10, %v6908_v33  ;;  %5433 = vmatprep.mubr.msk.bf16.mxu1 %vm1668_vm10, %v6941_v53  ;;  %v4952_v41 = vcombine.low %v7239_v37, %v7241_v38  ;;  %v3455_v49 = vshll.u32 %v7239_v37, 16 }
 0x123   : > { %5462 = vmatpush3.bf16.msra.mxu1 %v2610_v6 }
 0x124   : > { %5964 = vmatprep.subr.msk.bf16.mxu1 %vm1717_vm0, %v4226_v42  ;;  %v3457_v7 = vrot.slane %v3455_v49, 5 }
 0x129   : > { %5566 = vmatmul.mubr.msk.bf16.vlgmr.msra.gmra.mrb[0].mxu0 %vm1668_vm10, %v6949_v8  ;;  %5434 = vmatmul.mubr.msk.bf16.gmra.mrb[4].mxu1 %vm1668_vm10, %v6951_v12 }
 0x12a   : > { %5598 = vmatpush3.bf16.msra.mxu0 %v3484_v47  ;;  %5569 = vmatprep.mubr.msk.bf16.mxu0 %vm1668_vm10, %v6953_v24 }
 0x12b   : > { %5437 = vmatprep.mubr.msk.bf16.mxu1 %vm1668_vm10, %v6955_v30  ;;  %5963 = vmatprep.subr.msk.bf16.mxu0 %vm1717_vm0, %v4988_v15  ;;  %vm4193_vm0 = vcmask 60416  }
 0x131   : > { %5570 = vmatmul.mubr.msk.bf16.gmra.mrb[4].mxu0 %vm1668_vm10, %v6957_v20  ;;  %5438 = vmatmul.mubr.msk.bf16.gmra.mrb[8].mxu1 %vm1668_vm10, %v6977_v14 }
 0x132   : > { %5573 = vmatprep.mubr.msk.bf16.mxu0 %vm1668_vm10, %v6963_v28  ;;  %5441 = vmatprep.mubr.msk.bf16.mxu1 %vm1668_vm10, %v7067_v56 }
 0x139   : > { %5574 = vmatmul.mubr.msk.bf16.gmra.mrb[8].mxu0 %vm1668_vm10, %v7070_v27  ;;  %5442 = vmatmul.mubr.msk.bf16.gmra.mrb[12].mxu1 %vm1668_vm10, %v7074_v57 }
 0x13a   : > { %5577 = vmatprep.mubr.msk.bf16.mxu0 %vm1668_vm10, %v7076_v39  ;;  %5445 = vmatprep.mubr.msk.bf16.mxu1 %vm1668_vm10, %v7096_v58 }
 0x141   : > { %5578 = vmatmul.mubr.msk.bf16.gmra.mrb[12].mxu0 %vm1668_vm10, %v7098_v16  ;;  %5446 = vmatmul.mubr.msk.bf16.gmra.mrb[16].mxu1 %vm1668_vm10, %v7100_v2 }
 0x142   : > { %5581 = vmatprep.mubr.msk.bf16.mxu0 %vm1668_vm10, %v7106_v43  ;;  %5449 = vmatprep.mubr.msk.bf16.mxu1 %vm1668_vm10, %v7126_v10 }
 0x149   : > { %5582 = vmatmul.mubr.msk.bf16.gmra.mrb[16].mxu0 %vm1668_vm10, %v7130_v52  ;;  %5450 = vmatmul.mubr.msk.bf16.gmra.mrb[20].mxu1 %vm1668_vm10, %v7132_v17 }
 0x14a   : > { %5585 = vmatprep.mubr.msk.bf16.mxu0 %vm1668_vm10, %v6973_v9  ;;  %5453 = vmatprep.mubr.msk.bf16.mxu1 %vm1668_vm10, %v7007_v21 }
 0x151   : > { %5586 = vmatmul.mubr.msk.bf16.gmra.mrb[20].mxu0 %vm1668_vm10, %v6981_v59  ;;  %5454 = vmatmul.mubr.msk.bf16.gmra.mrb[24].mxu1 %vm1668_vm10, %v7023_v61 }
 0x152   : > { %5589 = vmatprep.mubr.msk.bf16.mxu0 %vm1668_vm10, %v7016_v0  ;;  %5457 = vmatprep.mubr.msk.bf16.mxu1 %vm1668_vm10, %v7029_v55 }
 0x159   : > { %5590 = vmatmul.mubr.msk.bf16.gmra.mrb[24].mxu0 %vm1668_vm10, %v7020_v26  ;;  %5458 = vmatmul.mubr.msk.bf16.gmra.mrb[28].mxu1 %vm1668_vm10, %v7061_v34 }
 0x15a   : > { %5593 = vmatprep.mubr.msk.bf16.mxu0 %vm1668_vm10, %v7059_v4  ;;  %5463 = vmatprep.mubr.msk.bf16.mxu1 %vm1668_vm10, %v6904_v3  ;;  %v7793_v3 = vld [vmem:[#allocation8_spill] sm:$0xff] }
 0x161   : > { %5594 = vmatmul.mubr.msk.bf16.gmra.mrb[28].mxu0 %vm1668_vm10, %v4952_v41  ;;  %5464 = vmatmul.mubr.msk.bf16.vlgmr.msra.gmra.mrb[0].mxu1 %vm1668_vm10, %v6908_v33  ;;  %v7794_v33 = vld [vmem:[#allocation9_spill] sm:$0xff] }
 0x162   : > { %5599 = vmatprep.mubr.msk.bf16.mxu0 %vm1668_vm10, %v6436_v48  ;;  %5467 = vmatprep.mubr.msk.bf16.mxu1 %vm1668_vm10, %v6949_v8  ;;  %v7795_v8 = vld [vmem:[#allocation10_spill] sm:$0xff] }
 0x163   : > { %5666 = vmatpush3.bf16.msra.mxu1 %v4228_v31 }
 0x169   : > { %5600 = vmatmul.mubr.msk.bf16.vlgmr.msra.gmra.mrb[0].mxu0 %vm1668_vm10, %v6472_v36  ;;  %5468 = vmatmul.mubr.msk.bf16.gmra.mrb[4].mxu1 %vm1668_vm10, %v6953_v24  ;;  %v7797_v24 = vld [vmem:[#allocation12_spill] sm:$0xff] }
 0x16a   : > { %5632 = vmatpush3.bf16.msra.mxu0 %v3696_v19  ;;  %5603 = vmatprep.mubr.msk.bf16.mxu0 %vm1668_vm10, %v7793_v3 }
 0x16b   : > { %5471 = vmatprep.mubr.msk.bf16.mxu1 %vm1668_vm10, %v6957_v20  ;;  %v7798_v20 = vld [vmem:[#allocation13_spill] sm:$0xff] }
 0x171   : > { %5604 = vmatmul.mubr.msk.bf16.gmra.mrb[4].mxu0 %vm1668_vm10, %v7794_v33  ;;  %5472 = vmatmul.mubr.msk.bf16.gmra.mrb[8].mxu1 %vm1668_vm10, %v6963_v28  ;;  %v7799_v28 = vld [vmem:[#allocation14_spill] sm:$0xff] }
 0x172   : > { %5607 = vmatprep.mubr.msk.bf16.mxu0 %vm1668_vm10, %v7795_v8  ;;  %5475 = vmatprep.mubr.msk.bf16.mxu1 %vm1668_vm10, %v7070_v27  ;;  %v7800_v27 = vld [vmem:[#allocation15_spill] sm:$0xff] }
 0x179   : > { %5608 = vmatmul.mubr.msk.bf16.gmra.mrb[8].mxu0 %vm1668_vm10, %v7796_v18  ;;  %5476 = vmatmul.mubr.msk.bf16.gmra.mrb[12].mxu1 %vm1668_vm10, %v7076_v39  ;;  %v3452_v39 = vshrl.u32 %v7239_v37, 16 }
 0x17a   : > { %5611 = vmatprep.mubr.msk.bf16.mxu0 %vm1668_vm10, %v7797_v24  ;;  %5479 = vmatprep.mubr.msk.bf16.mxu1 %vm1668_vm10, %v7098_v16  ;;  %v3465_v16 = vshrl.u32 %v7241_v38, 16 }
 0x17c   : > { %v3467_v54 = vrot.slane %v3465_v16, 4 }
 0x17e   : > { %v3468_v1 = vor.u32 %v3467_v54, %v3463_v44 }
 0x180   : > { %v3469_v50 = vrot.slane %v3468_v1, 4 }
 0x181   : > { %5612 = vmatmul.mubr.msk.bf16.gmra.mrb[12].mxu0 %vm1668_vm10, %v7798_v20  ;;  %5480 = vmatmul.mubr.msk.bf16.gmra.mrb[16].mxu1 %vm1668_vm10, %v7106_v43  ;;  %v3454_v43 = vrot.slane %v3452_v39, 4 }
 0x182   : > { %5615 = vmatprep.mubr.msk.bf16.mxu0 %vm1668_vm10, %v7799_v28  ;;  %5483 = vmatprep.mubr.msk.bf16.mxu1 %vm1668_vm10, %v7130_v52  ;;  %v3471_v52 = vshll.u32 %v1229_v62, 16 }
 0x183   : > { %v3458_v25 = vor.u32 %v3457_v7, %v3454_v43 }
 0x184   : > { %v3473_v5 = vrot.slane %v3471_v52, 5 }
 0x186   : > { %v3474_v51 = vsel %vm6338_vm11, %v3469_v50, %v3473_v5 }
 0x189   : > { %5616 = vmatmul.mubr.msk.bf16.gmra.mrb[16].mxu0 %vm1668_vm10, %v7800_v27  ;;  %5484 = vmatmul.mubr.msk.bf16.gmra.mrb[20].mxu1 %vm1668_vm10, %v6973_v9  ;;  %v7803_v9 = vld [vmem:[#allocation18_spill] sm:$0xff] }
 0x18a   : > { %5619 = vmatprep.mubr.msk.bf16.mxu0 %vm1668_vm10, %v7801_v11  ;;  %5487 = vmatprep.mubr.msk.bf16.mxu1 %vm1668_vm10, %v6981_v59  ;;  %v3459_v59 = vrot.slane %v3458_v25, 4 }
 0x18c   : > { %v3464_v63 = vsel %vm6338_vm11, %v3459_v59, %v3463_v44 }
 0x191   : > { %5620 = vmatmul.mubr.msk.bf16.gmra.mrb[20].mxu0 %vm1668_vm10, %v7802_v13  ;;  %5488 = vmatmul.mubr.msk.bf16.gmra.mrb[24].mxu1 %vm1668_vm10, %v7016_v0 }
 0x192   : > { %5623 = vmatprep.mubr.msk.bf16.mxu0 %vm1668_vm10, %v7803_v9  ;;  %5491 = vmatprep.mubr.msk.bf16.mxu1 %vm1668_vm10, %v7020_v26  ;;  %v4970_v26 = vcombine.low %v3464_v63, %v3474_v51 }
 0x199   : > { %5624 = vmatmul.mubr.msk.bf16.gmra.mrb[24].mxu0 %vm1668_vm10, %v7804_v23  ;;  %5492 = vmatmul.mubr.msk.bf16.gmra.mrb[28].mxu1 %vm1668_vm10, %v7059_v4 }
 0x19a   : > { %5627 = vmatprep.mubr.msk.bf16.mxu0 %vm1668_vm10, %v7805_v45  ;;  %5667 = vmatprep.mubr.msk.bf16.mxu1 %vm1668_vm10, %v7807_v40 }
 0x1a1   : > { %5628 = vmatmul.mubr.msk.bf16.gmra.mrb[28].mxu0 %vm1668_vm10, %v4970_v26  ;;  %5668 = vmatmul.mubr.msk.bf16.vlgmr.msra.gmra.mrb[32].mxu1 %vm1668_vm10, %v6436_v48  ;;  %v3682_v48 = vrot.slane %v7241_v38, 5 }
 0x1a2   : > { %5633 = vmatprep.mubr.msk.bf16.mxu0 %vm1668_vm10, %v6941_v53  ;;  %5671 = vmatprep.mubr.msk.bf16.mxu1 %vm1668_vm10, %v6472_v36  ;;  %v4987_v36 = vrot.slane %v7239_v37, 9  ;;  %v3685_v53 = vrot.slane %v1229_v62, 5 }
 0x1a9   : > { %5634 = vmatmul.mubr.msk.bf16.vlgmr.msra.gmra.mrb[0].mxu0 %vm1668_vm10, %v6951_v12  ;;  %5672 = vmatmul.mubr.msk.bf16.gmra.mrb[36].mxu1 %vm1668_vm10, %v7793_v3  ;;  %v3683_v12 = vsel %vm6878_vm1, %v4987_v36, %v3682_v48 }
 0x1aa   : > { %5637 = vmatprep.mubr.msk.bf16.mxu0 %vm1668_vm10, %v6955_v30  ;;  %5675 = vmatprep.mubr.msk.bf16.mxu1 %vm1668_vm10, %v7794_v33 }
 0x1b1   : > { %5638 = vmatmul.mubr.msk.bf16.gmra.mrb[4].mxu0 %vm1668_vm10, %v6977_v14  ;;  %5676 = vmatmul.mubr.msk.bf16.gmra.mrb[40].mxu1 %vm1668_vm10, %v7795_v8 }
 0x1b2   : > { %5641 = vmatprep.mubr.msk.bf16.mxu0 %vm1668_vm10, %v7067_v56  ;;  %5679 = vmatprep.mubr.msk.bf16.mxu1 %vm1668_vm10, %v7796_v18 }
 0x1b9   : > { %5642 = vmatmul.mubr.msk.bf16.gmra.mrb[8].mxu0 %vm1668_vm10, %v7074_v57  ;;  %5680 = vmatmul.mubr.msk.bf16.gmra.mrb[44].mxu1 %vm1668_vm10, %v7797_v24 }
 0x1ba   : > { %5645 = vmatprep.mubr.msk.bf16.mxu0 %vm1668_vm10, %v7096_v58  ;;  %5683 = vmatprep.mubr.msk.bf16.mxu1 %vm1668_vm10, %v7798_v20 }
 0x1c1   : > { %5646 = vmatmul.mubr.msk.bf16.gmra.mrb[12].mxu0 %vm1668_vm10, %v7100_v2  ;;  %5684 = vmatmul.mubr.msk.bf16.gmra.mrb[48].mxu1 %vm1668_vm10, %v7799_v28 }
 0x1c2   : > { %5649 = vmatprep.mubr.msk.bf16.mxu0 %vm1668_vm10, %v7126_v10  ;;  %5687 = vmatprep.mubr.msk.bf16.mxu1 %vm1668_vm10, %v7800_v27 }
 0x1c9   : > { %5650 = vmatmul.mubr.msk.bf16.gmra.mrb[16].mxu0 %vm1668_vm10, %v7132_v17  ;;  %5688 = vmatmul.mubr.msk.bf16.gmra.mrb[52].mxu1 %vm1668_vm10, %v7801_v11 }
 0x1ca   : > { %5653 = vmatprep.mubr.msk.bf16.mxu0 %vm1668_vm10, %v7007_v21  ;;  %5691 = vmatprep.mubr.msk.bf16.mxu1 %vm1668_vm10, %v7802_v13  ;;  %v3684_v21 = vrot.slane %v3682_v48, 4 }
 0x1cc   : > { %v3686_v30 = vsel %vm6878_vm1, %v3684_v21, %v3685_v53 }
 0x1cd   : > { %v4989_v14 = vcombine.low %v3683_v12, %v3686_v30 }
 0x1d1   : > { %5654 = vmatmul.mubr.msk.bf16.gmra.mrb[20].mxu0 %vm1668_vm10, %v7023_v61  ;;  %5692 = vmatmul.mubr.msk.bf16.gmra.mrb[56].mxu1 %vm1668_vm10, %v7803_v9 }
 0x1d2   : > { %5657 = vmatprep.mubr.msk.bf16.mxu0 %vm1668_vm10, %v7029_v55  ;;  %5695 = vmatprep.mubr.msk.bf16.mxu1 %vm1668_vm10, %v7804_v23 }
 0x1d9   : > { %5658 = vmatmul.mubr.msk.bf16.gmra.mrb[24].mxu0 %vm1668_vm10, %v7061_v34  ;;  %5696 = vmatmul.mubr.msk.bf16.gmra.mrb[60].mxu1 %vm1668_vm10, %v7805_v45 }
 0x1da   : > { %5661 = vmatprep.mubr.msk.bf16.mxu0 %vm1668_vm10, %v7072_v29 }
 0x1e1   : > { %5662 = vmatmul.mubr.msk.bf16.gmra.mrb[28].mxu0 %vm1668_vm10, %v4989_v14 }
 0x234   : > { %v5465_v61 = vpop.f32.mrb[0].mxu1 }
 0x235   : > { %v2646_v55 = vpop.f32.mrb[1].mxu1 }
 0x236   : > { %v5466_v4 = vpop.f32.mrb[2].mxu1 }
 0x237   : > { %v2649_v56 = vpop.f32.mrb[3].mxu1 }
 0x23c   : > { %v7388_v34 = vpop.f32.mrb[4].mxu1 }
 0x23d   : > { %v7390_v57 = vpop.f32.mrb[5].mxu1 }
 0x23e   : > { %v7392_v29 = vpop.f32.mrb[6].mxu1 }
 0x23f   : > { %v7394_v58 = vpop.f32.mrb[7].mxu1 }
 0x244   : > { %v7396_v22 = vpop.f32.mrb[8].mxu1 }
 0x245   : > { %v7398_v2 = vpop.f32.mrb[9].mxu1 }
 0x246   : > { %v7400_v10 = vpop.f32.mrb[10].mxu1 }
 0x247   : > { %v7402_v17 = vpop.f32.mrb[11].mxu1 }
 0x24c   : > { %v7404_v46 = vpop.f32.mrb[12].mxu1 }
 0x24d   : > { %v7406_v35 = vpop.f32.mrb[13].mxu1 }
 0x24e   : > { %v7408_v60 = vpop.f32.mrb[14].mxu1 }
 0x24f   : > { %v7410_v6 = vpop.f32.mrb[15].mxu1 }
 0x254   : > { %v7412_v42 = vpop.f32.mrb[16].mxu1 }
 0x255   : > { %v7414_v47 = vpop.f32.mrb[17].mxu1 }
 0x256   : > { %v7416_v15 = vpop.f32.mrb[18].mxu1 }
 0x257   : > { %v7418_v37 = vpop.f32.mrb[19].mxu1 }
 0x25c   : > { %v7420_v38 = vpop.f32.mrb[20].mxu1 }
 0x25d   : > { %v7422_v41 = vpop.f32.mrb[21].mxu1 }
 0x25e   : > { %v7424_v31 = vpop.f32.mrb[22].mxu1 }
 0x25f   : > { %v7426_v19 = vpop.f32.mrb[23].mxu1 }
 0x264   : > { %v7428_v3 = vpop.f32.mrb[24].mxu1 }
 0x265   : > { %v7430_v33 = vpop.f32.mrb[25].mxu1 }
 0x266   : > { %v7432_v8 = vpop.f32.mrb[26].mxu1 }
 0x267   : > { %v7434_v18 = vpop.f32.mrb[27].mxu1 }
 0x26c   : > { %v7436_v24 = vpop.f32.mrb[28].mxu1 }
 0x26d   : > { %v7438_v20 = vpop.f32.mrb[29].mxu1 }
 0x26e   : > { %v7440_v28 = vpop.f32.mrb[30].mxu1 }
 0x26f   : > { %v7442_v27 = vpop.f32.mrb[31].mxu1 }
 0x274   : > { %v5669_v39 = vpop.f32.mrb[32].mxu1 }
 0x275   : > { %v5159_v49 = vpack.c.bf16 %v5669_v39, %v5669_v39  ;;  %v4264_v16 = vpop.f32.mrb[33].mxu1 }
 0x276   : > { %v5157_v11 = vpack.c.bf16 %v4264_v16, %v4264_v16  ;;  %v5670_v32 = vpop.f32.mrb[34].mxu1 }
 0x277   : > { %4521 = vst.msk [vmem:[%s7448_s16 + $0x8] sm:$0xf] %vm4193_vm0, %v5159_v49  ;;  %v5160_v43 = vpack.c.bf16 %v5670_v32, %v5670_v32  ;;  %v4267_v7 = vpop.f32.mrb[35].mxu1 }
 0x278   : > { %4519 = vst.msk [vmem:[%s7448_s16] sm:$0xf] %vm4193_vm0, %v5157_v11  ;;  %v5158_v44 = vpack.c.bf16 %v4267_v7, %v4267_v7 }
 0x279   : > { %4522 = vst.msk [vmem:[%s7448_s16 + $0xc] sm:$0xf] %vm4193_vm0, %v5160_v43 }
 0x27a   : > { %4520 = vst.msk [vmem:[%s7448_s16 + $0x4] sm:$0xf] %vm4193_vm0, %v5158_v44 }
 0x27c   : > { %v5635_v54 = vpop.f32.mrb[0].mxu0  ;;  %v5673_v9 = vpop.f32.mrb[36].mxu1 }
 0x27d   : > { %v5699_v62 = vadd.f32 %v5635_v54, %v5465_v61  ;;  %v3732_v13 = vpop.f32.mrb[1].mxu0  ;;  %v5163_v52 = vpack.c.bf16 %v5673_v9, %v5673_v9  ;;  %v4280_v59 = vpop.f32.mrb[37].mxu1 }
 0x27e   : > { %v5700_v25 = vadd.f32 %v3732_v13, %v2646_v55  ;;  %v5636_v1 = vpop.f32.mrb[2].mxu0  ;;  %v5674_v45 = vpop.f32.mrb[38].mxu1  ;;  %v5161_v61 = vpack.c.bf16 %v4280_v59, %v4280_v59 }
 0x27f   : > { %v5127_v50 = vpack.c.bf16 %v5699_v62, %v5699_v62  ;;  %v5701_v5 = vadd.f32 %v5636_v1, %v5466_v4  ;;  %v3735_v23 = vpop.f32.mrb[3].mxu0  ;;  %4525 = vst.msk [vmem:[%s7448_s16 + $0x18] sm:$0xf] %vm4193_vm0, %v5163_v52  ;;  %v4283_v40 = vpop.f32.mrb[39].mxu1  ;;  %v3965_v26 = vmul.f32 %v5699_v62, %v5699_v62  ;;  %v5164_v55 = vpack.c.bf16 %v5674_v45, %v5674_v45 }
 0x280   : > { %v3963_v0 = vmul.f32 %v5700_v25, %v5700_v25  ;;  %v5125_v63 = vpack.c.bf16 %v5700_v25, %v5700_v25  ;;  %v5702_v51 = vadd.f32 %v3735_v23, %v2649_v56  ;;  %v3892_v36 = vsel %vm3891_vm2, %v5700_v25, 0.0  ;;  %4523 = vst.msk [vmem:[%s7448_s16 + $0x10] sm:$0xf] %vm4193_vm0, %v5161_v61 }
 0x281   : > { %4196 = vst.msk [vmem:[%s7461_s18 + $0x8] sm:$0xf] %vm4193_vm0, %v5127_v50  ;;  %v5128_v48 = vpack.c.bf16 %v5701_v5, %v5701_v5  ;;  %v3966_v30 = vmul.f32 %v5701_v5, %v5701_v5  ;;  %v3895_v4 = vsel %vm3891_vm2, %v5699_v62, 0.0  ;;  %v5162_v16 = vpack.c.bf16 %v4283_v40, %v4283_v40  ;;  %4526 = vst.msk [vmem:[%s7448_s16 + $0x1c] sm:$0xf] %vm4193_vm0, %v5164_v55 }
 0x282   : > { %4194 = vst.msk [vmem:[%s7461_s18] sm:$0xf] %vm4193_vm0, %v5125_v63  ;;  %v3893_v21 = vsel %vm3891_vm2, %v5702_v51, 0.0  ;;  %v3964_v53 = vmul.f32 %v5702_v51, %v5702_v51  ;;  %v5126_v12 = vpack.c.bf16 %v5702_v51, %v5702_v51  ;;  %v3995_v56 = vsel %vm3891_vm2, %v3963_v0, 0.0 }
 0x283   : > { %4197 = vst.msk [vmem:[%s7461_s18 + $0xc] sm:$0xf] %vm4193_vm0, %v5128_v48  ;;  %v3894_v14 = vadd.f32 %v3893_v21, %v3892_v36  ;;  %v3998_v54 = vsel %vm3891_vm2, %v3965_v26, 0.0  ;;  %4524 = vst.msk [vmem:[%s7448_s16 + $0x14] sm:$0xf] %vm4193_vm0, %v5162_v16  ;;  %v3897_v1 = vsel %vm3891_vm2, %v5701_v5, 0.0 }
 0x284   : > { %v3996_v39 = vsel %vm3891_vm2, %v3964_v53, 0.0  ;;  %4195 = vst.msk [vmem:[%s7461_s18 + $0x4] sm:$0xf] %vm4193_vm0, %v5126_v12  ;;  %v5639_v49 = vpop.f32.mrb[4].mxu0  ;;  %v5677_v44 = vpop.f32.mrb[40].mxu1 }
 0x285   : > { %v3896_v11 = vadd.f32 %v3895_v4, %v3894_v14  ;;  %v3997_v32 = vadd.f32 %v3996_v39, %v3995_v56  ;;  %v5703_v43 = vadd.f32 %v5639_v49, %v7388_v34  ;;  %v3748_v7 = vpop.f32.mrb[5].mxu0  ;;  %v5167_v9 = vpack.c.bf16 %v5677_v44, %v5677_v44  ;;  %v4296_v25 = vpop.f32.mrb[41].mxu1 }
 0x286   : > { %v5704_v62 = vadd.f32 %v3748_v7, %v7390_v57  ;;  %v5640_v13 = vpop.f32.mrb[6].mxu0  ;;  %v4000_v34 = vsel %vm3891_vm2, %v3966_v30, 0.0  ;;  %v5678_v23 = vpop.f32.mrb[42].mxu1  ;;  %v5165_v21 = vpack.c.bf16 %v4296_v25, %v4296_v25 }
 0x287   : > { %v3999_v52 = vadd.f32 %v3998_v54, %v3997_v32  ;;  %v5131_v59 = vpack.c.bf16 %v5703_v43, %v5703_v43  ;;  %v3751_v50 = vpop.f32.mrb[7].mxu0  ;;  %v3898_v45 = vadd.f32 %v3897_v1, %v3896_v11  ;;  %4529 = vst.msk [vmem:[%s7448_s16 + $0x28] sm:$0xf] %vm4193_vm0, %v5167_v9  ;;  %v4299_v51 = vpop.f32.mrb[43].mxu1  ;;  %v5705_v5 = vadd.f32 %v5640_v13, %v7392_v29 }
 0x288   : > { %v3899_v0 = vsel %vm3891_vm2, %v5704_v62, 0.0  ;;  %v3967_v63 = vmul.f32 %v5704_v62, %v5704_v62  ;;  %v5129_v57 = vpack.c.bf16 %v5704_v62, %v5704_v62  ;;  %v5706_v26 = vadd.f32 %v3751_v50, %v7394_v58  ;;  %4527 = vst.msk [vmem:[%s7448_s16 + $0x20] sm:$0xf] %vm4193_vm0, %v5165_v21 }
 0x289   : > { %4200 = vst.msk [vmem:[%s7461_s18 + $0x18] sm:$0xf] %vm4193_vm0, %v5131_v59  ;;  %v4001_v40 = vadd.f32 %v4000_v34, %v3999_v52  ;;  %v3900_v48 = vadd.f32 %v3899_v0, %v3898_v45  ;;  %v5168_v53 = vpack.c.bf16 %v5678_v23, %v5678_v23  ;;  %v3969_v12 = vmul.f32 %v5703_v43, %v5703_v43 }
 0x28a   : > { %v4002_v36 = vsel %vm3891_vm2, %v3967_v63, 0.0  ;;  %4198 = vst.msk [vmem:[%s7461_s18 + $0x10] sm:$0xf] %vm4193_vm0, %v5129_v57  ;;  %v5132_v14 = vpack.c.bf16 %v5705_v5, %v5705_v5  ;;  %v3901_v61 = vsel %vm3891_vm2, %v5706_v26, 0.0  ;;  %v3968_v55 = vmul.f32 %v5706_v26, %v5706_v26 }
 0x28b   : > { %v4003_v30 = vadd.f32 %v4002_v36, %v4001_v40  ;;  %v5130_v4 = vpack.c.bf16 %v5706_v26, %v5706_v26  ;;  %4530 = vst.msk [vmem:[%s7448_s16 + $0x2c] sm:$0xf] %vm4193_vm0, %v5168_v53  ;;  %v5166_v58 = vpack.c.bf16 %v4299_v51, %v4299_v51  ;;  %v3970_v56 = vmul.f32 %v5705_v5, %v5705_v5 }
 0x28c   : > { %v5643_v29 = vpop.f32.mrb[8].mxu0  ;;  %4201 = vst.msk [vmem:[%s7461_s18 + $0x1c] sm:$0xf] %vm4193_vm0, %v5132_v14  ;;  %v3902_v39 = vadd.f32 %v3901_v61, %v3900_v48  ;;  %v5681_v11 = vpop.f32.mrb[44].mxu1  ;;  %v3903_v32 = vsel %vm3891_vm2, %v5703_v43, 0.0  ;;  %v4004_v7 = vsel %vm3891_vm2, %v3968_v55, 0.0 }
 0x28d   : > { %v5707_v49 = vadd.f32 %v5643_v29, %v7396_v22  ;;  %v3764_v16 = vpop.f32.mrb[9].mxu0  ;;  %4199 = vst.msk [vmem:[%s7461_s18 + $0x14] sm:$0xf] %vm4193_vm0, %v5130_v4  ;;  %4528 = vst.msk [vmem:[%s7448_s16 + $0x24] sm:$0xf] %vm4193_vm0, %v5166_v58  ;;  %v5171_v62 = vpack.c.bf16 %v5681_v11, %v5681_v11  ;;  %v4312_v13 = vpop.f32.mrb[45].mxu1  ;;  %v4005_v43 = vadd.f32 %v4004_v7, %v4003_v30 }
 0x28e   : > { %v5708_v44 = vadd.f32 %v3764_v16, %v7398_v2  ;;  %v5644_v54 = vpop.f32.mrb[10].mxu0  ;;  %v4006_v9 = vsel %vm3891_vm2, %v3969_v12, 0.0  ;;  %v3905_v22 = vsel %vm3891_vm2, %v5705_v5, 0.0  ;;  %v3904_v25 = vadd.f32 %v3903_v32, %v3902_v39  ;;  %v5682_v34 = vpop.f32.mrb[46].mxu1 }
 0x28f   : > { %v3767_v1 = vpop.f32.mrb[11].mxu0  ;;  %v5135_v52 = vpack.c.bf16 %v5707_v49, %v5707_v49  ;;  %4533 = vst.msk [vmem:[%s7448_s16 + $0x38] sm:$0xf] %vm4193_vm0, %v5171_v62  ;;  %v4315_v23 = vpop.f32.mrb[47].mxu1  ;;  %v4008_v45 = vsel %vm3891_vm2, %v3970_v56, 0.0  ;;  %v4007_v0 = vadd.f32 %v4006_v9, %v4005_v43  ;;  %v5709_v57 = vadd.f32 %v5644_v54, %v7400_v10 }
 0x290   : > { %v3907_v59 = vsel %vm3891_vm2, %v5708_v44, 0.0  ;;  %v3971_v50 = vmul.f32 %v5708_v44, %v5708_v44  ;;  %v5133_v2 = vpack.c.bf16 %v5708_v44, %v5708_v44  ;;  %v3906_v63 = vadd.f32 %v3905_v22, %v3904_v25 }
 0x291   : > { %4204 = vst.msk [vmem:[%s7461_s18 + $0x28] sm:$0xf] %vm4193_vm0, %v5135_v52  ;;  %v5710_v40 = vadd.f32 %v3767_v1, %v7402_v17  ;;  %v5169_v5 = vpack.c.bf16 %v4312_v13, %v4312_v13  ;;  %v5172_v26 = vpack.c.bf16 %v5682_v34, %v5682_v34  ;;  %v3911_v48 = vsel %vm3891_vm2, %v5707_v49, 0.0 }
 0x292   : > { %v4010_v51 = vsel %vm3891_vm2, %v3971_v50, 0.0  ;;  %4202 = vst.msk [vmem:[%s7461_s18 + $0x20] sm:$0xf] %vm4193_vm0, %v5133_v2  ;;  %v3973_v36 = vmul.f32 %v5707_v49, %v5707_v49  ;;  %v3908_v21 = vadd.f32 %v3907_v59, %v3906_v63  ;;  %v4009_v53 = vadd.f32 %v4008_v45, %v4007_v0 }
 0x293   : > { %v5136_v10 = vpack.c.bf16 %v5709_v57, %v5709_v57  ;;  %v3909_v12 = vsel %vm3891_vm2, %v5710_v40, 0.0  ;;  %v3972_v30 = vmul.f32 %v5710_v40, %v5710_v40  ;;  %v5134_v14 = vpack.c.bf16 %v5710_v40, %v5710_v40  ;;  %4531 = vst.msk [vmem:[%s7448_s16 + $0x30] sm:$0xf] %vm4193_vm0, %v5169_v5  ;;  %4534 = vst.msk [vmem:[%s7448_s16 + $0x3c] sm:$0xf] %vm4193_vm0, %v5172_v26 }
 0x294   : > { %v5647_v61 = vpop.f32.mrb[12].mxu0  ;;  %v4011_v17 = vadd.f32 %v4010_v51, %v4009_v53  ;;  %v3974_v55 = vmul.f32 %v5709_v57, %v5709_v57  ;;  %v3910_v4 = vadd.f32 %v3909_v12, %v3908_v21  ;;  %v5685_v56 = vpop.f32.mrb[48].mxu1  ;;  %v5170_v11 = vpack.c.bf16 %v4315_v23, %v4315_v23 }
 0x295   : > { %v5711_v29 = vadd.f32 %v5647_v61, %v7404_v46  ;;  %v3780_v58 = vpop.f32.mrb[13].mxu0  ;;  %4205 = vst.msk [vmem:[%s7461_s18 + $0x2c] sm:$0xf] %vm4193_vm0, %v5136_v10  ;;  %v4012_v39 = vsel %vm3891_vm2, %v3972_v30, 0.0  ;;  %4203 = vst.msk [vmem:[%s7461_s18 + $0x24] sm:$0xf] %vm4193_vm0, %v5134_v14  ;;  %v5175_v32 = vpack.c.bf16 %v5685_v56, %v5685_v56 }
 0x296   : > { %v5712_v49 = vadd.f32 %v3780_v58, %v7406_v35  ;;  %v5648_v16 = vpop.f32.mrb[14].mxu0  ;;  %v4328_v7 = vpop.f32.mrb[49].mxu1  ;;  %v4014_v44 = vsel %vm3891_vm2, %v3973_v36, 0.0  ;;  %v3913_v46 = vsel %vm3891_vm2, %v5709_v57, 0.0  ;;  %v3912_v54 = vadd.f32 %v3911_v48, %v3910_v4  ;;  %4532 = vst.msk [vmem:[%s7448_s16 + $0x34] sm:$0xf] %vm4193_vm0, %v5170_v11 }
 0x297   : > { %v4013_v62 = vadd.f32 %v4012_v39, %v4011_v17  ;;  %v3783_v13 = vpop.f32.mrb[15].mxu0  ;;  %v5686_v9 = vpop.f32.mrb[50].mxu1  ;;  %v5139_v22 = vpack.c.bf16 %v5711_v29, %v5711_v29  ;;  %4537 = vst.msk [vmem:[%s7448_s16 + $0x48] sm:$0xf] %vm4193_vm0, %v5175_v32  ;;  %v4016_v34 = vsel %vm3891_vm2, %v3974_v55, 0.0  ;;  %v5713_v50 = vadd.f32 %v5648_v16, %v7408_v60 }
 0x298   : > { %v3915_v25 = vsel %vm3891_vm2, %v5712_v49, 0.0  ;;  %v3975_v43 = vmul.f32 %v5712_v49, %v5712_v49  ;;  %v5137_v35 = vpack.c.bf16 %v5712_v49, %v5712_v49  ;;  %v4331_v1 = vpop.f32.mrb[51].mxu1  ;;  %v3914_v59 = vadd.f32 %v3913_v46, %v3912_v54 }
 0x299   : > { %v4015_v52 = vadd.f32 %v4014_v44, %v4013_v62  ;;  %4208 = vst.msk [vmem:[%s7461_s18 + $0x38] sm:$0xf] %vm4193_vm0, %v5139_v22  ;;  %v5714_v23 = vadd.f32 %v3783_v13, %v7410_v6  ;;  %v5173_v45 = vpack.c.bf16 %v4328_v7, %v4328_v7  ;;  %v5176_v0 = vpack.c.bf16 %v5686_v9, %v5686_v9 }
 0x29a   : > { %v4018_v2 = vsel %vm3891_vm2, %v3975_v43, 0.0  ;;  %4206 = vst.msk [vmem:[%s7461_s18 + $0x30] sm:$0xf] %vm4193_vm0, %v5137_v35  ;;  %v3919_v63 = vsel %vm3891_vm2, %v5711_v29, 0.0  ;;  %v3977_v57 = vmul.f32 %v5711_v29, %v5711_v29  ;;  %v3916_v51 = vadd.f32 %v3915_v25, %v3914_v59 }
 0x29b   : > { %v4017_v40 = vadd.f32 %v4016_v34, %v4015_v52  ;;  %v5140_v60 = vpack.c.bf16 %v5713_v50, %v5713_v50  ;;  %v3917_v5 = vsel %vm3891_vm2, %v5714_v23, 0.0  ;;  %v3976_v26 = vmul.f32 %v5714_v23, %v5714_v23  ;;  %4535 = vst.msk [vmem:[%s7448_s16 + $0x40] sm:$0xf] %vm4193_vm0, %v5173_v45  ;;  %4538 = vst.msk [vmem:[%s7448_s16 + $0x4c] sm:$0xf] %vm4193_vm0, %v5176_v0 }
 0x29c   : > { %v5138_v48 = vpack.c.bf16 %v5714_v23, %v5714_v23  ;;  %v5651_v36 = vpop.f32.mrb[16].mxu0  ;;  %v3978_v21 = vmul.f32 %v5713_v50, %v5713_v50  ;;  %v3918_v53 = vadd.f32 %v3917_v5, %v3916_v51  ;;  %v5689_v30 = vpop.f32.mrb[52].mxu1  ;;  %v5174_v55 = vpack.c.bf16 %v4331_v1, %v4331_v1 }
 0x29d   : > { %v4019_v6 = vadd.f32 %v4018_v2, %v4017_v40  ;;  %v5715_v10 = vadd.f32 %v5651_v36, %v7412_v42  ;;  %v3796_v12 = vpop.f32.mrb[17].mxu0  ;;  %4209 = vst.msk [vmem:[%s7461_s18 + $0x3c] sm:$0xf] %vm4193_vm0, %v5140_v60  ;;  %v4020_v14 = vsel %vm3891_vm2, %v3976_v26, 0.0  ;;  %v5179_v4 = vpack.c.bf16 %v5689_v30, %v5689_v30  ;;  %v4344_v29 = vpop.f32.mrb[53].mxu1 }
 0x29e   : > { %4207 = vst.msk [vmem:[%s7461_s18 + $0x34] sm:$0xf] %vm4193_vm0, %v5138_v48  ;;  %v5716_v61 = vadd.f32 %v3796_v12, %v7414_v47  ;;  %v5652_v17 = vpop.f32.mrb[18].mxu0  ;;  %v4022_v58 = vsel %vm3891_vm2, %v3977_v57, 0.0  ;;  %v3921_v42 = vsel %vm3891_vm2, %v5713_v50, 0.0  ;;  %v3920_v56 = vadd.f32 %v3919_v63, %v3918_v53  ;;  %v5690_v16 = vpop.f32.mrb[54].mxu1 }
 0x29f   : > { %v4021_v39 = vadd.f32 %v4020_v14, %v4019_v6  ;;  %v3799_v49 = vpop.f32.mrb[19].mxu0  ;;  %v5143_v11 = vpack.c.bf16 %v5715_v10, %v5715_v10  ;;  %4536 = vst.msk [vmem:[%s7448_s16 + $0x44] sm:$0xf] %vm4193_vm0, %v5174_v55  ;;  %4541 = vst.msk [vmem:[%s7448_s16 + $0x58] sm:$0xf] %vm4193_vm0, %v5179_v4  ;;  %v4347_v44 = vpop.f32.mrb[55].mxu1  ;;  %v5717_v13 = vadd.f32 %v5652_v17, %v7416_v15 }
 0x2a0   : > { %v3923_v32 = vsel %vm3891_vm2, %v5716_v61, 0.0  ;;  %v3979_v7 = vmul.f32 %v5716_v61, %v5716_v61  ;;  %v5141_v47 = vpack.c.bf16 %v5716_v61, %v5716_v61  ;;  %v4024_v46 = vsel %vm3891_vm2, %v3978_v21, 0.0 }
 0x2a1   : > { %v4023_v54 = vadd.f32 %v4022_v58, %v4021_v39  ;;  %v3922_v62 = vadd.f32 %v3921_v42, %v3920_v56  ;;  %4212 = vst.msk [vmem:[%s7461_s18 + $0x48] sm:$0xf] %vm4193_vm0, %v5143_v11  ;;  %v5718_v22 = vadd.f32 %v3799_v49, %v7418_v37  ;;  %v5177_v25 = vpack.c.bf16 %v4344_v29, %v4344_v29 }
 0x2a2   : > { %v4026_v9 = vsel %vm3891_vm2, %v3979_v7, 0.0  ;;  %4210 = vst.msk [vmem:[%s7461_s18 + $0x40] sm:$0xf] %vm4193_vm0, %v5141_v47  ;;  %v5180_v43 = vpack.c.bf16 %v5690_v16, %v5690_v16  ;;  %v3927_v35 = vsel %vm3891_vm2, %v5715_v10, 0.0  ;;  %v3981_v1 = vmul.f32 %v5715_v10, %v5715_v10 }
 0x2a3   : > { %v3924_v34 = vadd.f32 %v3923_v32, %v3922_v62  ;;  %v4025_v52 = vadd.f32 %v4024_v46, %v4023_v54  ;;  %v5144_v15 = vpack.c.bf16 %v5717_v13, %v5717_v13  ;;  %v3925_v59 = vsel %vm3891_vm2, %v5718_v22, 0.0  ;;  %4539 = vst.msk [vmem:[%s7448_s16 + $0x50] sm:$0xf] %vm4193_vm0, %v5177_v25 }
 0x2a4   : > { %v3980_v50 = vmul.f32 %v5718_v22, %v5718_v22  ;;  %v5142_v2 = vpack.c.bf16 %v5718_v22, %v5718_v22  ;;  %v5655_v23 = vpop.f32.mrb[20].mxu0  ;;  %4542 = vst.msk [vmem:[%s7448_s16 + $0x5c] sm:$0xf] %vm4193_vm0, %v5180_v43  ;;  %v3982_v45 = vmul.f32 %v5717_v13, %v5717_v13  ;;  %v5693_v51 = vpop.f32.mrb[56].mxu1  ;;  %v5178_v26 = vpack.c.bf16 %v4347_v44, %v4347_v44 }
 0x2a5   : > { %v4027_v37 = vadd.f32 %v4026_v9, %v4025_v52  ;;  %v3926_v0 = vadd.f32 %v3925_v59, %v3924_v34  ;;  %v5719_v63 = vadd.f32 %v5655_v23, %v7420_v38  ;;  %v3812_v57 = vpop.f32.mrb[21].mxu0  ;;  %4213 = vst.msk [vmem:[%s7461_s18 + $0x4c] sm:$0xf] %vm4193_vm0, %v5144_v15  ;;  %v5183_v48 = vpack.c.bf16 %v5693_v51, %v5693_v51  ;;  %v4360_v36 = vpop.f32.mrb[57].mxu1 }
 0x2a6   : > { %v4028_v40 = vsel %vm3891_vm2, %v3980_v50, 0.0  ;;  %4211 = vst.msk [vmem:[%s7461_s18 + $0x44] sm:$0xf] %vm4193_vm0, %v5142_v2  ;;  %v5720_v60 = vadd.f32 %v3812_v57, %v7422_v41  ;;  %v5656_v5 = vpop.f32.mrb[22].mxu0  ;;  %v4030_v6 = vsel %vm3891_vm2, %v3981_v1, 0.0  ;;  %v3929_v38 = vsel %vm3891_vm2, %v5717_v13, 0.0 }
 0x2a7   : > { %v3928_v21 = vadd.f32 %v3927_v35, %v3926_v0  ;;  %v4029_v53 = vadd.f32 %v4028_v40, %v4027_v37  ;;  %v3815_v10 = vpop.f32.mrb[23].mxu0  ;;  %v5694_v12 = vpop.f32.mrb[58].mxu1  ;;  %v5147_v30 = vpack.c.bf16 %v5719_v63, %v5719_v63  ;;  %4540 = vst.msk [vmem:[%s7448_s16 + $0x54] sm:$0xf] %vm4193_vm0, %v5178_v26  ;;  %4545 = vst.msk [vmem:[%s7448_s16 + $0x68] sm:$0xf] %vm4193_vm0, %v5183_v48 }
 0x2a8   : > { %v3931_v14 = vsel %vm3891_vm2, %v5720_v60, 0.0  ;;  %v3983_v61 = vmul.f32 %v5720_v60, %v5720_v60  ;;  %v5145_v41 = vpack.c.bf16 %v5720_v60, %v5720_v60  ;;  %v4363_v17 = vpop.f32.mrb[59].mxu1  ;;  %v4032_v55 = vsel %vm3891_vm2, %v3982_v45, 0.0 }
 0x2a9   : > { %v4031_v4 = vadd.f32 %v4030_v6, %v4029_v53  ;;  %v3930_v29 = vadd.f32 %v3929_v38, %v3928_v21  ;;  %v5721_v58 = vadd.f32 %v5656_v5, %v7424_v31  ;;  %4216 = vst.msk [vmem:[%s7461_s18 + $0x58] sm:$0xf] %vm4193_vm0, %v5147_v30  ;;  %v5722_v56 = vadd.f32 %v3815_v10, %v7426_v19 }
 0x2aa   : > { %v4034_v42 = vsel %vm3891_vm2, %v3983_v61, 0.0  ;;  %4214 = vst.msk [vmem:[%s7461_s18 + $0x50] sm:$0xf] %vm4193_vm0, %v5145_v41  ;;  %v5181_v39 = vpack.c.bf16 %v4360_v36, %v4360_v36  ;;  %v5184_v49 = vpack.c.bf16 %v5694_v12, %v5694_v12  ;;  %v3935_v16 = vsel %vm3891_vm2, %v5719_v63, 0.0 }
 0x2ab   : > { %v3985_v11 = vmul.f32 %v5719_v63, %v5719_v63  ;;  %v3932_v32 = vadd.f32 %v3931_v14, %v3930_v29  ;;  %v4033_v7 = vadd.f32 %v4032_v55, %v4031_v4  ;;  %v5148_v31 = vpack.c.bf16 %v5721_v58, %v5721_v58 }
 0x2ac   : > { %v3933_v47 = vsel %vm3891_vm2, %v5722_v56, 0.0  ;;  %v3984_v44 = vmul.f32 %v5722_v56, %v5722_v56  ;;  %v5146_v46 = vpack.c.bf16 %v5722_v56, %v5722_v56  ;;  %v5659_v54 = vpop.f32.mrb[24].mxu0  ;;  %4543 = vst.msk [vmem:[%s7448_s16 + $0x60] sm:$0xf] %vm4193_vm0, %v5181_v39  ;;  %4546 = vst.msk [vmem:[%s7448_s16 + $0x6c] sm:$0xf] %vm4193_vm0, %v5184_v49  ;;  %v3986_v62 = vmul.f32 %v5721_v58, %v5721_v58 }
 0x2ad   : > { %v4035_v19 = vadd.f32 %v4034_v42, %v4033_v7  ;;  %v3934_v13 = vadd.f32 %v3933_v47, %v3932_v32  ;;  %v5723_v9 = vadd.f32 %v5659_v54, %v7428_v3  ;;  %v3828_v22 = vpop.f32.mrb[25].mxu0  ;;  %v5697_v25 = vpop.f32.mrb[60].mxu1  ;;  %4217 = vst.msk [vmem:[%s7461_s18 + $0x5c] sm:$0xf] %vm4193_vm0, %v5148_v31  ;;  %v5182_v34 = vpack.c.bf16 %v4363_v17, %v4363_v17 }
 0x2ae   : > { %v4036_v43 = vsel %vm3891_vm2, %v3984_v44, 0.0  ;;  %4215 = vst.msk [vmem:[%s7461_s18 + $0x54] sm:$0xf] %vm4193_vm0, %v5146_v46  ;;  %v5724_v35 = vadd.f32 %v3828_v22, %v7430_v33  ;;  %v5660_v1 = vpop.f32.mrb[26].mxu0  ;;  %v5187_v52 = vpack.c.bf16 %v5697_v25, %v5697_v25  ;;  %v4376_v15 = vpop.f32.mrb[61].mxu1  ;;  %v4038_v59 = vsel %vm3891_vm2, %v3985_v11, 0.0 }
 0x2af   : > { %v3937_v3 = vsel %vm3891_vm2, %v5721_v58, 0.0  ;;  %v3936_v50 = vadd.f32 %v3935_v16, %v3934_v13  ;;  %v4037_v2 = vadd.f32 %v4036_v43, %v4035_v19  ;;  %v3831_v23 = vpop.f32.mrb[27].mxu0  ;;  %v5698_v37 = vpop.f32.mrb[62].mxu1  ;;  %v5151_v45 = vpack.c.bf16 %v5723_v9, %v5723_v9  ;;  %4544 = vst.msk [vmem:[%s7448_s16 + $0x64] sm:$0xf] %vm4193_vm0, %v5182_v34 }
 0x2b0   : > { %v3939_v0 = vsel %vm3891_vm2, %v5724_v35, 0.0  ;;  %v3987_v63 = vmul.f32 %v5724_v35, %v5724_v35  ;;  %v5149_v33 = vpack.c.bf16 %v5724_v35, %v5724_v35  ;;  %4549 = vst.msk [vmem:[%s7448_s16 + $0x78] sm:$0xf] %vm4193_vm0, %v5187_v52  ;;  %v4379_v57 = vpop.f32.mrb[63].mxu1  ;;  %v4040_v51 = vsel %vm3891_vm2, %v3986_v62, 0.0 }
 0x2b1   : > { %v4039_v40 = vadd.f32 %v4038_v59, %v4037_v2  ;;  %v3938_v60 = vadd.f32 %v3937_v3, %v3936_v50  ;;  %v5725_v5 = vadd.f32 %v5660_v1, %v7432_v8  ;;  %4220 = vst.msk [vmem:[%s7461_s18 + $0x68] sm:$0xf] %vm4193_vm0, %v5151_v45  ;;  %v5726_v48 = vadd.f32 %v3831_v23, %v7434_v18 }
 0x2b2   : > { %v4042_v26 = vsel %vm3891_vm2, %v3987_v63, 0.0  ;;  %4218 = vst.msk [vmem:[%s7461_s18 + $0x60] sm:$0xf] %vm4193_vm0, %v5149_v33  ;;  %v5185_v36 = vpack.c.bf16 %v4376_v15, %v4376_v15  ;;  %v5188_v6 = vpack.c.bf16 %v5698_v37, %v5698_v37  ;;  %v3989_v38 = vmul.f32 %v5723_v9, %v5723_v9 }
 0x2b3   : > { %v3940_v21 = vadd.f32 %v3939_v0, %v3938_v60  ;;  %v4041_v53 = vadd.f32 %v4040_v51, %v4039_v40  ;;  %v5152_v10 = vpack.c.bf16 %v5725_v5, %v5725_v5  ;;  %v3941_v12 = vsel %vm3891_vm2, %v5726_v48, 0.0 }
 0x2b4   : > { %v3988_v8 = vmul.f32 %v5726_v48, %v5726_v48  ;;  %v5150_v30 = vpack.c.bf16 %v5726_v48, %v5726_v48  ;;  %v5663_v14 = vpop.f32.mrb[28].mxu0  ;;  %4547 = vst.msk [vmem:[%s7448_s16 + $0x70] sm:$0xf] %vm4193_vm0, %v5185_v36  ;;  %4550 = vst.msk [vmem:[%s7448_s16 + $0x7c] sm:$0xf] %vm4193_vm0, %v5188_v6  ;;  %v3943_v61 = vsel %vm3891_vm2, %v5723_v9, 0.0  ;;  %v3990_v4 = vmul.f32 %v5725_v5, %v5725_v5 }
 0x2b5   : > { %v4043_v18 = vadd.f32 %v4042_v26, %v4041_v53  ;;  %v3942_v41 = vadd.f32 %v3941_v12, %v3940_v21  ;;  %v5727_v17 = vadd.f32 %v5663_v14, %v7436_v24  ;;  %v3844_v55 = vpop.f32.mrb[29].mxu0  ;;  %4221 = vst.msk [vmem:[%s7461_s18 + $0x6c] sm:$0xf] %vm4193_vm0, %v5152_v10  ;;  %v5186_v56 = vpack.c.bf16 %v4379_v57, %v4379_v57 }
 0x2b6   : > { %v4044_v29 = vsel %vm3891_vm2, %v3988_v8, 0.0  ;;  %4219 = vst.msk [vmem:[%s7461_s18 + $0x64] sm:$0xf] %vm4193_vm0, %v5150_v30  ;;  %v5728_v58 = vadd.f32 %v3844_v55, %v7438_v20  ;;  %v5664_v42 = vpop.f32.mrb[30].mxu0  ;;  %v4046_v39 = vsel %vm3891_vm2, %v3989_v38, 0.0  ;;  %v3945_v49 = vsel %vm3891_vm2, %v5725_v5, 0.0 }
 0x2b7   : > { %v3944_v24 = vadd.f32 %v3943_v61, %v3942_v41  ;;  %v4045_v16 = vadd.f32 %v4044_v29, %v4043_v18  ;;  %v3847_v11 = vpop.f32.mrb[31].mxu0  ;;  %v5155_v32 = vpack.c.bf16 %v5727_v17, %v5727_v17  ;;  %4548 = vst.msk [vmem:[%s7448_s16 + $0x74] sm:$0xf] %vm4193_vm0, %v5186_v56  ;;  %v5729_v46 = vadd.f32 %v5664_v42, %v7440_v28  ;;  %s6056_s16 = scalar_lea.vmem %s7682_s30, 32 }
 0x2b8   : > { %v3947_v7 = vsel %vm3891_vm2, %v5728_v58, 0.0  ;;  %v3991_v31 = vmul.f32 %v5728_v58, %v5728_v58  ;;  %v5153_v47 = vpack.c.bf16 %v5728_v58, %v5728_v58  ;;  %v4048_v54 = vsel %vm3891_vm2, %v3990_v4, 0.0  ;;  %p6057_p12 = scmp.ne.s32.totalorder %s7682_s30, %s6056_s16  ;;  %p6064_p2 = scmp.lt.s32.totalorder %s6062_s17, %s6056_s16 }
 0x2b9   : > { %v4047_v44 = vadd.f32 %v4046_v39, %v4045_v16  ;;  %v3946_v20 = vadd.f32 %v3945_v49, %v3944_v24  ;;  %4224 = vst.msk [vmem:[%s7461_s18 + $0x78] sm:$0xf] %vm4193_vm0, %v5155_v32  ;;  %v5730_v62 = vadd.f32 %v3847_v11, %v7442_v27  ;;  %v3993_v13 = vmul.f32 %v5727_v17, %v5727_v17 }
 0x2ba   : > { %v4050_v19 = vsel %vm3891_vm2, %v3991_v31, 0.0  ;;  %4222 = vst.msk [vmem:[%s7461_s18 + $0x70] sm:$0xf] %vm4193_vm0, %v5153_v47  ;;  %v5156_v25 = vpack.c.bf16 %v5729_v46, %v5729_v46  ;;  %v3951_v52 = vsel %vm3891_vm2, %v5727_v17, 0.0  ;;  %v3994_v15 = vmul.f32 %v5729_v46, %v5729_v46  ;;  %p6058_p13 = pnand %p6057_p12, %p6218_p4  ;;  %p6065_p3 = por %p6064_p2, %p6063_p1 }
 0x2bb   : > { %v3948_v9 = vadd.f32 %v3947_v7, %v3946_v20  ;;  %v4049_v22 = vadd.f32 %v4048_v54, %v4047_v44  ;;  %v3949_v43 = vsel %vm3891_vm2, %v5730_v62, 0.0  ;;  %v3992_v35 = vmul.f32 %v5730_v62, %v5730_v62 }
 0x2bc   : > { %v5154_v28 = vpack.c.bf16 %v5730_v62, %v5730_v62  ;;  %4225 = vst.msk [vmem:[%s7461_s18 + $0x7c] sm:$0xf] %vm4193_vm0, %v5156_v25  ;;  %v4054_v50 = vsel %vm3891_vm2, %v3993_v13, 0.0  ;;  %v3953_v2 = vsel %vm3891_vm2, %v5729_v46, 0.0  ;;  %v4056_v45 = vsel %vm3891_vm2, %v3994_v15, 0.0  ;;  %p6059_p0 = pneg %p6058_p13 }
 0x2bd   : > { %v4051_v1 = vadd.f32 %v4050_v19, %v4049_v22  ;;  %v3950_v34 = vadd.f32 %v3949_v43, %v3948_v9  ;;  %v4052_v59 = vsel %vm3891_vm2, %v3992_v35, 0.0 }
 0x2be   : > { %4223 = vst.msk [vmem:[%s7461_s18 + $0x74] sm:$0xf] %vm4193_vm0, %v5154_v28  ;;  %p6066_p5 = pnand %p6065_p3, %p6059_p0 }
 0x2bf   : > { %v3952_v27 = vadd.f32 %v3951_v52, %v3950_v34  ;;  %v4053_v3 = vadd.f32 %v4052_v59, %v4051_v1 }
 0x2c1   : > { %v3954_v23 = vadd.f32 %v3953_v2, %v3952_v27  ;;  %v4055_v37 = vadd.f32 %v4054_v50, %v4053_v3 }
 0x2c3   : > { %v3955_v0 = vrot.slane %v3954_v23, 4  ;;  %v4057_v63 = vadd.f32 %v4056_v45, %v4055_v37 }
 0x2c5   : > { %v3956_v33 = vadd.f32 %v3955_v0, %v3954_v23  ;;  %v4058_v57 = vrot.slane %v4057_v63, 4 }
 0x2c7   : > { %v3957_v51 = vrot.slane %v3956_v33, 2  ;;  %v4059_v40 = vadd.f32 %v4058_v57, %v4057_v63 }
 0x2c9   : > { %v3958_v60 = vadd.f32 %v3957_v51, %v3956_v33  ;;  %v4060_v5 = vrot.slane %v4059_v40, 2 }
 0x2cb   : > { %v3959_v26 = vrot.slane %v3958_v60, 1  ;;  %v4061_v48 = vadd.f32 %v4060_v5, %v4059_v40 }
 0x2cd   : > { %v3960_v36 = vadd.f32 %v3959_v26, %v3958_v60  ;;  %v4062_v6 = vrot.slane %v4061_v48, 1 }
 0x2cf   : > { %3962 = vst.msk [vmem:[%s312_s23] sm:$0x1] %vm3961_vm3, %v3960_v36  ;;  %v4063_v38 = vadd.f32 %v4062_v6, %v4061_v48 }
 0x2d1   : > { %4064 = vst.msk [vmem:[%s312_s23 + $0x1] sm:$0x1] %vm3961_vm3, %v4063_v38 }
 0x2d2   : > { %6069 = shalt.err (!%p6066_p5)
}
 0x2d3   : > { %s6070_s18 = scalar_lea.hbm %s7680_s15, 32  ;;  %s6074_s22 = scalar_lea.hbm %s7734_s7, 64 }
 0x2d4   : > { %p6071_p6 = scmp.ne.s32.totalorder %s7680_s15, %s6070_s18  ;;  %p6075_p10 = scmp.lt.u32.totalorder %s7680_s15, %s7734_s7 }
 0x2d5   : > { %p6076_p11 = scmp.lt.u32.totalorder %s6074_s22, %s6070_s18  ;;  %p6078_p13 = scmp.lt.u32.totalorder %s6070_s18, %s7680_s15 }
 0x2d6   : > { %p6072_p7 = pnand %p6071_p6, %p6218_p4 }
 0x2d7   : > { %p6077_p12 = por %p6076_p11, %p6075_p10 }
 0x2d8   : > { %p6073_p9 = pneg %p6072_p7 }
 0x2d9   : > { %p6079_p0 = por %p6078_p13, %p6077_p12 }
 0x2db   : > { %p6080_p1 = pnand %p6079_p0, %p6073_p9 }
 0x2dd   : > { %6083 = shalt.err (!%p6080_p1)
}
 0x2de   : > { %5965 = dma.vmem_to_hbm [thread:$0]  (%p6218_p4), %s7682_s30, 32, %s7680_s15, %s4570_s12  }
 0x2df PF: > { %p5971_p2 = scmp.ge.s32.totalorder %s6134_s29, 2  ;;  %s4628_s10 = sand.u32 1, %s6114_s24  }
 0x2e0   : > { %s4629_s16 = scalar_lea.sflag [#allocation4], %s4628_s10 }
 0x2e1   : > { %p5968_p3 = pnand %p5971_p2, %p6225_p8 }
 0x2e3   : > { %6109 = dma.done.wait (!%p5968_p3), %s4629_s16, 32  }
 0x2e4   : > { %6111 = vsyncadd (!%p5968_p3), %s4629_s16, 4294967264  ;;  %s21_s29 = sadd.s32 1, %s6134_s29   ;;  %s7808_s24 = smov %s6118_s25 }
 0x2e5   : > { %p18_p5 = scmp.ge.s32.totalorder %s21_s29, 4   ;;  %s7809_s25 = smov %s6122_s26 }
 0x2e6   : > { %s7810_s26 = smov %s6231_s14  ;;  %s7811_s27 = smov %s6130_s28 }
 0x2e7   : > { %s7812_s28 = smov %s7814_s9  ;;  %20 = sbr.rel (!%p18_p5) target bundleno = 4 (0x4), region = 114 }
 0x2ee   :  { %4634 = vsyncpa [#allocation4], 1 }
 0x2ef   :  { %4636 = vsyncpa [#allocation4 + $0x1], 1 }

// kernel: tpu_custom_call.1
= control target key start
LH: loop header
LB: loop body
LE: loop exit
PB: predicated region body
PF: predicated region fallthrough
CT: control target
= control target key end

     0   :  { %13 = vsyncpa [#allocation4], 0  ;;  %s7727_s0 = inlined_call_operand.vmem [shape: f32[2,16,16,4], index: 0, kind: input, shape index: {}]   ;;  %s7728_s1 = inlined_call_operand.vmem [shape: bf16[9,4,8], index: 1, kind: input, shape index: {}]   ;;  %s7729_s2 = inlined_call_operand.vmem [shape: f32[1,1,4], index: 2, kind: input, shape index: {}]   ;;  %s7730_s3 = inlined_call_operand.vmem [shape: f32[1,1,4], index: 3, kind: input, shape index: {}]   ;;  %s7731_s4 = inlined_call_operand.vmem [shape: bf16[4,8], index: 4, kind: input, shape index: {}]   ;;  %s7732_s5 = inlined_call_operand.vmem [shape: bf16[2,256,8], index: 5, kind: output, shape index: {0}]   ;;  %s7733_s6 = inlined_call_operand.vmem [shape: bf16[2,256,8], index: 6, kind: output, shape index: {1}]   ;;  %s7734_s7 = inlined_call_operand.hbm [shape: f32[2,1,2,8], index: 7, kind: output, shape index: {2}]  }
   0x1   :  { %15 = vsyncpa [#allocation4 + $0x1], 0  ;;  %s6178_s24 = smov 0   ;;  %s6180_s25 = smov 0  }
   0x2   :  { %s6182_s26 = smov 0   ;;  %s6184_s27 = smov 0  }
   0x3   :  { %s6186_s28 = smov 0   ;;  %s6188_s29 = smov 0  }
   0x4 LB: > { %s4736_s30 = sadd.s32 4294967295, %s6134_s29   ;;  %s4737_s8 = sadd.s32 4294967294, %s6134_s29   ;;  %s6134_s29 = sphi %s6188_s29, %s21_s29   ;;  %s6130_s28 = sphi %s6186_s28, %s7812_s28   ;;  %s6126_s27 = sphi %s6184_s27, %s7811_s27   ;;  %s6122_s26 = sphi %s6182_s26, %s7810_s26   ;;  %s6118_s25 = sphi %s6180_s25, %s7809_s25   ;;  %s6114_s24 = sphi %s6178_s24, %s7808_s24  }
   0x5   : > { %s33_s9 = sadd.s32 1, %s6130_s28  ;;  %s208_s10 = sadd.s32 1, %s6122_s26 }
   0x6   : > { %p35_p0 = scmp.ge.s32.totalorder %s33_s9, 2  ;;  %p218_p1 = scmp.ne.s32.totalorder %s6122_s26, %s6118_s25 }
   0x7   : > { %p219_p2 = scmp.eq.s32.totalorder %s4736_s30, 1  ;;  %p224_p3 = scmp.ne.s32.totalorder %s6118_s25, %s6114_s24 }
   0x8   : > { %s7814_s9 = smov (%p35_p0, %s33_s9), 0  ;;  %p225_p5 = scmp.eq.s32.totalorder %s4737_s8, 1 }
   0x9   : > { %p6218_p4 = por %p219_p2, %p218_p1  ;;  %s203_s12 = ssub.s32 %s6130_s28, %s7814_s9 }
   0xa   : > { %p4740_p6 = scmp.ge.s32.totalorder %s6134_s29, 1  ;;  %p206_p7 = scmp.eq.s32.totalorder %s203_s12, 0 }
   0xb   : > { %p6225_p8 = por %p225_p5, %p224_p3  ;;  %p263_p9 = scmp.lt.s32.totalorder %s6134_s29, 3 }
   0xc   : > { %s6231_s14 = scalar_select %p206_p7, %s6122_s26, %s208_s10  }
   0xd   : > { %p264_p10 = pnand %p4740_p6, %p263_p9 }
   0xf   : > { %267 = sbr.rel (%p264_p10) target bundleno = 735 (0x2df), region = 40 }
  0x16   : > { %v4782_v0 = vld [vmem:[%s7728_s1 + $0x2] sm:$0x3]  ;;  %vm1717_vm0 = vcmask 1041408   ;;  %v4914_v1 = vld [vmem:[%s7728_s1 + $0x8] sm:$0x3]  ;;  %vm517_vm1 = vcmask 27648  }
  0x17   : > { %5955 = vmatprep.subr.msk.bf16.mxu1 %vm1717_vm0, %v4782_v0  ;;  %5959 = vmatprep.subr.msk.bf16.mxu0 %vm1717_vm0, %v4914_v1  ;;  %v1719_v2 = vsel %vm1717_vm0, %v4782_v0, 0  ;;  %v2838_v3 = vsel %vm1717_vm0, %v4914_v1, 0  ;;  %vm520_vm2 = vcmask 24576   ;;  %p313_p11 = scmp.lt.s32.totalorder %s6126_s27, 1  ;;  %v6136_v4 = vmov 0   ;;  %s310_s20 = sand.u32 1, %s6118_s25  }
  0x18   : > { %5360 = vmatpush3.bf16.msra.mxu1 %v1719_v2  ;;  %5496 = vmatpush3.bf16.msra.mxu0 %v2838_v3  ;;  %518 = vst.msk [vmem:[#allocation2] sm:$0xf] %vm517_vm1, %v6136_v4  ;;  %519 = vst.msk [vmem:[#allocation2 + $0x4] sm:$0xf] %vm517_vm1, %v6136_v4  ;;  %vm527_vm3 = vsmask.f32 256 }
  0x19   : > { %521 = vst.msk [vmem:[#allocation2 + $0x8] sm:$0x1] %vm520_vm2, %v6136_v4  ;;  %vm583_vm4 = vsmask.f32 7938  ;;  %525 = vst.msk [vmem:[#allocation2 + $0xd4] sm:$0x1] %vm520_vm2, %v6136_v4 }
  0x1a   : > { %523 = vst.msk [vmem:[#allocation2 + $0xcc] sm:$0xf] %vm517_vm1, %v6136_v4  ;;  %524 = vst.msk [vmem:[#allocation2 + $0xd0] sm:$0xf] %vm517_vm1, %v6136_v4  ;;  %s6257_s19 = scalar_select %p313_p11, %s6126_s27, 1  ;;  %vm1668_vm10 = vcmask 31744  }
  0x1b   : > { %vm6252_vm5 = vmand %vm520_vm2, %vm527_vm3  ;;  %v6268_v7 = vld [vmem:[%s7729_s2] ss:$0 sm:$0xff]  ;;  %v532_v8 = vld [vmem:[#allocation2 + $0xc] sm:$0x1]  ;;  %vm1231_vm7 = vsmask.f32 3328 }
  0x1c   : > { %vm6261_vm6 = vmand %vm520_vm2, %vm583_vm4  ;;  %s5090_s22 = sshll.u32 %s6257_s19, 8  ;;  %v533_v9 = vsel %vm6252_vm5, 0, %v532_v8  ;;  %v588_v10 = vld [vmem:[#allocation2 + $0x14] sm:$0x1]  ;;  %v6276_v11 = vld [vmem:[%s7728_s1 + $0xa] sm:$0x3] }
  0x1d   : > { %s6281_s12 = scalar_lea.vmem %s7727_s0, %s5090_s22  ;;  %534 = vst [vmem:[#allocation2 + $0xc] sm:$0x1] %v533_v9  ;;  %v589_v12 = vsel %vm6261_vm6, 0, %v588_v10  ;;  %5960 = vmatprep.subr.msk.bf16.mxu0 %vm1717_vm0, %v6276_v11  ;;  %v535_v13 = vld [vmem:[#allocation2 + $0x18] sm:$0x1]  ;;  %vm6349_vm12 = vmand %vm517_vm1, %vm583_vm4  ;;  %vm2190_vm14 = vcmask 1042432  }
  0x1e   : > { %v591_v14 = vld [vmem:[#allocation2 + $0x20] sm:$0x1]  ;;  %v344_v16 = vld [vmem:[%s6281_s12 + $0x8] sm:$0xff]  ;;  %590 = vst [vmem:[#allocation2 + $0x14] sm:$0x1] %v589_v12  ;;  %v536_v18 = vsel %vm6252_vm5, 0, %v535_v13 }
  0x1f   : > { %v343_v15 = vld [vmem:[%s6281_s12] sm:$0xff]  ;;  %v592_v19 = vsel %vm6261_vm6, 0, %v591_v14  ;;  %v383_v21 = vmul.f32 %v6268_v7, %v344_v16  ;;  %v345_v22 = vld [vmem:[%s6281_s12 + $0x10] sm:$0xff]  ;;  %v346_v23 = vld [vmem:[%s6281_s12 + $0x18] sm:$0xff]  ;;  %537 = vst [vmem:[#allocation2 + $0x18] sm:$0x1] %v536_v18 }
  0x20   : > { %v6292_v17 = vld [vmem:[%s7730_s3] ss:$0 sm:$0xff]  ;;  %v382_v20 = vmul.f32 %v6268_v7, %v343_v15  ;;  %593 = vst [vmem:[#allocation2 + $0x20] sm:$0x1] %v592_v19  ;;  %v585_v26 = vld [vmem:[#allocation2 + $0x8] sm:$0x1]  ;;  %v384_v28 = vmul.f32 %v6268_v7, %v345_v22  ;;  %v385_v29 = vmul.f32 %v6268_v7, %v346_v23 }
  0x21   : > { %v347_v24 = vld [vmem:[%s6281_s12 + $0x20] sm:$0xff]  ;;  %vm1232_vm8 = vsmask.f32 7440  ;;  %v586_v32 = vsel %vm6261_vm6, 0, %v585_v26  ;;  %v348_v35 = vld [vmem:[%s6281_s12 + $0x28] sm:$0xff]  ;;  %v349_v36 = vld [vmem:[%s6281_s12 + $0x30] sm:$0xff]  ;;  %v422_v38 = vadd.f32 %v6292_v17, %v383_v21 }
  0x22   : > { %v529_v25 = vld [vmem:[#allocation2] sm:$0x1]  ;;  %v1177_v27 = vld [vmem:[#allocation2 + $0x4] sm:$0xf]  ;;  %v386_v30 = vmul.f32 %v6268_v7, %v347_v24  ;;  %587 = vst [vmem:[#allocation2 + $0x8] sm:$0x1] %v586_v32  ;;  %v421_v37 = vadd.f32 %v6292_v17, %v382_v20  ;;  %v423_v39 = vadd.f32 %v6292_v17, %v384_v28  ;;  %v424_v40 = vadd.f32 %v6292_v17, %v385_v29  ;;  %vm6338_vm11 = vmor %vm1231_vm7, %vm1232_vm8 }
  0x23   : > { %v530_v31 = vsel %vm6252_vm5, 0, %v529_v25  ;;  %v1244_v33 = vshll.u32 %v1177_v27, 16  ;;  %v1248_v34 = vshrl.u32 %v1177_v27, 16  ;;  %v387_v43 = vmul.f32 %v6268_v7, %v348_v35  ;;  %v350_v45 = vld [vmem:[%s6281_s12 + $0x38] sm:$0xff]  ;;  %v538_v53 = vld [vmem:[#allocation2 + $0x24] sm:$0x1] }
  0x24   : > { %531 = vst [vmem:[#allocation2] sm:$0x1] %v530_v31  ;;  %v425_v44 = vadd.f32 %v6292_v17, %v386_v30  ;;  %v453_v46 = vmul.f32 0.1, %v421_v37  ;;  %v454_v47 = vmul.f32 0.1, %v422_v38  ;;  %v388_v48 = vmul.f32 %v6268_v7, %v349_v36 }
  0x25   : > { %v6316_v41 = vrot.slane %v1244_v33, 5  ;;  %v1250_v42 = vrot.slane %v1248_v34, 4  ;;  %vm735_vm9 = vsmask.f32 4368  ;;  %v455_v50 = vmul.f32 0.1, %v423_v39 }
  0x26   : > { %v456_v51 = vmul.f32 0.1, %v424_v40  ;;  %v426_v52 = vadd.f32 %v6292_v17, %v387_v43  ;;  %v485_v54 = vmax.f32 %v421_v37, %v453_v46  ;;  %v486_v55 = vmax.f32 %v422_v38, %v454_v47  ;;  %v594_v57 = vld [vmem:[#allocation2 + $0x2c] sm:$0x1]  ;;  %v6345_v27 = vld [vmem:[%s7728_s1] sm:$0x3]  ;;  %vm6360_vm13 = vmor %vm527_vm3, %vm735_vm9 }
  0x27   : > { %v1251_v49 = vor.u32 %v1250_v42, %v6316_v41  ;;  %v457_v56 = vmul.f32 0.1, %v425_v44  ;;  %v6325_v58 = vmul.f32 %v6268_v7, %v350_v45  ;;  %v487_v59 = vmax.f32 %v423_v39, %v455_v50  ;;  %5956 = vmatprep.subr.msk.bf16.mxu1 %vm1717_vm0, %v6345_v27  ;;  %v1060_v36 = vld [vmem:[#allocation2 + $0xc] sm:$0xf]  ;;  %v1064_v37 = vld [vmem:[#allocation2 + $0x14] sm:$0x1] }
  0x28   : > { %v488_v60 = vmax.f32 %v424_v40, %v456_v51  ;;  %v458_v61 = vmul.f32 0.1, %v426_v52  ;;  %v6328_v62 = vadd.f32 %v6292_v17, %v388_v48  ;;  %v5093_v0 = vpack.c.bf16 %v485_v54, %v485_v54  ;;  %v1067_v45 = vld [vmem:[#allocation2 + $0x18] sm:$0xf]  ;;  %s5091_s10 = sshll.u32 %s6257_s19, 7  ;;  %s4741_s21 = sshll.u32 %s310_s20, 1 }
  0x29   : > { %v6330_v63 = vrot.slane %v1251_v49, 4  ;;  %v5094_v1 = vpack.c.bf16 %v486_v55, %v486_v55  ;;  %v539_v2 = vsel %vm6252_vm5, 0, %v538_v53  ;;  %v1178_v4 = vld [vmem:[#allocation2 + $0x8] sm:$0x1]  ;;  %v5095_v8 = vpack.c.bf16 %v487_v59, %v487_v59  ;;  %v1071_v53 = vld [vmem:[#allocation2 + $0x20] sm:$0x1]  ;;  %s7448_s16 = scalar_lea.vmem %s7733_s6, %s5091_s10  ;;  %s7461_s18 = scalar_lea.vmem %s7732_s5, %s5091_s10 }
  0x2a   : > { %v5096_v9 = vpack.c.bf16 %v488_v60, %v488_v60  ;;  %v489_v10 = vmax.f32 %v425_v44, %v457_v56  ;;  %540 = vst [vmem:[#allocation2 + $0x24] sm:$0x1] %v539_v2  ;;  %v595_v12 = vsel %vm6261_vm6, 0, %v594_v57  ;;  %v1254_v15 = vshll.u32 %v1178_v4, 16  ;;  %v541_v60 = vld [vmem:[#allocation2 + $0x30] sm:$0x1] }
  0x2b   : > { %v1176_v3 = vld [vmem:[#allocation2] sm:$0xf]  ;;  %v490_v16 = vmax.f32 %v426_v52, %v458_v61  ;;  %596 = vst [vmem:[#allocation2 + $0x2c] sm:$0x1] %v595_v12  ;;  %v7770_v18 = vmov 0  ;;  %v738_v19 = vshrl.u32 %v5093_v0, 16 }
  0x2c   : > { %v1235_v13 = vshrl.u32 %v1176_v3, 16  ;;  %v1238_v14 = vshll.u32 %v1176_v3, 16  ;;  %v7771_v18 = vsel %vm6338_vm11, 4294967295, %v7770_v18  ;;  %v741_v20 = vshll.u32 %v5093_v0, 16  ;;  %v597_v2 = vld [vmem:[#allocation2 + $0x38] sm:$0x1] }
  0x2d   : > { %7772 = vst [vmem:[#allocation6_spill] sm:$0xff] %v7771_v18  ;;  %v746_v21 = vshrl.u32 %v5094_v1, 16  ;;  %v749_v22 = vshll.u32 %v5094_v1, 16  ;;  %v1256_v25 = vrot.slane %v1254_v15, 5  ;;  %v755_v26 = vshrl.u32 %v5095_v8, 16  ;;  %v351_v3 = vld [vmem:[%s6281_s12 + $0x40] sm:$0xff] }
  0x2e   : > { %v1237_v23 = vrot.slane %v1235_v13, 4  ;;  %v1240_v24 = vrot.slane %v1238_v14, 5  ;;  %v740_v29 = vrot.slane %v738_v19, 7  ;;  %v758_v31 = vshll.u32 %v5095_v8, 16  ;;  %s5087_s22 = sshll.u32 %s6126_s27, 5  ;;  %s312_s23 = scalar_lea.vmem [#allocation3], %s4741_s21 }
  0x2f   : > { %v748_v30 = vrot.slane %v746_v21, 7  ;;  %v763_v32 = vshrl.u32 %v5096_v9, 16  ;;  %v1257_v34 = vsel %vm6338_vm11, %v6330_v63, %v1256_v25  ;;  %v757_v38 = vrot.slane %v755_v26, 7  ;;  %s4592_s30 = sshll.u32 %s312_s23, 4  ;;  %s7680_s15 = scalar_lea.hbm %s7734_s7, %s5087_s22  ;;  %s7682_s30 = int_to_ptr.vmem [resolvable:$true] %s4592_s30 }
  0x30   : > { %v1241_v33 = vor.u32 %v1240_v24, %v1237_v23  ;;  %v766_v39 = vshll.u32 %v5096_v9, 16  ;;  %v743_v40 = vor.u32 %v741_v20, %v740_v29  ;;  %v744_v42 = vrot.slane %v740_v29, 4  ;;  %s6137_s27 = smov [#allocation3]  }
  0x31   : > { %v751_v43 = vor.u32 %v749_v22, %v748_v30  ;;  %v753_v44 = vrot.slane %v748_v30, 4  ;;  %v760_v47 = vor.u32 %v758_v31, %v757_v38  ;;  %v761_v48 = vrot.slane %v757_v38, 4  ;;  %v1074_v19 = vld [vmem:[#allocation2 + $0x24] sm:$0xf]  ;;  %s6060_s19 = sshll.u32 %s6137_s27, 4  ;;  %s6061_s19 = int_to_ptr.vmem [resolvable:$false] %s6060_s19 }
  0x32   : > { %v1242_v46 = vrot.slane %v1241_v33, 4  ;;  %v765_v49 = vrot.slane %v763_v32, 7  ;;  %v1061_v51 = vsel %vm6349_vm12, %v743_v40, %v1060_v36  ;;  %v5097_v54 = vpack.c.bf16 %v489_v10, %v489_v10  ;;  %v352_v10 = vld [vmem:[%s6281_s12 + $0x48] sm:$0xff]  ;;  %s6062_s17 = scalar_lea.vmem %s6061_s19, 64  ;;  %p6063_p1 = scmp.lt.s32.totalorder %s7682_s30, %s6061_s19 }
  0x33   : > { %v752_v50 = vsel %vm6360_vm13, %v744_v42, %v751_v43  ;;  %v1065_v52 = vsel %vm6252_vm5, %v753_v44, %v1064_v37  ;;  %1062 = vst [vmem:[#allocation2 + $0xc] sm:$0xf] %v1061_v51  ;;  %v1068_v59 = vsel %vm6349_vm12, %v760_v47, %v1067_v45  ;;  %v5098_v63 = vpack.c.bf16 %v490_v16, %v490_v16  ;;  %v544_v16 = vld [vmem:[#allocation2 + $0x3c] sm:$0x1] }
  0x34   : > { %v1247_v55 = vsel %vm6338_vm11, %v1242_v46, %v6316_v41  ;;  %1063 = vst.msk [vmem:[#allocation2 + $0x10] sm:$0xf] %vm517_vm1, %v752_v50  ;;  %1066 = vst [vmem:[#allocation2 + $0x14] sm:$0x1] %v1065_v52  ;;  %v768_v56 = vor.u32 %v766_v39, %v765_v49  ;;  %v770_v57 = vrot.slane %v765_v49, 4  ;;  %v772_v0 = vshrl.u32 %v5097_v54, 16 }
  0x35   : > { %v4783_v61 = vcombine.low %v1247_v55, %v1257_v34  ;;  %1069 = vst [vmem:[#allocation2 + $0x18] sm:$0xf] %v1068_v59  ;;  %v775_v1 = vshll.u32 %v5097_v54, 16  ;;  %v428_v8 = vadd.f32 %v6292_v17, %v6325_v58  ;;  %v459_v9 = vmul.f32 0.1, %v6328_v62 }
  0x36   : > { %v769_v41 = vsel %vm6360_vm13, %v761_v48, %v768_v56  ;;  %v1072_v4 = vsel %vm6252_vm5, %v770_v57, %v1071_v53  ;;  %v774_v12 = vrot.slane %v772_v0, 7  ;;  %v780_v13 = vshrl.u32 %v5098_v63, 16  ;;  %v353_v48 = vld [vmem:[%s6281_s12 + $0x50] sm:$0xff] }
  0x37   : > { %5361 = vmatprep.mubr.msk.bf16.mxu1 %vm1668_vm10, %v4783_v61  ;;  %1070 = vst.msk [vmem:[#allocation2 + $0x1c] sm:$0xf] %vm517_vm1, %v769_v41  ;;  %1073 = vst [vmem:[#allocation2 + $0x20] sm:$0x1] %v1072_v4  ;;  %v783_v14 = vshll.u32 %v5098_v63, 16  ;;  %v542_v15 = vsel %vm6252_vm5, 0, %v541_v60  ;;  %v491_v21 = vmax.f32 %v6328_v62, %v459_v9  ;;  %v390_v22 = vmul.f32 %v6268_v7, %v351_v3 }
  0x38   : > { %v460_v20 = vmul.f32 0.1, %v428_v8  ;;  %543 = vst [vmem:[#allocation2 + $0x30] sm:$0x1] %v542_v15  ;;  %v598_v58 = vsel %vm6261_vm6, 0, %v597_v2  ;;  %v777_v23 = vor.u32 %v775_v1, %v774_v12  ;;  %v778_v24 = vrot.slane %v774_v12, 4 }
  0x39   : > { %v782_v25 = vrot.slane %v780_v13, 7  ;;  %599 = vst [vmem:[#allocation2 + $0x38] sm:$0x1] %v598_v58  ;;  %v6395_v26 = vsel %vm1717_vm0, %v6276_v11, 0  ;;  %v391_v30 = vmul.f32 %v6268_v7, %v352_v10  ;;  %v545_v62 = vsel %vm6252_vm5, 0, %v544_v16 }
  0x3a   : > { %v492_v29 = vmax.f32 %v428_v8, %v460_v20  ;;  %v1179_v31 = vld [vmem:[#allocation2 + $0xc] sm:$0xf]  ;;  %v1075_v36 = vsel %vm6349_vm12, %v777_v23, %v1074_v19  ;;  %v6402_v37 = vpack.c.bf16 %v491_v21, %v491_v21  ;;  %v6405_v38 = vadd.f32 %v6292_v17, %v390_v22  ;;  %546 = vst [vmem:[#allocation2 + $0x3c] sm:$0x1] %v545_v62 }
  0x3b   : > { %v1180_v32 = vld [vmem:[#allocation2 + $0x10] sm:$0xf]  ;;  %v1181_v33 = vld [vmem:[#allocation2 + $0x14] sm:$0x1]  ;;  %v785_v34 = vor.u32 %v783_v14, %v782_v25  ;;  %v1259_v11 = vshrl.u32 %v1179_v31, 16  ;;  %v1262_v39 = vshll.u32 %v1179_v31, 16  ;;  %v6412_v3 = vadd.f32 %v6292_v17, %v391_v30 }
  0x3c   : > { %v1268_v40 = vshll.u32 %v1180_v32, 16  ;;  %v1272_v42 = vshrl.u32 %v1180_v32, 16  ;;  %v1182_v43 = vld [vmem:[#allocation2 + $0x18] sm:$0xf]  ;;  %1076 = vst [vmem:[#allocation2 + $0x24] sm:$0xf] %v1075_v36  ;;  %v6415_v41 = vmul.f32 %v6268_v7, %v353_v48  ;;  %v5100_v16 = vpack.c.bf16 %v492_v29, %v492_v29 }
  0x3d   : > { %v1278_v44 = vshll.u32 %v1181_v33, 16  ;;  %v1283_v45 = vshrl.u32 %v1182_v43, 16  ;;  %v1286_v46 = vshll.u32 %v1182_v43, 16  ;;  %v786_v47 = vsel %vm6360_vm13, %v778_v24, %v785_v34  ;;  %v1078_v12 = vld [vmem:[#allocation2 + $0x2c] sm:$0x1] }
  0x3e   : > { %v1261_v49 = vrot.slane %v1259_v11, 4  ;;  %v1264_v50 = vrot.slane %v1262_v39, 5  ;;  %v1270_v51 = vrot.slane %v1268_v40, 5  ;;  %v1274_v52 = vrot.slane %v1272_v42, 4  ;;  %v1183_v53 = vld [vmem:[#allocation2 + $0x1c] sm:$0xf] }
  0x3f   : > { %1077 = vst.msk [vmem:[#allocation2 + $0x28] sm:$0xf] %vm517_vm1, %v786_v47  ;;  %v1280_v54 = vrot.slane %v1278_v44, 5  ;;  %v1184_v55 = vld [vmem:[#allocation2 + $0x20] sm:$0x1]  ;;  %v1285_v56 = vrot.slane %v1283_v45, 4 }
  0x40   : > { %v1288_v57 = vrot.slane %v1286_v46, 5  ;;  %v1292_v59 = vshll.u32 %v1183_v53, 16  ;;  %v1265_v60 = vor.u32 %v1264_v50, %v1261_v49  ;;  %v1275_v61 = vor.u32 %v1274_v52, %v1270_v51  ;;  %v600_v40 = vld [vmem:[#allocation2 + $0x44] sm:$0x1]  ;;  %v1081_v46 = vld [vmem:[#allocation2 + $0x30] sm:$0xf] }
  0x41   : > { %v1296_v63 = vshrl.u32 %v1183_v53, 16  ;;  %v1302_v0 = vshll.u32 %v1184_v55, 16  ;;  %v787_v14 = vrot.slane %v782_v25, 4  ;;  %v789_v19 = vshrl.u32 %v6402_v37, 16  ;;  %v354_v47 = vld [vmem:[%s6281_s12 + $0x58] sm:$0xff] }
  0x42   : > { %v1289_v1 = vor.u32 %v1288_v57, %v1285_v56  ;;  %v1294_v2 = vrot.slane %v1292_v59, 5  ;;  %v1266_v4 = vrot.slane %v1265_v60, 4  ;;  %v1276_v8 = vrot.slane %v1275_v61, 4  ;;  %v1085_v57 = vld [vmem:[#allocation2 + $0x38] sm:$0x1] }
  0x43   : > { %v1298_v9 = vrot.slane %v1296_v63, 4  ;;  %v1304_v10 = vrot.slane %v1302_v0, 5  ;;  %v1185_v15 = vld [vmem:[#allocation2 + $0x24] sm:$0xf]  ;;  %v1079_v25 = vsel %vm6252_vm5, %v787_v14, %v1078_v12  ;;  %v791_v36 = vrot.slane %v789_v19, 7 }
  0x44   : > { %v1290_v13 = vrot.slane %v1289_v1, 4  ;;  %v1271_v20 = vsel %vm6338_vm11, %v1266_v4, %v1270_v51  ;;  %v1281_v21 = vsel %vm6338_vm11, %v1276_v8, %v1280_v54  ;;  %v1307_v22 = vshrl.u32 %v1185_v15, 16  ;;  %1080 = vst [vmem:[#allocation2 + $0x2c] sm:$0x1] %v1079_v25  ;;  %v603_v12 = vld [vmem:[#allocation2 + $0x50] sm:$0x1] }
  0x45   : > { %v1299_v58 = vor.u32 %v1298_v9, %v1294_v2  ;;  %v6422_v23 = vcombine.low %v1271_v20, %v1281_v21  ;;  %v1310_v29 = vshll.u32 %v1185_v15, 16  ;;  %v792_v11 = vshll.u32 %v6402_v37, 16  ;;  %v355_v20 = vld [vmem:[%s6281_s12 + $0x60] sm:$0xff] }
  0x46   : > { %v1295_v24 = vsel %vm6338_vm11, %v1290_v13, %v1294_v2  ;;  %v1186_v30 = vld [vmem:[#allocation2 + $0x28] sm:$0xf]  ;;  %v1309_v31 = vrot.slane %v1307_v22, 4  ;;  %v797_v39 = vshrl.u32 %v5100_v16, 16  ;;  %v800_v45 = vshll.u32 %v5100_v16, 16 }
  0x47   : > { %7777 = vst [vmem:[#allocation7_spill] sm:$0xff] %v6422_v23  ;;  %v1300_v62 = vrot.slane %v1299_v58, 4  ;;  %v1316_v32 = vshll.u32 %v1186_v30, 16  ;;  %v1320_v33 = vshrl.u32 %v1186_v30, 16  ;;  %5362 = vmatmul.mubr.msk.bf16.vlgmr.msra.gmra.mrb[0].mxu1 %vm1668_vm10, %v6422_v23  ;;  %5497 = vmatprep.mubr.msk.bf16.mxu0 %vm1668_vm10, %v6422_v23  ;;  %v1312_v34 = vrot.slane %v1310_v29, 5 }
  0x48   : > { %v794_v50 = vor.u32 %v792_v11, %v791_v36  ;;  %v795_v51 = vrot.slane %v791_v36, 4  ;;  %v799_v53 = vrot.slane %v797_v39, 7  ;;  %v461_v54 = vmul.f32 0.1, %v6405_v38  ;;  %v547_v2 = vld [vmem:[#allocation2 + $0x48] sm:$0x1] }
  0x49   : > { %v1305_v42 = vsel %vm6338_vm11, %v1300_v62, %v1304_v10  ;;  %v1318_v43 = vrot.slane %v1316_v32, 5  ;;  %v1322_v44 = vrot.slane %v1320_v33, 4  ;;  %v1313_v49 = vor.u32 %v1312_v34, %v1309_v31 }
  0x4a   : > { %v6436_v48 = vcombine.low %v1295_v24, %v1305_v42  ;;  %v462_v37 = vmul.f32 0.1, %v6412_v3  ;;  %v1082_v56 = vsel %vm6349_vm12, %v794_v50, %v1081_v46  ;;  %v601_v59 = vsel %vm6261_vm6, 0, %v600_v40  ;;  %v1088_v40 = vld [vmem:[#allocation2 + $0x3c] sm:$0xf] }
  0x4b   : > { %v1323_v52 = vor.u32 %v1322_v44, %v1318_v43  ;;  %v1314_v55 = vrot.slane %v1313_v49, 4  ;;  %v393_v60 = vmul.f32 %v6268_v7, %v354_v47  ;;  %v802_v63 = vor.u32 %v800_v45, %v799_v53  ;;  %1083 = vst [vmem:[#allocation2 + $0x30] sm:$0xf] %v1082_v56  ;;  %602 = vst [vmem:[#allocation2 + $0x44] sm:$0x1] %v601_v59  ;;  %v356_v44 = vld [vmem:[%s6281_s12 + $0x68] sm:$0xff] }
  0x4c   : > { %5498 = vmatmul.mubr.msk.bf16.vlgmr.msra.gmra.mrb[0].mxu0 %vm1668_vm10, %v6436_v48  ;;  %5365 = vmatprep.mubr.msk.bf16.mxu1 %vm1668_vm10, %v6436_v48  ;;  %v804_v0 = vrot.slane %v799_v53, 4  ;;  %v493_v1 = vmax.f32 %v6405_v38, %v461_v54  ;;  %v1187_v4 = vld [vmem:[#allocation2 + $0x2c] sm:$0x1]  ;;  %v494_v9 = vmax.f32 %v6412_v3, %v462_v37  ;;  %v431_v10 = vadd.f32 %v6292_v17, %v6415_v41 }
  0x4d   : > { %5530 = vmatpush3.bf16.msra.mxu0 %v6395_v26  ;;  %v1324_v61 = vrot.slane %v1323_v52, 4  ;;  %v1319_v8 = vsel %vm6338_vm11, %v1314_v55, %v1318_v43  ;;  %v432_v26 = vadd.f32 %v6292_v17, %v393_v60  ;;  %v1326_v13 = vshll.u32 %v1187_v4, 16 }
  0x4e   : > { %v803_v14 = vsel %vm6360_vm13, %v795_v51, %v802_v63  ;;  %v1086_v38 = vsel %vm6252_vm5, %v804_v0, %v1085_v57  ;;  %v5101_v15 = vpack.c.bf16 %v493_v1, %v493_v1  ;;  %v5102_v16 = vpack.c.bf16 %v494_v9, %v494_v9  ;;  %v550_v9 = vld [vmem:[#allocation2 + $0x54] sm:$0x1] }
  0x4f   : > { %1084 = vst.msk [vmem:[#allocation2 + $0x34] sm:$0xf] %vm517_vm1, %v803_v14  ;;  %1087 = vst [vmem:[#allocation2 + $0x38] sm:$0x1] %v1086_v38  ;;  %v463_v19 = vmul.f32 0.1, %v431_v10  ;;  %v394_v34 = vmul.f32 %v6268_v7, %v355_v20  ;;  %v395_v59 = vmul.f32 %v6268_v7, %v356_v44 }
  0x50   : > { %v464_v3 = vmul.f32 0.1, %v432_v26  ;;  %v548_v41 = vsel %vm6252_vm5, 0, %v547_v2  ;;  %v1328_v21 = vrot.slane %v1326_v13, 5  ;;  %v806_v58 = vshrl.u32 %v5101_v15, 16 }
  0x51   : > { %v809_v22 = vshll.u32 %v5101_v15, 16  ;;  %549 = vst [vmem:[#allocation2 + $0x48] sm:$0x1] %v548_v41  ;;  %v604_v24 = vsel %vm6261_vm6, 0, %v603_v12  ;;  %v814_v25 = vshrl.u32 %v5102_v16, 16  ;;  %v817_v30 = vshll.u32 %v5102_v16, 16 }
  0x52   : > { %v495_v29 = vmax.f32 %v431_v10, %v463_v19  ;;  %v496_v62 = vmax.f32 %v432_v26, %v464_v3  ;;  %605 = vst [vmem:[#allocation2 + $0x50] sm:$0x1] %v604_v24  ;;  %v1329_v31 = vsel %vm6338_vm11, %v1324_v61, %v1328_v21  ;;  %v808_v32 = vrot.slane %v806_v58, 7  ;;  %v1188_v11 = vld [vmem:[#allocation2 + $0x30] sm:$0xf] }
  0x53   : > { %v2011_v33 = vsel %vm1717_vm0, %v6345_v27, 0  ;;  %v6472_v36 = vcombine.low %v1319_v8, %v1329_v31  ;;  %v816_v39 = vrot.slane %v814_v25, 7  ;;  %v1331_v45 = vshrl.u32 %v1188_v11, 16  ;;  %v1092_v51 = vld [vmem:[#allocation2 + $0x44] sm:$0x1]  ;;  %v357_v24 = vld [vmem:[%s6281_s12 + $0x70] sm:$0xff] }
  0x54   : > { %v5103_v42 = vpack.c.bf16 %v495_v29, %v495_v29  ;;  %v5104_v43 = vpack.c.bf16 %v496_v62, %v496_v62  ;;  %5394 = vmatpush3.bf16.msra.mxu1 %v2011_v33  ;;  %v1334_v46 = vshll.u32 %v1188_v11, 16  ;;  %v811_v47 = vor.u32 %v809_v22, %v808_v32  ;;  %v606_v3 = vld [vmem:[#allocation2 + $0x5c] sm:$0x1] }
  0x55   : > { %v812_v49 = vrot.slane %v808_v32, 4  ;;  %5366 = vmatmul.mubr.msk.bf16.gmra.mrb[4].mxu1 %vm1668_vm10, %v6472_v36  ;;  %5501 = vmatprep.mubr.msk.bf16.mxu0 %vm1668_vm10, %v6472_v36  ;;  %v819_v27 = vor.u32 %v817_v30, %v816_v39  ;;  %v821_v50 = vrot.slane %v816_v39, 4  ;;  %v1333_v55 = vrot.slane %v1331_v45, 4  ;;  %v358_v25 = vld [vmem:[%s6281_s12 + $0x78] sm:$0xff]  ;;  %v4951_v45 = vld [vmem:[%s7728_s1 + $0xc] sm:$0x3] }
  0x56   : > { %v823_v52 = vshrl.u32 %v5103_v42, 16  ;;  %v826_v53 = vshll.u32 %v5103_v42, 16  ;;  %v1189_v54 = vld [vmem:[#allocation2 + $0x34] sm:$0xf]  ;;  %v1190_v37 = vld [vmem:[#allocation2 + $0x38] sm:$0x1]  ;;  %v1089_v57 = vsel %vm6349_vm12, %v811_v47, %v1088_v40  ;;  %v433_v21 = vadd.f32 %v6292_v17, %v394_v34  ;;  %5961 = vmatprep.subr.msk.bf16.mxu0 %vm1717_vm0, %v4951_v45 }
  0x57   : > { %v1336_v56 = vrot.slane %v1334_v46, 5  ;;  %v1340_v60 = vshll.u32 %v1189_v54, 16  ;;  %v1344_v61 = vshrl.u32 %v1189_v54, 16  ;;  %v1350_v63 = vshll.u32 %v1190_v37, 16  ;;  %1090 = vst [vmem:[#allocation2 + $0x3c] sm:$0xf] %v1089_v57 }
  0x58   : > { %v820_v0 = vsel %vm6360_vm13, %v812_v49, %v819_v27  ;;  %v1093_v2 = vsel %vm6252_vm5, %v821_v50, %v1092_v51  ;;  %v825_v4 = vrot.slane %v823_v52, 7  ;;  %v831_v8 = vshrl.u32 %v5104_v43, 16  ;;  %v1095_v14 = vld [vmem:[#allocation2 + $0x48] sm:$0xf] }
  0x59   : > { %v1337_v1 = vor.u32 %v1336_v56, %v1333_v55  ;;  %1091 = vst.msk [vmem:[#allocation2 + $0x40] sm:$0xf] %vm517_vm1, %v820_v0  ;;  %v1342_v10 = vrot.slane %v1340_v60, 5  ;;  %v1346_v26 = vrot.slane %v1344_v61, 4  ;;  %v1352_v12 = vrot.slane %v1350_v63, 5 }
  0x5a   : > { %1094 = vst [vmem:[#allocation2 + $0x44] sm:$0x1] %v1093_v2  ;;  %v834_v13 = vshll.u32 %v5104_v43, 16  ;;  %v828_v15 = vor.u32 %v826_v53, %v825_v4  ;;  %v829_v16 = vrot.slane %v825_v4, 4  ;;  %v833_v19 = vrot.slane %v831_v8, 7 }
  0x5b   : > { %v1338_v38 = vrot.slane %v1337_v1, 4  ;;  %v1347_v41 = vor.u32 %v1346_v26, %v1342_v10  ;;  %v1099_v20 = vld [vmem:[#allocation2 + $0x50] sm:$0x1]  ;;  %v434_v58 = vadd.f32 %v6292_v17, %v395_v59  ;;  %v551_v22 = vsel %vm6252_vm5, 0, %v550_v9  ;;  %v359_v9 = vld [vmem:[%s6281_s12 + $0x80] sm:$0xff] }
  0x5c   : > { %v836_v29 = vor.u32 %v834_v13, %v833_v19  ;;  %v838_v62 = vrot.slane %v833_v19, 4  ;;  %v1096_v31 = vsel %vm6349_vm12, %v828_v15, %v1095_v14  ;;  %552 = vst [vmem:[#allocation2 + $0x54] sm:$0x1] %v551_v22  ;;  %v465_v33 = vmul.f32 0.1, %v433_v21 }
  0x5d   : > { %v1343_v30 = vsel %vm6338_vm11, %v1338_v38, %v1342_v10  ;;  %v1348_v32 = vrot.slane %v1347_v41, 4  ;;  %1097 = vst [vmem:[#allocation2 + $0x48] sm:$0xf] %v1096_v31  ;;  %v466_v34 = vmul.f32 0.1, %v434_v58  ;;  %v607_v11 = vsel %vm6261_vm6, 0, %v606_v3 }
  0x5e   : > { %v1191_v39 = vld [vmem:[#allocation2 + $0x3c] sm:$0xf]  ;;  %v837_v40 = vsel %vm6360_vm13, %v829_v16, %v836_v29  ;;  %v1100_v42 = vsel %vm6252_vm5, %v838_v62, %v1099_v20  ;;  %608 = vst [vmem:[#allocation2 + $0x5c] sm:$0x1] %v607_v11  ;;  %v396_v43 = vmul.f32 %v6268_v7, %v357_v24  ;;  %v397_v44 = vmul.f32 %v6268_v7, %v358_v25  ;;  %v360_v10 = vld [vmem:[%s6281_s12 + $0x88] sm:$0xff] }
  0x5f   : > { %v1353_v46 = vsel %vm6338_vm11, %v1348_v32, %v1352_v12  ;;  %v1355_v49 = vshrl.u32 %v1191_v39, 16  ;;  %v1358_v27 = vshll.u32 %v1191_v39, 16  ;;  %1098 = vst.msk [vmem:[#allocation2 + $0x4c] sm:$0xf] %vm517_vm1, %v837_v40  ;;  %1101 = vst [vmem:[#allocation2 + $0x50] sm:$0x1] %v1100_v42  ;;  %v497_v50 = vmax.f32 %v433_v21, %v465_v33 }
  0x60   : > { %v1192_v47 = vld [vmem:[#allocation2 + $0x40] sm:$0xf]  ;;  %v6512_v51 = vcombine.low %v1343_v30, %v1353_v46  ;;  %v498_v37 = vmax.f32 %v434_v58, %v466_v34  ;;  %v435_v0 = vadd.f32 %v6292_v17, %v396_v43  ;;  %v436_v38 = vadd.f32 %v6292_v17, %v397_v44  ;;  %v609_v46 = vld [vmem:[#allocation2 + $0x68] sm:$0x1] }
  0x61   : > { %v1193_v52 = vld [vmem:[#allocation2 + $0x44] sm:$0x1]  ;;  %v1364_v53 = vshll.u32 %v1192_v47, 16  ;;  %v1368_v54 = vshrl.u32 %v1192_v47, 16  ;;  %v1357_v55 = vrot.slane %v1355_v49, 4  ;;  %v1360_v56 = vrot.slane %v1358_v27, 5 }
  0x62   : > { %7778 = vst [vmem:[#allocation8_spill] sm:$0xff] %v6512_v51  ;;  %v1374_v57 = vshll.u32 %v1193_v52, 16  ;;  %v5105_v59 = vpack.c.bf16 %v497_v50, %v497_v50  ;;  %5502 = vmatmul.mubr.msk.bf16.gmra.mrb[4].mxu0 %vm1668_vm10, %v6512_v51  ;;  %5369 = vmatprep.mubr.msk.bf16.mxu1 %vm1668_vm10, %v6512_v51  ;;  %v5106_v63 = vpack.c.bf16 %v498_v37, %v498_v37  ;;  %v553_v39 = vld [vmem:[#allocation2 + $0x60] sm:$0x1]  ;;  %v556_v52 = vld [vmem:[#allocation2 + $0x6c] sm:$0x1] }
  0x63   : > { %v1366_v60 = vrot.slane %v1364_v53, 5  ;;  %v1370_v61 = vrot.slane %v1368_v54, 4  ;;  %v1361_v1 = vor.u32 %v1360_v56, %v1357_v55  ;;  %v398_v22 = vmul.f32 %v6268_v7, %v359_v9  ;;  %v1102_v11 = vld [vmem:[#allocation2 + $0x54] sm:$0xf]  ;;  %v362_v9 = vld [vmem:[%s6281_s12 + $0x98] sm:$0xff] }
  0x64   : > { %v1376_v2 = vrot.slane %v1374_v57, 5  ;;  %v840_v4 = vshrl.u32 %v5105_v59, 16  ;;  %v843_v8 = vshll.u32 %v5105_v59, 16  ;;  %v1194_v12 = vld [vmem:[#allocation2 + $0x48] sm:$0xf]  ;;  %v848_v13 = vshrl.u32 %v5106_v63, 16 }
  0x65   : > { %v1371_v26 = vor.u32 %v1370_v61, %v1366_v60  ;;  %v851_v14 = vshll.u32 %v5106_v63, 16  ;;  %v1362_v15 = vrot.slane %v1361_v1, 4  ;;  %v1379_v16 = vshrl.u32 %v1194_v12, 16  ;;  %v1106_v45 = vld [vmem:[#allocation2 + $0x5c] sm:$0x1]  ;;  %v361_v63 = vld [vmem:[%s6281_s12 + $0x90] sm:$0xff] }
  0x66   : > { %v1382_v19 = vshll.u32 %v1194_v12, 16  ;;  %v842_v3 = vrot.slane %v840_v4, 7  ;;  %v1195_v20 = vld [vmem:[#allocation2 + $0x4c] sm:$0xf]  ;;  %v1196_v21 = vld [vmem:[#allocation2 + $0x50] sm:$0x1]  ;;  %v399_v24 = vmul.f32 %v6268_v7, %v360_v10 }
  0x67   : > { %v1372_v41 = vrot.slane %v1371_v26, 4  ;;  %v850_v58 = vrot.slane %v848_v13, 7  ;;  %v1367_v25 = vsel %vm6338_vm11, %v1362_v15, %v1366_v60  ;;  %v1381_v30 = vrot.slane %v1379_v16, 4  ;;  %v612_v61 = vld [vmem:[#allocation2 + $0x74] sm:$0x1] }
  0x68   : > { %v1384_v29 = vrot.slane %v1382_v19, 5  ;;  %v1388_v62 = vshll.u32 %v1195_v20, 16  ;;  %v1392_v32 = vshrl.u32 %v1195_v20, 16  ;;  %v1398_v33 = vshll.u32 %v1196_v21, 16  ;;  %v559_v20 = vld [vmem:[#allocation2 + $0x78] sm:$0x1] }
  0x69   : > { %v1377_v31 = vsel %vm6338_vm11, %v1372_v41, %v1376_v2  ;;  %v845_v34 = vor.u32 %v843_v8, %v842_v3  ;;  %v846_v44 = vrot.slane %v842_v3, 4  ;;  %v853_v27 = vor.u32 %v851_v14, %v850_v58 }
  0x6a   : > { %v6528_v40 = vcombine.low %v1367_v25, %v1377_v31  ;;  %v1385_v42 = vor.u32 %v1384_v29, %v1381_v30  ;;  %v1390_v43 = vrot.slane %v1388_v62, 5  ;;  %v1394_v47 = vrot.slane %v1392_v32, 4 }
  0x6b   : > { %v1400_v49 = vrot.slane %v1398_v33, 5  ;;  %v855_v50 = vrot.slane %v850_v58, 4  ;;  %v1103_v54 = vsel %vm6349_vm12, %v845_v34, %v1102_v11  ;;  %v467_v37 = vmul.f32 0.1, %v435_v0 }
  0x6c   : > { %7779 = vst [vmem:[#allocation9_spill] sm:$0xff] %v6528_v40  ;;  %5370 = vmatmul.mubr.msk.bf16.gmra.mrb[8].mxu1 %vm1668_vm10, %v6528_v40  ;;  %5505 = vmatprep.mubr.msk.bf16.mxu0 %vm1668_vm10, %v6528_v40  ;;  %v1386_v53 = vrot.slane %v1385_v42, 4  ;;  %v468_v55 = vmul.f32 0.1, %v436_v38  ;;  %v1395_v56 = vor.u32 %v1394_v47, %v1390_v43  ;;  %v854_v57 = vsel %vm6360_vm13, %v846_v44, %v853_v27 }
  0x6d   : > { %1104 = vst [vmem:[#allocation2 + $0x54] sm:$0xf] %v1103_v54  ;;  %v1107_v59 = vsel %vm6252_vm5, %v855_v50, %v1106_v45  ;;  %v554_v60 = vsel %vm6252_vm5, 0, %v553_v39  ;;  %1105 = vst.msk [vmem:[#allocation2 + $0x58] sm:$0xf] %vm517_vm1, %v854_v57  ;;  %v499_v2 = vmax.f32 %v435_v0, %v467_v37  ;;  %v610_v8 = vsel %vm6261_vm6, 0, %v609_v46 }
  0x6e   : > { %v1391_v1 = vsel %vm6338_vm11, %v1386_v53, %v1390_v43  ;;  %1108 = vst [vmem:[#allocation2 + $0x5c] sm:$0x1] %v1107_v59  ;;  %v500_v4 = vmax.f32 %v436_v38, %v468_v55  ;;  %555 = vst [vmem:[#allocation2 + $0x60] sm:$0x1] %v554_v60  ;;  %v1396_v10 = vrot.slane %v1395_v56, 4  ;;  %v437_v26 = vadd.f32 %v6292_v17, %v398_v22 }
  0x6f   : > { %611 = vst [vmem:[#allocation2 + $0x68] sm:$0x1] %v610_v8  ;;  %v438_v12 = vadd.f32 %v6292_v17, %v399_v24  ;;  %v557_v13 = vsel %vm6252_vm5, 0, %v556_v52  ;;  %v5107_v14 = vpack.c.bf16 %v499_v2, %v499_v2  ;;  %v613_v0 = vsel %vm6261_vm6, 0, %v612_v61  ;;  %v615_v2 = vld [vmem:[#allocation2 + $0x80] sm:$0x1] }
  0x70   : > { %v5108_v15 = vpack.c.bf16 %v500_v4, %v500_v4  ;;  %558 = vst [vmem:[#allocation2 + $0x6c] sm:$0x1] %v557_v13  ;;  %v400_v38 = vmul.f32 %v6268_v7, %v361_v63  ;;  %v1401_v16 = vsel %vm6338_vm11, %v1396_v10, %v1400_v49  ;;  %v469_v19 = vmul.f32 0.1, %v437_v26  ;;  %614 = vst [vmem:[#allocation2 + $0x74] sm:$0x1] %v613_v0 }
  0x71   : > { %v470_v3 = vmul.f32 0.1, %v438_v12  ;;  %v401_v41 = vmul.f32 %v6268_v7, %v362_v9  ;;  %v6559_v21 = vcombine.low %v1391_v1, %v1401_v16  ;;  %v857_v58 = vshrl.u32 %v5107_v14, 16  ;;  %v6576_v4 = vld [vmem:[%s7728_s1 + $0x4] sm:$0x3] }
  0x72   : > { %v860_v22 = vshll.u32 %v5107_v14, 16  ;;  %v865_v24 = vshrl.u32 %v5108_v15, 16  ;;  %v868_v25 = vshll.u32 %v5108_v15, 16  ;;  %v501_v30 = vmax.f32 %v437_v26, %v469_v19  ;;  %5957 = vmatprep.subr.msk.bf16.mxu1 %vm1717_vm0, %v6576_v4 }
  0x73   : > { %7780 = vst [vmem:[#allocation10_spill] sm:$0xff] %v6559_v21  ;;  %v502_v29 = vmax.f32 %v438_v12, %v470_v3  ;;  %v439_v62 = vadd.f32 %v6292_v17, %v400_v38  ;;  %5506 = vmatmul.mubr.msk.bf16.gmra.mrb[8].mxu0 %vm1668_vm10, %v6559_v21  ;;  %5373 = vmatprep.mubr.msk.bf16.mxu1 %vm1668_vm10, %v6559_v21  ;;  %v859_v32 = vrot.slane %v857_v58, 7  ;;  %v560_v34 = vsel %vm6252_vm5, 0, %v559_v20 }
  0x74   : > { %v1197_v31 = vld [vmem:[#allocation2 + $0x54] sm:$0xf]  ;;  %v867_v7 = vrot.slane %v865_v24, 7  ;;  %v440_v33 = vadd.f32 %v6292_v17, %v401_v41  ;;  %v1198_v11 = vld [vmem:[#allocation2 + $0x58] sm:$0xf]  ;;  %v5109_v44 = vpack.c.bf16 %v501_v30, %v501_v30  ;;  %v616_v3 = vsel %vm6261_vm6, 0, %v615_v2 }
  0x75   : > { %v1199_v39 = vld [vmem:[#allocation2 + $0x5c] sm:$0x1]  ;;  %v1403_v42 = vshrl.u32 %v1197_v31, 16  ;;  %v1406_v43 = vshll.u32 %v1197_v31, 16  ;;  %v5110_v45 = vpack.c.bf16 %v502_v29, %v502_v29  ;;  %561 = vst [vmem:[#allocation2 + $0x78] sm:$0x1] %v560_v34  ;;  %v862_v27 = vor.u32 %v860_v22, %v859_v32 }
  0x76   : > { %v1412_v46 = vshll.u32 %v1198_v11, 16  ;;  %v1416_v47 = vshrl.u32 %v1198_v11, 16  ;;  %v1422_v49 = vshll.u32 %v1199_v39, 16  ;;  %v1109_v50 = vld [vmem:[#allocation2 + $0x60] sm:$0xf]  ;;  %v863_v54 = vrot.slane %v859_v32, 4 }
  0x77   : > { %v1405_v52 = vrot.slane %v1403_v42, 4  ;;  %v1408_v53 = vrot.slane %v1406_v43, 5  ;;  %v870_v37 = vor.u32 %v868_v25, %v867_v7  ;;  %v1113_v17 = vld [vmem:[#allocation2 + $0x68] sm:$0x1]  ;;  %v872_v59 = vrot.slane %v867_v7, 4  ;;  %v363_v41 = vld [vmem:[%s6281_s12 + $0xa0] sm:$0xff] }
  0x78   : > { %v1414_v55 = vrot.slane %v1412_v46, 5  ;;  %v1418_v56 = vrot.slane %v1416_v47, 4  ;;  %v1424_v57 = vrot.slane %v1422_v49, 5  ;;  %v1110_v63 = vsel %vm6349_vm12, %v862_v27, %v1109_v50  ;;  %v1116_v12 = vld [vmem:[#allocation2 + $0x6c] sm:$0xf]  ;;  %v365_v34 = vld [vmem:[%s6281_s12 + $0xb0] sm:$0xff] }
  0x79   : > { %v1409_v60 = vor.u32 %v1408_v53, %v1405_v52  ;;  %v871_v61 = vsel %vm6360_vm13, %v863_v54, %v870_v37  ;;  %v874_v1 = vshrl.u32 %v5109_v44, 16  ;;  %1111 = vst [vmem:[#allocation2 + $0x60] sm:$0xf] %v1110_v63  ;;  %v1114_v9 = vsel %vm6252_vm5, %v872_v59, %v1113_v17  ;;  %v1120_v24 = vld [vmem:[#allocation2 + $0x74] sm:$0x1]  ;;  %v364_v30 = vld [vmem:[%s6281_s12 + $0xa8] sm:$0xff] }
  0x7a   : > { %v1419_v8 = vor.u32 %v1418_v56, %v1414_v55  ;;  %1112 = vst.msk [vmem:[#allocation2 + $0x64] sm:$0xf] %vm517_vm1, %v871_v61  ;;  %v877_v10 = vshll.u32 %v5109_v44, 16  ;;  %v882_v26 = vshrl.u32 %v5110_v45, 16  ;;  %1115 = vst [vmem:[#allocation2 + $0x68] sm:$0x1] %v1114_v9 }
  0x7b   : > { %v1410_v13 = vrot.slane %v1409_v60, 4  ;;  %v876_v14 = vrot.slane %v874_v1, 7  ;;  %v885_v15 = vshll.u32 %v5110_v45, 16  ;;  %v471_v0 = vmul.f32 0.1, %v439_v62 }
  0x7c   : > { %v1420_v38 = vrot.slane %v1419_v8, 4  ;;  %v884_v16 = vrot.slane %v882_v26, 7  ;;  %v472_v19 = vmul.f32 0.1, %v440_v33  ;;  %617 = vst [vmem:[#allocation2 + $0x80] sm:$0x1] %v616_v3 }
  0x7d   : > { %v1415_v20 = vsel %vm6338_vm11, %v1410_v13, %v1414_v55  ;;  %v879_v58 = vor.u32 %v877_v10, %v876_v14  ;;  %v880_v22 = vrot.slane %v876_v14, 4  ;;  %v503_v25 = vmax.f32 %v439_v62, %v471_v0  ;;  %v6599_v43 = vld [vmem:[%s7729_s2] ss:$0 sm:$0xff]  ;;  %v562_v1 = vld [vmem:[#allocation2 + $0x84] sm:$0x1]  ;;  %v366_v0 = vld [vmem:[%s6281_s12 + $0xb8] sm:$0xff] }
  0x7e   : > { %v1425_v29 = vsel %vm6338_vm11, %v1420_v38, %v1424_v57  ;;  %v887_v31 = vor.u32 %v885_v15, %v884_v16  ;;  %v889_v32 = vrot.slane %v884_v16, 4  ;;  %v504_v7 = vmax.f32 %v440_v33, %v472_v19  ;;  %v6615_v52 = vld [vmem:[%s7730_s3] ss:$0 sm:$0xff]  ;;  %v1123_v26 = vld [vmem:[#allocation2 + $0x78] sm:$0xf] }
  0x7f   : > { %v6592_v11 = vcombine.low %v1415_v20, %v1425_v29  ;;  %v1117_v39 = vsel %vm6349_vm12, %v879_v58, %v1116_v12  ;;  %v5111_v42 = vpack.c.bf16 %v503_v25, %v503_v25  ;;  %v402_v62 = vmul.f32 %v6599_v43, %v363_v41 }
  0x80   : > { %v888_v44 = vsel %vm6360_vm13, %v880_v22, %v887_v31  ;;  %1118 = vst [vmem:[#allocation2 + $0x6c] sm:$0xf] %v1117_v39  ;;  %v1121_v33 = vsel %vm6252_vm5, %v889_v32, %v1120_v24  ;;  %v5112_v45 = vpack.c.bf16 %v504_v7, %v504_v7  ;;  %v403_v46 = vmul.f32 %v6599_v43, %v364_v30  ;;  %v1200_v47 = vld [vmem:[#allocation2 + $0x60] sm:$0xf] }
  0x81   : > { %7781 = vst [vmem:[#allocation11_spill] sm:$0xff] %v6592_v11  ;;  %5374 = vmatmul.mubr.msk.bf16.gmra.mrb[12].mxu1 %vm1668_vm10, %v6592_v11  ;;  %5509 = vmatprep.mubr.msk.bf16.mxu0 %vm1668_vm10, %v6592_v11  ;;  %v1201_v49 = vld [vmem:[#allocation2 + $0x64] sm:$0xf]  ;;  %1119 = vst.msk [vmem:[#allocation2 + $0x70] sm:$0xf] %vm517_vm1, %v888_v44  ;;  %v891_v27 = vshrl.u32 %v5111_v42, 16  ;;  %v441_v53 = vadd.f32 %v6615_v52, %v402_v62  ;;  %v6619_v54 = vmul.f32 %v6599_v43, %v365_v34 }
  0x82   : > { %1122 = vst [vmem:[#allocation2 + $0x74] sm:$0x1] %v1121_v33  ;;  %v894_v50 = vshll.u32 %v5111_v42, 16  ;;  %v1202_v37 = vld [vmem:[#allocation2 + $0x68] sm:$0x1]  ;;  %v1427_v17 = vshrl.u32 %v1200_v47, 16  ;;  %v442_v19 = vadd.f32 %v6615_v52, %v403_v46  ;;  %v405_v7 = vmul.f32 %v6599_v43, %v366_v0 }
  0x83   : > { %v1430_v55 = vshll.u32 %v1200_v47, 16  ;;  %v1436_v56 = vshll.u32 %v1201_v49, 16  ;;  %v1440_v57 = vshrl.u32 %v1201_v49, 16  ;;  %v1446_v59 = vshll.u32 %v1202_v37, 16  ;;  %v1127_v44 = vld [vmem:[#allocation2 + $0x80] sm:$0x1] }
  0x84   : > { %v893_v60 = vrot.slane %v891_v27, 7  ;;  %v899_v61 = vshrl.u32 %v5112_v45, 16  ;;  %v902_v63 = vshll.u32 %v5112_v45, 16  ;;  %v1429_v2 = vrot.slane %v1427_v17, 4  ;;  %v618_v49 = vld [vmem:[#allocation2 + $0x8c] sm:$0x1] }
  0x85   : > { %v1432_v8 = vrot.slane %v1430_v55, 5  ;;  %v1438_v9 = vrot.slane %v1436_v56, 5  ;;  %v1442_v10 = vrot.slane %v1440_v57, 4  ;;  %v1448_v12 = vrot.slane %v1446_v59, 5  ;;  %v565_v17 = vld [vmem:[#allocation2 + $0x90] sm:$0x1] }
  0x86   : > { %v896_v13 = vor.u32 %v894_v50, %v893_v60  ;;  %v897_v14 = vrot.slane %v893_v60, 4  ;;  %v901_v15 = vrot.slane %v899_v61, 7  ;;  %v473_v3 = vmul.f32 0.1, %v441_v53  ;;  %v621_v60 = vld [vmem:[#allocation2 + $0x98] sm:$0x1] }
  0x87   : > { %v1433_v38 = vor.u32 %v1432_v8, %v1429_v2  ;;  %v1443_v16 = vor.u32 %v1442_v10, %v1438_v9  ;;  %v1203_v41 = vld [vmem:[#allocation2 + $0x6c] sm:$0xf]  ;;  %v563_v24 = vsel %vm6252_vm5, 0, %v562_v1  ;;  %v474_v59 = vmul.f32 0.1, %v442_v19 }
  0x88   : > { %v904_v20 = vor.u32 %v902_v63, %v901_v15  ;;  %v906_v58 = vrot.slane %v901_v15, 4  ;;  %v1124_v22 = vsel %vm6349_vm12, %v896_v13, %v1123_v26  ;;  %v6627_v29 = vld [vmem:[#allocation2 + $0x70] sm:$0xf]  ;;  %v505_v32 = vmax.f32 %v441_v53, %v473_v3  ;;  %564 = vst [vmem:[#allocation2 + $0x84] sm:$0x1] %v563_v24 }
  0x89   : > { %v1434_v25 = vrot.slane %v1433_v38, 4  ;;  %v1444_v30 = vrot.slane %v1443_v16, 4  ;;  %v1205_v31 = vld [vmem:[#allocation2 + $0x74] sm:$0x1]  ;;  %1125 = vst [vmem:[#allocation2 + $0x78] sm:$0xf] %v1124_v22  ;;  %v443_v2 = vadd.f32 %v6615_v52, %v6619_v54  ;;  %v444_v10 = vadd.f32 %v6615_v52, %v405_v7 }
  0x8a   : > { %v1451_v34 = vshrl.u32 %v1203_v41, 16  ;;  %v1454_v39 = vshll.u32 %v1203_v41, 16  ;;  %v1460_v42 = vshll.u32 %v6627_v29, 16  ;;  %v1464_v62 = vshrl.u32 %v6627_v29, 16  ;;  %v6037_v11 = vld [vmem:[#allocation2 + $0x40] sm:$0xf] }
  0x8b   : > { %v1439_v33 = vsel %vm6338_vm11, %v1434_v25, %v1438_v9  ;;  %v1449_v45 = vsel %vm6338_vm11, %v1444_v30, %v1448_v12  ;;  %v1470_v46 = vshll.u32 %v1205_v31, 16  ;;  %v905_v47 = vsel %vm6360_vm13, %v897_v14, %v904_v20 }
  0x8c   : > { %v6638_v27 = vcombine.low %v1439_v33, %v1449_v45  ;;  %v1453_v50 = vrot.slane %v1451_v34, 4  ;;  %v1456_v53 = vrot.slane %v1454_v39, 5  ;;  %v1462_v37 = vrot.slane %v1460_v42, 5  ;;  %1126 = vst.msk [vmem:[#allocation2 + $0x7c] sm:$0xf] %vm517_vm1, %v905_v47  ;;  %v367_v47 = vld [vmem:[%s6281_s12 + $0xc0] sm:$0xff] }
  0x8d   : > { %v1466_v55 = vrot.slane %v1464_v62, 4  ;;  %v1472_v56 = vrot.slane %v1470_v46, 5  ;;  %v1128_v57 = vsel %vm6252_vm5, %v906_v58, %v1127_v44  ;;  %v619_v63 = vsel %vm6261_vm6, 0, %v618_v49 }
  0x8e   : > { %7782 = vst [vmem:[#allocation12_spill] sm:$0xff] %v6638_v27  ;;  %5510 = vmatmul.mubr.msk.bf16.gmra.mrb[12].mxu0 %vm1668_vm10, %v6638_v27  ;;  %5377 = vmatprep.mubr.msk.bf16.mxu1 %vm1668_vm10, %v6638_v27  ;;  %v1457_v61 = vor.u32 %v1456_v53, %v1453_v50  ;;  %1129 = vst [vmem:[#allocation2 + $0x80] sm:$0x1] %v1128_v57  ;;  %v5113_v1 = vpack.c.bf16 %v505_v32, %v505_v32  ;;  %v566_v26 = vsel %vm6252_vm5, 0, %v565_v17  ;;  %vm2191_vm15 = vcmask 1046532  }
  0x8f   : > { %v1467_v8 = vor.u32 %v1466_v55, %v1462_v37  ;;  %v506_v9 = vmax.f32 %v442_v19, %v474_v59  ;;  %620 = vst [vmem:[#allocation2 + $0x8c] sm:$0x1] %v619_v63  ;;  %567 = vst [vmem:[#allocation2 + $0x90] sm:$0x1] %v566_v26  ;;  %v622_v0 = vsel %vm6261_vm6, 0, %v621_v60  ;;  %v368_v60 = vld [vmem:[%s6281_s12 + $0xc8] sm:$0xff] }
  0x90   : > { %v1458_v12 = vrot.slane %v1457_v61, 4  ;;  %v6654_v13 = vld [vmem:[#allocation2 + $0x78] sm:$0xf]  ;;  %v908_v14 = vshrl.u32 %v5113_v1, 16  ;;  %v911_v15 = vshll.u32 %v5113_v1, 16  ;;  %vm3891_vm2 = vcmask 64512  }
  0x91   : > { %v1468_v38 = vrot.slane %v1467_v8, 4  ;;  %v1475_v54 = vshrl.u32 %v6654_v13, 16  ;;  %v1478_v16 = vshll.u32 %v6654_v13, 16  ;;  %v5114_v19 = vpack.c.bf16 %v506_v9, %v506_v9  ;;  %v1130_v3 = vld [vmem:[#allocation2 + $0x84] sm:$0xf] }
  0x92   : > { %623 = vst [vmem:[#allocation2 + $0x98] sm:$0x1] %v622_v0  ;;  %v1463_v41 = vsel %vm6338_vm11, %v1458_v12, %v1462_v37  ;;  %v910_v20 = vrot.slane %v908_v14, 7  ;;  %v475_v58 = vmul.f32 0.1, %v443_v2  ;;  %v406_v8 = vmul.f32 %v6599_v43, %v367_v47 }
  0x93   : > { %v476_v22 = vmul.f32 0.1, %v444_v10  ;;  %v1473_v24 = vsel %vm6338_vm11, %v1468_v38, %v1472_v56  ;;  %v6664_v25 = vld [vmem:[#allocation2 + $0x7c] sm:$0xf]  ;;  %v1477_v30 = vrot.slane %v1475_v54, 4  ;;  %v1480_v31 = vrot.slane %v1478_v16, 5 }
  0x94   : > { %v916_v32 = vshrl.u32 %v5114_v19, 16  ;;  %v6666_v7 = vcombine.low %v1463_v41, %v1473_v24  ;;  %v1484_v34 = vshll.u32 %v6664_v25, 16  ;;  %v1488_v39 = vshrl.u32 %v6664_v25, 16  ;;  %v568_v9 = vld [vmem:[#allocation2 + $0x9c] sm:$0x1]  ;;  %v369_v16 = vld [vmem:[%s6281_s12 + $0xd0] sm:$0xff] }
  0x95   : > { %v913_v42 = vor.u32 %v911_v15, %v910_v20  ;;  %v6670_v62 = vld [vmem:[#allocation2 + $0x80] sm:$0x1]  ;;  %v1481_v44 = vor.u32 %v1480_v31, %v1477_v30  ;;  %v914_v33 = vrot.slane %v910_v20, 4  ;;  %v919_v46 = vshll.u32 %v5114_v19, 16  ;;  %v624_v26 = vld [vmem:[#allocation2 + $0xa4] sm:$0x1] }
  0x96   : > { %7783 = vst [vmem:[#allocation13_spill] sm:$0xff] %v6666_v7  ;;  %v918_v45 = vrot.slane %v916_v32, 7  ;;  %5378 = vmatmul.mubr.msk.bf16.gmra.mrb[16].mxu1 %vm1668_vm10, %v6666_v7  ;;  %5513 = vmatprep.mubr.msk.bf16.mxu0 %vm1668_vm10, %v6666_v7  ;;  %v1486_v49 = vrot.slane %v1484_v34, 5  ;;  %v1490_v50 = vrot.slane %v1488_v39, 4  ;;  %v1494_v53 = vshll.u32 %v6670_v62, 16  ;;  %v370_v19 = vld [vmem:[%s6281_s12 + $0xd8] sm:$0xff] }
  0x97   : > { %v1131_v37 = vsel %vm6349_vm12, %v913_v42, %v1130_v3  ;;  %v1134_v17 = vld [vmem:[#allocation2 + $0x8c] sm:$0x1]  ;;  %v1482_v55 = vrot.slane %v1481_v44, 4  ;;  %v507_v59 = vmax.f32 %v443_v2, %v475_v58  ;;  %v508_v1 = vmax.f32 %v444_v10, %v476_v22  ;;  %v571_v22 = vld [vmem:[#allocation2 + $0xa8] sm:$0x1] }
  0x98   : > { %v921_v56 = vor.u32 %v919_v46, %v918_v45  ;;  %v923_v57 = vrot.slane %v918_v45, 4  ;;  %1132 = vst [vmem:[#allocation2 + $0x84] sm:$0xf] %v1131_v37  ;;  %v1491_v61 = vor.u32 %v1490_v50, %v1486_v49  ;;  %v1496_v63 = vrot.slane %v1494_v53, 5  ;;  %v1137_v42 = vld [vmem:[#allocation2 + $0x90] sm:$0xf] }
  0x99   : > { %v1487_v12 = vsel %vm6338_vm11, %v1482_v55, %v1486_v49  ;;  %v5115_v2 = vpack.c.bf16 %v507_v59, %v507_v59  ;;  %v5116_v38 = vpack.c.bf16 %v508_v1, %v508_v1  ;;  %v407_v10 = vmul.f32 %v6599_v43, %v368_v60  ;;  %v1141_v59 = vld [vmem:[#allocation2 + $0x98] sm:$0x1]  ;;  %v6036_v7 = vld [vmem:[#allocation2 + $0x2c] sm:$0x1] }
  0x9a   : > { %v922_v14 = vsel %vm6360_vm13, %v914_v33, %v921_v56  ;;  %v1135_v15 = vsel %vm6252_vm5, %v923_v57, %v1134_v17  ;;  %v1492_v0 = vrot.slane %v1491_v61, 4  ;;  %v445_v54 = vadd.f32 %v6615_v52, %v406_v8 }
  0x9b   : > { %1133 = vst.msk [vmem:[#allocation2 + $0x88] sm:$0xf] %vm517_vm1, %v922_v14  ;;  %1136 = vst [vmem:[#allocation2 + $0x8c] sm:$0x1] %v1135_v15  ;;  %v925_v3 = vshrl.u32 %v5115_v2, 16  ;;  %v928_v41 = vshll.u32 %v5115_v2, 16  ;;  %v446_v32 = vadd.f32 %v6615_v52, %v407_v10  ;;  %v408_v33 = vmul.f32 %v6599_v43, %v369_v16 }
  0x9c   : > { %v569_v20 = vsel %vm6252_vm5, 0, %v568_v9  ;;  %v625_v58 = vsel %vm6261_vm6, 0, %v624_v26  ;;  %v1497_v24 = vsel %vm6338_vm11, %v1492_v0, %v1496_v63  ;;  %v933_v30 = vshrl.u32 %v5116_v38, 16 }
  0x9d   : > { %v936_v31 = vshll.u32 %v5116_v38, 16  ;;  %570 = vst [vmem:[#allocation2 + $0x9c] sm:$0x1] %v569_v20  ;;  %626 = vst [vmem:[#allocation2 + $0xa4] sm:$0x1] %v625_v58  ;;  %v6700_v34 = vcombine.low %v1487_v12, %v1497_v24  ;;  %v927_v39 = vrot.slane %v925_v3, 7  ;;  %v409_v49 = vmul.f32 %v6599_v43, %v370_v19 }
  0x9e   : > { %v477_v44 = vmul.f32 0.1, %v445_v54  ;;  %v935_v46 = vrot.slane %v933_v30, 7  ;;  %v478_v47 = vmul.f32 0.1, %v446_v32  ;;  %v572_v50 = vsel %vm6252_vm5, 0, %v571_v22 }
  0x9f   : > { %7784 = vst [vmem:[#allocation14_spill] sm:$0xff] %v6700_v34  ;;  %v6703_v45 = vld [vmem:[#allocation2 + $0x84] sm:$0xf]  ;;  %5514 = vmatmul.mubr.msk.bf16.gmra.mrb[16].mxu0 %vm1668_vm10, %v6700_v34  ;;  %5381 = vmatprep.mubr.msk.bf16.mxu1 %vm1668_vm10, %v6700_v34  ;;  %v930_v17 = vor.u32 %v928_v41, %v927_v39  ;;  %v931_v55 = vrot.slane %v927_v39, 4  ;;  %573 = vst [vmem:[#allocation2 + $0xa8] sm:$0x1] %v572_v50  ;;  %v447_v12 = vadd.f32 %v6615_v52, %v408_v33 }
  0xa0   : > { %v1499_v53 = vshrl.u32 %v6703_v45, 16  ;;  %v1502_v37 = vshll.u32 %v6703_v45, 16  ;;  %v938_v56 = vor.u32 %v936_v31, %v935_v46  ;;  %v940_v57 = vrot.slane %v935_v46, 4  ;;  %v627_v58 = vld [vmem:[#allocation2 + $0xb0] sm:$0x1] }
  0xa1   : > { %v509_v60 = vmax.f32 %v445_v54, %v477_v44  ;;  %v510_v61 = vmax.f32 %v446_v32, %v478_v47  ;;  %v1138_v26 = vsel %vm6349_vm12, %v930_v17, %v1137_v42  ;;  %v448_v20 = vadd.f32 %v6615_v52, %v409_v49  ;;  %v371_v32 = vld [vmem:[%s6281_s12 + $0xe0] sm:$0xff] }
  0xa2   : > { %v6714_v63 = vld [vmem:[#allocation2 + $0x88] sm:$0xf]  ;;  %v6716_v1 = vld [vmem:[#allocation2 + $0x8c] sm:$0x1]  ;;  %v1501_v8 = vrot.slane %v1499_v53, 4  ;;  %v1504_v9 = vrot.slane %v1502_v37, 5  ;;  %v939_v0 = vsel %vm6360_vm13, %v931_v55, %v938_v56  ;;  %v1142_v10 = vsel %vm6252_vm5, %v940_v57, %v1141_v59 }
  0xa3   : > { %v1508_v14 = vshll.u32 %v6714_v63, 16  ;;  %v1512_v15 = vshrl.u32 %v6714_v63, 16  ;;  %v1518_v2 = vshll.u32 %v6716_v1, 16  ;;  %1139 = vst [vmem:[#allocation2 + $0x90] sm:$0xf] %v1138_v26  ;;  %v5117_v54 = vpack.c.bf16 %v509_v60, %v509_v60 }
  0xa4   : > { %v1505_v38 = vor.u32 %v1504_v9, %v1501_v8  ;;  %1140 = vst.msk [vmem:[#allocation2 + $0x94] sm:$0xf] %vm517_vm1, %v939_v0  ;;  %v5118_v16 = vpack.c.bf16 %v510_v61, %v510_v61  ;;  %1143 = vst [vmem:[#allocation2 + $0x98] sm:$0x1] %v1142_v10  ;;  %v479_v44 = vmul.f32 0.1, %v447_v12  ;;  %v410_v55 = vmul.f32 %v6599_v43, %v371_v32 }
  0xa5   : > { %v1510_v19 = vrot.slane %v1508_v14, 5  ;;  %v1514_v3 = vrot.slane %v1512_v15, 4  ;;  %v1520_v41 = vrot.slane %v1518_v2, 5  ;;  %v942_v24 = vshrl.u32 %v5117_v54, 16  ;;  %v1144_v8 = vld [vmem:[#allocation2 + $0x9c] sm:$0xf] }
  0xa6   : > { %v1506_v22 = vrot.slane %v1505_v38, 4  ;;  %v945_v30 = vshll.u32 %v5117_v54, 16  ;;  %v950_v31 = vshrl.u32 %v5118_v16, 16  ;;  %v953_v42 = vshll.u32 %v5118_v16, 16  ;;  %v1148_v15 = vld [vmem:[#allocation2 + $0xa4] sm:$0x1] }
  0xa7   : > { %v1515_v39 = vor.u32 %v1514_v3, %v1510_v19  ;;  %v480_v33 = vmul.f32 0.1, %v448_v20  ;;  %v944_v47 = vrot.slane %v942_v24, 7  ;;  %v628_v53 = vsel %vm6261_vm6, 0, %v627_v58  ;;  %v372_v58 = vld [vmem:[%s6281_s12 + $0xe8] sm:$0xff] }
  0xa8   : > { %v1511_v46 = vsel %vm6338_vm11, %v1506_v22, %v1510_v19  ;;  %v952_v50 = vrot.slane %v950_v31, 7  ;;  %v511_v49 = vmax.f32 %v447_v12, %v479_v44  ;;  %629 = vst [vmem:[#allocation2 + $0xb0] sm:$0x1] %v628_v53  ;;  %v574_v32 = vld [vmem:[#allocation2 + $0xb4] sm:$0x1]  ;;  %v2219_v27 = vrot.slane %v6036_v7, 5 }
  0xa9   : > { %v1516_v37 = vrot.slane %v1515_v39, 4  ;;  %v512_v17 = vmax.f32 %v448_v20, %v480_v33  ;;  %v947_v57 = vor.u32 %v945_v30, %v944_v47  ;;  %v948_v59 = vrot.slane %v944_v47, 4 }
  0xaa   : > { %v6736_v56 = vld [vmem:[#allocation2 + $0x90] sm:$0xf]  ;;  %v955_v60 = vor.u32 %v953_v42, %v952_v50  ;;  %v957_v61 = vrot.slane %v952_v50, 4  ;;  %v5119_v2 = vpack.c.bf16 %v511_v49, %v511_v49  ;;  %vm3961_vm3 = vcmask 57344  }
  0xab   : > { %v1521_v9 = vsel %vm6338_vm11, %v1516_v37, %v1520_v41  ;;  %v6740_v26 = vld [vmem:[#allocation2 + $0x94] sm:$0xf]  ;;  %v1523_v14 = vshrl.u32 %v6736_v56, 16  ;;  %v1526_v12 = vshll.u32 %v6736_v56, 16  ;;  %v6746_v38 = vld [vmem:[#allocation2 + $0x98] sm:$0x1]  ;;  %v1145_v20 = vsel %vm6349_vm12, %v947_v57, %v1144_v8 }
  0xac   : > { %v6744_v0 = vcombine.low %v1511_v46, %v1521_v9  ;;  %v1532_v10 = vshll.u32 %v6740_v26, 16  ;;  %v1536_v54 = vshrl.u32 %v6740_v26, 16  ;;  %v956_v16 = vsel %vm6360_vm13, %v948_v59, %v955_v60  ;;  %1146 = vst [vmem:[#allocation2 + $0x9c] sm:$0xf] %v1145_v20  ;;  %v630_v46 = vld [vmem:[#allocation2 + $0xbc] sm:$0x1] }
  0xad   : > { %v1525_v19 = vrot.slane %v1523_v14, 4  ;;  %v1528_v3 = vrot.slane %v1526_v12, 5  ;;  %v1542_v41 = vshll.u32 %v6746_v38, 16  ;;  %1147 = vst.msk [vmem:[#allocation2 + $0xa0] sm:$0xf] %vm517_vm1, %v956_v16  ;;  %v1149_v30 = vsel %vm6252_vm5, %v957_v61, %v1148_v15 }
  0xae   : > { %7785 = vst [vmem:[#allocation15_spill] sm:$0xff] %v6744_v0  ;;  %5382 = vmatmul.mubr.msk.bf16.gmra.mrb[20].mxu1 %vm1668_vm10, %v6744_v0  ;;  %5517 = vmatprep.mubr.msk.bf16.mxu0 %vm1668_vm10, %v6744_v0  ;;  %v1534_v22 = vrot.slane %v1532_v10, 5  ;;  %v1538_v24 = vrot.slane %v1536_v54, 4  ;;  %v5120_v31 = vpack.c.bf16 %v512_v17, %v512_v17  ;;  %1150 = vst [vmem:[#allocation2 + $0xa4] sm:$0x1] %v1149_v30  ;;  %v959_v44 = vshrl.u32 %v5119_v2, 16 }
  0xaf   : > { %v1529_v39 = vor.u32 %v1528_v3, %v1525_v19  ;;  %v1544_v42 = vrot.slane %v1542_v41, 5  ;;  %v962_v33 = vshll.u32 %v5119_v2, 16  ;;  %v411_v37 = vmul.f32 %v6599_v43, %v372_v58  ;;  %v1151_v8 = vld [vmem:[#allocation2 + $0xa8] sm:$0xf]  ;;  %v1155_v10 = vld [vmem:[#allocation2 + $0xb0] sm:$0x1] }
  0xb0   : > { %v1539_v47 = vor.u32 %v1538_v24, %v1534_v22  ;;  %v967_v50 = vshrl.u32 %v5120_v31, 16  ;;  %v970_v53 = vshll.u32 %v5120_v31, 16  ;;  %v961_v57 = vrot.slane %v959_v44, 7  ;;  %v373_v31 = vld [vmem:[%s6281_s12 + $0xf0] sm:$0xff] }
  0xb1   : > { %v1530_v49 = vrot.slane %v1529_v39, 4  ;;  %v449_v59 = vadd.f32 %v6615_v52, %v410_v55  ;;  %v575_v60 = vsel %vm6252_vm5, 0, %v574_v32  ;;  %v450_v9 = vadd.f32 %v6615_v52, %v411_v37 }
  0xb2   : > { %v1540_v17 = vrot.slane %v1539_v47, 4  ;;  %v969_v61 = vrot.slane %v967_v50, 7  ;;  %576 = vst [vmem:[#allocation2 + $0xb4] sm:$0x1] %v575_v60  ;;  %v631_v14 = vsel %vm6261_vm6, 0, %v630_v46  ;;  %v964_v15 = vor.u32 %v962_v33, %v961_v57  ;;  %v374_v46 = vld [vmem:[%s6281_s12 + $0xf8] sm:$0xff] }
  0xb3   : > { %v1535_v12 = vsel %vm6338_vm11, %v1530_v49, %v1534_v22  ;;  %v965_v2 = vrot.slane %v961_v57, 4  ;;  %v481_v55 = vmul.f32 0.1, %v449_v59  ;;  %632 = vst [vmem:[#allocation2 + $0xbc] sm:$0x1] %v631_v14  ;;  %s4570_s12 = scalar_lea.sflag [#allocation4], %s310_s20 }
  0xb4   : > { %v1545_v54 = vsel %vm6338_vm11, %v1540_v17, %v1544_v42  ;;  %v6774_v16 = vld [vmem:[#allocation2 + $0xa0] sm:$0xf]  ;;  %v972_v19 = vor.u32 %v970_v53, %v969_v61  ;;  %v974_v3 = vrot.slane %v969_v61, 4  ;;  %v482_v41 = vmul.f32 0.1, %v450_v9 }
  0xb5   : > { %v6776_v20 = vcombine.low %v1535_v12, %v1545_v54  ;;  %v6778_v58 = vld [vmem:[#allocation2 + $0x9c] sm:$0xf]  ;;  %v1556_v22 = vshll.u32 %v6774_v16, 16  ;;  %v1560_v24 = vshrl.u32 %v6774_v16, 16  ;;  %v1152_v30 = vsel %vm6349_vm12, %v964_v15, %v1151_v8  ;;  %v6785_v32 = vld [vmem:[#allocation2 + $0xa4] sm:$0x1] }
  0xb6   : > { %v1547_v39 = vshrl.u32 %v6778_v58, 16  ;;  %v1550_v42 = vshll.u32 %v6778_v58, 16  ;;  %v973_v44 = vsel %vm6360_vm13, %v965_v2, %v972_v19  ;;  %1153 = vst [vmem:[#allocation2 + $0xa8] sm:$0xf] %v1152_v30  ;;  %v1156_v33 = vsel %vm6252_vm5, %v974_v3, %v1155_v10  ;;  %v577_v49 = vld [vmem:[#allocation2 + $0xc0] sm:$0x1] }
  0xb7   : > { %7786 = vst [vmem:[#allocation16_spill] sm:$0xff] %v6776_v20  ;;  %5518 = vmatmul.mubr.msk.bf16.gmra.mrb[20].mxu0 %vm1668_vm10, %v6776_v20  ;;  %5385 = vmatprep.mubr.msk.bf16.mxu1 %vm1668_vm10, %v6776_v20  ;;  %v1558_v47 = vrot.slane %v1556_v22, 5  ;;  %v1562_v50 = vrot.slane %v1560_v24, 4  ;;  %v1566_v53 = vshll.u32 %v6785_v32, 16  ;;  %1154 = vst.msk [vmem:[#allocation2 + $0xac] sm:$0xf] %vm517_vm1, %v973_v44  ;;  %v513_v37 = vmax.f32 %v449_v59, %v481_v55 }
  0xb8   : > { %1157 = vst [vmem:[#allocation2 + $0xb0] sm:$0x1] %v1156_v33  ;;  %v1549_v57 = vrot.slane %v1547_v39, 4  ;;  %v1552_v60 = vrot.slane %v1550_v42, 5  ;;  %v514_v17 = vmax.f32 %v450_v9, %v482_v41  ;;  %v412_v61 = vmul.f32 %v6599_v43, %v373_v31  ;;  %v633_v3 = vld [vmem:[#allocation2 + $0xc8] sm:$0x1] }
  0xb9   : > { %v1563_v8 = vor.u32 %v1562_v50, %v1558_v47  ;;  %v1568_v14 = vrot.slane %v1566_v53, 5  ;;  %v5121_v12 = vpack.c.bf16 %v513_v37, %v513_v37  ;;  %v413_v15 = vmul.f32 %v6599_v43, %v374_v46  ;;  %v6034_v20 = vld [vmem:[#allocation2 + $0x18] sm:$0xf] }
  0xba   : > { %v1553_v2 = vor.u32 %v1552_v60, %v1549_v57  ;;  %v5122_v10 = vpack.c.bf16 %v514_v17, %v514_v17  ;;  %v451_v54 = vadd.f32 %v6615_v52, %v412_v61  ;;  %v578_v19 = vsel %vm6252_vm5, 0, %v577_v49 }
  0xbb   : > { %v1564_v59 = vrot.slane %v1563_v8, 4  ;;  %v976_v55 = vshrl.u32 %v5121_v12, 16  ;;  %v979_v22 = vshll.u32 %v5121_v12, 16  ;;  %v452_v9 = vadd.f32 %v6615_v52, %v413_v15  ;;  %579 = vst [vmem:[#allocation2 + $0xc0] sm:$0x1] %v578_v19 }
  0xbc   : > { %v1554_v41 = vrot.slane %v1553_v2, 4  ;;  %v984_v24 = vshrl.u32 %v5122_v10, 16  ;;  %v987_v30 = vshll.u32 %v5122_v10, 16  ;;  %v483_v31 = vmul.f32 0.1, %v451_v54 }
  0xbd   : > { %v1569_v43 = vsel %vm6338_vm11, %v1564_v59, %v1568_v14  ;;  %v6808_v39 = vld [vmem:[#allocation2 + $0xa8] sm:$0xf]  ;;  %v978_v42 = vrot.slane %v976_v55, 7  ;;  %v484_v44 = vmul.f32 0.1, %v452_v9  ;;  %v634_v33 = vsel %vm6261_vm6, 0, %v633_v3 }
  0xbe   : > { %v1559_v46 = vsel %vm6338_vm11, %v1554_v41, %v1558_v47  ;;  %v6814_v50 = vld [vmem:[#allocation2 + $0xac] sm:$0xf]  ;;  %v1571_v53 = vshrl.u32 %v6808_v39, 16  ;;  %v1574_v37 = vshll.u32 %v6808_v39, 16  ;;  %v515_v49 = vmax.f32 %v451_v54, %v483_v31  ;;  %635 = vst [vmem:[#allocation2 + $0xc8] sm:$0x1] %v634_v33 }
  0xbf   : > { %v6816_v52 = vld [vmem:[#allocation2 + $0xb0] sm:$0x1]  ;;  %v6820_v57 = vcombine.low %v1559_v46, %v1569_v43  ;;  %v1580_v60 = vshll.u32 %v6814_v50, 16  ;;  %v1584_v17 = vshrl.u32 %v6814_v50, 16  ;;  %v1158_v8 = vld [vmem:[#allocation2 + $0xb4] sm:$0xf]  ;;  %v981_v12 = vor.u32 %v979_v22, %v978_v42 }
  0xc0   : > { %v1590_v61 = vshll.u32 %v6816_v52, 16  ;;  %v1573_v47 = vrot.slane %v1571_v53, 4  ;;  %v1576_v14 = vrot.slane %v1574_v37, 5  ;;  %v982_v10 = vrot.slane %v978_v42, 4  ;;  %v1162_v59 = vld [vmem:[#allocation2 + $0xbc] sm:$0x1] }
  0xc1   : > { %7787 = vst [vmem:[#allocation17_spill] sm:$0xff] %v6820_v57  ;;  %5386 = vmatmul.mubr.msk.bf16.gmra.mrb[24].mxu1 %vm1668_vm10, %v6820_v57  ;;  %5521 = vmatprep.mubr.msk.bf16.mxu0 %vm1668_vm10, %v6820_v57  ;;  %v1582_v15 = vrot.slane %v1580_v60, 5  ;;  %v1586_v2 = vrot.slane %v1584_v17, 4  ;;  %v986_v54 = vrot.slane %v984_v24, 7  ;;  %v1159_v3 = vsel %vm6349_vm12, %v981_v12, %v1158_v8  ;;  %v6033_v57 = vld [vmem:[#allocation2 + $0x34] sm:$0xf] }
  0xc2   : > { %v1577_v19 = vor.u32 %v1576_v14, %v1573_v47  ;;  %v516_v55 = vmax.f32 %v452_v9, %v484_v44  ;;  %v5123_v41 = vpack.c.bf16 %v515_v49, %v515_v49  ;;  %v1592_v43 = vrot.slane %v1590_v61, 5  ;;  %1160 = vst [vmem:[#allocation2 + $0xb4] sm:$0xf] %v1159_v3  ;;  %v1165_v61 = vld [vmem:[#allocation2 + $0xc0] sm:$0xf] }
  0xc3   : > { %v1587_v31 = vor.u32 %v1586_v2, %v1582_v15  ;;  %v989_v22 = vor.u32 %v987_v30, %v986_v54  ;;  %v991_v33 = vrot.slane %v986_v54, 4  ;;  %v4849_v0 = vrot.slane %v6034_v20, 9 }
  0xc4   : > { %v1578_v46 = vrot.slane %v1577_v19, 4  ;;  %v5124_v53 = vpack.c.bf16 %v516_v55, %v516_v55  ;;  %v993_v37 = vshrl.u32 %v5123_v41, 16  ;;  %v996_v23 = vshll.u32 %v5123_v41, 16 }
  0xc5   : > { %v1588_v60 = vrot.slane %v1587_v31, 4  ;;  %v990_v24 = vsel %vm6360_vm13, %v982_v10, %v989_v22  ;;  %v1163_v42 = vsel %vm6252_vm5, %v991_v33, %v1162_v59  ;;  %v1169_v2 = vld [vmem:[#allocation2 + $0xc8] sm:$0x1]  ;;  %v2296_v40 = vrot.slane %v6816_v52, 5 }
  0xc6   : > { %v1583_v9 = vsel %vm6338_vm11, %v1578_v46, %v1582_v15  ;;  %1161 = vst.msk [vmem:[#allocation2 + $0xb8] sm:$0xf] %vm517_vm1, %v990_v24  ;;  %1164 = vst [vmem:[#allocation2 + $0xbc] sm:$0x1] %v1163_v42  ;;  %v995_v30 = vrot.slane %v993_v37, 7  ;;  %v1001_v44 = vshrl.u32 %v5124_v53, 16 }
  0xc7   : > { %v1004_v49 = vshll.u32 %v5124_v53, 16  ;;  %v1593_v17 = vsel %vm6338_vm11, %v1588_v60, %v1592_v43  ;;  %v6025_v60 = vld [vmem:[#allocation2 + $0x10] sm:$0xf] }
  0xc8   : > { %v6840_v8 = vcombine.low %v1583_v9, %v1593_v17  ;;  %v998_v47 = vor.u32 %v996_v23, %v995_v30  ;;  %v999_v14 = vrot.slane %v995_v30, 4  ;;  %v1003_v12 = vrot.slane %v1001_v44, 7 }
  0xc9   : > { %v6846_v15 = vld [vmem:[#allocation2 + $0xb4] sm:$0xf]  ;;  %v2202_v24 = vrot.slane %v6025_v60, 5 }
  0xca   : > { %7788 = vst [vmem:[#allocation18_spill] sm:$0xff] %v6840_v8  ;;  %5522 = vmatmul.mubr.msk.bf16.gmra.mrb[24].mxu0 %vm1668_vm10, %v6840_v8  ;;  %5389 = vmatprep.mubr.msk.bf16.mxu1 %vm1668_vm10, %v6840_v8  ;;  %v1006_v10 = vor.u32 %v1004_v49, %v1003_v12  ;;  %v1008_v54 = vrot.slane %v1003_v12, 4  ;;  %v1166_v19 = vsel %vm6349_vm12, %v998_v47, %v1165_v61  ;;  %v1595_v3 = vshrl.u32 %v6846_v15, 16  ;;  %v6026_v61 = vld [vmem:[#allocation2 + $0xc] sm:$0xf] }
  0xcb   : > { %v1598_v23 = vshll.u32 %v6846_v15, 16  ;;  %1167 = vst [vmem:[#allocation2 + $0xc0] sm:$0xf] %v1166_v19  ;;  %v4848_v47 = vrot.slane %v6026_v61, 9 }
  0xcc   : > { %v1007_v59 = vsel %vm6360_vm13, %v999_v14, %v1006_v10  ;;  %v1170_v55 = vsel %vm6252_vm5, %v1008_v54, %v1169_v2  ;;  %v1597_v43 = vrot.slane %v1595_v3, 4  ;;  %v6027_v14 = vld [vmem:[#allocation2 + $0x14] sm:$0x1]  ;;  %v2204_v3 = vrot.slane %v2202_v24, 4 }
  0xcd   : > { %v6856_v41 = vld [vmem:[#allocation2 + $0xb8] sm:$0xf]  ;;  %v6858_v31 = vld [vmem:[#allocation2 + $0xbc] sm:$0x1]  ;;  %v1600_v22 = vrot.slane %v1598_v23, 5  ;;  %v2205_v12 = vrot.slane %v6027_v14, 5 }
  0xce   : > { %1168 = vst.msk [vmem:[#allocation2 + $0xc4] sm:$0xf] %vm517_vm1, %v1007_v59  ;;  %1171 = vst [vmem:[#allocation2 + $0xc8] sm:$0x1] %v1170_v55  ;;  %v1604_v28 = vshll.u32 %v6856_v41, 16  ;;  %v1608_v33 = vshrl.u32 %v6856_v41, 16 }
  0xcf   : > { %v1614_v46 = vshll.u32 %v6858_v31, 16  ;;  %v1601_v35 = vor.u32 %v1600_v22, %v1597_v43  ;;  %vm6878_vm1 = vmor %vm2190_vm14, %vm2191_vm15  ;;  %v2300_v52 = vrot.slane %v6856_v41, 5 }
  0xd0   : > { %v1606_v53 = vrot.slane %v1604_v28, 5  ;;  %v1610_v37 = vrot.slane %v1608_v33, 4  ;;  %v2203_v8 = vsel %vm6878_vm1, %v4848_v47, %v2202_v24  ;;  %v2223_v24 = vrot.slane %v6033_v57, 5 }
  0xd1   : > { %v1602_v42 = vrot.slane %v1601_v35, 4  ;;  %v1616_v30 = vrot.slane %v1614_v46, 5  ;;  %v6885_v46 = vld [vmem:[#allocation2 + $0x4] sm:$0xf]  ;;  %v6887_v35 = vld [vmem:[#allocation2] sm:$0xf] }
  0xd2   : > { %v1611_v9 = vor.u32 %v1610_v37, %v1606_v53  ;;  %v6864_v44 = vld [vmem:[#allocation2 + $0xc0] sm:$0xf] }
  0xd3   : > { %v2806_v49 = vshrl.u32 %v6864_v44, 16  ;;  %v2809_v17 = vshll.u32 %v6864_v44, 16  ;;  %v1607_v2 = vsel %vm6338_vm11, %v1602_v42, %v1606_v53  ;;  %v4815_v53 = vcombine.low %v6887_v35, %v6885_v46 }
  0xd4   : > { %v1612_v10 = vrot.slane %v1611_v9, 4 }
  0xd5   : > { %v6870_v54 = vld [vmem:[#allocation2 + $0xc4] sm:$0xf]  ;;  %v6872_v19 = vld [vmem:[#allocation2 + $0xc8] sm:$0x1]  ;;  %v2808_v23 = vrot.slane %v2806_v49, 4  ;;  %v2811_v59 = vrot.slane %v2809_v17, 5 }
  0xd6   : > { %v2815_v55 = vshll.u32 %v6870_v54, 16  ;;  %v2819_v43 = vshrl.u32 %v6870_v54, 16  ;;  %v1617_v28 = vsel %vm6338_vm11, %v1612_v10, %v1616_v30  ;;  %v2825_v33 = vshll.u32 %v6872_v19, 16  ;;  %v6030_v17 = vld [vmem:[#allocation2 + $0x1c] sm:$0xf] }
  0xd7   : > { %v6891_v37 = vcombine.low %v1607_v2, %v1617_v28  ;;  %v2812_v42 = vor.u32 %v2811_v59, %v2808_v23  ;;  %v2209_v14 = vrot.slane %v6030_v17, 5  ;;  %v2206_v30 = vsel %vm6878_vm1, %v2204_v3, %v2205_v12  ;;  %v6031_v23 = vld [vmem:[#allocation2 + $0x28] sm:$0xf] }
  0xd8   : > { %v2817_v9 = vrot.slane %v2815_v55, 5  ;;  %v2821_v49 = vrot.slane %v2819_v43, 4  ;;  %v2827_v28 = vrot.slane %v2825_v33, 5  ;;  %v2216_v59 = vrot.slane %v6031_v23, 5  ;;  %v6032_v55 = vld [vmem:[#allocation2 + $0x20] sm:$0x1] }
  0xd9   : > { %7791 = vst [vmem:[#allocation19_spill] sm:$0xff] %v6891_v37  ;;  %5390 = vmatmul.mubr.msk.bf16.gmra.mrb[28].mxu1 %vm1668_vm10, %v6891_v37  ;;  %5525 = vmatprep.mubr.msk.bf16.mxu0 %vm1668_vm10, %v6891_v37  ;;  %v2813_v10 = vrot.slane %v2812_v42, 4  ;;  %v2212_v43 = vrot.slane %v6032_v55, 5  ;;  %v6904_v3 = vcombine.low %v6026_v61, %v6025_v60  ;;  %v6906_v37 = vcombine.low %v2203_v8, %v2206_v30  ;;  %v6038_v60 = vld [vmem:[#allocation2 + $0x30] sm:$0xf] }
  0xda   : > { %v2822_v2 = vor.u32 %v2821_v49, %v2817_v9  ;;  %5395 = vmatprep.mubr.msk.bf16.mxu1 %vm1668_vm10, %v4815_v53  ;;  %v2211_v42 = vrot.slane %v2209_v14, 4  ;;  %v6908_v33 = vcombine.low %v6034_v20, %v6030_v17  ;;  %v6035_v49 = vld [vmem:[#allocation2 + $0x24] sm:$0xf]  ;;  %v2218_v55 = vrot.slane %v2216_v59, 4  ;;  %v6039_v8 = vld [vmem:[#allocation2 + $0x38] sm:$0x1] }
  0xdb   : > { %v2818_v47 = vsel %vm6338_vm11, %v2813_v10, %v2817_v9  ;;  %v4850_v34 = vrot.slane %v6035_v49, 9  ;;  %v2230_v9 = vrot.slane %v6037_v11, 5  ;;  %v4851_v61 = vrot.slane %v6038_v60, 9 }
  0xdc   : > { %v2823_v12 = vrot.slane %v2822_v2, 4  ;;  %v2225_v2 = vrot.slane %v2223_v24, 4  ;;  %v2226_v30 = vrot.slane %v6039_v8, 5  ;;  %v2404_v20 = vsel %vm1717_vm0, %v6576_v4, 0 }
  0xdd   : > { %v2210_v17 = vsel %vm6878_vm1, %v4849_v0, %v2209_v14  ;;  %v2213_v7 = vsel %vm6878_vm1, %v2211_v42, %v2212_v43  ;;  %v2220_v4 = vsel %vm6878_vm1, %v2218_v55, %v2219_v27  ;;  %v6040_v0 = vld [vmem:[#allocation2 + $0x3c] sm:$0xf]  ;;  %v2232_v43 = vrot.slane %v2230_v9, 4  ;;  %v6042_v27 = vld [vmem:[%s7728_s1 + $0xc] sm:$0x3] }
  0xde   : > { %v2828_v53 = vsel %vm6338_vm11, %v2823_v12, %v2827_v28  ;;  %v2217_v28 = vsel %vm6878_vm1, %v4850_v34, %v2216_v59  ;;  %v4852_v14 = vrot.slane %v6040_v0, 9  ;;  %v6041_v12 = vld [vmem:[#allocation2 + $0x44] sm:$0x1]  ;;  %v2224_v34 = vsel %vm6878_vm1, %v4851_v61, %v2223_v24  ;;  %v6043_v61 = vld [vmem:[#allocation2 + $0x4c] sm:$0xf] }
  0xdf   : > { %v6912_v10 = vcombine.low %v2818_v47, %v2828_v53  ;;  %v6927_v47 = vld [vmem:[%s7728_s1 + $0x6] sm:$0x3]  ;;  %v2233_v42 = vrot.slane %v6041_v12, 5  ;;  %v2227_v59 = vsel %vm6878_vm1, %v2225_v2, %v2226_v30  ;;  %v6941_v53 = vcombine.low %v2210_v17, %v2213_v7 }
  0xe0   : > { %v3256_v55 = vsel %vm1717_vm0, %v6042_v27, 0  ;;  %v6949_v8 = vcombine.low %v6035_v49, %v6031_v23  ;;  %v6951_v12 = vcombine.low %v2217_v28, %v2220_v4  ;;  %v6953_v24 = vcombine.low %v6038_v60, %v6033_v57  ;;  %v6044_v27 = vld [vmem:[#allocation2 + $0x48] sm:$0xf]  ;;  %v6045_v23 = vld [vmem:[#allocation2 + $0x50] sm:$0x1] }
  0xe1   : > { %7792 = vst [vmem:[#allocation20_spill] sm:$0xff] %v6912_v10  ;;  %5526 = vmatmul.mubr.msk.bf16.gmra.mrb[28].mxu0 %vm1668_vm10, %v6912_v10  ;;  %5396 = vmatmul.mubr.msk.bf16.vlgmr.msra.gmra.mrb[0].mxu1 %vm1668_vm10, %v6904_v3  ;;  %v2237_v2 = vrot.slane %v6043_v61, 5  ;;  %v6955_v30 = vcombine.low %v2224_v34, %v2227_v59  ;;  %v2231_v17 = vsel %vm6878_vm1, %v4852_v14, %v2230_v9  ;;  %v4853_v18 = vrot.slane %v6044_v27, 9  ;;  %v6966_v60 = vld [vmem:[#allocation2 + $0x58] sm:$0xf] }
  0xe2   : > { %5531 = vmatprep.mubr.msk.bf16.mxu0 %vm1668_vm10, %v6906_v37  ;;  %5399 = vmatprep.mubr.msk.bf16.mxu1 %vm1668_vm10, %v6908_v33  ;;  %v2234_v7 = vsel %vm6878_vm1, %v2232_v43, %v2233_v42  ;;  %v2240_v49 = vrot.slane %v6045_v23, 5  ;;  %v6963_v28 = vcombine.low %v6044_v27, %v6043_v61  ;;  %v4859_v57 = vrot.slane %v6736_v56, 9  ;;  %v6047_v42 = vld [vmem:[#allocation2 + $0x54] sm:$0xf] }
  0xe3   : > { %5428 = vmatpush3.bf16.msra.mxu1 %v2404_v20  ;;  %v6957_v20 = vcombine.low %v6040_v0, %v6037_v11  ;;  %v2244_v4 = vrot.slane %v6966_v60, 5  ;;  %v2279_v11 = vrot.slane %v6740_v26, 5  ;;  %v2282_v0 = vrot.slane %v6746_v38, 5  ;;  %v6986_v38 = vld [vmem:[%s7728_s1 + $0xe] sm:$0x3] }
  0xe4   : > { %5958 = vmatprep.subr.msk.bf16.mxu1 %vm1717_vm0, %v6927_v47  ;;  %v6973_v9 = vcombine.low %v6736_v56, %v6740_v26  ;;  %v6977_v14 = vcombine.low %v2231_v17, %v2234_v7  ;;  %v2239_v43 = vrot.slane %v2237_v2, 4  ;;  %v4854_v34 = vrot.slane %v6047_v42, 9  ;;  %v6048_v7 = vld [vmem:[#allocation2 + $0x5c] sm:$0x1] }
  0xe5   : > { %v6981_v59 = vcombine.low %v6778_v58, %v6774_v16  ;;  %v2280_v56 = vsel %vm6878_vm1, %v4859_v57, %v2279_v11  ;;  %v2281_v26 = vrot.slane %v2279_v11, 4  ;;  %v4860_v61 = vrot.slane %v6778_v58, 9 }
  0xe6   : > { %v2286_v17 = vrot.slane %v6774_v16, 5  ;;  %v2247_v27 = vrot.slane %v6048_v7, 5  ;;  %v4861_v23 = vrot.slane %v6808_v39, 9  ;;  %v2293_v10 = vrot.slane %v6814_v50, 5 }
  0xe7   : > { %v2246_v57 = vrot.slane %v2244_v4, 4  ;;  %v2283_v58 = vsel %vm6878_vm1, %v2281_v26, %v2282_v0  ;;  %v7016_v0 = vcombine.low %v6808_v39, %v6814_v50  ;;  %v7020_v26 = vcombine.low %v6846_v15, %v6856_v41 }
  0xe8   : > { %v2287_v16 = vsel %vm6878_vm1, %v4860_v61, %v2286_v17  ;;  %v2288_v11 = vrot.slane %v2286_v17, 4  ;;  %v7007_v21 = vcombine.low %v2280_v56, %v2283_v58  ;;  %v2295_v7 = vrot.slane %v2293_v10, 4  ;;  %v6049_v58 = vld [vmem:[#allocation2 + $0x64] sm:$0xf] }
  0xe9   : > { %5532 = vmatmul.mubr.msk.bf16.vlgmr.msra.gmra.mrb[0].mxu0 %vm1668_vm10, %v6941_v53  ;;  %5400 = vmatmul.mubr.msk.bf16.gmra.mrb[4].mxu1 %vm1668_vm10, %v6949_v8  ;;  %v4862_v56 = vrot.slane %v6846_v15, 9  ;;  %v2303_v17 = vrot.slane %v6858_v31, 5  ;;  %v4932_v39 = vrot.slane %v6864_v44, 9  ;;  %v3036_v50 = vrot.slane %v6870_v54, 5  ;;  %v580_v31 = vld [vmem:[#allocation2 + $0xcc] sm:$0x1] }
  0xea   : > { %5564 = vmatpush3.bf16.msra.mxu0 %v3256_v55  ;;  %5535 = vmatprep.mubr.msk.bf16.mxu0 %vm1668_vm10, %v6951_v12  ;;  %v2289_v55 = vrot.slane %v6785_v32, 5  ;;  %v2294_v32 = vsel %vm6878_vm1, %v4861_v23, %v2293_v10  ;;  %v2297_v10 = vsel %vm6878_vm1, %v2295_v7, %v2296_v40  ;;  %v3039_v23 = vrot.slane %v6872_v19, 5 }
  0xeb   : > { %5403 = vmatprep.mubr.msk.bf16.mxu1 %vm1668_vm10, %v6953_v24  ;;  %5962 = vmatprep.subr.msk.bf16.mxu0 %vm1717_vm0, %v6986_v38  ;;  %v2241_v40 = vsel %vm6878_vm1, %v2239_v43, %v2240_v49  ;;  %v2301_v15 = vsel %vm6878_vm1, %v4862_v56, %v2300_v52  ;;  %v2302_v41 = vrot.slane %v2300_v52, 4  ;;  %v2245_v19 = vsel %vm6878_vm1, %v4854_v34, %v2244_v4  ;;  %v6051_v52 = vld [vmem:[#allocation2 + $0x68] sm:$0x1] }
  0xec   : > { %v2290_v51 = vsel %vm6878_vm1, %v2288_v11, %v2289_v55  ;;  %v7029_v55 = vcombine.low %v2294_v32, %v2297_v10  ;;  %v2248_v49 = vsel %vm6878_vm1, %v2246_v57, %v2247_v27  ;;  %v2258_v43 = vrot.slane %v6627_v29, 5 }
  0xed   : > { %v7023_v61 = vcombine.low %v2287_v16, %v2290_v51  ;;  %v2238_v51 = vsel %vm6878_vm1, %v4853_v18, %v2237_v2  ;;  %v2251_v16 = vrot.slane %v6049_v58, 5  ;;  %v3037_v18 = vsel %vm6878_vm1, %v4932_v39, %v3036_v50 }
  0xee   : > { %v3038_v2 = vrot.slane %v3036_v50, 4  ;;  %v2304_v11 = vsel %vm6878_vm1, %v2302_v41, %v2303_v17  ;;  %v7059_v4 = vcombine.low %v6864_v44, %v6870_v54  ;;  %v581_v7 = vsel %vm6252_vm5, 0, %v580_v31  ;;  %v6050_v44 = vld [vmem:[#allocation2 + $0x60] sm:$0xf]  ;;  %v6052_v50 = vld [vmem:[#allocation2 + $0x6c] sm:$0xf] }
  0xef   : > { %v7061_v34 = vcombine.low %v2301_v15, %v2304_v11  ;;  %v7067_v56 = vcombine.low %v2238_v51, %v2241_v40  ;;  %v7070_v27 = vcombine.low %v6047_v42, %v6966_v60  ;;  %582 = vst [vmem:[#allocation2 + $0xcc] sm:$0x1] %v581_v7  ;;  %v7074_v57 = vcombine.low %v2245_v19, %v2248_v49  ;;  %v6053_v51 = vld [vmem:[#allocation2 + $0x74] sm:$0x1] }
  0xf0   : > { %v3040_v32 = vsel %vm6878_vm1, %v3038_v2, %v3039_v23  ;;  %v4855_v54 = vrot.slane %v6050_v44, 9  ;;  %v2253_v10 = vrot.slane %v2251_v16, 4  ;;  %v2254_v17 = vrot.slane %v6051_v52, 5 }
  0xf1   : > { %5536 = vmatmul.mubr.msk.bf16.gmra.mrb[4].mxu0 %vm1668_vm10, %v6955_v30  ;;  %5404 = vmatmul.mubr.msk.bf16.gmra.mrb[8].mxu1 %vm1668_vm10, %v6957_v20  ;;  %v7072_v29 = vcombine.low %v3037_v18, %v3040_v32  ;;  %v7076_v39 = vcombine.low %v6050_v44, %v6049_v58  ;;  %v4856_v5 = vrot.slane %v6052_v50, 9  ;;  %v2260_v23 = vrot.slane %v2258_v43, 4  ;;  %v6054_v18 = vld [vmem:[#allocation2 + $0x70] sm:$0xf] }
  0xf2   : > { %5539 = vmatprep.mubr.msk.bf16.mxu0 %vm1668_vm10, %v6977_v14  ;;  %5407 = vmatprep.mubr.msk.bf16.mxu1 %vm1668_vm10, %v6963_v28  ;;  %v2261_v40 = vrot.slane %v6053_v51, 5  ;;  %v2252_v60 = vsel %vm6878_vm1, %v4855_v54, %v2251_v16  ;;  %v2255_v42 = vsel %vm6878_vm1, %v2253_v10, %v2254_v17  ;;  %v2265_v15 = vrot.slane %v6664_v25, 5  ;;  %v636_v51 = vld [vmem:[#allocation2 + $0xd4] sm:$0x1] }
  0xf3   : > { %v2259_v41 = vsel %vm6878_vm1, %v4856_v5, %v2258_v43  ;;  %v2272_v19 = vrot.slane %v6714_v63, 5  ;;  %v7096_v58 = vcombine.low %v2252_v60, %v2255_v42  ;;  %v7098_v16 = vcombine.low %v6052_v50, %v6054_v18  ;;  %v6055_v5 = vld [vmem:[#allocation2 + $0x8] sm:$0x1]  ;;  %v4226_v42 = vld [vmem:[%s7731_s4] sm:$0x3] }
  0xf4   : > { %v2262_v31 = vsel %vm6878_vm1, %v2260_v23, %v2261_v40  ;;  %v4857_v49 = vrot.slane %v6654_v13, 9  ;;  %v2267_v11 = vrot.slane %v2265_v15, 4  ;;  %v2268_v32 = vrot.slane %v6670_v62, 5  ;;  %v7796_v18 = vld [vmem:[#allocation11_spill] sm:$0xff] }
  0xf5   : > { %v7100_v2 = vcombine.low %v2259_v41, %v2262_v31  ;;  %v7106_v43 = vcombine.low %v6654_v13, %v6664_v25  ;;  %v4858_v7 = vrot.slane %v6703_v45, 9  ;;  %v2274_v44 = vrot.slane %v2272_v19, 4 }
  0xf6   : > { %v2275_v54 = vrot.slane %v6716_v1, 5  ;;  %v2266_v62 = vsel %vm6878_vm1, %v4857_v49, %v2265_v15  ;;  %v2269_v13 = vsel %vm6878_vm1, %v2267_v11, %v2268_v32  ;;  %v7130_v52 = vcombine.low %v6703_v45, %v6714_v63  ;;  %v4988_v15 = vld [vmem:[%s7728_s1 + $0x10] sm:$0x3] }
  0xf7   : > { %v2273_v25 = vsel %vm6878_vm1, %v4858_v7, %v2272_v19  ;;  %v7126_v10 = vcombine.low %v2266_v62, %v2269_v13  ;;  %v2195_v50 = vrot.slane %v6885_v46, 5  ;;  %v2198_v23 = vrot.slane %v6055_v5, 5  ;;  %v7801_v11 = vld [vmem:[#allocation16_spill] sm:$0xff]  ;;  %v7802_v13 = vld [vmem:[#allocation17_spill] sm:$0xff] }
  0xf8   : > { %v2276_v1 = vsel %vm6878_vm1, %v2274_v44, %v2275_v54  ;;  %v4847_v45 = vrot.slane %v6887_v35, 9  ;;  %v637_v40 = vsel %vm6261_vm6, 0, %v636_v51  ;;  %v2610_v6 = vsel %vm1717_vm0, %v6927_v47, 0 }
  0xf9   : > { %5540 = vmatmul.mubr.msk.bf16.gmra.mrb[8].mxu0 %vm1668_vm10, %v7067_v56  ;;  %5408 = vmatmul.mubr.msk.bf16.gmra.mrb[12].mxu1 %vm1668_vm10, %v7070_v27  ;;  %v7132_v17 = vcombine.low %v2273_v25, %v2276_v1  ;;  %v2197_v63 = vrot.slane %v2195_v50, 4  ;;  %638 = vst [vmem:[#allocation2 + $0xd4] sm:$0x1] %v637_v40  ;;  %v3484_v47 = vsel %vm1717_vm0, %v6986_v38, 0  ;;  %v7241_v38 = vld [vmem:[#allocation2 + $0xd0] sm:$0xf] }
  0xfa   : > { %5543 = vmatprep.mubr.msk.bf16.mxu0 %vm1668_vm10, %v7074_v57  ;;  %5411 = vmatprep.mubr.msk.bf16.mxu1 %vm1668_vm10, %v7076_v39  ;;  %v2196_v46 = vsel %vm6878_vm1, %v4847_v45, %v2195_v50  ;;  %v4228_v31 = vsel %vm1717_vm0, %v4226_v42, 0  ;;  %v3696_v19 = vsel %vm1717_vm0, %v4988_v15, 0  ;;  %v3461_v32 = vshll.u32 %v7241_v38, 16  ;;  %v7805_v45 = vld [vmem:[#allocation20_spill] sm:$0xff]  ;;  %v7807_v40 = vld [vmem:[#allocation7_spill] sm:$0xff] }
  0xfb   : > { %v2199_v35 = vsel %vm6878_vm1, %v2197_v63, %v2198_v23  ;;  %v7804_v23 = vld [vmem:[#allocation19_spill] sm:$0xff] }
  0xfc   : > { %v4864_v60 = vcombine.low %v2196_v46, %v2199_v35  ;;  %v3463_v44 = vrot.slane %v3461_v32, 5 }
 0x100   : > { %v1229_v62 = vld [vmem:[#allocation2 + $0xd4] sm:$0x1] }
 0x101   : > { %5544 = vmatmul.mubr.msk.bf16.gmra.mrb[12].mxu0 %vm1668_vm10, %v7096_v58  ;;  %5412 = vmatmul.mubr.msk.bf16.gmra.mrb[16].mxu1 %vm1668_vm10, %v7098_v16 }
 0x102   : > { %5547 = vmatprep.mubr.msk.bf16.mxu0 %vm1668_vm10, %v7100_v2  ;;  %5415 = vmatprep.mubr.msk.bf16.mxu1 %vm1668_vm10, %v7106_v43 }
 0x109   : > { %5548 = vmatmul.mubr.msk.bf16.gmra.mrb[16].mxu0 %vm1668_vm10, %v7126_v10  ;;  %5416 = vmatmul.mubr.msk.bf16.gmra.mrb[20].mxu1 %vm1668_vm10, %v7130_v52 }
 0x10a   : > { %5551 = vmatprep.mubr.msk.bf16.mxu0 %vm1668_vm10, %v7132_v17  ;;  %5419 = vmatprep.mubr.msk.bf16.mxu1 %vm1668_vm10, %v6973_v9 }
 0x111   : > { %5552 = vmatmul.mubr.msk.bf16.gmra.mrb[20].mxu0 %vm1668_vm10, %v7007_v21  ;;  %5420 = vmatmul.mubr.msk.bf16.gmra.mrb[24].mxu1 %vm1668_vm10, %v6981_v59 }
 0x112   : > { %5555 = vmatprep.mubr.msk.bf16.mxu0 %vm1668_vm10, %v7023_v61  ;;  %5423 = vmatprep.mubr.msk.bf16.mxu1 %vm1668_vm10, %v7016_v0 }
 0x119   : > { %5556 = vmatmul.mubr.msk.bf16.gmra.mrb[24].mxu0 %vm1668_vm10, %v7029_v55  ;;  %5424 = vmatmul.mubr.msk.bf16.gmra.mrb[28].mxu1 %vm1668_vm10, %v7020_v26 }
 0x11a   : > { %5559 = vmatprep.mubr.msk.bf16.mxu0 %vm1668_vm10, %v7061_v34  ;;  %5429 = vmatprep.mubr.msk.bf16.mxu1 %vm1668_vm10, %v4864_v60 }
 0x121   : > { %5560 = vmatmul.mubr.msk.bf16.gmra.mrb[28].mxu0 %vm1668_vm10, %v7072_v29  ;;  %5430 = vmatmul.mubr.msk.bf16.vlgmr.msra.gmra.mrb[0].mxu1 %vm1668_vm10, %v6906_v37  ;;  %v7239_v37 = vld [vmem:[#allocation2 + $0xcc] sm:$0xf] }
 0x122   : > { %5565 = vmatprep.mubr.msk.bf16.mxu0 %vm1668_vm10, %v6908_v33  ;;  %5433 = vmatprep.mubr.msk.bf16.mxu1 %vm1668_vm10, %v6941_v53  ;;  %v4952_v41 = vcombine.low %v7239_v37, %v7241_v38  ;;  %v3455_v49 = vshll.u32 %v7239_v37, 16 }
 0x123   : > { %5462 = vmatpush3.bf16.msra.mxu1 %v2610_v6 }
 0x124   : > { %5964 = vmatprep.subr.msk.bf16.mxu1 %vm1717_vm0, %v4226_v42  ;;  %v3457_v7 = vrot.slane %v3455_v49, 5 }
 0x129   : > { %5566 = vmatmul.mubr.msk.bf16.vlgmr.msra.gmra.mrb[0].mxu0 %vm1668_vm10, %v6949_v8  ;;  %5434 = vmatmul.mubr.msk.bf16.gmra.mrb[4].mxu1 %vm1668_vm10, %v6951_v12 }
 0x12a   : > { %5598 = vmatpush3.bf16.msra.mxu0 %v3484_v47  ;;  %5569 = vmatprep.mubr.msk.bf16.mxu0 %vm1668_vm10, %v6953_v24 }
 0x12b   : > { %5437 = vmatprep.mubr.msk.bf16.mxu1 %vm1668_vm10, %v6955_v30  ;;  %5963 = vmatprep.subr.msk.bf16.mxu0 %vm1717_vm0, %v4988_v15  ;;  %vm4193_vm0 = vcmask 60416  }
 0x131   : > { %5570 = vmatmul.mubr.msk.bf16.gmra.mrb[4].mxu0 %vm1668_vm10, %v6957_v20  ;;  %5438 = vmatmul.mubr.msk.bf16.gmra.mrb[8].mxu1 %vm1668_vm10, %v6977_v14 }
 0x132   : > { %5573 = vmatprep.mubr.msk.bf16.mxu0 %vm1668_vm10, %v6963_v28  ;;  %5441 = vmatprep.mubr.msk.bf16.mxu1 %vm1668_vm10, %v7067_v56 }
 0x139   : > { %5574 = vmatmul.mubr.msk.bf16.gmra.mrb[8].mxu0 %vm1668_vm10, %v7070_v27  ;;  %5442 = vmatmul.mubr.msk.bf16.gmra.mrb[12].mxu1 %vm1668_vm10, %v7074_v57 }
 0x13a   : > { %5577 = vmatprep.mubr.msk.bf16.mxu0 %vm1668_vm10, %v7076_v39  ;;  %5445 = vmatprep.mubr.msk.bf16.mxu1 %vm1668_vm10, %v7096_v58 }
 0x141   : > { %5578 = vmatmul.mubr.msk.bf16.gmra.mrb[12].mxu0 %vm1668_vm10, %v7098_v16  ;;  %5446 = vmatmul.mubr.msk.bf16.gmra.mrb[16].mxu1 %vm1668_vm10, %v7100_v2 }
 0x142   : > { %5581 = vmatprep.mubr.msk.bf16.mxu0 %vm1668_vm10, %v7106_v43  ;;  %5449 = vmatprep.mubr.msk.bf16.mxu1 %vm1668_vm10, %v7126_v10 }
 0x149   : > { %5582 = vmatmul.mubr.msk.bf16.gmra.mrb[16].mxu0 %vm1668_vm10, %v7130_v52  ;;  %5450 = vmatmul.mubr.msk.bf16.gmra.mrb[20].mxu1 %vm1668_vm10, %v7132_v17 }
 0x14a   : > { %5585 = vmatprep.mubr.msk.bf16.mxu0 %vm1668_vm10, %v6973_v9  ;;  %5453 = vmatprep.mubr.msk.bf16.mxu1 %vm1668_vm10, %v7007_v21 }
 0x151   : > { %5586 = vmatmul.mubr.msk.bf16.gmra.mrb[20].mxu0 %vm1668_vm10, %v6981_v59  ;;  %5454 = vmatmul.mubr.msk.bf16.gmra.mrb[24].mxu1 %vm1668_vm10, %v7023_v61 }
 0x152   : > { %5589 = vmatprep.mubr.msk.bf16.mxu0 %vm1668_vm10, %v7016_v0  ;;  %5457 = vmatprep.mubr.msk.bf16.mxu1 %vm1668_vm10, %v7029_v55 }
 0x159   : > { %5590 = vmatmul.mubr.msk.bf16.gmra.mrb[24].mxu0 %vm1668_vm10, %v7020_v26  ;;  %5458 = vmatmul.mubr.msk.bf16.gmra.mrb[28].mxu1 %vm1668_vm10, %v7061_v34 }
 0x15a   : > { %5593 = vmatprep.mubr.msk.bf16.mxu0 %vm1668_vm10, %v7059_v4  ;;  %5463 = vmatprep.mubr.msk.bf16.mxu1 %vm1668_vm10, %v6904_v3  ;;  %v7793_v3 = vld [vmem:[#allocation8_spill] sm:$0xff] }
 0x161   : > { %5594 = vmatmul.mubr.msk.bf16.gmra.mrb[28].mxu0 %vm1668_vm10, %v4952_v41  ;;  %5464 = vmatmul.mubr.msk.bf16.vlgmr.msra.gmra.mrb[0].mxu1 %vm1668_vm10, %v6908_v33  ;;  %v7794_v33 = vld [vmem:[#allocation9_spill] sm:$0xff] }
 0x162   : > { %5599 = vmatprep.mubr.msk.bf16.mxu0 %vm1668_vm10, %v6436_v48  ;;  %5467 = vmatprep.mubr.msk.bf16.mxu1 %vm1668_vm10, %v6949_v8  ;;  %v7795_v8 = vld [vmem:[#allocation10_spill] sm:$0xff] }
 0x163   : > { %5666 = vmatpush3.bf16.msra.mxu1 %v4228_v31 }
 0x169   : > { %5600 = vmatmul.mubr.msk.bf16.vlgmr.msra.gmra.mrb[0].mxu0 %vm1668_vm10, %v6472_v36  ;;  %5468 = vmatmul.mubr.msk.bf16.gmra.mrb[4].mxu1 %vm1668_vm10, %v6953_v24  ;;  %v7797_v24 = vld [vmem:[#allocation12_spill] sm:$0xff] }
 0x16a   : > { %5632 = vmatpush3.bf16.msra.mxu0 %v3696_v19  ;;  %5603 = vmatprep.mubr.msk.bf16.mxu0 %vm1668_vm10, %v7793_v3 }
 0x16b   : > { %5471 = vmatprep.mubr.msk.bf16.mxu1 %vm1668_vm10, %v6957_v20  ;;  %v7798_v20 = vld [vmem:[#allocation13_spill] sm:$0xff] }
 0x171   : > { %5604 = vmatmul.mubr.msk.bf16.gmra.mrb[4].mxu0 %vm1668_vm10, %v7794_v33  ;;  %5472 = vmatmul.mubr.msk.bf16.gmra.mrb[8].mxu1 %vm1668_vm10, %v6963_v28  ;;  %v7799_v28 = vld [vmem:[#allocation14_spill] sm:$0xff] }
 0x172   : > { %5607 = vmatprep.mubr.msk.bf16.mxu0 %vm1668_vm10, %v7795_v8  ;;  %5475 = vmatprep.mubr.msk.bf16.mxu1 %vm1668_vm10, %v7070_v27  ;;  %v7800_v27 = vld [vmem:[#allocation15_spill] sm:$0xff] }
 0x179   : > { %5608 = vmatmul.mubr.msk.bf16.gmra.mrb[8].mxu0 %vm1668_vm10, %v7796_v18  ;;  %5476 = vmatmul.mubr.msk.bf16.gmra.mrb[12].mxu1 %vm1668_vm10, %v7076_v39  ;;  %v3452_v39 = vshrl.u32 %v7239_v37, 16 }
 0x17a   : > { %5611 = vmatprep.mubr.msk.bf16.mxu0 %vm1668_vm10, %v7797_v24  ;;  %5479 = vmatprep.mubr.msk.bf16.mxu1 %vm1668_vm10, %v7098_v16  ;;  %v3465_v16 = vshrl.u32 %v7241_v38, 16 }
 0x17c   : > { %v3467_v54 = vrot.slane %v3465_v16, 4 }
 0x17e   : > { %v3468_v1 = vor.u32 %v3467_v54, %v3463_v44 }
 0x180   : > { %v3469_v50 = vrot.slane %v3468_v1, 4 }
 0x181   : > { %5612 = vmatmul.mubr.msk.bf16.gmra.mrb[12].mxu0 %vm1668_vm10, %v7798_v20  ;;  %5480 = vmatmul.mubr.msk.bf16.gmra.mrb[16].mxu1 %vm1668_vm10, %v7106_v43  ;;  %v3454_v43 = vrot.slane %v3452_v39, 4 }
 0x182   : > { %5615 = vmatprep.mubr.msk.bf16.mxu0 %vm1668_vm10, %v7799_v28  ;;  %5483 = vmatprep.mubr.msk.bf16.mxu1 %vm1668_vm10, %v7130_v52  ;;  %v3471_v52 = vshll.u32 %v1229_v62, 16 }
 0x183   : > { %v3458_v25 = vor.u32 %v3457_v7, %v3454_v43 }
 0x184   : > { %v3473_v5 = vrot.slane %v3471_v52, 5 }
 0x186   : > { %v3474_v51 = vsel %vm6338_vm11, %v3469_v50, %v3473_v5 }
 0x189   : > { %5616 = vmatmul.mubr.msk.bf16.gmra.mrb[16].mxu0 %vm1668_vm10, %v7800_v27  ;;  %5484 = vmatmul.mubr.msk.bf16.gmra.mrb[20].mxu1 %vm1668_vm10, %v6973_v9  ;;  %v7803_v9 = vld [vmem:[#allocation18_spill] sm:$0xff] }
 0x18a   : > { %5619 = vmatprep.mubr.msk.bf16.mxu0 %vm1668_vm10, %v7801_v11  ;;  %5487 = vmatprep.mubr.msk.bf16.mxu1 %vm1668_vm10, %v6981_v59  ;;  %v3459_v59 = vrot.slane %v3458_v25, 4 }
 0x18c   : > { %v3464_v63 = vsel %vm6338_vm11, %v3459_v59, %v3463_v44 }
 0x191   : > { %5620 = vmatmul.mubr.msk.bf16.gmra.mrb[20].mxu0 %vm1668_vm10, %v7802_v13  ;;  %5488 = vmatmul.mubr.msk.bf16.gmra.mrb[24].mxu1 %vm1668_vm10, %v7016_v0 }
 0x192   : > { %5623 = vmatprep.mubr.msk.bf16.mxu0 %vm1668_vm10, %v7803_v9  ;;  %5491 = vmatprep.mubr.msk.bf16.mxu1 %vm1668_vm10, %v7020_v26  ;;  %v4970_v26 = vcombine.low %v3464_v63, %v3474_v51 }
 0x199   : > { %5624 = vmatmul.mubr.msk.bf16.gmra.mrb[24].mxu0 %vm1668_vm10, %v7804_v23  ;;  %5492 = vmatmul.mubr.msk.bf16.gmra.mrb[28].mxu1 %vm1668_vm10, %v7059_v4 }
 0x19a   : > { %5627 = vmatprep.mubr.msk.bf16.mxu0 %vm1668_vm10, %v7805_v45  ;;  %5667 = vmatprep.mubr.msk.bf16.mxu1 %vm1668_vm10, %v7807_v40 }
 0x1a1   : > { %5628 = vmatmul.mubr.msk.bf16.gmra.mrb[28].mxu0 %vm1668_vm10, %v4970_v26  ;;  %5668 = vmatmul.mubr.msk.bf16.vlgmr.msra.gmra.mrb[32].mxu1 %vm1668_vm10, %v6436_v48  ;;  %v3682_v48 = vrot.slane %v7241_v38, 5 }
 0x1a2   : > { %5633 = vmatprep.mubr.msk.bf16.mxu0 %vm1668_vm10, %v6941_v53  ;;  %5671 = vmatprep.mubr.msk.bf16.mxu1 %vm1668_vm10, %v6472_v36  ;;  %v4987_v36 = vrot.slane %v7239_v37, 9  ;;  %v3685_v53 = vrot.slane %v1229_v62, 5 }
 0x1a9   : > { %5634 = vmatmul.mubr.msk.bf16.vlgmr.msra.gmra.mrb[0].mxu0 %vm1668_vm10, %v6951_v12  ;;  %5672 = vmatmul.mubr.msk.bf16.gmra.mrb[36].mxu1 %vm1668_vm10, %v7793_v3  ;;  %v3683_v12 = vsel %vm6878_vm1, %v4987_v36, %v3682_v48 }
 0x1aa   : > { %5637 = vmatprep.mubr.msk.bf16.mxu0 %vm1668_vm10, %v6955_v30  ;;  %5675 = vmatprep.mubr.msk.bf16.mxu1 %vm1668_vm10, %v7794_v33 }
 0x1b1   : > { %5638 = vmatmul.mubr.msk.bf16.gmra.mrb[4].mxu0 %vm1668_vm10, %v6977_v14  ;;  %5676 = vmatmul.mubr.msk.bf16.gmra.mrb[40].mxu1 %vm1668_vm10, %v7795_v8 }
 0x1b2   : > { %5641 = vmatprep.mubr.msk.bf16.mxu0 %vm1668_vm10, %v7067_v56  ;;  %5679 = vmatprep.mubr.msk.bf16.mxu1 %vm1668_vm10, %v7796_v18 }
 0x1b9   : > { %5642 = vmatmul.mubr.msk.bf16.gmra.mrb[8].mxu0 %vm1668_vm10, %v7074_v57  ;;  %5680 = vmatmul.mubr.msk.bf16.gmra.mrb[44].mxu1 %vm1668_vm10, %v7797_v24 }
 0x1ba   : > { %5645 = vmatprep.mubr.msk.bf16.mxu0 %vm1668_vm10, %v7096_v58  ;;  %5683 = vmatprep.mubr.msk.bf16.mxu1 %vm1668_vm10, %v7798_v20 }
 0x1c1   : > { %5646 = vmatmul.mubr.msk.bf16.gmra.mrb[12].mxu0 %vm1668_vm10, %v7100_v2  ;;  %5684 = vmatmul.mubr.msk.bf16.gmra.mrb[48].mxu1 %vm1668_vm10, %v7799_v28 }
 0x1c2   : > { %5649 = vmatprep.mubr.msk.bf16.mxu0 %vm1668_vm10, %v7126_v10  ;;  %5687 = vmatprep.mubr.msk.bf16.mxu1 %vm1668_vm10, %v7800_v27 }
 0x1c9   : > { %5650 = vmatmul.mubr.msk.bf16.gmra.mrb[16].mxu0 %vm1668_vm10, %v7132_v17  ;;  %5688 = vmatmul.mubr.msk.bf16.gmra.mrb[52].mxu1 %vm1668_vm10, %v7801_v11 }
 0x1ca   : > { %5653 = vmatprep.mubr.msk.bf16.mxu0 %vm1668_vm10, %v7007_v21  ;;  %5691 = vmatprep.mubr.msk.bf16.mxu1 %vm1668_vm10, %v7802_v13  ;;  %v3684_v21 = vrot.slane %v3682_v48, 4 }
 0x1cc   : > { %v3686_v30 = vsel %vm6878_vm1, %v3684_v21, %v3685_v53 }
 0x1cd   : > { %v4989_v14 = vcombine.low %v3683_v12, %v3686_v30 }
 0x1d1   : > { %5654 = vmatmul.mubr.msk.bf16.gmra.mrb[20].mxu0 %vm1668_vm10, %v7023_v61  ;;  %5692 = vmatmul.mubr.msk.bf16.gmra.mrb[56].mxu1 %vm1668_vm10, %v7803_v9 }
 0x1d2   : > { %5657 = vmatprep.mubr.msk.bf16.mxu0 %vm1668_vm10, %v7029_v55  ;;  %5695 = vmatprep.mubr.msk.bf16.mxu1 %vm1668_vm10, %v7804_v23 }
 0x1d9   : > { %5658 = vmatmul.mubr.msk.bf16.gmra.mrb[24].mxu0 %vm1668_vm10, %v7061_v34  ;;  %5696 = vmatmul.mubr.msk.bf16.gmra.mrb[60].mxu1 %vm1668_vm10, %v7805_v45 }
 0x1da   : > { %5661 = vmatprep.mubr.msk.bf16.mxu0 %vm1668_vm10, %v7072_v29 }
 0x1e1   : > { %5662 = vmatmul.mubr.msk.bf16.gmra.mrb[28].mxu0 %vm1668_vm10, %v4989_v14 }
 0x234   : > { %v5465_v61 = vpop.f32.mrb[0].mxu1 }
 0x235   : > { %v2646_v55 = vpop.f32.mrb[1].mxu1 }
 0x236   : > { %v5466_v4 = vpop.f32.mrb[2].mxu1 }
 0x237   : > { %v2649_v56 = vpop.f32.mrb[3].mxu1 }
 0x23c   : > { %v7388_v34 = vpop.f32.mrb[4].mxu1 }
 0x23d   : > { %v7390_v57 = vpop.f32.mrb[5].mxu1 }
 0x23e   : > { %v7392_v29 = vpop.f32.mrb[6].mxu1 }
 0x23f   : > { %v7394_v58 = vpop.f32.mrb[7].mxu1 }
 0x244   : > { %v7396_v22 = vpop.f32.mrb[8].mxu1 }
 0x245   : > { %v7398_v2 = vpop.f32.mrb[9].mxu1 }
 0x246   : > { %v7400_v10 = vpop.f32.mrb[10].mxu1 }
 0x247   : > { %v7402_v17 = vpop.f32.mrb[11].mxu1 }
 0x24c   : > { %v7404_v46 = vpop.f32.mrb[12].mxu1 }
 0x24d   : > { %v7406_v35 = vpop.f32.mrb[13].mxu1 }
 0x24e   : > { %v7408_v60 = vpop.f32.mrb[14].mxu1 }
 0x24f   : > { %v7410_v6 = vpop.f32.mrb[15].mxu1 }
 0x254   : > { %v7412_v42 = vpop.f32.mrb[16].mxu1 }
 0x255   : > { %v7414_v47 = vpop.f32.mrb[17].mxu1 }
 0x256   : > { %v7416_v15 = vpop.f32.mrb[18].mxu1 }
 0x257   : > { %v7418_v37 = vpop.f32.mrb[19].mxu1 }
 0x25c   : > { %v7420_v38 = vpop.f32.mrb[20].mxu1 }
 0x25d   : > { %v7422_v41 = vpop.f32.mrb[21].mxu1 }
 0x25e   : > { %v7424_v31 = vpop.f32.mrb[22].mxu1 }
 0x25f   : > { %v7426_v19 = vpop.f32.mrb[23].mxu1 }
 0x264   : > { %v7428_v3 = vpop.f32.mrb[24].mxu1 }
 0x265   : > { %v7430_v33 = vpop.f32.mrb[25].mxu1 }
 0x266   : > { %v7432_v8 = vpop.f32.mrb[26].mxu1 }
 0x267   : > { %v7434_v18 = vpop.f32.mrb[27].mxu1 }
 0x26c   : > { %v7436_v24 = vpop.f32.mrb[28].mxu1 }
 0x26d   : > { %v7438_v20 = vpop.f32.mrb[29].mxu1 }
 0x26e   : > { %v7440_v28 = vpop.f32.mrb[30].mxu1 }
 0x26f   : > { %v7442_v27 = vpop.f32.mrb[31].mxu1 }
 0x274   : > { %v5669_v39 = vpop.f32.mrb[32].mxu1 }
 0x275   : > { %v5159_v49 = vpack.c.bf16 %v5669_v39, %v5669_v39  ;;  %v4264_v16 = vpop.f32.mrb[33].mxu1 }
 0x276   : > { %v5157_v11 = vpack.c.bf16 %v4264_v16, %v4264_v16  ;;  %v5670_v32 = vpop.f32.mrb[34].mxu1 }
 0x277   : > { %4521 = vst.msk [vmem:[%s7448_s16 + $0x8] sm:$0xf] %vm4193_vm0, %v5159_v49  ;;  %v5160_v43 = vpack.c.bf16 %v5670_v32, %v5670_v32  ;;  %v4267_v7 = vpop.f32.mrb[35].mxu1 }
 0x278   : > { %4519 = vst.msk [vmem:[%s7448_s16] sm:$0xf] %vm4193_vm0, %v5157_v11  ;;  %v5158_v44 = vpack.c.bf16 %v4267_v7, %v4267_v7 }
 0x279   : > { %4522 = vst.msk [vmem:[%s7448_s16 + $0xc] sm:$0xf] %vm4193_vm0, %v5160_v43 }
 0x27a   : > { %4520 = vst.msk [vmem:[%s7448_s16 + $0x4] sm:$0xf] %vm4193_vm0, %v5158_v44 }
 0x27c   : > { %v5635_v54 = vpop.f32.mrb[0].mxu0  ;;  %v5673_v9 = vpop.f32.mrb[36].mxu1 }
 0x27d   : > { %v5699_v62 = vadd.f32 %v5635_v54, %v5465_v61  ;;  %v3732_v13 = vpop.f32.mrb[1].mxu0  ;;  %v5163_v52 = vpack.c.bf16 %v5673_v9, %v5673_v9  ;;  %v4280_v59 = vpop.f32.mrb[37].mxu1 }
 0x27e   : > { %v5700_v25 = vadd.f32 %v3732_v13, %v2646_v55  ;;  %v5636_v1 = vpop.f32.mrb[2].mxu0  ;;  %v5674_v45 = vpop.f32.mrb[38].mxu1  ;;  %v5161_v61 = vpack.c.bf16 %v4280_v59, %v4280_v59 }
 0x27f   : > { %v5127_v50 = vpack.c.bf16 %v5699_v62, %v5699_v62  ;;  %v5701_v5 = vadd.f32 %v5636_v1, %v5466_v4  ;;  %v3735_v23 = vpop.f32.mrb[3].mxu0  ;;  %4525 = vst.msk [vmem:[%s7448_s16 + $0x18] sm:$0xf] %vm4193_vm0, %v5163_v52  ;;  %v4283_v40 = vpop.f32.mrb[39].mxu1  ;;  %v3965_v26 = vmul.f32 %v5699_v62, %v5699_v62  ;;  %v5164_v55 = vpack.c.bf16 %v5674_v45, %v5674_v45 }
 0x280   : > { %v3963_v0 = vmul.f32 %v5700_v25, %v5700_v25  ;;  %v5125_v63 = vpack.c.bf16 %v5700_v25, %v5700_v25  ;;  %v5702_v51 = vadd.f32 %v3735_v23, %v2649_v56  ;;  %v3892_v36 = vsel %vm3891_vm2, %v5700_v25, 0.0  ;;  %4523 = vst.msk [vmem:[%s7448_s16 + $0x10] sm:$0xf] %vm4193_vm0, %v5161_v61 }
 0x281   : > { %4196 = vst.msk [vmem:[%s7461_s18 + $0x8] sm:$0xf] %vm4193_vm0, %v5127_v50  ;;  %v5128_v48 = vpack.c.bf16 %v5701_v5, %v5701_v5  ;;  %v3966_v30 = vmul.f32 %v5701_v5, %v5701_v5  ;;  %v3895_v4 = vsel %vm3891_vm2, %v5699_v62, 0.0  ;;  %v5162_v16 = vpack.c.bf16 %v4283_v40, %v4283_v40  ;;  %4526 = vst.msk [vmem:[%s7448_s16 + $0x1c] sm:$0xf] %vm4193_vm0, %v5164_v55 }
 0x282   : > { %4194 = vst.msk [vmem:[%s7461_s18] sm:$0xf] %vm4193_vm0, %v5125_v63  ;;  %v3893_v21 = vsel %vm3891_vm2, %v5702_v51, 0.0  ;;  %v3964_v53 = vmul.f32 %v5702_v51, %v5702_v51  ;;  %v5126_v12 = vpack.c.bf16 %v5702_v51, %v5702_v51  ;;  %v3995_v56 = vsel %vm3891_vm2, %v3963_v0, 0.0 }
 0x283   : > { %4197 = vst.msk [vmem:[%s7461_s18 + $0xc] sm:$0xf] %vm4193_vm0, %v5128_v48  ;;  %v3894_v14 = vadd.f32 %v3893_v21, %v3892_v36  ;;  %v3998_v54 = vsel %vm3891_vm2, %v3965_v26, 0.0  ;;  %4524 = vst.msk [vmem:[%s7448_s16 + $0x14] sm:$0xf] %vm4193_vm0, %v5162_v16  ;;  %v3897_v1 = vsel %vm3891_vm2, %v5701_v5, 0.0 }
 0x284   : > { %v3996_v39 = vsel %vm3891_vm2, %v3964_v53, 0.0  ;;  %4195 = vst.msk [vmem:[%s7461_s18 + $0x4] sm:$0xf] %vm4193_vm0, %v5126_v12  ;;  %v5639_v49 = vpop.f32.mrb[4].mxu0  ;;  %v5677_v44 = vpop.f32.mrb[40].mxu1 }
 0x285   : > { %v3896_v11 = vadd.f32 %v3895_v4, %v3894_v14  ;;  %v3997_v32 = vadd.f32 %v3996_v39, %v3995_v56  ;;  %v5703_v43 = vadd.f32 %v5639_v49, %v7388_v34  ;;  %v3748_v7 = vpop.f32.mrb[5].mxu0  ;;  %v5167_v9 = vpack.c.bf16 %v5677_v44, %v5677_v44  ;;  %v4296_v25 = vpop.f32.mrb[41].mxu1 }
 0x286   : > { %v5704_v62 = vadd.f32 %v3748_v7, %v7390_v57  ;;  %v5640_v13 = vpop.f32.mrb[6].mxu0  ;;  %v4000_v34 = vsel %vm3891_vm2, %v3966_v30, 0.0  ;;  %v5678_v23 = vpop.f32.mrb[42].mxu1  ;;  %v5165_v21 = vpack.c.bf16 %v4296_v25, %v4296_v25 }
 0x287   : > { %v3999_v52 = vadd.f32 %v3998_v54, %v3997_v32  ;;  %v5131_v59 = vpack.c.bf16 %v5703_v43, %v5703_v43  ;;  %v3751_v50 = vpop.f32.mrb[7].mxu0  ;;  %v3898_v45 = vadd.f32 %v3897_v1, %v3896_v11  ;;  %4529 = vst.msk [vmem:[%s7448_s16 + $0x28] sm:$0xf] %vm4193_vm0, %v5167_v9  ;;  %v4299_v51 = vpop.f32.mrb[43].mxu1  ;;  %v5705_v5 = vadd.f32 %v5640_v13, %v7392_v29 }
 0x288   : > { %v3899_v0 = vsel %vm3891_vm2, %v5704_v62, 0.0  ;;  %v3967_v63 = vmul.f32 %v5704_v62, %v5704_v62  ;;  %v5129_v57 = vpack.c.bf16 %v5704_v62, %v5704_v62  ;;  %v5706_v26 = vadd.f32 %v3751_v50, %v7394_v58  ;;  %4527 = vst.msk [vmem:[%s7448_s16 + $0x20] sm:$0xf] %vm4193_vm0, %v5165_v21 }
 0x289   : > { %4200 = vst.msk [vmem:[%s7461_s18 + $0x18] sm:$0xf] %vm4193_vm0, %v5131_v59  ;;  %v4001_v40 = vadd.f32 %v4000_v34, %v3999_v52  ;;  %v3900_v48 = vadd.f32 %v3899_v0, %v3898_v45  ;;  %v5168_v53 = vpack.c.bf16 %v5678_v23, %v5678_v23  ;;  %v3969_v12 = vmul.f32 %v5703_v43, %v5703_v43 }
 0x28a   : > { %v4002_v36 = vsel %vm3891_vm2, %v3967_v63, 0.0  ;;  %4198 = vst.msk [vmem:[%s7461_s18 + $0x10] sm:$0xf] %vm4193_vm0, %v5129_v57  ;;  %v5132_v14 = vpack.c.bf16 %v5705_v5, %v5705_v5  ;;  %v3901_v61 = vsel %vm3891_vm2, %v5706_v26, 0.0  ;;  %v3968_v55 = vmul.f32 %v5706_v26, %v5706_v26 }
 0x28b   : > { %v4003_v30 = vadd.f32 %v4002_v36, %v4001_v40  ;;  %v5130_v4 = vpack.c.bf16 %v5706_v26, %v5706_v26  ;;  %4530 = vst.msk [vmem:[%s7448_s16 + $0x2c] sm:$0xf] %vm4193_vm0, %v5168_v53  ;;  %v5166_v58 = vpack.c.bf16 %v4299_v51, %v4299_v51  ;;  %v3970_v56 = vmul.f32 %v5705_v5, %v5705_v5 }
 0x28c   : > { %v5643_v29 = vpop.f32.mrb[8].mxu0  ;;  %4201 = vst.msk [vmem:[%s7461_s18 + $0x1c] sm:$0xf] %vm4193_vm0, %v5132_v14  ;;  %v3902_v39 = vadd.f32 %v3901_v61, %v3900_v48  ;;  %v5681_v11 = vpop.f32.mrb[44].mxu1  ;;  %v3903_v32 = vsel %vm3891_vm2, %v5703_v43, 0.0  ;;  %v4004_v7 = vsel %vm3891_vm2, %v3968_v55, 0.0 }
 0x28d   : > { %v5707_v49 = vadd.f32 %v5643_v29, %v7396_v22  ;;  %v3764_v16 = vpop.f32.mrb[9].mxu0  ;;  %4199 = vst.msk [vmem:[%s7461_s18 + $0x14] sm:$0xf] %vm4193_vm0, %v5130_v4  ;;  %4528 = vst.msk [vmem:[%s7448_s16 + $0x24] sm:$0xf] %vm4193_vm0, %v5166_v58  ;;  %v5171_v62 = vpack.c.bf16 %v5681_v11, %v5681_v11  ;;  %v4312_v13 = vpop.f32.mrb[45].mxu1  ;;  %v4005_v43 = vadd.f32 %v4004_v7, %v4003_v30 }
 0x28e   : > { %v5708_v44 = vadd.f32 %v3764_v16, %v7398_v2  ;;  %v5644_v54 = vpop.f32.mrb[10].mxu0  ;;  %v4006_v9 = vsel %vm3891_vm2, %v3969_v12, 0.0  ;;  %v3905_v22 = vsel %vm3891_vm2, %v5705_v5, 0.0  ;;  %v3904_v25 = vadd.f32 %v3903_v32, %v3902_v39  ;;  %v5682_v34 = vpop.f32.mrb[46].mxu1 }
 0x28f   : > { %v3767_v1 = vpop.f32.mrb[11].mxu0  ;;  %v5135_v52 = vpack.c.bf16 %v5707_v49, %v5707_v49  ;;  %4533 = vst.msk [vmem:[%s7448_s16 + $0x38] sm:$0xf] %vm4193_vm0, %v5171_v62  ;;  %v4315_v23 = vpop.f32.mrb[47].mxu1  ;;  %v4008_v45 = vsel %vm3891_vm2, %v3970_v56, 0.0  ;;  %v4007_v0 = vadd.f32 %v4006_v9, %v4005_v43  ;;  %v5709_v57 = vadd.f32 %v5644_v54, %v7400_v10 }
 0x290   : > { %v3907_v59 = vsel %vm3891_vm2, %v5708_v44, 0.0  ;;  %v3971_v50 = vmul.f32 %v5708_v44, %v5708_v44  ;;  %v5133_v2 = vpack.c.bf16 %v5708_v44, %v5708_v44  ;;  %v3906_v63 = vadd.f32 %v3905_v22, %v3904_v25 }
 0x291   : > { %4204 = vst.msk [vmem:[%s7461_s18 + $0x28] sm:$0xf] %vm4193_vm0, %v5135_v52  ;;  %v5710_v40 = vadd.f32 %v3767_v1, %v7402_v17  ;;  %v5169_v5 = vpack.c.bf16 %v4312_v13, %v4312_v13  ;;  %v5172_v26 = vpack.c.bf16 %v5682_v34, %v5682_v34  ;;  %v3911_v48 = vsel %vm3891_vm2, %v5707_v49, 0.0 }
 0x292   : > { %v4010_v51 = vsel %vm3891_vm2, %v3971_v50, 0.0  ;;  %4202 = vst.msk [vmem:[%s7461_s18 + $0x20] sm:$0xf] %vm4193_vm0, %v5133_v2  ;;  %v3973_v36 = vmul.f32 %v5707_v49, %v5707_v49  ;;  %v3908_v21 = vadd.f32 %v3907_v59, %v3906_v63  ;;  %v4009_v53 = vadd.f32 %v4008_v45, %v4007_v0 }
 0x293   : > { %v5136_v10 = vpack.c.bf16 %v5709_v57, %v5709_v57  ;;  %v3909_v12 = vsel %vm3891_vm2, %v5710_v40, 0.0  ;;  %v3972_v30 = vmul.f32 %v5710_v40, %v5710_v40  ;;  %v5134_v14 = vpack.c.bf16 %v5710_v40, %v5710_v40  ;;  %4531 = vst.msk [vmem:[%s7448_s16 + $0x30] sm:$0xf] %vm4193_vm0, %v5169_v5  ;;  %4534 = vst.msk [vmem:[%s7448_s16 + $0x3c] sm:$0xf] %vm4193_vm0, %v5172_v26 }
 0x294   : > { %v5647_v61 = vpop.f32.mrb[12].mxu0  ;;  %v4011_v17 = vadd.f32 %v4010_v51, %v4009_v53  ;;  %v3974_v55 = vmul.f32 %v5709_v57, %v5709_v57  ;;  %v3910_v4 = vadd.f32 %v3909_v12, %v3908_v21  ;;  %v5685_v56 = vpop.f32.mrb[48].mxu1  ;;  %v5170_v11 = vpack.c.bf16 %v4315_v23, %v4315_v23 }
 0x295   : > { %v5711_v29 = vadd.f32 %v5647_v61, %v7404_v46  ;;  %v3780_v58 = vpop.f32.mrb[13].mxu0  ;;  %4205 = vst.msk [vmem:[%s7461_s18 + $0x2c] sm:$0xf] %vm4193_vm0, %v5136_v10  ;;  %v4012_v39 = vsel %vm3891_vm2, %v3972_v30, 0.0  ;;  %4203 = vst.msk [vmem:[%s7461_s18 + $0x24] sm:$0xf] %vm4193_vm0, %v5134_v14  ;;  %v5175_v32 = vpack.c.bf16 %v5685_v56, %v5685_v56 }
 0x296   : > { %v5712_v49 = vadd.f32 %v3780_v58, %v7406_v35  ;;  %v5648_v16 = vpop.f32.mrb[14].mxu0  ;;  %v4328_v7 = vpop.f32.mrb[49].mxu1  ;;  %v4014_v44 = vsel %vm3891_vm2, %v3973_v36, 0.0  ;;  %v3913_v46 = vsel %vm3891_vm2, %v5709_v57, 0.0  ;;  %v3912_v54 = vadd.f32 %v3911_v48, %v3910_v4  ;;  %4532 = vst.msk [vmem:[%s7448_s16 + $0x34] sm:$0xf] %vm4193_vm0, %v5170_v11 }
 0x297   : > { %v4013_v62 = vadd.f32 %v4012_v39, %v4011_v17  ;;  %v3783_v13 = vpop.f32.mrb[15].mxu0  ;;  %v5686_v9 = vpop.f32.mrb[50].mxu1  ;;  %v5139_v22 = vpack.c.bf16 %v5711_v29, %v5711_v29  ;;  %4537 = vst.msk [vmem:[%s7448_s16 + $0x48] sm:$0xf] %vm4193_vm0, %v5175_v32  ;;  %v4016_v34 = vsel %vm3891_vm2, %v3974_v55, 0.0  ;;  %v5713_v50 = vadd.f32 %v5648_v16, %v7408_v60 }
 0x298   : > { %v3915_v25 = vsel %vm3891_vm2, %v5712_v49, 0.0  ;;  %v3975_v43 = vmul.f32 %v5712_v49, %v5712_v49  ;;  %v5137_v35 = vpack.c.bf16 %v5712_v49, %v5712_v49  ;;  %v4331_v1 = vpop.f32.mrb[51].mxu1  ;;  %v3914_v59 = vadd.f32 %v3913_v46, %v3912_v54 }
 0x299   : > { %v4015_v52 = vadd.f32 %v4014_v44, %v4013_v62  ;;  %4208 = vst.msk [vmem:[%s7461_s18 + $0x38] sm:$0xf] %vm4193_vm0, %v5139_v22  ;;  %v5714_v23 = vadd.f32 %v3783_v13, %v7410_v6  ;;  %v5173_v45 = vpack.c.bf16 %v4328_v7, %v4328_v7  ;;  %v5176_v0 = vpack.c.bf16 %v5686_v9, %v5686_v9 }
 0x29a   : > { %v4018_v2 = vsel %vm3891_vm2, %v3975_v43, 0.0  ;;  %4206 = vst.msk [vmem:[%s7461_s18 + $0x30] sm:$0xf] %vm4193_vm0, %v5137_v35  ;;  %v3919_v63 = vsel %vm3891_vm2, %v5711_v29, 0.0  ;;  %v3977_v57 = vmul.f32 %v5711_v29, %v5711_v29  ;;  %v3916_v51 = vadd.f32 %v3915_v25, %v3914_v59 }
 0x29b   : > { %v4017_v40 = vadd.f32 %v4016_v34, %v4015_v52  ;;  %v5140_v60 = vpack.c.bf16 %v5713_v50, %v5713_v50  ;;  %v3917_v5 = vsel %vm3891_vm2, %v5714_v23, 0.0  ;;  %v3976_v26 = vmul.f32 %v5714_v23, %v5714_v23  ;;  %4535 = vst.msk [vmem:[%s7448_s16 + $0x40] sm:$0xf] %vm4193_vm0, %v5173_v45  ;;  %4538 = vst.msk [vmem:[%s7448_s16 + $0x4c] sm:$0xf] %vm4193_vm0, %v5176_v0 }
 0x29c   : > { %v5138_v48 = vpack.c.bf16 %v5714_v23, %v5714_v23  ;;  %v5651_v36 = vpop.f32.mrb[16].mxu0  ;;  %v3978_v21 = vmul.f32 %v5713_v50, %v5713_v50  ;;  %v3918_v53 = vadd.f32 %v3917_v5, %v3916_v51  ;;  %v5689_v30 = vpop.f32.mrb[52].mxu1  ;;  %v5174_v55 = vpack.c.bf16 %v4331_v1, %v4331_v1 }
 0x29d   : > { %v4019_v6 = vadd.f32 %v4018_v2, %v4017_v40  ;;  %v5715_v10 = vadd.f32 %v5651_v36, %v7412_v42  ;;  %v3796_v12 = vpop.f32.mrb[17].mxu0  ;;  %4209 = vst.msk [vmem:[%s7461_s18 + $0x3c] sm:$0xf] %vm4193_vm0, %v5140_v60  ;;  %v4020_v14 = vsel %vm3891_vm2, %v3976_v26, 0.0  ;;  %v5179_v4 = vpack.c.bf16 %v5689_v30, %v5689_v30  ;;  %v4344_v29 = vpop.f32.mrb[53].mxu1 }
 0x29e   : > { %4207 = vst.msk [vmem:[%s7461_s18 + $0x34] sm:$0xf] %vm4193_vm0, %v5138_v48  ;;  %v5716_v61 = vadd.f32 %v3796_v12, %v7414_v47  ;;  %v5652_v17 = vpop.f32.mrb[18].mxu0  ;;  %v4022_v58 = vsel %vm3891_vm2, %v3977_v57, 0.0  ;;  %v3921_v42 = vsel %vm3891_vm2, %v5713_v50, 0.0  ;;  %v3920_v56 = vadd.f32 %v3919_v63, %v3918_v53  ;;  %v5690_v16 = vpop.f32.mrb[54].mxu1 }
 0x29f   : > { %v4021_v39 = vadd.f32 %v4020_v14, %v4019_v6  ;;  %v3799_v49 = vpop.f32.mrb[19].mxu0  ;;  %v5143_v11 = vpack.c.bf16 %v5715_v10, %v5715_v10  ;;  %4536 = vst.msk [vmem:[%s7448_s16 + $0x44] sm:$0xf] %vm4193_vm0, %v5174_v55  ;;  %4541 = vst.msk [vmem:[%s7448_s16 + $0x58] sm:$0xf] %vm4193_vm0, %v5179_v4  ;;  %v4347_v44 = vpop.f32.mrb[55].mxu1  ;;  %v5717_v13 = vadd.f32 %v5652_v17, %v7416_v15 }
 0x2a0   : > { %v3923_v32 = vsel %vm3891_vm2, %v5716_v61, 0.0  ;;  %v3979_v7 = vmul.f32 %v5716_v61, %v5716_v61  ;;  %v5141_v47 = vpack.c.bf16 %v5716_v61, %v5716_v61  ;;  %v4024_v46 = vsel %vm3891_vm2, %v3978_v21, 0.0 }
 0x2a1   : > { %v4023_v54 = vadd.f32 %v4022_v58, %v4021_v39  ;;  %v3922_v62 = vadd.f32 %v3921_v42, %v3920_v56  ;;  %4212 = vst.msk [vmem:[%s7461_s18 + $0x48] sm:$0xf] %vm4193_vm0, %v5143_v11  ;;  %v5718_v22 = vadd.f32 %v3799_v49, %v7418_v37  ;;  %v5177_v25 = vpack.c.bf16 %v4344_v29, %v4344_v29 }
 0x2a2   : > { %v4026_v9 = vsel %vm3891_vm2, %v3979_v7, 0.0  ;;  %4210 = vst.msk [vmem:[%s7461_s18 + $0x40] sm:$0xf] %vm4193_vm0, %v5141_v47  ;;  %v5180_v43 = vpack.c.bf16 %v5690_v16, %v5690_v16  ;;  %v3927_v35 = vsel %vm3891_vm2, %v5715_v10, 0.0  ;;  %v3981_v1 = vmul.f32 %v5715_v10, %v5715_v10 }
 0x2a3   : > { %v3924_v34 = vadd.f32 %v3923_v32, %v3922_v62  ;;  %v4025_v52 = vadd.f32 %v4024_v46, %v4023_v54  ;;  %v5144_v15 = vpack.c.bf16 %v5717_v13, %v5717_v13  ;;  %v3925_v59 = vsel %vm3891_vm2, %v5718_v22, 0.0  ;;  %4539 = vst.msk [vmem:[%s7448_s16 + $0x50] sm:$0xf] %vm4193_vm0, %v5177_v25 }
 0x2a4   : > { %v3980_v50 = vmul.f32 %v5718_v22, %v5718_v22  ;;  %v5142_v2 = vpack.c.bf16 %v5718_v22, %v5718_v22  ;;  %v5655_v23 = vpop.f32.mrb[20].mxu0  ;;  %4542 = vst.msk [vmem:[%s7448_s16 + $0x5c] sm:$0xf] %vm4193_vm0, %v5180_v43  ;;  %v3982_v45 = vmul.f32 %v5717_v13, %v5717_v13  ;;  %v5693_v51 = vpop.f32.mrb[56].mxu1  ;;  %v5178_v26 = vpack.c.bf16 %v4347_v44, %v4347_v44 }
 0x2a5   : > { %v4027_v37 = vadd.f32 %v4026_v9, %v4025_v52  ;;  %v3926_v0 = vadd.f32 %v3925_v59, %v3924_v34  ;;  %v5719_v63 = vadd.f32 %v5655_v23, %v7420_v38  ;;  %v3812_v57 = vpop.f32.mrb[21].mxu0  ;;  %4213 = vst.msk [vmem:[%s7461_s18 + $0x4c] sm:$0xf] %vm4193_vm0, %v5144_v15  ;;  %v5183_v48 = vpack.c.bf16 %v5693_v51, %v5693_v51  ;;  %v4360_v36 = vpop.f32.mrb[57].mxu1 }
 0x2a6   : > { %v4028_v40 = vsel %vm3891_vm2, %v3980_v50, 0.0  ;;  %4211 = vst.msk [vmem:[%s7461_s18 + $0x44] sm:$0xf] %vm4193_vm0, %v5142_v2  ;;  %v5720_v60 = vadd.f32 %v3812_v57, %v7422_v41  ;;  %v5656_v5 = vpop.f32.mrb[22].mxu0  ;;  %v4030_v6 = vsel %vm3891_vm2, %v3981_v1, 0.0  ;;  %v3929_v38 = vsel %vm3891_vm2, %v5717_v13, 0.0 }
 0x2a7   : > { %v3928_v21 = vadd.f32 %v3927_v35, %v3926_v0  ;;  %v4029_v53 = vadd.f32 %v4028_v40, %v4027_v37  ;;  %v3815_v10 = vpop.f32.mrb[23].mxu0  ;;  %v5694_v12 = vpop.f32.mrb[58].mxu1  ;;  %v5147_v30 = vpack.c.bf16 %v5719_v63, %v5719_v63  ;;  %4540 = vst.msk [vmem:[%s7448_s16 + $0x54] sm:$0xf] %vm4193_vm0, %v5178_v26  ;;  %4545 = vst.msk [vmem:[%s7448_s16 + $0x68] sm:$0xf] %vm4193_vm0, %v5183_v48 }
 0x2a8   : > { %v3931_v14 = vsel %vm3891_vm2, %v5720_v60, 0.0  ;;  %v3983_v61 = vmul.f32 %v5720_v60, %v5720_v60  ;;  %v5145_v41 = vpack.c.bf16 %v5720_v60, %v5720_v60  ;;  %v4363_v17 = vpop.f32.mrb[59].mxu1  ;;  %v4032_v55 = vsel %vm3891_vm2, %v3982_v45, 0.0 }
 0x2a9   : > { %v4031_v4 = vadd.f32 %v4030_v6, %v4029_v53  ;;  %v3930_v29 = vadd.f32 %v3929_v38, %v3928_v21  ;;  %v5721_v58 = vadd.f32 %v5656_v5, %v7424_v31  ;;  %4216 = vst.msk [vmem:[%s7461_s18 + $0x58] sm:$0xf] %vm4193_vm0, %v5147_v30  ;;  %v5722_v56 = vadd.f32 %v3815_v10, %v7426_v19 }
 0x2aa   : > { %v4034_v42 = vsel %vm3891_vm2, %v3983_v61, 0.0  ;;  %4214 = vst.msk [vmem:[%s7461_s18 + $0x50] sm:$0xf] %vm4193_vm0, %v5145_v41  ;;  %v5181_v39 = vpack.c.bf16 %v4360_v36, %v4360_v36  ;;  %v5184_v49 = vpack.c.bf16 %v5694_v12, %v5694_v12  ;;  %v3935_v16 = vsel %vm3891_vm2, %v5719_v63, 0.0 }
 0x2ab   : > { %v3985_v11 = vmul.f32 %v5719_v63, %v5719_v63  ;;  %v3932_v32 = vadd.f32 %v3931_v14, %v3930_v29  ;;  %v4033_v7 = vadd.f32 %v4032_v55, %v4031_v4  ;;  %v5148_v31 = vpack.c.bf16 %v5721_v58, %v5721_v58 }
 0x2ac   : > { %v3933_v47 = vsel %vm3891_vm2, %v5722_v56, 0.0  ;;  %v3984_v44 = vmul.f32 %v5722_v56, %v5722_v56  ;;  %v5146_v46 = vpack.c.bf16 %v5722_v56, %v5722_v56  ;;  %v5659_v54 = vpop.f32.mrb[24].mxu0  ;;  %4543 = vst.msk [vmem:[%s7448_s16 + $0x60] sm:$0xf] %vm4193_vm0, %v5181_v39  ;;  %4546 = vst.msk [vmem:[%s7448_s16 + $0x6c] sm:$0xf] %vm4193_vm0, %v5184_v49  ;;  %v3986_v62 = vmul.f32 %v5721_v58, %v5721_v58 }
 0x2ad   : > { %v4035_v19 = vadd.f32 %v4034_v42, %v4033_v7  ;;  %v3934_v13 = vadd.f32 %v3933_v47, %v3932_v32  ;;  %v5723_v9 = vadd.f32 %v5659_v54, %v7428_v3  ;;  %v3828_v22 = vpop.f32.mrb[25].mxu0  ;;  %v5697_v25 = vpop.f32.mrb[60].mxu1  ;;  %4217 = vst.msk [vmem:[%s7461_s18 + $0x5c] sm:$0xf] %vm4193_vm0, %v5148_v31  ;;  %v5182_v34 = vpack.c.bf16 %v4363_v17, %v4363_v17 }
 0x2ae   : > { %v4036_v43 = vsel %vm3891_vm2, %v3984_v44, 0.0  ;;  %4215 = vst.msk [vmem:[%s7461_s18 + $0x54] sm:$0xf] %vm4193_vm0, %v5146_v46  ;;  %v5724_v35 = vadd.f32 %v3828_v22, %v7430_v33  ;;  %v5660_v1 = vpop.f32.mrb[26].mxu0  ;;  %v5187_v52 = vpack.c.bf16 %v5697_v25, %v5697_v25  ;;  %v4376_v15 = vpop.f32.mrb[61].mxu1  ;;  %v4038_v59 = vsel %vm3891_vm2, %v3985_v11, 0.0 }
 0x2af   : > { %v3937_v3 = vsel %vm3891_vm2, %v5721_v58, 0.0  ;;  %v3936_v50 = vadd.f32 %v3935_v16, %v3934_v13  ;;  %v4037_v2 = vadd.f32 %v4036_v43, %v4035_v19  ;;  %v3831_v23 = vpop.f32.mrb[27].mxu0  ;;  %v5698_v37 = vpop.f32.mrb[62].mxu1  ;;  %v5151_v45 = vpack.c.bf16 %v5723_v9, %v5723_v9  ;;  %4544 = vst.msk [vmem:[%s7448_s16 + $0x64] sm:$0xf] %vm4193_vm0, %v5182_v34 }
 0x2b0   : > { %v3939_v0 = vsel %vm3891_vm2, %v5724_v35, 0.0  ;;  %v3987_v63 = vmul.f32 %v5724_v35, %v5724_v35  ;;  %v5149_v33 = vpack.c.bf16 %v5724_v35, %v5724_v35  ;;  %4549 = vst.msk [vmem:[%s7448_s16 + $0x78] sm:$0xf] %vm4193_vm0, %v5187_v52  ;;  %v4379_v57 = vpop.f32.mrb[63].mxu1  ;;  %v4040_v51 = vsel %vm3891_vm2, %v3986_v62, 0.0 }
 0x2b1   : > { %v4039_v40 = vadd.f32 %v4038_v59, %v4037_v2  ;;  %v3938_v60 = vadd.f32 %v3937_v3, %v3936_v50  ;;  %v5725_v5 = vadd.f32 %v5660_v1, %v7432_v8  ;;  %4220 = vst.msk [vmem:[%s7461_s18 + $0x68] sm:$0xf] %vm4193_vm0, %v5151_v45  ;;  %v5726_v48 = vadd.f32 %v3831_v23, %v7434_v18 }
 0x2b2   : > { %v4042_v26 = vsel %vm3891_vm2, %v3987_v63, 0.0  ;;  %4218 = vst.msk [vmem:[%s7461_s18 + $0x60] sm:$0xf] %vm4193_vm0, %v5149_v33  ;;  %v5185_v36 = vpack.c.bf16 %v4376_v15, %v4376_v15  ;;  %v5188_v6 = vpack.c.bf16 %v5698_v37, %v5698_v37  ;;  %v3989_v38 = vmul.f32 %v5723_v9, %v5723_v9 }
 0x2b3   : > { %v3940_v21 = vadd.f32 %v3939_v0, %v3938_v60  ;;  %v4041_v53 = vadd.f32 %v4040_v51, %v4039_v40  ;;  %v5152_v10 = vpack.c.bf16 %v5725_v5, %v5725_v5  ;;  %v3941_v12 = vsel %vm3891_vm2, %v5726_v48, 0.0 }
 0x2b4   : > { %v3988_v8 = vmul.f32 %v5726_v48, %v5726_v48  ;;  %v5150_v30 = vpack.c.bf16 %v5726_v48, %v5726_v48  ;;  %v5663_v14 = vpop.f32.mrb[28].mxu0  ;;  %4547 = vst.msk [vmem:[%s7448_s16 + $0x70] sm:$0xf] %vm4193_vm0, %v5185_v36  ;;  %4550 = vst.msk [vmem:[%s7448_s16 + $0x7c] sm:$0xf] %vm4193_vm0, %v5188_v6  ;;  %v3943_v61 = vsel %vm3891_vm2, %v5723_v9, 0.0  ;;  %v3990_v4 = vmul.f32 %v5725_v5, %v5725_v5 }
 0x2b5   : > { %v4043_v18 = vadd.f32 %v4042_v26, %v4041_v53  ;;  %v3942_v41 = vadd.f32 %v3941_v12, %v3940_v21  ;;  %v5727_v17 = vadd.f32 %v5663_v14, %v7436_v24  ;;  %v3844_v55 = vpop.f32.mrb[29].mxu0  ;;  %4221 = vst.msk [vmem:[%s7461_s18 + $0x6c] sm:$0xf] %vm4193_vm0, %v5152_v10  ;;  %v5186_v56 = vpack.c.bf16 %v4379_v57, %v4379_v57 }
 0x2b6   : > { %v4044_v29 = vsel %vm3891_vm2, %v3988_v8, 0.0  ;;  %4219 = vst.msk [vmem:[%s7461_s18 + $0x64] sm:$0xf] %vm4193_vm0, %v5150_v30  ;;  %v5728_v58 = vadd.f32 %v3844_v55, %v7438_v20  ;;  %v5664_v42 = vpop.f32.mrb[30].mxu0  ;;  %v4046_v39 = vsel %vm3891_vm2, %v3989_v38, 0.0  ;;  %v3945_v49 = vsel %vm3891_vm2, %v5725_v5, 0.0 }
 0x2b7   : > { %v3944_v24 = vadd.f32 %v3943_v61, %v3942_v41  ;;  %v4045_v16 = vadd.f32 %v4044_v29, %v4043_v18  ;;  %v3847_v11 = vpop.f32.mrb[31].mxu0  ;;  %v5155_v32 = vpack.c.bf16 %v5727_v17, %v5727_v17  ;;  %4548 = vst.msk [vmem:[%s7448_s16 + $0x74] sm:$0xf] %vm4193_vm0, %v5186_v56  ;;  %v5729_v46 = vadd.f32 %v5664_v42, %v7440_v28  ;;  %s6056_s16 = scalar_lea.vmem %s7682_s30, 32 }
 0x2b8   : > { %v3947_v7 = vsel %vm3891_vm2, %v5728_v58, 0.0  ;;  %v3991_v31 = vmul.f32 %v5728_v58, %v5728_v58  ;;  %v5153_v47 = vpack.c.bf16 %v5728_v58, %v5728_v58  ;;  %v4048_v54 = vsel %vm3891_vm2, %v3990_v4, 0.0  ;;  %p6057_p12 = scmp.ne.s32.totalorder %s7682_s30, %s6056_s16  ;;  %p6064_p2 = scmp.lt.s32.totalorder %s6062_s17, %s6056_s16 }
 0x2b9   : > { %v4047_v44 = vadd.f32 %v4046_v39, %v4045_v16  ;;  %v3946_v20 = vadd.f32 %v3945_v49, %v3944_v24  ;;  %4224 = vst.msk [vmem:[%s7461_s18 + $0x78] sm:$0xf] %vm4193_vm0, %v5155_v32  ;;  %v5730_v62 = vadd.f32 %v3847_v11, %v7442_v27  ;;  %v3993_v13 = vmul.f32 %v5727_v17, %v5727_v17 }
 0x2ba   : > { %v4050_v19 = vsel %vm3891_vm2, %v3991_v31, 0.0  ;;  %4222 = vst.msk [vmem:[%s7461_s18 + $0x70] sm:$0xf] %vm4193_vm0, %v5153_v47  ;;  %v5156_v25 = vpack.c.bf16 %v5729_v46, %v5729_v46  ;;  %v3951_v52 = vsel %vm3891_vm2, %v5727_v17, 0.0  ;;  %v3994_v15 = vmul.f32 %v5729_v46, %v5729_v46  ;;  %p6058_p13 = pnand %p6057_p12, %p6218_p4  ;;  %p6065_p3 = por %p6064_p2, %p6063_p1 }
 0x2bb   : > { %v3948_v9 = vadd.f32 %v3947_v7, %v3946_v20  ;;  %v4049_v22 = vadd.f32 %v4048_v54, %v4047_v44  ;;  %v3949_v43 = vsel %vm3891_vm2, %v5730_v62, 0.0  ;;  %v3992_v35 = vmul.f32 %v5730_v62, %v5730_v62 }
 0x2bc   : > { %v5154_v28 = vpack.c.bf16 %v5730_v62, %v5730_v62  ;;  %4225 = vst.msk [vmem:[%s7461_s18 + $0x7c] sm:$0xf] %vm4193_vm0, %v5156_v25  ;;  %v4054_v50 = vsel %vm3891_vm2, %v3993_v13, 0.0  ;;  %v3953_v2 = vsel %vm3891_vm2, %v5729_v46, 0.0  ;;  %v4056_v45 = vsel %vm3891_vm2, %v3994_v15, 0.0  ;;  %p6059_p0 = pneg %p6058_p13 }
 0x2bd   : > { %v4051_v1 = vadd.f32 %v4050_v19, %v4049_v22  ;;  %v3950_v34 = vadd.f32 %v3949_v43, %v3948_v9  ;;  %v4052_v59 = vsel %vm3891_vm2, %v3992_v35, 0.0 }
 0x2be   : > { %4223 = vst.msk [vmem:[%s7461_s18 + $0x74] sm:$0xf] %vm4193_vm0, %v5154_v28  ;;  %p6066_p5 = pnand %p6065_p3, %p6059_p0 }
 0x2bf   : > { %v3952_v27 = vadd.f32 %v3951_v52, %v3950_v34  ;;  %v4053_v3 = vadd.f32 %v4052_v59, %v4051_v1 }
 0x2c1   : > { %v3954_v23 = vadd.f32 %v3953_v2, %v3952_v27  ;;  %v4055_v37 = vadd.f32 %v4054_v50, %v4053_v3 }
 0x2c3   : > { %v3955_v0 = vrot.slane %v3954_v23, 4  ;;  %v4057_v63 = vadd.f32 %v4056_v45, %v4055_v37 }
 0x2c5   : > { %v3956_v33 = vadd.f32 %v3955_v0, %v3954_v23  ;;  %v4058_v57 = vrot.slane %v4057_v63, 4 }
 0x2c7   : > { %v3957_v51 = vrot.slane %v3956_v33, 2  ;;  %v4059_v40 = vadd.f32 %v4058_v57, %v4057_v63 }
 0x2c9   : > { %v3958_v60 = vadd.f32 %v3957_v51, %v3956_v33  ;;  %v4060_v5 = vrot.slane %v4059_v40, 2 }
 0x2cb   : > { %v3959_v26 = vrot.slane %v3958_v60, 1  ;;  %v4061_v48 = vadd.f32 %v4060_v5, %v4059_v40 }
 0x2cd   : > { %v3960_v36 = vadd.f32 %v3959_v26, %v3958_v60  ;;  %v4062_v6 = vrot.slane %v4061_v48, 1 }
 0x2cf   : > { %3962 = vst.msk [vmem:[%s312_s23] sm:$0x1] %vm3961_vm3, %v3960_v36  ;;  %v4063_v38 = vadd.f32 %v4062_v6, %v4061_v48 }
 0x2d1   : > { %4064 = vst.msk [vmem:[%s312_s23 + $0x1] sm:$0x1] %vm3961_vm3, %v4063_v38 }
 0x2d2   : > { %6069 = shalt.err (!%p6066_p5)
}
 0x2d3   : > { %s6070_s18 = scalar_lea.hbm %s7680_s15, 32  ;;  %s6074_s22 = scalar_lea.hbm %s7734_s7, 64 }
 0x2d4   : > { %p6071_p6 = scmp.ne.s32.totalorder %s7680_s15, %s6070_s18  ;;  %p6075_p10 = scmp.lt.u32.totalorder %s7680_s15, %s7734_s7 }
 0x2d5   : > { %p6076_p11 = scmp.lt.u32.totalorder %s6074_s22, %s6070_s18  ;;  %p6078_p13 = scmp.lt.u32.totalorder %s6070_s18, %s7680_s15 }
 0x2d6   : > { %p6072_p7 = pnand %p6071_p6, %p6218_p4 }
 0x2d7   : > { %p6077_p12 = por %p6076_p11, %p6075_p10 }
 0x2d8   : > { %p6073_p9 = pneg %p6072_p7 }
 0x2d9   : > { %p6079_p0 = por %p6078_p13, %p6077_p12 }
 0x2db   : > { %p6080_p1 = pnand %p6079_p0, %p6073_p9 }
 0x2dd   : > { %6083 = shalt.err (!%p6080_p1)
}
 0x2de   : > { %5965 = dma.vmem_to_hbm [thread:$0]  (%p6218_p4), %s7682_s30, 32, %s7680_s15, %s4570_s12  }
 0x2df PF: > { %p5971_p2 = scmp.ge.s32.totalorder %s6134_s29, 2  ;;  %s4628_s10 = sand.u32 1, %s6114_s24  }
 0x2e0   : > { %s4629_s16 = scalar_lea.sflag [#allocation4], %s4628_s10 }
 0x2e1   : > { %p5968_p3 = pnand %p5971_p2, %p6225_p8 }
 0x2e3   : > { %6109 = dma.done.wait (!%p5968_p3), %s4629_s16, 32  }
 0x2e4   : > { %6111 = vsyncadd (!%p5968_p3), %s4629_s16, 4294967264  ;;  %s21_s29 = sadd.s32 1, %s6134_s29   ;;  %s7808_s24 = smov %s6118_s25 }
 0x2e5   : > { %p18_p5 = scmp.ge.s32.totalorder %s21_s29, 4   ;;  %s7809_s25 = smov %s6122_s26 }
 0x2e6   : > { %s7810_s26 = smov %s6231_s14  ;;  %s7811_s27 = smov %s6130_s28 }
 0x2e7   : > { %s7812_s28 = smov %s7814_s9  ;;  %20 = sbr.rel (!%p18_p5) target bundleno = 4 (0x4), region = 114 }
 0x2ee   :  { %4634 = vsyncpa [#allocation4], 1 }
 0x2ef   :  { %4636 = vsyncpa [#allocation4 + $0x1], 1 }

</bundles_post_ra>
